<compile_context>
chip_gen: v6e
topology: v6e:2x2x1
jax: 0.10.0
libtpu: 0.0.40
codegen_flags: <defaults>
</compile_context>

<pallas_src>
import functools

import jax
import jax.numpy as jnp
from jax import lax
from jax.experimental import pallas as pl
from jax.experimental.pallas import tpu as pltpu

NUM_POS = 2
NUM_NEG = 18
NUM_VECS = 22  # 1 query + 2 pos + 18 neg + 1 other_neg


def _ceil_div(a, b):
    return -(-a // b)


def _round_up(a, b):
    return _ceil_div(a, b) * b


def _quad_loss_kernel(x_ref, out_ref, *, batch, tile_b, margin_dis, margin_sec,
                      mask_tail, use_mxu_reduce):
    """One grid step = `tile_b` batch rows of the native (B, 22, D) tensor."""
    b = pl.program_id(0)
    feat = x_ref.shape[-1]

    if use_mxu_reduce:
        # Reduce over the feature (lane) axis on the MXU instead of the XLU.
        ones = jnp.ones((feat, 8), jnp.float32)

    def dist(u, v):
        """Per-row Euclidean distance: (TB, D), (TB, D) -> (TB, 1)."""
        d = u - v
        sq = d * d
        if use_mxu_reduce:
            s = jnp.dot(sq, ones, preferred_element_type=jnp.float32,
                        precision=lax.Precision.HIGHEST)[:, 0:1]
        else:
            s = jnp.sum(sq, axis=-1, keepdims=True)
        return jnp.sqrt(s)

    def role(k):
        """Role-vector k as an f32 (TB, D) slab (lazy per-role cast)."""
        return x_ref[:, k, :].astype(jnp.float32)

    q = role(0)
    oth = role(NUM_VECS - 1)

    # Best (minimum) query <-> positive distance.
    best_pos = jnp.minimum(dist(q, role(1)), dist(q, role(2)))         # (TB, 1)

    trip_acc = jnp.zeros((tile_b, 1), jnp.float32)
    sec_acc = jnp.zeros((tile_b, 1), jnp.float32)
    for i in range(NUM_NEG):
        neg_i = role(3 + i)
        trip_acc = trip_acc + jnp.maximum(best_pos - dist(q, neg_i) + margin_dis, 0.0)
        sec_acc = sec_acc + jnp.maximum(best_pos - dist(neg_i, oth) + margin_sec, 0.0)

    def write(trip_v, sec_v):
        # Full (8,128) f32 tile: row 0 carries the trip partial, rows 1..7 the
        # second-loss partial -> one unmasked lane-dense store (no concat).
        row_id = lax.broadcasted_iota(jnp.int32, (8, 128), 0)
        out_ref[0, :, :] = jnp.where(row_id == 0, jnp.sum(trip_v), jnp.sum(sec_v))

    if mask_tail:
        # Only the last block can contain out-of-range (garbage) rows.
        last = pl.num_programs(0) - 1

        @pl.when(b == last)
        def _():
            ridx = b * tile_b + lax.broadcasted_iota(jnp.int32, (tile_b, 1), 0)
            valid = ridx < batch
            write(jnp.where(valid, trip_acc, 0.0),
                  jnp.where(valid, sec_acc, 0.0))

        @pl.when(b != last)
        def _():
            write(trip_acc, sec_acc)
    else:
        write(trip_acc, sec_acc)


def _pick_tiling(batch, feat_dim, dtype):
    """Batch tile, number of blocks and VMEM limit, sized from this chip's VMEM."""
    in_bytes = jnp.dtype(dtype).itemsize
    try:
        vmem_cap = int(pltpu.get_tpu_info().vmem_capacity_bytes)
    except Exception:
        vmem_cap = 64 * 1024 * 1024          # conservative (v7x-sized) default
    # Working-set budget ~1/3 of VMEM: double-buffered input block (22 sublanes
    # padded to 24) + a handful of f32 (TB, D) temporaries per batch row.
    budget = vmem_cap // 3
    per_row = 2 * 24 * feat_dim * in_bytes + 8 * feat_dim * 4
    tb = max(8, min(512, (budget // per_row) // 8 * 8))
    if vmem_cap <= 64 * 1024 * 1024:         # v7x-class part: keep extra headroom
        tb = min(tb, 256)
    tb = max(1, min(tb, batch))              # block must not exceed the batch axis
    # Use both TensorCores (v7x megacore) when the batch allows >= 2 blocks.
    if batch >= 16 and _ceil_div(batch, tb) == 1:
        tb = min(tb, _round_up(_ceil_div(batch, 2), 8))
    nb = _ceil_div(batch, tb)
    vmem_limit = int(min(vmem_cap * 3 // 4, 96 * 1024 * 1024))
    return tb, nb, vmem_limit


def lazy_quadruplet_loss(x, margin_dis=0.5, margin_sec=0.2):
    """x: (B, 22, D) -> (loss, (trip_loss, second_loss)), matching the PyTorch module."""
    assert x.ndim == 3 and x.shape[1] == NUM_VECS
    B, _, D = x.shape

    tb, nb, vmem_limit = _pick_tiling(B, D, x.dtype)

    kernel = functools.partial(
        _quad_loss_kernel,
        batch=B,
        tile_b=tb,
        margin_dis=float(margin_dis),
        margin_sec=float(margin_sec),
        mask_tail=(B % tb != 0),
        use_mxu_reduce=(D % 128 == 0),
    )

    partials = pl.pallas_call(
        kernel,
        out_shape=jax.ShapeDtypeStruct((nb, 8, 128), jnp.float32),
        grid_spec=pltpu.PrefetchScalarGridSpec(
            num_scalar_prefetch=0,
            grid=(nb,),
            # Native layout: axes 22 and D are taken in full, so the (8,128)
            # rule is satisfied and no wrapper-side transpose/pad is needed.
            in_specs=[pl.BlockSpec((tb, NUM_VECS, D), lambda b: (b, 0, 0))],
            out_specs=pl.BlockSpec((1, 8, 128), lambda b: (b, 0, 0)),
        ),
        compiler_params=pltpu.CompilerParams(
            # Independent partial sums per block -> safe to shard across TCs.
            dimension_semantics=("parallel",),
            vmem_limit_bytes=vmem_limit,
        ),
    )(x)

    denom = jnp.float32(B * NUM_NEG)
    trip_loss = jnp.sum(partials[:, 0, 0]) / denom
    second_loss = jnp.sum(partials[:, 1, 0]) / denom
    loss = trip_loss + second_loss
    return loss, (trip_loss, second_loss)


def _reference(x, margin_dis, margin_sec):
    """Pure-JAX reference mirroring the PyTorch module exactly."""
    x = x.astype(jnp.float32)
    q = x[:, 0:1, :]
    pos = x[:, 1:3, :]
    neg = x[:, 3:21, :]
    oth = x[:, 21:, :]
    d_pos = jnp.linalg.norm(q - pos, axis=2)                  # (B, 2)
    best_pos = jnp.min(d_pos, axis=1, keepdims=True)          # (B, 1)
    d_q_neg = jnp.linalg.norm(q - neg, axis=2)                # (B, 18)
    d_neg_oth = jnp.linalg.norm(neg - oth, axis=2)            # (B, 18)
    trip = jnp.mean(jnp.maximum(best_pos - d_q_neg + margin_dis, 0.0))
    sec = jnp.mean(jnp.maximum(best_pos - d_neg_oth + margin_sec, 0.0))
    return trip + sec, (trip, sec)


if __name__ == "__main__":
    key = jax.random.PRNGKey(0)
    B, D = 2, 256
    margin_dis, margin_sec = 0.5, 0.2  # deterministic constructor args

    x = jax.random.normal(key, (B, NUM_VECS, D), dtype=jnp.float32)

    loss, (trip, sec) = lazy_quadruplet_loss(x, margin_dis, margin_sec)
    jax.block_until_ready((loss, trip, sec))

    ref_loss, (ref_trip, ref_sec) = _reference(x, margin_dis, margin_sec)
    assert jnp.allclose(loss, ref_loss, rtol=1e-5, atol=1e-5), (loss, ref_loss)
    assert jnp.allclose(trip, ref_trip, rtol=1e-5, atol=1e-5), (trip, ref_trip)
    assert jnp.allclose(sec, ref_sec, rtol=1e-5, atol=1e-5), (sec, ref_sec)

    print("KERNEL_OK")
</pallas_src>

<mosaic_0001>
module attributes {stable_mosaic.version = 11 : i64} {
  func.func @_quad_loss_kernel(%arg0: i32, %arg1: memref<2x22x256xf32, #tpu.memory_space<vmem>>, %arg2: memref<1x8x128xf32, #tpu.memory_space<vmem>>) attributes {dimension_semantics = [#tpu.dimension_semantics<parallel>], iteration_bounds = array<i64: 1>, scalar_prefetch = 0 : i64, scratch_operands = 0 : i64, tpu.core_type = #tpu.core_type<tc>, window_params = [{transform_indices = @transform_0, window_bounds = array<i64: 2, 22, 256>}, {transform_indices = @transform_1, window_bounds = array<i64: 1, 8, 128>}]} {
    %cst = arith.constant 1.000000e+00 : f32
    %0 = vector.broadcast %cst : f32 to vector<256x8xf32>
    %c0 = arith.constant 0 : index
    %c0_0 = arith.constant 0 : index
    %c0_1 = arith.constant 0 : index
    %1 = vector.load %arg1[%c0, %c0_0, %c0_1] : memref<2x22x256xf32, #tpu.memory_space<vmem>>, vector<2x1x256xf32>
    %2 = vector.shape_cast %1 : vector<2x1x256xf32> to vector<2x256xf32>
    %c0_2 = arith.constant 0 : index
    %c21 = arith.constant 21 : index
    %c0_3 = arith.constant 0 : index
    %3 = vector.load %arg1[%c0_2, %c21, %c0_3] : memref<2x22x256xf32, #tpu.memory_space<vmem>>, vector<2x1x256xf32>
    %4 = vector.shape_cast %3 : vector<2x1x256xf32> to vector<2x256xf32>
    %c0_4 = arith.constant 0 : index
    %c1 = arith.constant 1 : index
    %c0_5 = arith.constant 0 : index
    %5 = vector.load %arg1[%c0_4, %c1, %c0_5] : memref<2x22x256xf32, #tpu.memory_space<vmem>>, vector<2x1x256xf32>
    %6 = vector.shape_cast %5 : vector<2x1x256xf32> to vector<2x256xf32>
    %7 = arith.subf %2, %6 : vector<2x256xf32>
    %8 = arith.mulf %7, %7 : vector<2x256xf32>
    %cst_6 = arith.constant dense<0.000000e+00> : vector<2x8xf32>
    %9 = tpu.matmul %8, %0, %cst_6 {dimension_numbers = #tpu.dot_dimension_numbers<[1], [0], [0], [1], [0, 0, 1, 1], [], []>, precision = #tpu.contract_precision<fp32>} : vector<2x256xf32>, vector<256x8xf32>, vector<2x8xf32> -> vector<2x8xf32>
    %10 = vector.extract_strided_slice %9 {offsets = [0, 0], sizes = [2, 1], strides = [1, 1]} : vector<2x8xf32> to vector<2x1xf32>
    %11 = math.sqrt %10 : vector<2x1xf32>
    %c0_7 = arith.constant 0 : index
    %c2 = arith.constant 2 : index
    %c0_8 = arith.constant 0 : index
    %12 = vector.load %arg1[%c0_7, %c2, %c0_8] : memref<2x22x256xf32, #tpu.memory_space<vmem>>, vector<2x1x256xf32>
    %13 = vector.shape_cast %12 : vector<2x1x256xf32> to vector<2x256xf32>
    %14 = arith.subf %2, %13 : vector<2x256xf32>
    %15 = arith.mulf %14, %14 : vector<2x256xf32>
    %cst_9 = arith.constant dense<0.000000e+00> : vector<2x8xf32>
    %16 = tpu.matmul %15, %0, %cst_9 {dimension_numbers = #tpu.dot_dimension_numbers<[1], [0], [0], [1], [0, 0, 1, 1], [], []>, precision = #tpu.contract_precision<fp32>} : vector<2x256xf32>, vector<256x8xf32>, vector<2x8xf32> -> vector<2x8xf32>
    %17 = vector.extract_strided_slice %16 {offsets = [0, 0], sizes = [2, 1], strides = [1, 1]} : vector<2x8xf32> to vector<2x1xf32>
    %18 = math.sqrt %17 : vector<2x1xf32>
    %19 = arith.minimumf %11, %18 : vector<2x1xf32>
    %cst_10 = arith.constant 0.000000e+00 : f32
    %20 = vector.broadcast %cst_10 : f32 to vector<2x1xf32>
    %cst_11 = arith.constant 0.000000e+00 : f32
    %21 = vector.broadcast %cst_11 : f32 to vector<2x1xf32>
    %c0_12 = arith.constant 0 : index
    %c3 = arith.constant 3 : index
    %c0_13 = arith.constant 0 : index
    %22 = vector.load %arg1[%c0_12, %c3, %c0_13] : memref<2x22x256xf32, #tpu.memory_space<vmem>>, vector<2x1x256xf32>
    %23 = vector.shape_cast %22 : vector<2x1x256xf32> to vector<2x256xf32>
    %24 = arith.subf %2, %23 : vector<2x256xf32>
    %25 = arith.mulf %24, %24 : vector<2x256xf32>
    %cst_14 = arith.constant dense<0.000000e+00> : vector<2x8xf32>
    %26 = tpu.matmul %25, %0, %cst_14 {dimension_numbers = #tpu.dot_dimension_numbers<[1], [0], [0], [1], [0, 0, 1, 1], [], []>, precision = #tpu.contract_precision<fp32>} : vector<2x256xf32>, vector<256x8xf32>, vector<2x8xf32> -> vector<2x8xf32>
    %27 = vector.extract_strided_slice %26 {offsets = [0, 0], sizes = [2, 1], strides = [1, 1]} : vector<2x8xf32> to vector<2x1xf32>
    %28 = math.sqrt %27 : vector<2x1xf32>
    %29 = arith.subf %19, %28 : vector<2x1xf32>
    %cst_15 = arith.constant 5.000000e-01 : f32
    %30 = vector.broadcast %cst_15 : f32 to vector<2x1xf32>
    %31 = arith.addf %29, %30 : vector<2x1xf32>
    %cst_16 = arith.constant 0.000000e+00 : f32
    %32 = vector.broadcast %cst_16 : f32 to vector<2x1xf32>
    %33 = arith.maximumf %31, %32 : vector<2x1xf32>
    %34 = arith.addf %20, %33 : vector<2x1xf32>
    %35 = arith.subf %23, %4 : vector<2x256xf32>
    %36 = arith.mulf %35, %35 : vector<2x256xf32>
    %cst_17 = arith.constant dense<0.000000e+00> : vector<2x8xf32>
    %37 = tpu.matmul %36, %0, %cst_17 {dimension_numbers = #tpu.dot_dimension_numbers<[1], [0], [0], [1], [0, 0, 1, 1], [], []>, precision = #tpu.contract_precision<fp32>} : vector<2x256xf32>, vector<256x8xf32>, vector<2x8xf32> -> vector<2x8xf32>
    %38 = vector.extract_strided_slice %37 {offsets = [0, 0], sizes = [2, 1], strides = [1, 1]} : vector<2x8xf32> to vector<2x1xf32>
    %39 = math.sqrt %38 : vector<2x1xf32>
    %40 = arith.subf %19, %39 : vector<2x1xf32>
    %cst_18 = arith.constant 2.000000e-01 : f32
    %41 = vector.broadcast %cst_18 : f32 to vector<2x1xf32>
    %42 = arith.addf %40, %41 : vector<2x1xf32>
    %cst_19 = arith.constant 0.000000e+00 : f32
    %43 = vector.broadcast %cst_19 : f32 to vector<2x1xf32>
    %44 = arith.maximumf %42, %43 : vector<2x1xf32>
    %45 = arith.addf %21, %44 : vector<2x1xf32>
    %c0_20 = arith.constant 0 : index
    %c4 = arith.constant 4 : index
    %c0_21 = arith.constant 0 : index
    %46 = vector.load %arg1[%c0_20, %c4, %c0_21] : memref<2x22x256xf32, #tpu.memory_space<vmem>>, vector<2x1x256xf32>
    %47 = vector.shape_cast %46 : vector<2x1x256xf32> to vector<2x256xf32>
    %48 = arith.subf %2, %47 : vector<2x256xf32>
    %49 = arith.mulf %48, %48 : vector<2x256xf32>
    %cst_22 = arith.constant dense<0.000000e+00> : vector<2x8xf32>
    %50 = tpu.matmul %49, %0, %cst_22 {dimension_numbers = #tpu.dot_dimension_numbers<[1], [0], [0], [1], [0, 0, 1, 1], [], []>, precision = #tpu.contract_precision<fp32>} : vector<2x256xf32>, vector<256x8xf32>, vector<2x8xf32> -> vector<2x8xf32>
    %51 = vector.extract_strided_slice %50 {offsets = [0, 0], sizes = [2, 1], strides = [1, 1]} : vector<2x8xf32> to vector<2x1xf32>
    %52 = math.sqrt %51 : vector<2x1xf32>
    %53 = arith.subf %19, %52 : vector<2x1xf32>
    %cst_23 = arith.constant 5.000000e-01 : f32
    %54 = vector.broadcast %cst_23 : f32 to vector<2x1xf32>
    %55 = arith.addf %53, %54 : vector<2x1xf32>
    %cst_24 = arith.constant 0.000000e+00 : f32
    %56 = vector.broadcast %cst_24 : f32 to vector<2x1xf32>
    %57 = arith.maximumf %55, %56 : vector<2x1xf32>
    %58 = arith.addf %34, %57 : vector<2x1xf32>
    %59 = arith.subf %47, %4 : vector<2x256xf32>
    %60 = arith.mulf %59, %59 : vector<2x256xf32>
    %cst_25 = arith.constant dense<0.000000e+00> : vector<2x8xf32>
    %61 = tpu.matmul %60, %0, %cst_25 {dimension_numbers = #tpu.dot_dimension_numbers<[1], [0], [0], [1], [0, 0, 1, 1], [], []>, precision = #tpu.contract_precision<fp32>} : vector<2x256xf32>, vector<256x8xf32>, vector<2x8xf32> -> vector<2x8xf32>
    %62 = vector.extract_strided_slice %61 {offsets = [0, 0], sizes = [2, 1], strides = [1, 1]} : vector<2x8xf32> to vector<2x1xf32>
    %63 = math.sqrt %62 : vector<2x1xf32>
    %64 = arith.subf %19, %63 : vector<2x1xf32>
    %cst_26 = arith.constant 2.000000e-01 : f32
    %65 = vector.broadcast %cst_26 : f32 to vector<2x1xf32>
    %66 = arith.addf %64, %65 : vector<2x1xf32>
    %cst_27 = arith.constant 0.000000e+00 : f32
    %67 = vector.broadcast %cst_27 : f32 to vector<2x1xf32>
    %68 = arith.maximumf %66, %67 : vector<2x1xf32>
    %69 = arith.addf %45, %68 : vector<2x1xf32>
    %c0_28 = arith.constant 0 : index
    %c5 = arith.constant 5 : index
    %c0_29 = arith.constant 0 : index
    %70 = vector.load %arg1[%c0_28, %c5, %c0_29] : memref<2x22x256xf32, #tpu.memory_space<vmem>>, vector<2x1x256xf32>
    %71 = vector.shape_cast %70 : vector<2x1x256xf32> to vector<2x256xf32>
    %72 = arith.subf %2, %71 : vector<2x256xf32>
    %73 = arith.mulf %72, %72 : vector<2x256xf32>
    %cst_30 = arith.constant dense<0.000000e+00> : vector<2x8xf32>
    %74 = tpu.matmul %73, %0, %cst_30 {dimension_numbers = #tpu.dot_dimension_numbers<[1], [0], [0], [1], [0, 0, 1, 1], [], []>, precision = #tpu.contract_precision<fp32>} : vector<2x256xf32>, vector<256x8xf32>, vector<2x8xf32> -> vector<2x8xf32>
    %75 = vector.extract_strided_slice %74 {offsets = [0, 0], sizes = [2, 1], strides = [1, 1]} : vector<2x8xf32> to vector<2x1xf32>
    %76 = math.sqrt %75 : vector<2x1xf32>
    %77 = arith.subf %19, %76 : vector<2x1xf32>
    %cst_31 = arith.constant 5.000000e-01 : f32
    %78 = vector.broadcast %cst_31 : f32 to vector<2x1xf32>
    %79 = arith.addf %77, %78 : vector<2x1xf32>
    %cst_32 = arith.constant 0.000000e+00 : f32
    %80 = vector.broadcast %cst_32 : f32 to vector<2x1xf32>
    %81 = arith.maximumf %79, %80 : vector<2x1xf32>
    %82 = arith.addf %58, %81 : vector<2x1xf32>
    %83 = arith.subf %71, %4 : vector<2x256xf32>
    %84 = arith.mulf %83, %83 : vector<2x256xf32>
    %cst_33 = arith.constant dense<0.000000e+00> : vector<2x8xf32>
    %85 = tpu.matmul %84, %0, %cst_33 {dimension_numbers = #tpu.dot_dimension_numbers<[1], [0], [0], [1], [0, 0, 1, 1], [], []>, precision = #tpu.contract_precision<fp32>} : vector<2x256xf32>, vector<256x8xf32>, vector<2x8xf32> -> vector<2x8xf32>
    %86 = vector.extract_strided_slice %85 {offsets = [0, 0], sizes = [2, 1], strides = [1, 1]} : vector<2x8xf32> to vector<2x1xf32>
    %87 = math.sqrt %86 : vector<2x1xf32>
    %88 = arith.subf %19, %87 : vector<2x1xf32>
    %cst_34 = arith.constant 2.000000e-01 : f32
    %89 = vector.broadcast %cst_34 : f32 to vector<2x1xf32>
    %90 = arith.addf %88, %89 : vector<2x1xf32>
    %cst_35 = arith.constant 0.000000e+00 : f32
    %91 = vector.broadcast %cst_35 : f32 to vector<2x1xf32>
    %92 = arith.maximumf %90, %91 : vector<2x1xf32>
    %93 = arith.addf %69, %92 : vector<2x1xf32>
    %c0_36 = arith.constant 0 : index
    %c6 = arith.constant 6 : index
    %c0_37 = arith.constant 0 : index
    %94 = vector.load %arg1[%c0_36, %c6, %c0_37] : memref<2x22x256xf32, #tpu.memory_space<vmem>>, vector<2x1x256xf32>
    %95 = vector.shape_cast %94 : vector<2x1x256xf32> to vector<2x256xf32>
    %96 = arith.subf %2, %95 : vector<2x256xf32>
    %97 = arith.mulf %96, %96 : vector<2x256xf32>
    %cst_38 = arith.constant dense<0.000000e+00> : vector<2x8xf32>
    %98 = tpu.matmul %97, %0, %cst_38 {dimension_numbers = #tpu.dot_dimension_numbers<[1], [0], [0], [1], [0, 0, 1, 1], [], []>, precision = #tpu.contract_precision<fp32>} : vector<2x256xf32>, vector<256x8xf32>, vector<2x8xf32> -> vector<2x8xf32>
    %99 = vector.extract_strided_slice %98 {offsets = [0, 0], sizes = [2, 1], strides = [1, 1]} : vector<2x8xf32> to vector<2x1xf32>
    %100 = math.sqrt %99 : vector<2x1xf32>
    %101 = arith.subf %19, %100 : vector<2x1xf32>
    %cst_39 = arith.constant 5.000000e-01 : f32
    %102 = vector.broadcast %cst_39 : f32 to vector<2x1xf32>
    %103 = arith.addf %101, %102 : vector<2x1xf32>
    %cst_40 = arith.constant 0.000000e+00 : f32
    %104 = vector.broadcast %cst_40 : f32 to vector<2x1xf32>
    %105 = arith.maximumf %103, %104 : vector<2x1xf32>
    %106 = arith.addf %82, %105 : vector<2x1xf32>
    %107 = arith.subf %95, %4 : vector<2x256xf32>
    %108 = arith.mulf %107, %107 : vector<2x256xf32>
    %cst_41 = arith.constant dense<0.000000e+00> : vector<2x8xf32>
    %109 = tpu.matmul %108, %0, %cst_41 {dimension_numbers = #tpu.dot_dimension_numbers<[1], [0], [0], [1], [0, 0, 1, 1], [], []>, precision = #tpu.contract_precision<fp32>} : vector<2x256xf32>, vector<256x8xf32>, vector<2x8xf32> -> vector<2x8xf32>
    %110 = vector.extract_strided_slice %109 {offsets = [0, 0], sizes = [2, 1], strides = [1, 1]} : vector<2x8xf32> to vector<2x1xf32>
    %111 = math.sqrt %110 : vector<2x1xf32>
    %112 = arith.subf %19, %111 : vector<2x1xf32>
    %cst_42 = arith.constant 2.000000e-01 : f32
    %113 = vector.broadcast %cst_42 : f32 to vector<2x1xf32>
    %114 = arith.addf %112, %113 : vector<2x1xf32>
    %cst_43 = arith.constant 0.000000e+00 : f32
    %115 = vector.broadcast %cst_43 : f32 to vector<2x1xf32>
    %116 = arith.maximumf %114, %115 : vector<2x1xf32>
    %117 = arith.addf %93, %116 : vector<2x1xf32>
    %c0_44 = arith.constant 0 : index
    %c7 = arith.constant 7 : index
    %c0_45 = arith.constant 0 : index
    %118 = vector.load %arg1[%c0_44, %c7, %c0_45] : memref<2x22x256xf32, #tpu.memory_space<vmem>>, vector<2x1x256xf32>
    %119 = vector.shape_cast %118 : vector<2x1x256xf32> to vector<2x256xf32>
    %120 = arith.subf %2, %119 : vector<2x256xf32>
    %121 = arith.mulf %120, %120 : vector<2x256xf32>
    %cst_46 = arith.constant dense<0.000000e+00> : vector<2x8xf32>
    %122 = tpu.matmul %121, %0, %cst_46 {dimension_numbers = #tpu.dot_dimension_numbers<[1], [0], [0], [1], [0, 0, 1, 1], [], []>, precision = #tpu.contract_precision<fp32>} : vector<2x256xf32>, vector<256x8xf32>, vector<2x8xf32> -> vector<2x8xf32>
    %123 = vector.extract_strided_slice %122 {offsets = [0, 0], sizes = [2, 1], strides = [1, 1]} : vector<2x8xf32> to vector<2x1xf32>
    %124 = math.sqrt %123 : vector<2x1xf32>
    %125 = arith.subf %19, %124 : vector<2x1xf32>
    %cst_47 = arith.constant 5.000000e-01 : f32
    %126 = vector.broadcast %cst_47 : f32 to vector<2x1xf32>
    %127 = arith.addf %125, %126 : vector<2x1xf32>
    %cst_48 = arith.constant 0.000000e+00 : f32
    %128 = vector.broadcast %cst_48 : f32 to vector<2x1xf32>
    %129 = arith.maximumf %127, %128 : vector<2x1xf32>
    %130 = arith.addf %106, %129 : vector<2x1xf32>
    %131 = arith.subf %119, %4 : vector<2x256xf32>
    %132 = arith.mulf %131, %131 : vector<2x256xf32>
    %cst_49 = arith.constant dense<0.000000e+00> : vector<2x8xf32>
    %133 = tpu.matmul %132, %0, %cst_49 {dimension_numbers = #tpu.dot_dimension_numbers<[1], [0], [0], [1], [0, 0, 1, 1], [], []>, precision = #tpu.contract_precision<fp32>} : vector<2x256xf32>, vector<256x8xf32>, vector<2x8xf32> -> vector<2x8xf32>
    %134 = vector.extract_strided_slice %133 {offsets = [0, 0], sizes = [2, 1], strides = [1, 1]} : vector<2x8xf32> to vector<2x1xf32>
    %135 = math.sqrt %134 : vector<2x1xf32>
    %136 = arith.subf %19, %135 : vector<2x1xf32>
    %cst_50 = arith.constant 2.000000e-01 : f32
    %137 = vector.broadcast %cst_50 : f32 to vector<2x1xf32>
    %138 = arith.addf %136, %137 : vector<2x1xf32>
    %cst_51 = arith.constant 0.000000e+00 : f32
    %139 = vector.broadcast %cst_51 : f32 to vector<2x1xf32>
    %140 = arith.maximumf %138, %139 : vector<2x1xf32>
    %141 = arith.addf %117, %140 : vector<2x1xf32>
    %c0_52 = arith.constant 0 : index
    %c8 = arith.constant 8 : index
    %c0_53 = arith.constant 0 : index
    %142 = vector.load %arg1[%c0_52, %c8, %c0_53] : memref<2x22x256xf32, #tpu.memory_space<vmem>>, vector<2x1x256xf32>
    %143 = vector.shape_cast %142 : vector<2x1x256xf32> to vector<2x256xf32>
    %144 = arith.subf %2, %143 : vector<2x256xf32>
    %145 = arith.mulf %144, %144 : vector<2x256xf32>
    %cst_54 = arith.constant dense<0.000000e+00> : vector<2x8xf32>
    %146 = tpu.matmul %145, %0, %cst_54 {dimension_numbers = #tpu.dot_dimension_numbers<[1], [0], [0], [1], [0, 0, 1, 1], [], []>, precision = #tpu.contract_precision<fp32>} : vector<2x256xf32>, vector<256x8xf32>, vector<2x8xf32> -> vector<2x8xf32>
    %147 = vector.extract_strided_slice %146 {offsets = [0, 0], sizes = [2, 1], strides = [1, 1]} : vector<2x8xf32> to vector<2x1xf32>
    %148 = math.sqrt %147 : vector<2x1xf32>
    %149 = arith.subf %19, %148 : vector<2x1xf32>
    %cst_55 = arith.constant 5.000000e-01 : f32
    %150 = vector.broadcast %cst_55 : f32 to vector<2x1xf32>
    %151 = arith.addf %149, %150 : vector<2x1xf32>
    %cst_56 = arith.constant 0.000000e+00 : f32
    %152 = vector.broadcast %cst_56 : f32 to vector<2x1xf32>
    %153 = arith.maximumf %151, %152 : vector<2x1xf32>
    %154 = arith.addf %130, %153 : vector<2x1xf32>
    %155 = arith.subf %143, %4 : vector<2x256xf32>
    %156 = arith.mulf %155, %155 : vector<2x256xf32>
    %cst_57 = arith.constant dense<0.000000e+00> : vector<2x8xf32>
    %157 = tpu.matmul %156, %0, %cst_57 {dimension_numbers = #tpu.dot_dimension_numbers<[1], [0], [0], [1], [0, 0, 1, 1], [], []>, precision = #tpu.contract_precision<fp32>} : vector<2x256xf32>, vector<256x8xf32>, vector<2x8xf32> -> vector<2x8xf32>
    %158 = vector.extract_strided_slice %157 {offsets = [0, 0], sizes = [2, 1], strides = [1, 1]} : vector<2x8xf32> to vector<2x1xf32>
    %159 = math.sqrt %158 : vector<2x1xf32>
    %160 = arith.subf %19, %159 : vector<2x1xf32>
    %cst_58 = arith.constant 2.000000e-01 : f32
    %161 = vector.broadcast %cst_58 : f32 to vector<2x1xf32>
    %162 = arith.addf %160, %161 : vector<2x1xf32>
    %cst_59 = arith.constant 0.000000e+00 : f32
    %163 = vector.broadcast %cst_59 : f32 to vector<2x1xf32>
    %164 = arith.maximumf %162, %163 : vector<2x1xf32>
    %165 = arith.addf %141, %164 : vector<2x1xf32>
    %c0_60 = arith.constant 0 : index
    %c9 = arith.constant 9 : index
    %c0_61 = arith.constant 0 : index
    %166 = vector.load %arg1[%c0_60, %c9, %c0_61] : memref<2x22x256xf32, #tpu.memory_space<vmem>>, vector<2x1x256xf32>
    %167 = vector.shape_cast %166 : vector<2x1x256xf32> to vector<2x256xf32>
    %168 = arith.subf %2, %167 : vector<2x256xf32>
    %169 = arith.mulf %168, %168 : vector<2x256xf32>
    %cst_62 = arith.constant dense<0.000000e+00> : vector<2x8xf32>
    %170 = tpu.matmul %169, %0, %cst_62 {dimension_numbers = #tpu.dot_dimension_numbers<[1], [0], [0], [1], [0, 0, 1, 1], [], []>, precision = #tpu.contract_precision<fp32>} : vector<2x256xf32>, vector<256x8xf32>, vector<2x8xf32> -> vector<2x8xf32>
    %171 = vector.extract_strided_slice %170 {offsets = [0, 0], sizes = [2, 1], strides = [1, 1]} : vector<2x8xf32> to vector<2x1xf32>
    %172 = math.sqrt %171 : vector<2x1xf32>
    %173 = arith.subf %19, %172 : vector<2x1xf32>
    %cst_63 = arith.constant 5.000000e-01 : f32
    %174 = vector.broadcast %cst_63 : f32 to vector<2x1xf32>
    %175 = arith.addf %173, %174 : vector<2x1xf32>
    %cst_64 = arith.constant 0.000000e+00 : f32
    %176 = vector.broadcast %cst_64 : f32 to vector<2x1xf32>
    %177 = arith.maximumf %175, %176 : vector<2x1xf32>
    %178 = arith.addf %154, %177 : vector<2x1xf32>
    %179 = arith.subf %167, %4 : vector<2x256xf32>
    %180 = arith.mulf %179, %179 : vector<2x256xf32>
    %cst_65 = arith.constant dense<0.000000e+00> : vector<2x8xf32>
    %181 = tpu.matmul %180, %0, %cst_65 {dimension_numbers = #tpu.dot_dimension_numbers<[1], [0], [0], [1], [0, 0, 1, 1], [], []>, precision = #tpu.contract_precision<fp32>} : vector<2x256xf32>, vector<256x8xf32>, vector<2x8xf32> -> vector<2x8xf32>
    %182 = vector.extract_strided_slice %181 {offsets = [0, 0], sizes = [2, 1], strides = [1, 1]} : vector<2x8xf32> to vector<2x1xf32>
    %183 = math.sqrt %182 : vector<2x1xf32>
    %184 = arith.subf %19, %183 : vector<2x1xf32>
    %cst_66 = arith.constant 2.000000e-01 : f32
    %185 = vector.broadcast %cst_66 : f32 to vector<2x1xf32>
    %186 = arith.addf %184, %185 : vector<2x1xf32>
    %cst_67 = arith.constant 0.000000e+00 : f32
    %187 = vector.broadcast %cst_67 : f32 to vector<2x1xf32>
    %188 = arith.maximumf %186, %187 : vector<2x1xf32>
    %189 = arith.addf %165, %188 : vector<2x1xf32>
    %c0_68 = arith.constant 0 : index
    %c10 = arith.constant 10 : index
    %c0_69 = arith.constant 0 : index
    %190 = vector.load %arg1[%c0_68, %c10, %c0_69] : memref<2x22x256xf32, #tpu.memory_space<vmem>>, vector<2x1x256xf32>
    %191 = vector.shape_cast %190 : vector<2x1x256xf32> to vector<2x256xf32>
    %192 = arith.subf %2, %191 : vector<2x256xf32>
    %193 = arith.mulf %192, %192 : vector<2x256xf32>
    %cst_70 = arith.constant dense<0.000000e+00> : vector<2x8xf32>
    %194 = tpu.matmul %193, %0, %cst_70 {dimension_numbers = #tpu.dot_dimension_numbers<[1], [0], [0], [1], [0, 0, 1, 1], [], []>, precision = #tpu.contract_precision<fp32>} : vector<2x256xf32>, vector<256x8xf32>, vector<2x8xf32> -> vector<2x8xf32>
    %195 = vector.extract_strided_slice %194 {offsets = [0, 0], sizes = [2, 1], strides = [1, 1]} : vector<2x8xf32> to vector<2x1xf32>
    %196 = math.sqrt %195 : vector<2x1xf32>
    %197 = arith.subf %19, %196 : vector<2x1xf32>
    %cst_71 = arith.constant 5.000000e-01 : f32
    %198 = vector.broadcast %cst_71 : f32 to vector<2x1xf32>
    %199 = arith.addf %197, %198 : vector<2x1xf32>
    %cst_72 = arith.constant 0.000000e+00 : f32
    %200 = vector.broadcast %cst_72 : f32 to vector<2x1xf32>
    %201 = arith.maximumf %199, %200 : vector<2x1xf32>
    %202 = arith.addf %178, %201 : vector<2x1xf32>
    %203 = arith.subf %191, %4 : vector<2x256xf32>
    %204 = arith.mulf %203, %203 : vector<2x256xf32>
    %cst_73 = arith.constant dense<0.000000e+00> : vector<2x8xf32>
    %205 = tpu.matmul %204, %0, %cst_73 {dimension_numbers = #tpu.dot_dimension_numbers<[1], [0], [0], [1], [0, 0, 1, 1], [], []>, precision = #tpu.contract_precision<fp32>} : vector<2x256xf32>, vector<256x8xf32>, vector<2x8xf32> -> vector<2x8xf32>
    %206 = vector.extract_strided_slice %205 {offsets = [0, 0], sizes = [2, 1], strides = [1, 1]} : vector<2x8xf32> to vector<2x1xf32>
    %207 = math.sqrt %206 : vector<2x1xf32>
    %208 = arith.subf %19, %207 : vector<2x1xf32>
    %cst_74 = arith.constant 2.000000e-01 : f32
    %209 = vector.broadcast %cst_74 : f32 to vector<2x1xf32>
    %210 = arith.addf %208, %209 : vector<2x1xf32>
    %cst_75 = arith.constant 0.000000e+00 : f32
    %211 = vector.broadcast %cst_75 : f32 to vector<2x1xf32>
    %212 = arith.maximumf %210, %211 : vector<2x1xf32>
    %213 = arith.addf %189, %212 : vector<2x1xf32>
    %c0_76 = arith.constant 0 : index
    %c11 = arith.constant 11 : index
    %c0_77 = arith.constant 0 : index
    %214 = vector.load %arg1[%c0_76, %c11, %c0_77] : memref<2x22x256xf32, #tpu.memory_space<vmem>>, vector<2x1x256xf32>
    %215 = vector.shape_cast %214 : vector<2x1x256xf32> to vector<2x256xf32>
    %216 = arith.subf %2, %215 : vector<2x256xf32>
    %217 = arith.mulf %216, %216 : vector<2x256xf32>
    %cst_78 = arith.constant dense<0.000000e+00> : vector<2x8xf32>
    %218 = tpu.matmul %217, %0, %cst_78 {dimension_numbers = #tpu.dot_dimension_numbers<[1], [0], [0], [1], [0, 0, 1, 1], [], []>, precision = #tpu.contract_precision<fp32>} : vector<2x256xf32>, vector<256x8xf32>, vector<2x8xf32> -> vector<2x8xf32>
    %219 = vector.extract_strided_slice %218 {offsets = [0, 0], sizes = [2, 1], strides = [1, 1]} : vector<2x8xf32> to vector<2x1xf32>
    %220 = math.sqrt %219 : vector<2x1xf32>
    %221 = arith.subf %19, %220 : vector<2x1xf32>
    %cst_79 = arith.constant 5.000000e-01 : f32
    %222 = vector.broadcast %cst_79 : f32 to vector<2x1xf32>
    %223 = arith.addf %221, %222 : vector<2x1xf32>
    %cst_80 = arith.constant 0.000000e+00 : f32
    %224 = vector.broadcast %cst_80 : f32 to vector<2x1xf32>
    %225 = arith.maximumf %223, %224 : vector<2x1xf32>
    %226 = arith.addf %202, %225 : vector<2x1xf32>
    %227 = arith.subf %215, %4 : vector<2x256xf32>
    %228 = arith.mulf %227, %227 : vector<2x256xf32>
    %cst_81 = arith.constant dense<0.000000e+00> : vector<2x8xf32>
    %229 = tpu.matmul %228, %0, %cst_81 {dimension_numbers = #tpu.dot_dimension_numbers<[1], [0], [0], [1], [0, 0, 1, 1], [], []>, precision = #tpu.contract_precision<fp32>} : vector<2x256xf32>, vector<256x8xf32>, vector<2x8xf32> -> vector<2x8xf32>
    %230 = vector.extract_strided_slice %229 {offsets = [0, 0], sizes = [2, 1], strides = [1, 1]} : vector<2x8xf32> to vector<2x1xf32>
    %231 = math.sqrt %230 : vector<2x1xf32>
    %232 = arith.subf %19, %231 : vector<2x1xf32>
    %cst_82 = arith.constant 2.000000e-01 : f32
    %233 = vector.broadcast %cst_82 : f32 to vector<2x1xf32>
    %234 = arith.addf %232, %233 : vector<2x1xf32>
    %cst_83 = arith.constant 0.000000e+00 : f32
    %235 = vector.broadcast %cst_83 : f32 to vector<2x1xf32>
    %236 = arith.maximumf %234, %235 : vector<2x1xf32>
    %237 = arith.addf %213, %236 : vector<2x1xf32>
    %c0_84 = arith.constant 0 : index
    %c12 = arith.constant 12 : index
    %c0_85 = arith.constant 0 : index
    %238 = vector.load %arg1[%c0_84, %c12, %c0_85] : memref<2x22x256xf32, #tpu.memory_space<vmem>>, vector<2x1x256xf32>
    %239 = vector.shape_cast %238 : vector<2x1x256xf32> to vector<2x256xf32>
    %240 = arith.subf %2, %239 : vector<2x256xf32>
    %241 = arith.mulf %240, %240 : vector<2x256xf32>
    %cst_86 = arith.constant dense<0.000000e+00> : vector<2x8xf32>
    %242 = tpu.matmul %241, %0, %cst_86 {dimension_numbers = #tpu.dot_dimension_numbers<[1], [0], [0], [1], [0, 0, 1, 1], [], []>, precision = #tpu.contract_precision<fp32>} : vector<2x256xf32>, vector<256x8xf32>, vector<2x8xf32> -> vector<2x8xf32>
    %243 = vector.extract_strided_slice %242 {offsets = [0, 0], sizes = [2, 1], strides = [1, 1]} : vector<2x8xf32> to vector<2x1xf32>
    %244 = math.sqrt %243 : vector<2x1xf32>
    %245 = arith.subf %19, %244 : vector<2x1xf32>
    %cst_87 = arith.constant 5.000000e-01 : f32
    %246 = vector.broadcast %cst_87 : f32 to vector<2x1xf32>
    %247 = arith.addf %245, %246 : vector<2x1xf32>
    %cst_88 = arith.constant 0.000000e+00 : f32
    %248 = vector.broadcast %cst_88 : f32 to vector<2x1xf32>
    %249 = arith.maximumf %247, %248 : vector<2x1xf32>
    %250 = arith.addf %226, %249 : vector<2x1xf32>
    %251 = arith.subf %239, %4 : vector<2x256xf32>
    %252 = arith.mulf %251, %251 : vector<2x256xf32>
    %cst_89 = arith.constant dense<0.000000e+00> : vector<2x8xf32>
    %253 = tpu.matmul %252, %0, %cst_89 {dimension_numbers = #tpu.dot_dimension_numbers<[1], [0], [0], [1], [0, 0, 1, 1], [], []>, precision = #tpu.contract_precision<fp32>} : vector<2x256xf32>, vector<256x8xf32>, vector<2x8xf32> -> vector<2x8xf32>
    %254 = vector.extract_strided_slice %253 {offsets = [0, 0], sizes = [2, 1], strides = [1, 1]} : vector<2x8xf32> to vector<2x1xf32>
    %255 = math.sqrt %254 : vector<2x1xf32>
    %256 = arith.subf %19, %255 : vector<2x1xf32>
    %cst_90 = arith.constant 2.000000e-01 : f32
    %257 = vector.broadcast %cst_90 : f32 to vector<2x1xf32>
    %258 = arith.addf %256, %257 : vector<2x1xf32>
    %cst_91 = arith.constant 0.000000e+00 : f32
    %259 = vector.broadcast %cst_91 : f32 to vector<2x1xf32>
    %260 = arith.maximumf %258, %259 : vector<2x1xf32>
    %261 = arith.addf %237, %260 : vector<2x1xf32>
    %c0_92 = arith.constant 0 : index
    %c13 = arith.constant 13 : index
    %c0_93 = arith.constant 0 : index
    %262 = vector.load %arg1[%c0_92, %c13, %c0_93] : memref<2x22x256xf32, #tpu.memory_space<vmem>>, vector<2x1x256xf32>
    %263 = vector.shape_cast %262 : vector<2x1x256xf32> to vector<2x256xf32>
    %264 = arith.subf %2, %263 : vector<2x256xf32>
    %265 = arith.mulf %264, %264 : vector<2x256xf32>
    %cst_94 = arith.constant dense<0.000000e+00> : vector<2x8xf32>
    %266 = tpu.matmul %265, %0, %cst_94 {dimension_numbers = #tpu.dot_dimension_numbers<[1], [0], [0], [1], [0, 0, 1, 1], [], []>, precision = #tpu.contract_precision<fp32>} : vector<2x256xf32>, vector<256x8xf32>, vector<2x8xf32> -> vector<2x8xf32>
    %267 = vector.extract_strided_slice %266 {offsets = [0, 0], sizes = [2, 1], strides = [1, 1]} : vector<2x8xf32> to vector<2x1xf32>
    %268 = math.sqrt %267 : vector<2x1xf32>
    %269 = arith.subf %19, %268 : vector<2x1xf32>
    %cst_95 = arith.constant 5.000000e-01 : f32
    %270 = vector.broadcast %cst_95 : f32 to vector<2x1xf32>
    %271 = arith.addf %269, %270 : vector<2x1xf32>
    %cst_96 = arith.constant 0.000000e+00 : f32
    %272 = vector.broadcast %cst_96 : f32 to vector<2x1xf32>
    %273 = arith.maximumf %271, %272 : vector<2x1xf32>
    %274 = arith.addf %250, %273 : vector<2x1xf32>
    %275 = arith.subf %263, %4 : vector<2x256xf32>
    %276 = arith.mulf %275, %275 : vector<2x256xf32>
    %cst_97 = arith.constant dense<0.000000e+00> : vector<2x8xf32>
    %277 = tpu.matmul %276, %0, %cst_97 {dimension_numbers = #tpu.dot_dimension_numbers<[1], [0], [0], [1], [0, 0, 1, 1], [], []>, precision = #tpu.contract_precision<fp32>} : vector<2x256xf32>, vector<256x8xf32>, vector<2x8xf32> -> vector<2x8xf32>
    %278 = vector.extract_strided_slice %277 {offsets = [0, 0], sizes = [2, 1], strides = [1, 1]} : vector<2x8xf32> to vector<2x1xf32>
    %279 = math.sqrt %278 : vector<2x1xf32>
    %280 = arith.subf %19, %279 : vector<2x1xf32>
    %cst_98 = arith.constant 2.000000e-01 : f32
    %281 = vector.broadcast %cst_98 : f32 to vector<2x1xf32>
    %282 = arith.addf %280, %281 : vector<2x1xf32>
    %cst_99 = arith.constant 0.000000e+00 : f32
    %283 = vector.broadcast %cst_99 : f32 to vector<2x1xf32>
    %284 = arith.maximumf %282, %283 : vector<2x1xf32>
    %285 = arith.addf %261, %284 : vector<2x1xf32>
    %c0_100 = arith.constant 0 : index
    %c14 = arith.constant 14 : index
    %c0_101 = arith.constant 0 : index
    %286 = vector.load %arg1[%c0_100, %c14, %c0_101] : memref<2x22x256xf32, #tpu.memory_space<vmem>>, vector<2x1x256xf32>
    %287 = vector.shape_cast %286 : vector<2x1x256xf32> to vector<2x256xf32>
    %288 = arith.subf %2, %287 : vector<2x256xf32>
    %289 = arith.mulf %288, %288 : vector<2x256xf32>
    %cst_102 = arith.constant dense<0.000000e+00> : vector<2x8xf32>
    %290 = tpu.matmul %289, %0, %cst_102 {dimension_numbers = #tpu.dot_dimension_numbers<[1], [0], [0], [1], [0, 0, 1, 1], [], []>, precision = #tpu.contract_precision<fp32>} : vector<2x256xf32>, vector<256x8xf32>, vector<2x8xf32> -> vector<2x8xf32>
    %291 = vector.extract_strided_slice %290 {offsets = [0, 0], sizes = [2, 1], strides = [1, 1]} : vector<2x8xf32> to vector<2x1xf32>
    %292 = math.sqrt %291 : vector<2x1xf32>
    %293 = arith.subf %19, %292 : vector<2x1xf32>
    %cst_103 = arith.constant 5.000000e-01 : f32
    %294 = vector.broadcast %cst_103 : f32 to vector<2x1xf32>
    %295 = arith.addf %293, %294 : vector<2x1xf32>
    %cst_104 = arith.constant 0.000000e+00 : f32
    %296 = vector.broadcast %cst_104 : f32 to vector<2x1xf32>
    %297 = arith.maximumf %295, %296 : vector<2x1xf32>
    %298 = arith.addf %274, %297 : vector<2x1xf32>
    %299 = arith.subf %287, %4 : vector<2x256xf32>
    %300 = arith.mulf %299, %299 : vector<2x256xf32>
    %cst_105 = arith.constant dense<0.000000e+00> : vector<2x8xf32>
    %301 = tpu.matmul %300, %0, %cst_105 {dimension_numbers = #tpu.dot_dimension_numbers<[1], [0], [0], [1], [0, 0, 1, 1], [], []>, precision = #tpu.contract_precision<fp32>} : vector<2x256xf32>, vector<256x8xf32>, vector<2x8xf32> -> vector<2x8xf32>
    %302 = vector.extract_strided_slice %301 {offsets = [0, 0], sizes = [2, 1], strides = [1, 1]} : vector<2x8xf32> to vector<2x1xf32>
    %303 = math.sqrt %302 : vector<2x1xf32>
    %304 = arith.subf %19, %303 : vector<2x1xf32>
    %cst_106 = arith.constant 2.000000e-01 : f32
    %305 = vector.broadcast %cst_106 : f32 to vector<2x1xf32>
    %306 = arith.addf %304, %305 : vector<2x1xf32>
    %cst_107 = arith.constant 0.000000e+00 : f32
    %307 = vector.broadcast %cst_107 : f32 to vector<2x1xf32>
    %308 = arith.maximumf %306, %307 : vector<2x1xf32>
    %309 = arith.addf %285, %308 : vector<2x1xf32>
    %c0_108 = arith.constant 0 : index
    %c15 = arith.constant 15 : index
    %c0_109 = arith.constant 0 : index
    %310 = vector.load %arg1[%c0_108, %c15, %c0_109] : memref<2x22x256xf32, #tpu.memory_space<vmem>>, vector<2x1x256xf32>
    %311 = vector.shape_cast %310 : vector<2x1x256xf32> to vector<2x256xf32>
    %312 = arith.subf %2, %311 : vector<2x256xf32>
    %313 = arith.mulf %312, %312 : vector<2x256xf32>
    %cst_110 = arith.constant dense<0.000000e+00> : vector<2x8xf32>
    %314 = tpu.matmul %313, %0, %cst_110 {dimension_numbers = #tpu.dot_dimension_numbers<[1], [0], [0], [1], [0, 0, 1, 1], [], []>, precision = #tpu.contract_precision<fp32>} : vector<2x256xf32>, vector<256x8xf32>, vector<2x8xf32> -> vector<2x8xf32>
    %315 = vector.extract_strided_slice %314 {offsets = [0, 0], sizes = [2, 1], strides = [1, 1]} : vector<2x8xf32> to vector<2x1xf32>
    %316 = math.sqrt %315 : vector<2x1xf32>
    %317 = arith.subf %19, %316 : vector<2x1xf32>
    %cst_111 = arith.constant 5.000000e-01 : f32
    %318 = vector.broadcast %cst_111 : f32 to vector<2x1xf32>
    %319 = arith.addf %317, %318 : vector<2x1xf32>
    %cst_112 = arith.constant 0.000000e+00 : f32
    %320 = vector.broadcast %cst_112 : f32 to vector<2x1xf32>
    %321 = arith.maximumf %319, %320 : vector<2x1xf32>
    %322 = arith.addf %298, %321 : vector<2x1xf32>
    %323 = arith.subf %311, %4 : vector<2x256xf32>
    %324 = arith.mulf %323, %323 : vector<2x256xf32>
    %cst_113 = arith.constant dense<0.000000e+00> : vector<2x8xf32>
    %325 = tpu.matmul %324, %0, %cst_113 {dimension_numbers = #tpu.dot_dimension_numbers<[1], [0], [0], [1], [0, 0, 1, 1], [], []>, precision = #tpu.contract_precision<fp32>} : vector<2x256xf32>, vector<256x8xf32>, vector<2x8xf32> -> vector<2x8xf32>
    %326 = vector.extract_strided_slice %325 {offsets = [0, 0], sizes = [2, 1], strides = [1, 1]} : vector<2x8xf32> to vector<2x1xf32>
    %327 = math.sqrt %326 : vector<2x1xf32>
    %328 = arith.subf %19, %327 : vector<2x1xf32>
    %cst_114 = arith.constant 2.000000e-01 : f32
    %329 = vector.broadcast %cst_114 : f32 to vector<2x1xf32>
    %330 = arith.addf %328, %329 : vector<2x1xf32>
    %cst_115 = arith.constant 0.000000e+00 : f32
    %331 = vector.broadcast %cst_115 : f32 to vector<2x1xf32>
    %332 = arith.maximumf %330, %331 : vector<2x1xf32>
    %333 = arith.addf %309, %332 : vector<2x1xf32>
    %c0_116 = arith.constant 0 : index
    %c16 = arith.constant 16 : index
    %c0_117 = arith.constant 0 : index
    %334 = vector.load %arg1[%c0_116, %c16, %c0_117] : memref<2x22x256xf32, #tpu.memory_space<vmem>>, vector<2x1x256xf32>
    %335 = vector.shape_cast %334 : vector<2x1x256xf32> to vector<2x256xf32>
    %336 = arith.subf %2, %335 : vector<2x256xf32>
    %337 = arith.mulf %336, %336 : vector<2x256xf32>
    %cst_118 = arith.constant dense<0.000000e+00> : vector<2x8xf32>
    %338 = tpu.matmul %337, %0, %cst_118 {dimension_numbers = #tpu.dot_dimension_numbers<[1], [0], [0], [1], [0, 0, 1, 1], [], []>, precision = #tpu.contract_precision<fp32>} : vector<2x256xf32>, vector<256x8xf32>, vector<2x8xf32> -> vector<2x8xf32>
    %339 = vector.extract_strided_slice %338 {offsets = [0, 0], sizes = [2, 1], strides = [1, 1]} : vector<2x8xf32> to vector<2x1xf32>
    %340 = math.sqrt %339 : vector<2x1xf32>
    %341 = arith.subf %19, %340 : vector<2x1xf32>
    %cst_119 = arith.constant 5.000000e-01 : f32
    %342 = vector.broadcast %cst_119 : f32 to vector<2x1xf32>
    %343 = arith.addf %341, %342 : vector<2x1xf32>
    %cst_120 = arith.constant 0.000000e+00 : f32
    %344 = vector.broadcast %cst_120 : f32 to vector<2x1xf32>
    %345 = arith.maximumf %343, %344 : vector<2x1xf32>
    %346 = arith.addf %322, %345 : vector<2x1xf32>
    %347 = arith.subf %335, %4 : vector<2x256xf32>
    %348 = arith.mulf %347, %347 : vector<2x256xf32>
    %cst_121 = arith.constant dense<0.000000e+00> : vector<2x8xf32>
    %349 = tpu.matmul %348, %0, %cst_121 {dimension_numbers = #tpu.dot_dimension_numbers<[1], [0], [0], [1], [0, 0, 1, 1], [], []>, precision = #tpu.contract_precision<fp32>} : vector<2x256xf32>, vector<256x8xf32>, vector<2x8xf32> -> vector<2x8xf32>
    %350 = vector.extract_strided_slice %349 {offsets = [0, 0], sizes = [2, 1], strides = [1, 1]} : vector<2x8xf32> to vector<2x1xf32>
    %351 = math.sqrt %350 : vector<2x1xf32>
    %352 = arith.subf %19, %351 : vector<2x1xf32>
    %cst_122 = arith.constant 2.000000e-01 : f32
    %353 = vector.broadcast %cst_122 : f32 to vector<2x1xf32>
    %354 = arith.addf %352, %353 : vector<2x1xf32>
    %cst_123 = arith.constant 0.000000e+00 : f32
    %355 = vector.broadcast %cst_123 : f32 to vector<2x1xf32>
    %356 = arith.maximumf %354, %355 : vector<2x1xf32>
    %357 = arith.addf %333, %356 : vector<2x1xf32>
    %c0_124 = arith.constant 0 : index
    %c17 = arith.constant 17 : index
    %c0_125 = arith.constant 0 : index
    %358 = vector.load %arg1[%c0_124, %c17, %c0_125] : memref<2x22x256xf32, #tpu.memory_space<vmem>>, vector<2x1x256xf32>
    %359 = vector.shape_cast %358 : vector<2x1x256xf32> to vector<2x256xf32>
    %360 = arith.subf %2, %359 : vector<2x256xf32>
    %361 = arith.mulf %360, %360 : vector<2x256xf32>
    %cst_126 = arith.constant dense<0.000000e+00> : vector<2x8xf32>
    %362 = tpu.matmul %361, %0, %cst_126 {dimension_numbers = #tpu.dot_dimension_numbers<[1], [0], [0], [1], [0, 0, 1, 1], [], []>, precision = #tpu.contract_precision<fp32>} : vector<2x256xf32>, vector<256x8xf32>, vector<2x8xf32> -> vector<2x8xf32>
    %363 = vector.extract_strided_slice %362 {offsets = [0, 0], sizes = [2, 1], strides = [1, 1]} : vector<2x8xf32> to vector<2x1xf32>
    %364 = math.sqrt %363 : vector<2x1xf32>
    %365 = arith.subf %19, %364 : vector<2x1xf32>
    %cst_127 = arith.constant 5.000000e-01 : f32
    %366 = vector.broadcast %cst_127 : f32 to vector<2x1xf32>
    %367 = arith.addf %365, %366 : vector<2x1xf32>
    %cst_128 = arith.constant 0.000000e+00 : f32
    %368 = vector.broadcast %cst_128 : f32 to vector<2x1xf32>
    %369 = arith.maximumf %367, %368 : vector<2x1xf32>
    %370 = arith.addf %346, %369 : vector<2x1xf32>
    %371 = arith.subf %359, %4 : vector<2x256xf32>
    %372 = arith.mulf %371, %371 : vector<2x256xf32>
    %cst_129 = arith.constant dense<0.000000e+00> : vector<2x8xf32>
    %373 = tpu.matmul %372, %0, %cst_129 {dimension_numbers = #tpu.dot_dimension_numbers<[1], [0], [0], [1], [0, 0, 1, 1], [], []>, precision = #tpu.contract_precision<fp32>} : vector<2x256xf32>, vector<256x8xf32>, vector<2x8xf32> -> vector<2x8xf32>
    %374 = vector.extract_strided_slice %373 {offsets = [0, 0], sizes = [2, 1], strides = [1, 1]} : vector<2x8xf32> to vector<2x1xf32>
    %375 = math.sqrt %374 : vector<2x1xf32>
    %376 = arith.subf %19, %375 : vector<2x1xf32>
    %cst_130 = arith.constant 2.000000e-01 : f32
    %377 = vector.broadcast %cst_130 : f32 to vector<2x1xf32>
    %378 = arith.addf %376, %377 : vector<2x1xf32>
    %cst_131 = arith.constant 0.000000e+00 : f32
    %379 = vector.broadcast %cst_131 : f32 to vector<2x1xf32>
    %380 = arith.maximumf %378, %379 : vector<2x1xf32>
    %381 = arith.addf %357, %380 : vector<2x1xf32>
    %c0_132 = arith.constant 0 : index
    %c18 = arith.constant 18 : index
    %c0_133 = arith.constant 0 : index
    %382 = vector.load %arg1[%c0_132, %c18, %c0_133] : memref<2x22x256xf32, #tpu.memory_space<vmem>>, vector<2x1x256xf32>
    %383 = vector.shape_cast %382 : vector<2x1x256xf32> to vector<2x256xf32>
    %384 = arith.subf %2, %383 : vector<2x256xf32>
    %385 = arith.mulf %384, %384 : vector<2x256xf32>
    %cst_134 = arith.constant dense<0.000000e+00> : vector<2x8xf32>
    %386 = tpu.matmul %385, %0, %cst_134 {dimension_numbers = #tpu.dot_dimension_numbers<[1], [0], [0], [1], [0, 0, 1, 1], [], []>, precision = #tpu.contract_precision<fp32>} : vector<2x256xf32>, vector<256x8xf32>, vector<2x8xf32> -> vector<2x8xf32>
    %387 = vector.extract_strided_slice %386 {offsets = [0, 0], sizes = [2, 1], strides = [1, 1]} : vector<2x8xf32> to vector<2x1xf32>
    %388 = math.sqrt %387 : vector<2x1xf32>
    %389 = arith.subf %19, %388 : vector<2x1xf32>
    %cst_135 = arith.constant 5.000000e-01 : f32
    %390 = vector.broadcast %cst_135 : f32 to vector<2x1xf32>
    %391 = arith.addf %389, %390 : vector<2x1xf32>
    %cst_136 = arith.constant 0.000000e+00 : f32
    %392 = vector.broadcast %cst_136 : f32 to vector<2x1xf32>
    %393 = arith.maximumf %391, %392 : vector<2x1xf32>
    %394 = arith.addf %370, %393 : vector<2x1xf32>
    %395 = arith.subf %383, %4 : vector<2x256xf32>
    %396 = arith.mulf %395, %395 : vector<2x256xf32>
    %cst_137 = arith.constant dense<0.000000e+00> : vector<2x8xf32>
    %397 = tpu.matmul %396, %0, %cst_137 {dimension_numbers = #tpu.dot_dimension_numbers<[1], [0], [0], [1], [0, 0, 1, 1], [], []>, precision = #tpu.contract_precision<fp32>} : vector<2x256xf32>, vector<256x8xf32>, vector<2x8xf32> -> vector<2x8xf32>
    %398 = vector.extract_strided_slice %397 {offsets = [0, 0], sizes = [2, 1], strides = [1, 1]} : vector<2x8xf32> to vector<2x1xf32>
    %399 = math.sqrt %398 : vector<2x1xf32>
    %400 = arith.subf %19, %399 : vector<2x1xf32>
    %cst_138 = arith.constant 2.000000e-01 : f32
    %401 = vector.broadcast %cst_138 : f32 to vector<2x1xf32>
    %402 = arith.addf %400, %401 : vector<2x1xf32>
    %cst_139 = arith.constant 0.000000e+00 : f32
    %403 = vector.broadcast %cst_139 : f32 to vector<2x1xf32>
    %404 = arith.maximumf %402, %403 : vector<2x1xf32>
    %405 = arith.addf %381, %404 : vector<2x1xf32>
    %c0_140 = arith.constant 0 : index
    %c19 = arith.constant 19 : index
    %c0_141 = arith.constant 0 : index
    %406 = vector.load %arg1[%c0_140, %c19, %c0_141] : memref<2x22x256xf32, #tpu.memory_space<vmem>>, vector<2x1x256xf32>
    %407 = vector.shape_cast %406 : vector<2x1x256xf32> to vector<2x256xf32>
    %408 = arith.subf %2, %407 : vector<2x256xf32>
    %409 = arith.mulf %408, %408 : vector<2x256xf32>
    %cst_142 = arith.constant dense<0.000000e+00> : vector<2x8xf32>
    %410 = tpu.matmul %409, %0, %cst_142 {dimension_numbers = #tpu.dot_dimension_numbers<[1], [0], [0], [1], [0, 0, 1, 1], [], []>, precision = #tpu.contract_precision<fp32>} : vector<2x256xf32>, vector<256x8xf32>, vector<2x8xf32> -> vector<2x8xf32>
    %411 = vector.extract_strided_slice %410 {offsets = [0, 0], sizes = [2, 1], strides = [1, 1]} : vector<2x8xf32> to vector<2x1xf32>
    %412 = math.sqrt %411 : vector<2x1xf32>
    %413 = arith.subf %19, %412 : vector<2x1xf32>
    %cst_143 = arith.constant 5.000000e-01 : f32
    %414 = vector.broadcast %cst_143 : f32 to vector<2x1xf32>
    %415 = arith.addf %413, %414 : vector<2x1xf32>
    %cst_144 = arith.constant 0.000000e+00 : f32
    %416 = vector.broadcast %cst_144 : f32 to vector<2x1xf32>
    %417 = arith.maximumf %415, %416 : vector<2x1xf32>
    %418 = arith.addf %394, %417 : vector<2x1xf32>
    %419 = arith.subf %407, %4 : vector<2x256xf32>
    %420 = arith.mulf %419, %419 : vector<2x256xf32>
    %cst_145 = arith.constant dense<0.000000e+00> : vector<2x8xf32>
    %421 = tpu.matmul %420, %0, %cst_145 {dimension_numbers = #tpu.dot_dimension_numbers<[1], [0], [0], [1], [0, 0, 1, 1], [], []>, precision = #tpu.contract_precision<fp32>} : vector<2x256xf32>, vector<256x8xf32>, vector<2x8xf32> -> vector<2x8xf32>
    %422 = vector.extract_strided_slice %421 {offsets = [0, 0], sizes = [2, 1], strides = [1, 1]} : vector<2x8xf32> to vector<2x1xf32>
    %423 = math.sqrt %422 : vector<2x1xf32>
    %424 = arith.subf %19, %423 : vector<2x1xf32>
    %cst_146 = arith.constant 2.000000e-01 : f32
    %425 = vector.broadcast %cst_146 : f32 to vector<2x1xf32>
    %426 = arith.addf %424, %425 : vector<2x1xf32>
    %cst_147 = arith.constant 0.000000e+00 : f32
    %427 = vector.broadcast %cst_147 : f32 to vector<2x1xf32>
    %428 = arith.maximumf %426, %427 : vector<2x1xf32>
    %429 = arith.addf %405, %428 : vector<2x1xf32>
    %c0_148 = arith.constant 0 : index
    %c20 = arith.constant 20 : index
    %c0_149 = arith.constant 0 : index
    %430 = vector.load %arg1[%c0_148, %c20, %c0_149] : memref<2x22x256xf32, #tpu.memory_space<vmem>>, vector<2x1x256xf32>
    %431 = vector.shape_cast %430 : vector<2x1x256xf32> to vector<2x256xf32>
    %432 = arith.subf %2, %431 : vector<2x256xf32>
    %433 = arith.mulf %432, %432 : vector<2x256xf32>
    %cst_150 = arith.constant dense<0.000000e+00> : vector<2x8xf32>
    %434 = tpu.matmul %433, %0, %cst_150 {dimension_numbers = #tpu.dot_dimension_numbers<[1], [0], [0], [1], [0, 0, 1, 1], [], []>, precision = #tpu.contract_precision<fp32>} : vector<2x256xf32>, vector<256x8xf32>, vector<2x8xf32> -> vector<2x8xf32>
    %435 = vector.extract_strided_slice %434 {offsets = [0, 0], sizes = [2, 1], strides = [1, 1]} : vector<2x8xf32> to vector<2x1xf32>
    %436 = math.sqrt %435 : vector<2x1xf32>
    %437 = arith.subf %19, %436 : vector<2x1xf32>
    %cst_151 = arith.constant 5.000000e-01 : f32
    %438 = vector.broadcast %cst_151 : f32 to vector<2x1xf32>
    %439 = arith.addf %437, %438 : vector<2x1xf32>
    %cst_152 = arith.constant 0.000000e+00 : f32
    %440 = vector.broadcast %cst_152 : f32 to vector<2x1xf32>
    %441 = arith.maximumf %439, %440 : vector<2x1xf32>
    %442 = arith.addf %418, %441 : vector<2x1xf32>
    %443 = arith.subf %431, %4 : vector<2x256xf32>
    %444 = arith.mulf %443, %443 : vector<2x256xf32>
    %cst_153 = arith.constant dense<0.000000e+00> : vector<2x8xf32>
    %445 = tpu.matmul %444, %0, %cst_153 {dimension_numbers = #tpu.dot_dimension_numbers<[1], [0], [0], [1], [0, 0, 1, 1], [], []>, precision = #tpu.contract_precision<fp32>} : vector<2x256xf32>, vector<256x8xf32>, vector<2x8xf32> -> vector<2x8xf32>
    %446 = vector.extract_strided_slice %445 {offsets = [0, 0], sizes = [2, 1], strides = [1, 1]} : vector<2x8xf32> to vector<2x1xf32>
    %447 = math.sqrt %446 : vector<2x1xf32>
    %448 = arith.subf %19, %447 : vector<2x1xf32>
    %cst_154 = arith.constant 2.000000e-01 : f32
    %449 = vector.broadcast %cst_154 : f32 to vector<2x1xf32>
    %450 = arith.addf %448, %449 : vector<2x1xf32>
    %cst_155 = arith.constant 0.000000e+00 : f32
    %451 = vector.broadcast %cst_155 : f32 to vector<2x1xf32>
    %452 = arith.maximumf %450, %451 : vector<2x1xf32>
    %453 = arith.addf %429, %452 : vector<2x1xf32>
    %454 = tpu.iota {dimensions = array<i32: 0>} : vector<8x128xi32>
    %c0_i32 = arith.constant 0 : i32
    %455 = vector.broadcast %c0_i32 : i32 to vector<8x128xi32>
    %456 = arith.cmpi eq, %454, %455 : vector<8x128xi32>
    %457 = vector.shape_cast %442 : vector<2x1xf32> to vector<1x2x1xf32>
    %cst_156 = arith.constant dense<0.000000e+00> : vector<1xf32>
    %458 = vector.multi_reduction <add>, %457, %cst_156 [1, 2] : vector<1x2x1xf32> to vector<1xf32>
    %459 = vector.shape_cast %458 : vector<1xf32> to vector<1x1x1xf32>
    %460 = vector.extract %459[0, 0, 0] : f32 from vector<1x1x1xf32>
    %461 = vector.shape_cast %453 : vector<2x1xf32> to vector<1x2x1xf32>
    %cst_157 = arith.constant dense<0.000000e+00> : vector<1xf32>
    %462 = vector.multi_reduction <add>, %461, %cst_157 [1, 2] : vector<1x2x1xf32> to vector<1xf32>
    %463 = vector.shape_cast %462 : vector<1xf32> to vector<1x1x1xf32>
    %464 = vector.extract %463[0, 0, 0] : f32 from vector<1x1x1xf32>
    %465 = vector.broadcast %460 : f32 to vector<8x128xf32>
    %466 = vector.broadcast %464 : f32 to vector<8x128xf32>
    %467 = arith.select %456, %465, %466 : vector<8x128xi1>, vector<8x128xf32>
    %c0_158 = arith.constant 0 : index
    %c0_159 = arith.constant 0 : index
    %c0_160 = arith.constant 0 : index
    %468 = vector.load %arg2[%c0_158, %c0_159, %c0_160] : memref<1x8x128xf32, #tpu.memory_space<vmem>>, vector<1x8x128xf32>
    %469 = vector.shape_cast %468 : vector<1x8x128xf32> to vector<8x128xf32>
    %470 = vector.shape_cast %467 : vector<8x128xf32> to vector<1x8x128xf32>
    tpu.vector_store %arg2[%c0_158, %c0_159, %c0_160], %470 {strides = array<i32>} : memref<1x8x128xf32, #tpu.memory_space<vmem>>, vector<1x8x128xf32>,
    return
  }
  func.func @transform_0(%arg0: i32) -> (i32, i32, i32) {
    %c0_i32 = arith.constant 0 : i32
    %c0_i32_0 = arith.constant 0 : i32
    %c0_i32_1 = arith.constant 0 : i32
    return %arg0, %c0_i32, %c0_i32_0 : i32, i32, i32
  }
  func.func @transform_1(%arg0: i32) -> (i32, i32, i32) {
    %c0_i32 = arith.constant 0 : i32
    %c0_i32_0 = arith.constant 0 : i32
    %c0_i32_1 = arith.constant 0 : i32
    return %arg0, %c0_i32, %c0_i32_0 : i32, i32, i32
  }
}

</mosaic_0001>

<bundles_post_ra>
// kernel: tpu_custom_call.1
= control target key start
LH: loop header
LB: loop body
LE: loop exit
PB: predicated region body
PF: predicated region fallthrough
CT: control target
= control target key end

     0   :  { %v30_v1 = vlaneseq  ;;  %v22848_v2 = vmov 1.0   ;;  %v22849_v3 = vmov 0.0   ;;  %v22850_v9 = vmov 1966171168   ;;  %s28960_s0 = inlined_call_operand.vmem [shape: f32[2,22,256], index: 0, kind: input, shape index: {}]   ;;  %s28961_s1 = inlined_call_operand.hbm [shape: f32[1,8,128], index: 1, kind: output, shape index: {}]  }
   0x1   :  { %v22865_v0 = vld [vmem:[%s28960_s0] ss:$8 sm:$0x3]  ;;  %18718 = vmatprep.subr.mxu0 %v22848_v2  ;;  %233 = vmatprep.subr.mxu1 %v22849_v3  ;;  %v22872_v4 = vld [vmem:[%s28960_s0 + $0x30] ss:$8 sm:$0x3]  ;;  %v28_v10 = vunpack.c.l.s4 %v22850_v9 }
   0x2   :  { %v18678_v5 = vld [vmem:[%s28960_s0 + $0x1] ss:$8 sm:$0x3]  ;;  %18719 = vmatpush3.msra.mxu0 %v22848_v2  ;;  %234 = vmatpush1.msra.mxu1 %v22849_v3  ;;  %v18679_v6 = vld [vmem:[%s28960_s0 + $0x31] ss:$8 sm:$0x3] }
   0x3   :  { %v20_v7 = vsub.f32 %v22865_v0, %v18678_v5  ;;  %18720 = vmatprep.subr.mxu0 %v22848_v2  ;;  %v21_v8 = vsub.f32 %v22872_v4, %v18679_v6  ;;  %v22885_v11 = vshrl.u32 %v30_v1, 7  ;;  %18753 = vmatprep.subr.mxu1 %v22848_v2  ;;  %v29_v14 = vunpack.c.0.s8 %v28_v10 }
   0x4   :  { %18721 = vmatpush3.msra.mxu0 %v22848_v2 }
   0x5   :  { %v22_v12 = vmul.f32 %v20_v7, %v20_v7  ;;  %18722 = vmatprep.subr.mxu0 %v22848_v2  ;;  %v23_v13 = vmul.f32 %v21_v8, %v21_v8 }
   0x6   :  { %6 = vsyncpa [#allocation3], 0  ;;  %18723 = vmatpush3.msra.mxu0 %v22848_v2  ;;  %v22893_v16 = vsub.s32 %v29_v14, %v22885_v11  ;;  %v18680_v31 = vld [vmem:[%s28960_s0 + $0x2] ss:$8 sm:$0x3]  ;;  %s22851_s17 = smov [#allocation2]  }
   0x7   :  { %18724 = vmatprep.subr.mxu0 %v22848_v2  ;;  %v26_v15 = vcombine.low %v22_v12, %v23_v13  ;;  %v18681_v32 = vld [vmem:[%s28960_s0 + $0x32] ss:$8 sm:$0x3]  ;;  %v508_v33 = vsub.f32 %v22865_v0, %v18680_v31  ;;  %v23121_v52 = vld [vmem:[%s28960_s0 + $0x3] ss:$8 sm:$0x3] }
   0x8   :  { %18725 = vmatpush3.msra.mxu0 %v22848_v2  ;;  %v509_v34 = vsub.f32 %v22872_v4, %v18681_v32  ;;  %v23126_v53 = vld [vmem:[%s28960_s0 + $0x33] ss:$8 sm:$0x3]  ;;  %v997_v54 = vsub.f32 %v22865_v0, %v23121_v52  ;;  %v23272_v12 = vld [vmem:[%s28960_s0 + $0x25] ss:$8 sm:$0x3] }
   0x9   :  { %18726 = vmatprep.subr.mxu0 %v22848_v2  ;;  %v33_v17 = vrot.slane %v26_v15, %v22893_v16  ;;  %v510_v35 = vmul.f32 %v508_v33, %v508_v33  ;;  %v998_v55 = vsub.f32 %v22872_v4, %v23126_v53  ;;  %v23277_v13 = vld [vmem:[%s28960_s0 + $0x55] ss:$8 sm:$0x3]  ;;  %v1485_v14 = vsub.f32 %v23121_v52, %v23272_v12  ;;  %s18667_s18 = sshll.u32 %s22851_s17, 4  ;;  %s18668_s18 = int_to_ptr.vmem [resolvable:$true] %s18667_s18 }
   0xa   :  { %18727 = vmatpush3.msra.mxu0 %v22848_v2  ;;  %v511_v36 = vmul.f32 %v509_v34, %v509_v34  ;;  %v999_v56 = vmul.f32 %v997_v54, %v997_v54  ;;  %v1486_v15 = vsub.f32 %v23126_v53, %v23277_v13  ;;  %s22826_s20 = scalar_lea.vmem %s18668_s18, 128  ;;  %p22831_p1 = scmp.lt.s32.totalorder %s18668_s18, %s18668_s18 }
   0xb   :  { %18728 = vmatprep.subr.mxu0 %v22848_v2  ;;  %v34_v18 = vcombine.high %v33_v17, %v33_v17  ;;  %v41_v19 = vrot.slane %v33_v17, %v22893_v16  ;;  %v1000_v57 = vmul.f32 %v998_v55, %v998_v55  ;;  %v1487_v17 = vmul.f32 %v1485_v14, %v1485_v14  ;;  %p22827_p0 = scmp.ne.s32.totalorder %s18668_s18, %s22826_s20  ;;  %p22832_p2 = scmp.lt.s32.totalorder %s22826_s20, %s22826_s20 }
   0xc   :  { %18729 = vmatpush3.msra.mxu0 %v22848_v2  ;;  %v514_v37 = vcombine.low %v510_v35, %v511_v36  ;;  %v23419_v36 = vld [vmem:[%s28960_s0 + $0x4] ss:$8 sm:$0x3] }
   0xd   :  { %18730 = vmatprep.subr.mxu0 %v22848_v2  ;;  %v48_v20 = vrot.slane %v34_v18, %v22893_v16  ;;  %v22904_v21 = vand.u32 4294901760, %v41_v19  ;;  %v1003_v58 = vcombine.low %v999_v56, %v1000_v57  ;;  %v1488_v18 = vmul.f32 %v1486_v15, %v1486_v15  ;;  %p22833_p3 = por %p22832_p2, %p22831_p1 }
   0xe   :  { %18731 = vmatpush3.msra.mxu0 %v22848_v2  ;;  %v521_v38 = vrot.slane %v514_v37, %v22893_v16  ;;  %v23424_v37 = vld [vmem:[%s28960_s0 + $0x34] ss:$8 sm:$0x3] }
   0xf   :  { %18732 = vmatprep.subr.mxu0 %v22848_v2  ;;  %v22908_v22 = vand.u32 4294901760, %v48_v20  ;;  %v22912_v23 = vsub.f32 %v41_v19, %v22904_v21  ;;  %v1010_v59 = vrot.slane %v1003_v58, %v22893_v16  ;;  %v1491_v19 = vcombine.low %v1487_v17, %v1488_v18  ;;  %p22834_p4 = pnand %p22833_p3, %p22827_p0 }
  0x10   :  { %18733 = vmatpush3.msra.mxu0 %v22848_v2  ;;  %v522_v39 = vcombine.high %v521_v38, %v521_v38  ;;  %v529_v41 = vrot.slane %v521_v38, %v22893_v16  ;;  %v23435_v38 = vld [vmem:[%s28960_s0] ss:$8 sm:$0x3] }
  0x11   :  { %18734 = vmatprep.subr.mxu0 %v22848_v2  ;;  %v22916_v24 = vsub.f32 %v48_v20, %v22908_v22  ;;  %v123_v26 = vand.u32 4294901760, %v22912_v23  ;;  %v1011_v60 = vcombine.high %v1010_v59, %v1010_v59  ;;  %v1018_v62 = vrot.slane %v1010_v59, %v22893_v16 }
  0x12   :  { %18735 = vmatpush3.msra.mxu0 %v22848_v2  ;;  %v536_v40 = vrot.slane %v522_v39, %v22893_v16  ;;  %v23038_v43 = vand.u32 4294901760, %v529_v41  ;;  %v1498_v20 = vrot.slane %v1491_v19, %v22893_v16  ;;  %v1977_v39 = vsub.f32 %v23435_v38, %v23419_v36 }
  0x13   :  { %269 = vmatprep.mubr.f32.mxu1 %v22916_v24  ;;  %18736 = vmatprep.subr.mxu0 %v22848_v2  ;;  %v117_v25 = vand.u32 4294901760, %v22916_v24  ;;  %v124_v28 = vsub.f32 %v22912_v23, %v123_v26  ;;  %v1025_v61 = vrot.slane %v1011_v60, %v22893_v16  ;;  %v23195_v0 = vand.u32 4294901760, %v1018_v62 }
  0x14   :  { %272 = vmatmul.mubr.f32.vlgmr.msra.gmra.mxu1 %v22912_v23  ;;  %18737 = vmatpush3.msra.mxu0 %v22848_v2  ;;  %v23034_v42 = vand.u32 4294901760, %v536_v40  ;;  %v23052_v45 = vsub.f32 %v529_v41, %v23038_v43  ;;  %v1506_v23 = vrot.slane %v1498_v20, %v22893_v16 }
  0x15   :  { %18754 = vmatpush3.msra.mxu1 %v22848_v2  ;;  %18738 = vmatprep.subr.mxu0 %v22848_v2  ;;  %v118_v27 = vsub.f32 %v22916_v24, %v117_v25  ;;  %v125_v30 = vand.u32 4294901760, %v124_v28  ;;  %v23191_v63 = vand.u32 4294901760, %v1025_v61  ;;  %v23211_v4 = vsub.f32 %v1018_v62, %v23195_v0 }
  0x16   :  { %18755 = vmatprep.subr.mxu1 %v22848_v2  ;;  %18739 = vmatpush3.msra.mxu0 %v22848_v2  ;;  %v23047_v44 = vsub.f32 %v536_v40, %v23034_v42  ;;  %v611_v47 = vand.u32 4294901760, %v23052_v45  ;;  %v23442_v40 = vld [vmem:[%s28960_s0 + $0x30] ss:$8 sm:$0x3] }
  0x17   :  { %18756 = vmatpush3.msra.mxu1 %v22848_v2  ;;  %18740 = vmatprep.subr.mxu0 %v22848_v2  ;;  %v119_v29 = vand.u32 4294901760, %v118_v27  ;;  %v23204_v1 = vsub.f32 %v1025_v61, %v23191_v63  ;;  %v1100_v6 = vand.u32 4294901760, %v23211_v4  ;;  %v1978_v41 = vsub.f32 %v23442_v40, %v23424_v37 }
  0x18   :  { %18757 = vmatprep.subr.mxu1 %v22848_v2  ;;  %18741 = vmatpush3.msra.mxu0 %v22848_v2  ;;  %v605_v46 = vand.u32 4294901760, %v23047_v44  ;;  %v612_v49 = vsub.f32 %v23052_v45, %v611_v47 }
  0x19   :  { %18758 = vmatpush3.msra.mxu1 %v22848_v2  ;;  %18742 = vmatprep.subr.mxu0 %v22848_v2  ;;  %v1094_v5 = vand.u32 4294901760, %v23204_v1  ;;  %v1101_v8 = vsub.f32 %v23211_v4, %v1100_v6 }
  0x1a   :  { %18759 = vmatprep.subr.mxu1 %v22848_v2  ;;  %18743 = vmatpush3.msra.mxu0 %v22848_v2  ;;  %v606_v48 = vsub.f32 %v23047_v44, %v605_v46  ;;  %v613_v51 = vand.u32 4294901760, %v612_v49 }
  0x1b   :  { %18760 = vmatpush3.msra.mxu1 %v22848_v2  ;;  %18744 = vmatprep.subr.mxu0 %v22848_v2  ;;  %v1095_v7 = vsub.f32 %v23204_v1, %v1094_v5  ;;  %v1102_v10 = vand.u32 4294901760, %v1101_v8 }
  0x1c   :  { %18761 = vmatprep.subr.mxu1 %v22848_v2  ;;  %18745 = vmatpush3.msra.mxu0 %v22848_v2  ;;  %v607_v50 = vand.u32 4294901760, %v606_v48 }
  0x1d   :  { %18762 = vmatpush3.msra.mxu1 %v22848_v2  ;;  %18746 = vmatprep.subr.mxu0 %v22848_v2  ;;  %v1096_v9 = vand.u32 4294901760, %v1095_v7 }
  0x1e   :  { %18763 = vmatprep.subr.mxu1 %v22848_v2  ;;  %18747 = vmatpush3.msra.mxu0 %v22848_v2 }
  0x1f   :  { %18764 = vmatpush3.msra.mxu1 %v22848_v2  ;;  %18748 = vmatprep.subr.mxu0 %v22848_v2 }
  0x20   :  { %18765 = vmatprep.subr.mxu1 %v22848_v2  ;;  %18749 = vmatpush3.msra.mxu0 %v22848_v2 }
  0x21   :  { %18766 = vmatpush3.msra.mxu1 %v22848_v2  ;;  %120 = vmatprep.mubr.f32.mxu0 %v119_v29 }
  0x22   :  { %18767 = vmatprep.subr.mxu1 %v22848_v2  ;;  %126 = vmatmul.mubr.f32.vlgmr.msra.gmra.mxu0 %v125_v30 }
  0x23   :  { %18768 = vmatpush3.msra.mxu1 %v22848_v2  ;;  %161 = vmatprep.subr.mxu0 %v22849_v3 }
  0x24   :  { %18769 = vmatprep.subr.mxu1 %v22848_v2  ;;  %162 = vmatpush1.msra.mxu0 %v22849_v3 }
  0x25   :  { %18770 = vmatpush3.msra.mxu1 %v22848_v2  ;;  %196 = vmatprep.mubr.f32.mxu0 %v22908_v22 }
  0x26   :  { %18771 = vmatprep.subr.mxu1 %v22848_v2  ;;  %198 = vmatmul.mubr.f32.vlgmr.msra.gmra.mxu0 %v22904_v21 }
  0x27   :  { %18772 = vmatpush3.msra.mxu1 %v22848_v2  ;;  %383 = vmatprep.subr.mxu0 %v22849_v3 }
  0x28   :  { %18773 = vmatprep.subr.mxu1 %v22848_v2  ;;  %384 = vmatpush1.msra.mxu0 %v22849_v3 }
  0x29   :  { %18774 = vmatpush3.msra.mxu1 %v22848_v2  ;;  %418 = vmatprep.mubr.f32.mxu0 %v22908_v22 }
  0x2a   :  { %18775 = vmatprep.subr.mxu1 %v22848_v2  ;;  %18788 = vmatprep.subr.mxu0 %v22848_v2 }
  0x2b   :  { %18776 = vmatpush3.msra.mxu1 %v22848_v2  ;;  %420 = vmatmul.mubr.f32.vlgmr.msra.gmra.mxu0 %v22904_v21 }
  0x2c   :  { %18777 = vmatprep.subr.mxu1 %v22848_v2  ;;  %18789 = vmatpush3.msra.mxu0 %v22848_v2 }
  0x2d   :  { %18778 = vmatpush3.msra.mxu1 %v22848_v2  ;;  %18790 = vmatprep.subr.mxu0 %v22848_v2 }
  0x2e   :  { %18779 = vmatprep.subr.mxu1 %v22848_v2  ;;  %18791 = vmatpush3.msra.mxu0 %v22848_v2 }
  0x2f   :  { %18780 = vmatpush3.msra.mxu1 %v22848_v2  ;;  %18792 = vmatprep.subr.mxu0 %v22848_v2 }
  0x30   :  { %18781 = vmatprep.subr.mxu1 %v22848_v2  ;;  %18793 = vmatpush3.msra.mxu0 %v22848_v2 }
  0x31   :  { %18782 = vmatpush3.msra.mxu1 %v22848_v2  ;;  %18794 = vmatprep.subr.mxu0 %v22848_v2 }
  0x32   :  { %18783 = vmatprep.subr.mxu1 %v22848_v2  ;;  %18795 = vmatpush3.msra.mxu0 %v22848_v2 }
  0x33   :  { %18784 = vmatpush3.msra.mxu1 %v22848_v2  ;;  %344 = vmatprep.mubr.f32.mxu1 %v117_v25  ;;  %v23346_v25 = vand.u32 4294901760, %v1506_v23 }
  0x34   :  { %18796 = vmatprep.subr.mxu0 %v22848_v2  ;;  %348 = vmatmul.mubr.f32.vlgmr.msra.gmra.mxu1 %v123_v26 }
  0x35   :  { %18797 = vmatpush3.msra.mxu0 %v22848_v2  ;;  %18823 = vmatprep.subr.mxu1 %v22848_v2  ;;  %v23362_v27 = vsub.f32 %v1506_v23, %v23346_v25 }
  0x36   :  { %18798 = vmatprep.subr.mxu0 %v22848_v2  ;;  %18824 = vmatpush3.msra.mxu1 %v22848_v2 }
  0x37   :  { %18799 = vmatpush3.msra.mxu0 %v22848_v2  ;;  %18825 = vmatprep.subr.mxu1 %v22848_v2  ;;  %v1588_v29 = vand.u32 4294901760, %v23362_v27 }
  0x38   :  { %18800 = vmatprep.subr.mxu0 %v22848_v2  ;;  %18826 = vmatpush3.msra.mxu1 %v22848_v2 }
  0x39   :  { %18801 = vmatpush3.msra.mxu0 %v22848_v2  ;;  %18827 = vmatprep.subr.mxu1 %v22848_v2  ;;  %v1589_v31 = vsub.f32 %v23362_v27, %v1588_v29 }
  0x3a   :  { %18802 = vmatprep.subr.mxu0 %v22848_v2  ;;  %18828 = vmatpush3.msra.mxu1 %v22848_v2 }
  0x3b   :  { %18803 = vmatpush3.msra.mxu0 %v22848_v2  ;;  %18829 = vmatprep.subr.mxu1 %v22848_v2  ;;  %v1590_v33 = vand.u32 4294901760, %v1589_v31 }
  0x3c   :  { %18804 = vmatprep.subr.mxu0 %v22848_v2  ;;  %18830 = vmatpush3.msra.mxu1 %v22848_v2 }
  0x3d   :  { %18805 = vmatpush3.msra.mxu0 %v22848_v2  ;;  %18831 = vmatprep.subr.mxu1 %v22848_v2 }
  0x3e   :  { %18806 = vmatprep.subr.mxu0 %v22848_v2  ;;  %18832 = vmatpush3.msra.mxu1 %v22848_v2 }
  0x3f   :  { %18807 = vmatpush3.msra.mxu0 %v22848_v2  ;;  %18833 = vmatprep.subr.mxu1 %v22848_v2 }
  0x40   :  { %18808 = vmatprep.subr.mxu0 %v22848_v2  ;;  %18834 = vmatpush3.msra.mxu1 %v22848_v2 }
  0x41   :  { %18809 = vmatpush3.msra.mxu0 %v22848_v2  ;;  %18835 = vmatprep.subr.mxu1 %v22848_v2 }
  0x42   :  { %18810 = vmatprep.subr.mxu0 %v22848_v2  ;;  %18836 = vmatpush3.msra.mxu1 %v22848_v2 }
  0x43   :  { %18811 = vmatpush3.msra.mxu0 %v22848_v2  ;;  %18837 = vmatprep.subr.mxu1 %v22848_v2 }
  0x44   :  { %18812 = vmatprep.subr.mxu0 %v22848_v2  ;;  %18838 = vmatpush3.msra.mxu1 %v22848_v2 }
  0x45   :  { %18813 = vmatpush3.msra.mxu0 %v22848_v2  ;;  %18839 = vmatprep.subr.mxu1 %v22848_v2 }
  0x46   :  { %18814 = vmatprep.subr.mxu0 %v22848_v2  ;;  %18840 = vmatpush3.msra.mxu1 %v22848_v2 }
  0x47   :  { %18815 = vmatpush3.msra.mxu0 %v22848_v2  ;;  %18841 = vmatprep.subr.mxu1 %v22848_v2 }
  0x48   :  { %18816 = vmatprep.subr.mxu0 %v22848_v2  ;;  %18842 = vmatpush3.msra.mxu1 %v22848_v2 }
  0x49   :  { %18817 = vmatpush3.msra.mxu0 %v22848_v2  ;;  %18843 = vmatprep.subr.mxu1 %v22848_v2 }
  0x4a   :  { %18818 = vmatprep.subr.mxu0 %v22848_v2  ;;  %18844 = vmatpush3.msra.mxu1 %v22848_v2 }
  0x4b   :  { %18819 = vmatpush3.msra.mxu0 %v22848_v2  ;;  %490 = vmatprep.mubr.f32.mxu0 %v22908_v22 }
  0x4c   :  { %18845 = vmatprep.subr.mxu1 %v22848_v2  ;;  %492 = vmatmul.mubr.f32.vlgmr.msra.gmra.mxu0 %v22904_v21  ;;  %v1499_v21 = vcombine.high %v1498_v20, %v1498_v20 }
  0x4d   :  { %18846 = vmatpush3.msra.mxu1 %v22848_v2  ;;  %649 = vmatprep.subr.mxu0 %v22849_v3 }
  0x4e   :  { %18847 = vmatprep.subr.mxu1 %v22848_v2  ;;  %650 = vmatpush1.msra.mxu0 %v22849_v3  ;;  %v1513_v22 = vrot.slane %v1499_v21, %v22893_v16  ;;  %v2465_v21 = vsub.f32 %v23419_v36, %v23272_v12 }
  0x4f   :  { %18848 = vmatpush3.msra.mxu1 %v22848_v2  ;;  %684 = vmatprep.mubr.f32.mxu0 %v23034_v42 }
  0x50   :  { %18849 = vmatprep.subr.mxu1 %v22848_v2  ;;  %18858 = vmatprep.subr.mxu0 %v22848_v2  ;;  %v23342_v24 = vand.u32 4294901760, %v1513_v22  ;;  %v2467_v23 = vmul.f32 %v2465_v21, %v2465_v21 }
  0x51   :  { %18850 = vmatpush3.msra.mxu1 %v22848_v2  ;;  %686 = vmatmul.mubr.f32.vlgmr.msra.gmra.mxu0 %v23038_v43 }
  0x52   :  { %18859 = vmatpush3.msra.mxu0 %v22848_v2  ;;  %18851 = vmatprep.subr.mxu1 %v22848_v2  ;;  %v23355_v26 = vsub.f32 %v1513_v22, %v23342_v24  ;;  %v2466_v22 = vsub.f32 %v23424_v37, %v23277_v13 }
  0x53   :  { %18860 = vmatprep.subr.mxu0 %v22848_v2  ;;  %18852 = vmatpush3.msra.mxu1 %v22848_v2 }
  0x54   :  { %18861 = vmatpush3.msra.mxu0 %v22848_v2  ;;  %18853 = vmatprep.subr.mxu1 %v22848_v2  ;;  %v1582_v28 = vand.u32 4294901760, %v23355_v26 }
  0x55   :  { %18862 = vmatprep.subr.mxu0 %v22848_v2  ;;  %18854 = vmatpush3.msra.mxu1 %v22848_v2 }
  0x56   :  { %608 = vmatprep.mubr.f32.mxu1 %v607_v50  ;;  %18863 = vmatpush3.msra.mxu0 %v22848_v2  ;;  %v1583_v30 = vsub.f32 %v23355_v26, %v1582_v28 }
  0x57   :  { %614 = vmatmul.mubr.f32.vlgmr.msra.gmra.mxu1 %v613_v51  ;;  %721 = vmatprep.subr.mxu1 %v22849_v3 }
  0x58   :  { %18864 = vmatprep.subr.mxu0 %v22848_v2  ;;  %722 = vmatpush1.msra.mxu1 %v22849_v3  ;;  %v1584_v32 = vand.u32 4294901760, %v1583_v30 }
  0x59   :  { %18865 = vmatpush3.msra.mxu0 %v22848_v2  ;;  %757 = vmatprep.mubr.f32.mxu1 %v23047_v44 }
  0x5a   :  { %18866 = vmatprep.subr.mxu0 %v22848_v2  ;;  %871 = vmatprep.subr.mxu1 %v22849_v3 }
  0x5b   :  { %18867 = vmatpush3.msra.mxu0 %v22848_v2  ;;  %760 = vmatmul.mubr.f32.vlgmr.msra.gmra.mxu1 %v23052_v45 }
  0x5c   :  { %18868 = vmatprep.subr.mxu0 %v22848_v2  ;;  %872 = vmatpush1.msra.mxu1 %v22849_v3 }
  0x5d   :  { %18869 = vmatpush3.msra.mxu0 %v22848_v2  ;;  %906 = vmatprep.mubr.f32.mxu1 %v23034_v42 }
  0x5e   :  { %18870 = vmatprep.subr.mxu0 %v22848_v2  ;;  %18893 = vmatprep.subr.mxu1 %v22848_v2 }
  0x5f   :  { %18871 = vmatpush3.msra.mxu0 %v22848_v2  ;;  %908 = vmatmul.mubr.f32.vlgmr.msra.gmra.mxu1 %v23038_v43 }
  0x60   :  { %18872 = vmatprep.subr.mxu0 %v22848_v2  ;;  %18894 = vmatpush3.msra.mxu1 %v22848_v2 }
  0x61   :  { %18873 = vmatpush3.msra.mxu0 %v22848_v2  ;;  %18895 = vmatprep.subr.mxu1 %v22848_v2 }
  0x62   :  { %18874 = vmatprep.subr.mxu0 %v22848_v2  ;;  %18896 = vmatpush3.msra.mxu1 %v22848_v2 }
  0x63   :  { %18875 = vmatpush3.msra.mxu0 %v22848_v2  ;;  %18897 = vmatprep.subr.mxu1 %v22848_v2 }
  0x64   :  { %18876 = vmatprep.subr.mxu0 %v22848_v2  ;;  %18898 = vmatpush3.msra.mxu1 %v22848_v2 }
  0x65   :  { %18877 = vmatpush3.msra.mxu0 %v22848_v2  ;;  %18899 = vmatprep.subr.mxu1 %v22848_v2 }
  0x66   :  { %18878 = vmatprep.subr.mxu0 %v22848_v2  ;;  %18900 = vmatpush3.msra.mxu1 %v22848_v2 }
  0x67   :  { %18879 = vmatpush3.msra.mxu0 %v22848_v2  ;;  %18901 = vmatprep.subr.mxu1 %v22848_v2 }
  0x68   :  { %18880 = vmatprep.subr.mxu0 %v22848_v2  ;;  %18902 = vmatpush3.msra.mxu1 %v22848_v2 }
  0x69   :  { %18881 = vmatpush3.msra.mxu0 %v22848_v2  ;;  %18903 = vmatprep.subr.mxu1 %v22848_v2 }
  0x6a   :  { %18882 = vmatprep.subr.mxu0 %v22848_v2  ;;  %18904 = vmatpush3.msra.mxu1 %v22848_v2 }
  0x6b   :  { %18883 = vmatpush3.msra.mxu0 %v22848_v2  ;;  %18905 = vmatprep.subr.mxu1 %v22848_v2 }
  0x6c   :  { %18884 = vmatprep.subr.mxu0 %v22848_v2  ;;  %18906 = vmatpush3.msra.mxu1 %v22848_v2 }
  0x6d   :  { %18885 = vmatpush3.msra.mxu0 %v22848_v2  ;;  %18907 = vmatprep.subr.mxu1 %v22848_v2 }
  0x6e   :  { %18886 = vmatprep.subr.mxu0 %v22848_v2  ;;  %18908 = vmatpush3.msra.mxu1 %v22848_v2 }
  0x6f   :  { %18887 = vmatpush3.msra.mxu0 %v22848_v2  ;;  %18909 = vmatprep.subr.mxu1 %v22848_v2 }
  0x70   :  { %18888 = vmatprep.subr.mxu0 %v22848_v2  ;;  %18910 = vmatpush3.msra.mxu1 %v22848_v2 }
  0x71   :  { %18889 = vmatpush3.msra.mxu0 %v22848_v2  ;;  %832 = vmatprep.mubr.f32.mxu0 %v605_v46 }
  0x72   :  { %18911 = vmatprep.subr.mxu1 %v22848_v2  ;;  %836 = vmatmul.mubr.f32.vlgmr.msra.gmra.mxu0 %v611_v47 }
  0x73   :  { %18912 = vmatpush3.msra.mxu1 %v22848_v2  ;;  %18928 = vmatprep.subr.mxu0 %v22848_v2 }
  0x74   :  { %18913 = vmatprep.subr.mxu1 %v22848_v2  ;;  %18929 = vmatpush3.msra.mxu0 %v22848_v2 }
  0x75   :  { %18914 = vmatpush3.msra.mxu1 %v22848_v2  ;;  %18930 = vmatprep.subr.mxu0 %v22848_v2 }
  0x76   :  { %18915 = vmatprep.subr.mxu1 %v22848_v2  ;;  %18931 = vmatpush3.msra.mxu0 %v22848_v2 }
  0x77   :  { %18916 = vmatpush3.msra.mxu1 %v22848_v2  ;;  %18932 = vmatprep.subr.mxu0 %v22848_v2 }
  0x78   :  { %18917 = vmatprep.subr.mxu1 %v22848_v2  ;;  %18933 = vmatpush3.msra.mxu0 %v22848_v2 }
  0x79   :  { %18918 = vmatpush3.msra.mxu1 %v22848_v2  ;;  %18934 = vmatprep.subr.mxu0 %v22848_v2 }
  0x7a   :  { %18919 = vmatprep.subr.mxu1 %v22848_v2  ;;  %18935 = vmatpush3.msra.mxu0 %v22848_v2 }
  0x7b   :  { %18920 = vmatpush3.msra.mxu1 %v22848_v2  ;;  %18936 = vmatprep.subr.mxu0 %v22848_v2 }
  0x7c   :  { %18921 = vmatprep.subr.mxu1 %v22848_v2  ;;  %18937 = vmatpush3.msra.mxu0 %v22848_v2 }
  0x7d   :  { %18922 = vmatpush3.msra.mxu1 %v22848_v2  ;;  %18938 = vmatprep.subr.mxu0 %v22848_v2 }
  0x7e   :  { %18923 = vmatprep.subr.mxu1 %v22848_v2  ;;  %18939 = vmatpush3.msra.mxu0 %v22848_v2 }
  0x7f   :  { %18924 = vmatpush3.msra.mxu1 %v22848_v2  ;;  %978 = vmatprep.mubr.f32.mxu1 %v23034_v42  ;;  %v1979_v42 = vmul.f32 %v1977_v39, %v1977_v39 }
  0x80   :  { %18940 = vmatprep.subr.mxu0 %v22848_v2  ;;  %980 = vmatmul.mubr.f32.vlgmr.msra.gmra.mxu1 %v23038_v43  ;;  %v1980_v43 = vmul.f32 %v1978_v41, %v1978_v41 }
  0x81   :  { %18941 = vmatpush3.msra.mxu0 %v22848_v2  ;;  %1138 = vmatprep.subr.mxu1 %v22849_v3 }
  0x82   :  { %18942 = vmatprep.subr.mxu0 %v22848_v2  ;;  %1139 = vmatpush1.msra.mxu1 %v22849_v3  ;;  %v1983_v44 = vcombine.low %v1979_v42, %v1980_v43 }
  0x83   :  { %18943 = vmatpush3.msra.mxu0 %v22848_v2  ;;  %1173 = vmatprep.mubr.f32.mxu1 %v23191_v63 }
  0x84   :  { %18944 = vmatprep.subr.mxu0 %v22848_v2  ;;  %1175 = vmatmul.mubr.f32.vlgmr.msra.gmra.mxu1 %v23195_v0  ;;  %v1990_v48 = vrot.slane %v1983_v44, %v22893_v16 }
  0x85   :  { %18945 = vmatpush3.msra.mxu0 %v22848_v2  ;;  %1210 = vmatprep.subr.mxu1 %v22849_v3 }
  0x86   :  { %18946 = vmatprep.subr.mxu0 %v22848_v2  ;;  %1211 = vmatpush1.msra.mxu1 %v22849_v3  ;;  %v1991_v53 = vcombine.high %v1990_v48, %v1990_v48  ;;  %v1998_v57 = vrot.slane %v1990_v48, %v22893_v16 }
  0x87   :  { %18947 = vmatpush3.msra.mxu0 %v22848_v2  ;;  %1246 = vmatprep.mubr.f32.mxu1 %v23204_v1 }
  0x88   :  { %18948 = vmatprep.subr.mxu0 %v22848_v2  ;;  %18963 = vmatprep.subr.mxu1 %v22848_v2  ;;  %v2005_v55 = vrot.slane %v1991_v53, %v22893_v16  ;;  %v23503_v59 = vand.u32 4294901760, %v1998_v57 }
  0x89   :  { %18949 = vmatpush3.msra.mxu0 %v22848_v2  ;;  %1249 = vmatmul.mubr.f32.vlgmr.msra.gmra.mxu1 %v23211_v4 }
  0x8a   :  { %18964 = vmatpush3.msra.mxu1 %v22848_v2  ;;  %18950 = vmatprep.subr.mxu0 %v22848_v2  ;;  %v23499_v58 = vand.u32 4294901760, %v2005_v55 }
  0x8b   :  { %18965 = vmatprep.subr.mxu1 %v22848_v2  ;;  %18951 = vmatpush3.msra.mxu0 %v22848_v2 }
  0x8c   :  { %18966 = vmatpush3.msra.mxu1 %v22848_v2  ;;  %18952 = vmatprep.subr.mxu0 %v22848_v2  ;;  %v23512_v61 = vsub.f32 %v2005_v55, %v23499_v58 }
  0x8d   :  { %18967 = vmatprep.subr.mxu1 %v22848_v2  ;;  %18953 = vmatpush3.msra.mxu0 %v22848_v2 }
  0x8e   :  { %18968 = vmatpush3.msra.mxu1 %v22848_v2  ;;  %18954 = vmatprep.subr.mxu0 %v22848_v2  ;;  %v2074_v4 = vand.u32 4294901760, %v23512_v61 }
  0x8f   :  { %18969 = vmatprep.subr.mxu1 %v22848_v2  ;;  %18955 = vmatpush3.msra.mxu0 %v22848_v2 }
  0x90   :  { %18970 = vmatpush3.msra.mxu1 %v22848_v2  ;;  %18956 = vmatprep.subr.mxu0 %v22848_v2  ;;  %v2075_v7 = vsub.f32 %v23512_v61, %v2074_v4 }
  0x91   :  { %18971 = vmatprep.subr.mxu1 %v22848_v2  ;;  %18957 = vmatpush3.msra.mxu0 %v22848_v2 }
  0x92   :  { %18972 = vmatpush3.msra.mxu1 %v22848_v2  ;;  %18958 = vmatprep.subr.mxu0 %v22848_v2 }
  0x93   :  { %18973 = vmatprep.subr.mxu1 %v22848_v2  ;;  %18959 = vmatpush3.msra.mxu0 %v22848_v2 }
  0x94   :  { %1097 = vmatprep.mubr.f32.mxu0 %v1096_v9  ;;  %18974 = vmatpush3.msra.mxu1 %v22848_v2  ;;  %v2076_v9 = vand.u32 4294901760, %v2075_v7 }
  0x95   :  { %1103 = vmatmul.mubr.f32.vlgmr.msra.gmra.mxu0 %v1102_v10  ;;  %18975 = vmatprep.subr.mxu1 %v22848_v2 }
  0x96   :  { %18976 = vmatpush3.msra.mxu1 %v22848_v2  ;;  %1360 = vmatprep.subr.mxu0 %v22849_v3 }
  0x97   :  { %18977 = vmatprep.subr.mxu1 %v22848_v2  ;;  %1361 = vmatpush1.msra.mxu0 %v22849_v3 }
  0x98   :  { %18978 = vmatpush3.msra.mxu1 %v22848_v2  ;;  %1395 = vmatprep.mubr.f32.mxu0 %v23191_v63 }
  0x99   :  { %18998 = vmatprep.subr.mxu0 %v22848_v2  ;;  %18979 = vmatprep.subr.mxu1 %v22848_v2 }
  0x9a   :  { %1397 = vmatmul.mubr.f32.vlgmr.msra.gmra.mxu0 %v23195_v0  ;;  %18980 = vmatpush3.msra.mxu1 %v22848_v2 }
  0x9b   :  { %18999 = vmatpush3.msra.mxu0 %v22848_v2  ;;  %18981 = vmatprep.subr.mxu1 %v22848_v2 }
  0x9c   :  { %19000 = vmatprep.subr.mxu0 %v22848_v2  ;;  %18982 = vmatpush3.msra.mxu1 %v22848_v2 }
  0x9d   :  { %19001 = vmatpush3.msra.mxu0 %v22848_v2  ;;  %18983 = vmatprep.subr.mxu1 %v22848_v2 }
  0x9e   :  { %19002 = vmatprep.subr.mxu0 %v22848_v2  ;;  %18984 = vmatpush3.msra.mxu1 %v22848_v2 }
  0x9f   :  { %19003 = vmatpush3.msra.mxu0 %v22848_v2  ;;  %18985 = vmatprep.subr.mxu1 %v22848_v2 }
  0xa0   :  { %19004 = vmatprep.subr.mxu0 %v22848_v2  ;;  %18986 = vmatpush3.msra.mxu1 %v22848_v2 }
  0xa1   :  { %19005 = vmatpush3.msra.mxu0 %v22848_v2  ;;  %18987 = vmatprep.subr.mxu1 %v22848_v2 }
  0xa2   :  { %19006 = vmatprep.subr.mxu0 %v22848_v2  ;;  %18988 = vmatpush3.msra.mxu1 %v22848_v2 }
  0xa3   :  { %19007 = vmatpush3.msra.mxu0 %v22848_v2  ;;  %18989 = vmatprep.subr.mxu1 %v22848_v2 }
  0xa4   :  { %19008 = vmatprep.subr.mxu0 %v22848_v2  ;;  %18990 = vmatpush3.msra.mxu1 %v22848_v2 }
  0xa5   :  { %19009 = vmatpush3.msra.mxu0 %v22848_v2  ;;  %18991 = vmatprep.subr.mxu1 %v22848_v2 }
  0xa6   :  { %19010 = vmatprep.subr.mxu0 %v22848_v2  ;;  %18992 = vmatpush3.msra.mxu1 %v22848_v2 }
  0xa7   :  { %19011 = vmatpush3.msra.mxu0 %v22848_v2  ;;  %18993 = vmatprep.subr.mxu1 %v22848_v2 }
  0xa8   :  { %19012 = vmatprep.subr.mxu0 %v22848_v2  ;;  %18994 = vmatpush3.msra.mxu1 %v22848_v2 }
  0xa9   :  { %19013 = vmatpush3.msra.mxu0 %v22848_v2  ;;  %1321 = vmatprep.mubr.f32.mxu1 %v1094_v5 }
  0xaa   :  { %19014 = vmatprep.subr.mxu0 %v22848_v2  ;;  %1325 = vmatmul.mubr.f32.vlgmr.msra.gmra.mxu1 %v1100_v6 }
  0xab   :  { %19015 = vmatpush3.msra.mxu0 %v22848_v2  ;;  %19033 = vmatprep.subr.mxu1 %v22848_v2 }
  0xac   :  { %19016 = vmatprep.subr.mxu0 %v22848_v2  ;;  %19034 = vmatpush3.msra.mxu1 %v22848_v2 }
  0xad   :  { %19017 = vmatpush3.msra.mxu0 %v22848_v2  ;;  %19035 = vmatprep.subr.mxu1 %v22848_v2 }
  0xae   :  { %19018 = vmatprep.subr.mxu0 %v22848_v2  ;;  %19036 = vmatpush3.msra.mxu1 %v22848_v2 }
  0xaf   :  { %19019 = vmatpush3.msra.mxu0 %v22848_v2  ;;  %19037 = vmatprep.subr.mxu1 %v22848_v2 }
  0xb0   :  { %19020 = vmatprep.subr.mxu0 %v22848_v2  ;;  %19038 = vmatpush3.msra.mxu1 %v22848_v2 }
  0xb1   :  { %19021 = vmatpush3.msra.mxu0 %v22848_v2  ;;  %19039 = vmatprep.subr.mxu1 %v22848_v2 }
  0xb2   :  { %19022 = vmatprep.subr.mxu0 %v22848_v2  ;;  %19040 = vmatpush3.msra.mxu1 %v22848_v2 }
  0xb3   :  { %19023 = vmatpush3.msra.mxu0 %v22848_v2  ;;  %19041 = vmatprep.subr.mxu1 %v22848_v2 }
  0xb4   :  { %19024 = vmatprep.subr.mxu0 %v22848_v2  ;;  %19042 = vmatpush3.msra.mxu1 %v22848_v2 }
  0xb5   :  { %19025 = vmatpush3.msra.mxu0 %v22848_v2  ;;  %19043 = vmatprep.subr.mxu1 %v22848_v2 }
  0xb6   :  { %19026 = vmatprep.subr.mxu0 %v22848_v2  ;;  %19044 = vmatpush3.msra.mxu1 %v22848_v2 }
  0xb7   :  { %19027 = vmatpush3.msra.mxu0 %v22848_v2  ;;  %19045 = vmatprep.subr.mxu1 %v22848_v2 }
  0xb8   :  { %19028 = vmatprep.subr.mxu0 %v22848_v2  ;;  %19046 = vmatpush3.msra.mxu1 %v22848_v2 }
  0xb9   :  { %19029 = vmatpush3.msra.mxu0 %v22848_v2  ;;  %1467 = vmatprep.mubr.f32.mxu0 %v23191_v63  ;;  %v23519_v63 = vsub.f32 %v1998_v57, %v23503_v59 }
  0xba   :  { %19047 = vmatprep.subr.mxu1 %v22848_v2  ;;  %1469 = vmatmul.mubr.f32.vlgmr.msra.gmra.mxu0 %v23195_v0 }
  0xbb   :  { %19048 = vmatpush3.msra.mxu1 %v22848_v2  ;;  %1626 = vmatprep.subr.mxu0 %v22849_v3  ;;  %v2080_v5 = vand.u32 4294901760, %v23519_v63 }
  0xbc   :  { %19049 = vmatprep.subr.mxu1 %v22848_v2  ;;  %1627 = vmatpush1.msra.mxu0 %v22849_v3 }
  0xbd   :  { %19050 = vmatpush3.msra.mxu1 %v22848_v2  ;;  %1661 = vmatprep.mubr.f32.mxu0 %v23342_v24  ;;  %v2081_v8 = vsub.f32 %v23519_v63, %v2080_v5 }
  0xbe   :  { %19051 = vmatprep.subr.mxu1 %v22848_v2  ;;  %1663 = vmatmul.mubr.f32.vlgmr.msra.gmra.mxu0 %v23346_v25 }
  0xbf   :  { %19052 = vmatpush3.msra.mxu1 %v22848_v2  ;;  %1698 = vmatprep.subr.mxu0 %v22849_v3  ;;  %v2082_v10 = vand.u32 4294901760, %v2081_v8 }
  0xc0   :  { %19053 = vmatprep.subr.mxu1 %v22848_v2  ;;  %1699 = vmatpush1.msra.mxu0 %v22849_v3 }
  0xc1   :  { %19054 = vmatpush3.msra.mxu1 %v22848_v2  ;;  %1734 = vmatprep.mubr.f32.mxu0 %v23355_v26 }
  0xc2   :  { %19055 = vmatprep.subr.mxu1 %v22848_v2  ;;  %19068 = vmatprep.subr.mxu0 %v22848_v2 }
  0xc3   :  { %19056 = vmatpush3.msra.mxu1 %v22848_v2  ;;  %1737 = vmatmul.mubr.f32.vlgmr.msra.gmra.mxu0 %v23362_v27 }
  0xc4   :  { %19069 = vmatpush3.msra.mxu0 %v22848_v2  ;;  %19057 = vmatprep.subr.mxu1 %v22848_v2 }
  0xc5   :  { %19070 = vmatprep.subr.mxu0 %v22848_v2  ;;  %19058 = vmatpush3.msra.mxu1 %v22848_v2 }
  0xc6   :  { %19071 = vmatpush3.msra.mxu0 %v22848_v2  ;;  %19059 = vmatprep.subr.mxu1 %v22848_v2 }
  0xc7   :  { %19072 = vmatprep.subr.mxu0 %v22848_v2  ;;  %19060 = vmatpush3.msra.mxu1 %v22848_v2 }
  0xc8   :  { %19073 = vmatpush3.msra.mxu0 %v22848_v2  ;;  %19061 = vmatprep.subr.mxu1 %v22848_v2 }
  0xc9   :  { %19074 = vmatprep.subr.mxu0 %v22848_v2  ;;  %19062 = vmatpush3.msra.mxu1 %v22848_v2 }
  0xca   :  { %19075 = vmatpush3.msra.mxu0 %v22848_v2  ;;  %19063 = vmatprep.subr.mxu1 %v22848_v2 }
  0xcb   :  { %19076 = vmatprep.subr.mxu0 %v22848_v2  ;;  %19064 = vmatpush3.msra.mxu1 %v22848_v2 }
  0xcc   :  { %1585 = vmatprep.mubr.f32.mxu1 %v1584_v32  ;;  %19077 = vmatpush3.msra.mxu0 %v22848_v2 }
  0xcd   :  { %1591 = vmatmul.mubr.f32.vlgmr.msra.gmra.mxu1 %v1590_v33  ;;  %19078 = vmatprep.subr.mxu0 %v22848_v2 }
  0xce   :  { %1848 = vmatprep.subr.mxu1 %v22849_v3  ;;  %19079 = vmatpush3.msra.mxu0 %v22848_v2 }
  0xcf   :  { %1849 = vmatpush1.msra.mxu1 %v22849_v3  ;;  %19080 = vmatprep.subr.mxu0 %v22848_v2 }
  0xd0   :  { %19081 = vmatpush3.msra.mxu0 %v22848_v2  ;;  %1883 = vmatprep.mubr.f32.mxu1 %v23342_v24 }
  0xd1   :  { %19103 = vmatprep.subr.mxu1 %v22848_v2  ;;  %19082 = vmatprep.subr.mxu0 %v22848_v2 }
  0xd2   :  { %1885 = vmatmul.mubr.f32.vlgmr.msra.gmra.mxu1 %v23346_v25  ;;  %19083 = vmatpush3.msra.mxu0 %v22848_v2 }
  0xd3   :  { %19104 = vmatpush3.msra.mxu1 %v22848_v2  ;;  %19084 = vmatprep.subr.mxu0 %v22848_v2 }
  0xd4   :  { %19105 = vmatprep.subr.mxu1 %v22848_v2  ;;  %19085 = vmatpush3.msra.mxu0 %v22848_v2  ;;  %v273_v34 = vpop.f32.mrf.mxu1 }
  0xd5   :  { %19106 = vmatpush3.msra.mxu1 %v22848_v2  ;;  %19086 = vmatprep.subr.mxu0 %v22848_v2 }
  0xd6   :  { %19107 = vmatprep.subr.mxu1 %v22848_v2  ;;  %19087 = vmatpush3.msra.mxu0 %v22848_v2  ;;  %v275_v35 = vpop.f32.mrf.mxu1 }
  0xd7   :  { %19108 = vmatpush3.msra.mxu1 %v22848_v2  ;;  %19088 = vmatprep.subr.mxu0 %v22848_v2 }
  0xd8   :  { %19109 = vmatprep.subr.mxu1 %v22848_v2  ;;  %19089 = vmatpush3.msra.mxu0 %v22848_v2 }
  0xd9   :  { %19110 = vmatpush3.msra.mxu1 %v22848_v2  ;;  %19090 = vmatprep.subr.mxu0 %v22848_v2 }
  0xda   :  { %19111 = vmatprep.subr.mxu1 %v22848_v2  ;;  %19091 = vmatpush3.msra.mxu0 %v22848_v2 }
  0xdb   :  { %19112 = vmatpush3.msra.mxu1 %v22848_v2  ;;  %19092 = vmatprep.subr.mxu0 %v22848_v2 }
  0xdc   :  { %19113 = vmatprep.subr.mxu1 %v22848_v2  ;;  %19093 = vmatpush3.msra.mxu0 %v22848_v2 }
  0xdd   :  { %19114 = vmatpush3.msra.mxu1 %v22848_v2  ;;  %19094 = vmatprep.subr.mxu0 %v22848_v2 }
  0xde   :  { %19115 = vmatprep.subr.mxu1 %v22848_v2  ;;  %19095 = vmatpush3.msra.mxu0 %v22848_v2 }
  0xdf   :  { %19116 = vmatpush3.msra.mxu1 %v22848_v2  ;;  %19096 = vmatprep.subr.mxu0 %v22848_v2 }
  0xe0   :  { %19117 = vmatprep.subr.mxu1 %v22848_v2  ;;  %19097 = vmatpush3.msra.mxu0 %v22848_v2 }
  0xe1   :  { %19118 = vmatpush3.msra.mxu1 %v22848_v2  ;;  %19098 = vmatprep.subr.mxu0 %v22848_v2 }
  0xe2   :  { %19119 = vmatprep.subr.mxu1 %v22848_v2  ;;  %19099 = vmatpush3.msra.mxu0 %v22848_v2  ;;  %v18750_v45 = vpop.f32.mrf.mxu0 }
  0xe3   :  { %19120 = vmatpush3.msra.mxu1 %v22848_v2  ;;  %1809 = vmatprep.mubr.f32.mxu0 %v1582_v28 }
  0xe4   :  { %19121 = vmatprep.subr.mxu1 %v22848_v2  ;;  %1813 = vmatmul.mubr.f32.vlgmr.msra.gmra.mxu0 %v1588_v29  ;;  %v18751_v46 = vpop.f32.mrf.mxu0 }
  0xe5   :  { %19122 = vmatpush3.msra.mxu1 %v22848_v2  ;;  %19138 = vmatprep.subr.mxu0 %v22848_v2  ;;  %v18752_v47 = vadd.f32 %v18751_v46, %v18750_v45 }
  0xe6   :  { %19123 = vmatprep.subr.mxu1 %v22848_v2  ;;  %19139 = vmatpush3.msra.mxu0 %v22848_v2  ;;  %v199_v49 = vpop.f32.mrf.mxu0 }
  0xe7   :  { %19124 = vmatpush3.msra.mxu1 %v22848_v2  ;;  %19140 = vmatprep.subr.mxu0 %v22848_v2  ;;  %v200_v50 = vadd.f32 %v18752_v47, %v199_v49 }
  0xe8   :  { %19125 = vmatprep.subr.mxu1 %v22848_v2  ;;  %19141 = vmatpush3.msra.mxu0 %v22848_v2  ;;  %v201_v51 = vpop.f32.mrf.mxu0 }
  0xe9   :  { %19126 = vmatpush3.msra.mxu1 %v22848_v2  ;;  %19142 = vmatprep.subr.mxu0 %v22848_v2  ;;  %v274_v52 = vadd.f32 %v273_v34, %v200_v50 }
  0xea   :  { %19127 = vmatprep.subr.mxu1 %v22848_v2  ;;  %19143 = vmatpush3.msra.mxu0 %v22848_v2 }
  0xeb   :  { %19128 = vmatpush3.msra.mxu1 %v22848_v2  ;;  %19144 = vmatprep.subr.mxu0 %v22848_v2  ;;  %v421_v54 = vpop.f32.mrf.mxu0 }
  0xec   :  { %19129 = vmatprep.subr.mxu1 %v22848_v2  ;;  %19145 = vmatpush3.msra.mxu0 %v22848_v2 }
  0xed   :  { %19130 = vmatpush3.msra.mxu1 %v22848_v2  ;;  %19146 = vmatprep.subr.mxu0 %v22848_v2  ;;  %v423_v56 = vpop.f32.mrf.mxu0 }
  0xee   :  { %19131 = vmatprep.subr.mxu1 %v22848_v2  ;;  %19147 = vmatpush3.msra.mxu0 %v22848_v2 }
  0xef   :  { %19132 = vmatpush3.msra.mxu1 %v22848_v2  ;;  %19148 = vmatprep.subr.mxu0 %v22848_v2 }
  0xf0   :  { %19133 = vmatprep.subr.mxu1 %v22848_v2  ;;  %19149 = vmatpush3.msra.mxu0 %v22848_v2 }
  0xf1   :  { %19134 = vmatpush3.msra.mxu1 %v22848_v2  ;;  %1955 = vmatprep.mubr.f32.mxu1 %v23342_v24  ;;  %v2468_v24 = vmul.f32 %v2466_v22, %v2466_v22 }
  0xf2   :  { %19150 = vmatprep.subr.mxu0 %v22848_v2  ;;  %1957 = vmatmul.mubr.f32.vlgmr.msra.gmra.mxu1 %v23346_v25 }
  0xf3   :  { %19151 = vmatpush3.msra.mxu0 %v22848_v2  ;;  %2118 = vmatprep.subr.mxu1 %v22849_v3  ;;  %v2471_v27 = vcombine.low %v2467_v23, %v2468_v24 }
  0xf4   :  { %19152 = vmatprep.subr.mxu0 %v22848_v2  ;;  %2119 = vmatpush1.msra.mxu1 %v22849_v3  ;;  %v18785_v60 = vpop.f32.mrf.mxu1 }
  0xf5   :  { %19153 = vmatpush3.msra.mxu0 %v22848_v2  ;;  %2153 = vmatprep.mubr.f32.mxu1 %v23499_v58  ;;  %v2478_v32 = vrot.slane %v2471_v27, %v22893_v16 }
  0xf6   :  { %19154 = vmatprep.subr.mxu0 %v22848_v2  ;;  %2155 = vmatmul.mubr.f32.vlgmr.msra.gmra.mxu1 %v23503_v59  ;;  %v18786_v62 = vpop.f32.mrf.mxu1 }
  0xf7   :  { %19155 = vmatpush3.msra.mxu0 %v22848_v2  ;;  %2190 = vmatprep.subr.mxu1 %v22849_v3  ;;  %v18787_v0 = vadd.f32 %v18786_v62, %v18785_v60  ;;  %v2479_v34 = vcombine.high %v2478_v32, %v2478_v32  ;;  %v2486_v36 = vrot.slane %v2478_v32, %v22893_v16  ;;  %v23731_v60 = vld [vmem:[%s28960_s0 + $0x5] ss:$8 sm:$0x3] }
  0xf8   :  { %19156 = vmatprep.subr.mxu0 %v22848_v2  ;;  %2191 = vmatpush1.msra.mxu1 %v22849_v3 }
  0xf9   :  { %19157 = vmatpush3.msra.mxu0 %v22848_v2  ;;  %2226 = vmatprep.mubr.f32.mxu1 %v23512_v61  ;;  %v350_v1 = vadd.f32 %v18787_v0, %v274_v52  ;;  %v2493_v35 = vrot.slane %v2479_v34, %v22893_v16  ;;  %v23650_v39 = vand.u32 4294901760, %v2486_v36  ;;  %v23736_v61 = vld [vmem:[%s28960_s0 + $0x35] ss:$8 sm:$0x3]  ;;  %v2957_v0 = vsub.f32 %v23435_v38, %v23731_v60 }
  0xfa   :  { %19158 = vmatprep.subr.mxu0 %v22848_v2  ;;  %19173 = vmatprep.subr.mxu1 %v22848_v2 }
  0xfb   :  { %19159 = vmatpush3.msra.mxu0 %v22848_v2  ;;  %2229 = vmatmul.mubr.f32.vlgmr.msra.gmra.mxu1 %v23519_v63  ;;  %v422_v6 = vadd.f32 %v421_v54, %v350_v1  ;;  %v23646_v37 = vand.u32 4294901760, %v2493_v35  ;;  %v23666_v42 = vsub.f32 %v2486_v36, %v23650_v39  ;;  %v2958_v1 = vsub.f32 %v23442_v40, %v23736_v61 }
  0xfc   :  { %19174 = vmatpush3.msra.mxu1 %v22848_v2  ;;  %19160 = vmatprep.subr.mxu0 %v22848_v2  ;;  %v2959_v38 = vmul.f32 %v2957_v0, %v2957_v0 }
  0xfd   :  { %19175 = vmatprep.subr.mxu1 %v22848_v2  ;;  %19161 = vmatpush3.msra.mxu0 %v22848_v2  ;;  %v23659_v41 = vsub.f32 %v2493_v35, %v23646_v37  ;;  %v2568_v45 = vand.u32 4294901760, %v23666_v42 }
  0xfe   :  { %19176 = vmatpush3.msra.mxu1 %v22848_v2  ;;  %19162 = vmatprep.subr.mxu0 %v22848_v2 }
  0xff   :  { %19177 = vmatprep.subr.mxu1 %v22848_v2  ;;  %19163 = vmatpush3.msra.mxu0 %v22848_v2  ;;  %v2562_v43 = vand.u32 4294901760, %v23659_v41  ;;  %v2569_v49 = vsub.f32 %v23666_v42, %v2568_v45 }
 0x100   :  { %19178 = vmatpush3.msra.mxu1 %v22848_v2  ;;  %19164 = vmatprep.subr.mxu0 %v22848_v2 }
 0x101   :  { %19179 = vmatprep.subr.mxu1 %v22848_v2  ;;  %19165 = vmatpush3.msra.mxu0 %v22848_v2  ;;  %v2563_v48 = vsub.f32 %v23659_v41, %v2562_v43  ;;  %v2570_v53 = vand.u32 4294901760, %v2569_v49 }
 0x102   :  { %19180 = vmatpush3.msra.mxu1 %v22848_v2  ;;  %19166 = vmatprep.subr.mxu0 %v22848_v2 }
 0x103   :  { %19181 = vmatprep.subr.mxu1 %v22848_v2  ;;  %19167 = vmatpush3.msra.mxu0 %v22848_v2  ;;  %v2564_v52 = vand.u32 4294901760, %v2563_v48 }
 0x104   :  { %19182 = vmatpush3.msra.mxu1 %v22848_v2  ;;  %19168 = vmatprep.subr.mxu0 %v22848_v2 }
 0x105   :  { %19183 = vmatprep.subr.mxu1 %v22848_v2  ;;  %19169 = vmatpush3.msra.mxu0 %v22848_v2 }
 0x106   :  { %2077 = vmatprep.mubr.f32.mxu0 %v2076_v9  ;;  %19184 = vmatpush3.msra.mxu1 %v22848_v2 }
 0x107   :  { %2083 = vmatmul.mubr.f32.vlgmr.msra.gmra.mxu0 %v2082_v10  ;;  %19185 = vmatprep.subr.mxu1 %v22848_v2 }
 0x108   :  { %19186 = vmatpush3.msra.mxu1 %v22848_v2  ;;  %2340 = vmatprep.subr.mxu0 %v22849_v3 }
 0x109   :  { %19187 = vmatprep.subr.mxu1 %v22848_v2  ;;  %2341 = vmatpush1.msra.mxu0 %v22849_v3 }
 0x10a   :  { %19188 = vmatpush3.msra.mxu1 %v22848_v2  ;;  %2375 = vmatprep.mubr.f32.mxu0 %v23499_v58 }
 0x10b   :  { %19208 = vmatprep.subr.mxu0 %v22848_v2  ;;  %19189 = vmatprep.subr.mxu1 %v22848_v2 }
 0x10c   :  { %2377 = vmatmul.mubr.f32.vlgmr.msra.gmra.mxu0 %v23503_v59  ;;  %19190 = vmatpush3.msra.mxu1 %v22848_v2  ;;  %v18820_v14 = vpop.f32.mrf.mxu0 }
 0x10d   :  { %19209 = vmatpush3.msra.mxu0 %v22848_v2  ;;  %19191 = vmatprep.subr.mxu1 %v22848_v2 }
 0x10e   :  { %19210 = vmatprep.subr.mxu0 %v22848_v2  ;;  %19192 = vmatpush3.msra.mxu1 %v22848_v2  ;;  %v18821_v15 = vpop.f32.mrf.mxu0 }
 0x10f   :  { %19211 = vmatpush3.msra.mxu0 %v22848_v2  ;;  %19193 = vmatprep.subr.mxu1 %v22848_v2  ;;  %v18822_v17 = vadd.f32 %v18821_v15, %v18820_v14 }
 0x110   :  { %19212 = vmatprep.subr.mxu0 %v22848_v2  ;;  %19194 = vmatpush3.msra.mxu1 %v22848_v2 }
 0x111   :  { %19213 = vmatpush3.msra.mxu0 %v22848_v2  ;;  %19195 = vmatprep.subr.mxu1 %v22848_v2  ;;  %v23579_v18 = vadd.f32 %v18822_v17, %v422_v6  ;;  %v687_v19 = vpop.f32.mrf.mxu0 }
 0x112   :  { %19214 = vmatprep.subr.mxu0 %v22848_v2  ;;  %19196 = vmatpush3.msra.mxu1 %v22848_v2 }
 0x113   :  { %19215 = vmatpush3.msra.mxu0 %v22848_v2  ;;  %19197 = vmatprep.subr.mxu1 %v22848_v2  ;;  %v689_v20 = vpop.f32.mrf.mxu0  ;;  %22716 = vrsqrt.f32 %v23579_v18  ;;  %vm499_vm0 = vcmp.eq.f32.partialorder %v23579_v18, inf  ;;  %v502_v14 = vand.u32 2147483648, %v23579_v18  ;;  %vm501_vm2 = vcmp.eq.f32.partialorder %v23579_v18, 0.0 }
 0x114   :  { %19216 = vmatprep.subr.mxu0 %v22848_v2  ;;  %19198 = vmatpush3.msra.mxu1 %v22848_v2 }
 0x115   :  { %19217 = vmatpush3.msra.mxu0 %v22848_v2  ;;  %19199 = vmatprep.subr.mxu1 %v22848_v2 }
 0x116   :  { %19218 = vmatprep.subr.mxu0 %v22848_v2  ;;  %19200 = vmatpush3.msra.mxu1 %v22848_v2 }
 0x117   :  { %19219 = vmatpush3.msra.mxu0 %v22848_v2  ;;  %19201 = vmatprep.subr.mxu1 %v22848_v2  ;;  %v18855_v12 = vpop.f32.mrf.mxu1 }
 0x118   :  { %19220 = vmatprep.subr.mxu0 %v22848_v2  ;;  %19202 = vmatpush3.msra.mxu1 %v22848_v2 }
 0x119   :  { %19221 = vmatpush3.msra.mxu0 %v22848_v2  ;;  %19203 = vmatprep.subr.mxu1 %v22848_v2  ;;  %v18856_v13 = vpop.f32.mrf.mxu1 }
 0x11a   :  { %19222 = vmatprep.subr.mxu0 %v22848_v2  ;;  %19204 = vmatpush3.msra.mxu1 %v22848_v2  ;;  %v18857_v25 = vadd.f32 %v18856_v13, %v18855_v12 }
 0x11b   :  { %19223 = vmatpush3.msra.mxu0 %v22848_v2  ;;  %2301 = vmatprep.mubr.f32.mxu1 %v2074_v4  ;;  %v761_v26 = vpop.f32.mrf.mxu1 }
 0x11c   :  { %19224 = vmatprep.subr.mxu0 %v22848_v2  ;;  %2305 = vmatmul.mubr.f32.vlgmr.msra.gmra.mxu1 %v2080_v5  ;;  %v688_v28 = vadd.f32 %v18857_v25, %v687_v19  ;;  %v2960_v5 = vmul.f32 %v2958_v1, %v2958_v1 }
 0x11d   :  { %19225 = vmatpush3.msra.mxu0 %v22848_v2  ;;  %19243 = vmatprep.subr.mxu1 %v22848_v2  ;;  %v763_v29 = vpop.f32.mrf.mxu1 }
 0x11e   :  { %19226 = vmatprep.subr.mxu0 %v22848_v2  ;;  %19244 = vmatpush3.msra.mxu1 %v22848_v2  ;;  %v23613_v30 = vadd.f32 %v761_v26, %v688_v28  ;;  %v2963_v6 = vcombine.low %v2959_v38, %v2960_v5 }
 0x11f   :  { %19227 = vmatpush3.msra.mxu0 %v22848_v2  ;;  %19245 = vmatprep.subr.mxu1 %v22848_v2  ;;  %v23617_v31 = vpop.f32.mrf.mxu1 }
 0x120   :  { %19228 = vmatprep.subr.mxu0 %v22848_v2  ;;  %19246 = vmatpush3.msra.mxu1 %v22848_v2  ;;  %v22717_v4 = vpop.eup %22716  ;;  %v2970_v20 = vrot.slane %v2963_v6, %v22893_v16 }
 0x121   :  { %19229 = vmatpush3.msra.mxu0 %v22848_v2  ;;  %19247 = vmatprep.subr.mxu1 %v22848_v2  ;;  %v911_v33 = vpop.f32.mrf.mxu1  ;;  %v498_v40 = vmul.f32 %v22717_v4, %v23579_v18 }
 0x122   :  { %19230 = vmatprep.subr.mxu0 %v22848_v2  ;;  %19248 = vmatpush3.msra.mxu1 %v22848_v2  ;;  %v2971_v13 = vcombine.high %v2970_v20, %v2970_v20  ;;  %v2978_v28 = vrot.slane %v2970_v20, %v22893_v16 }
 0x123   :  { %19231 = vmatpush3.msra.mxu0 %v22848_v2  ;;  %19249 = vmatprep.subr.mxu1 %v22848_v2  ;;  %v500_v8 = vsel %vm499_vm0, %v23579_v18, %v498_v40 }
 0x124   :  { %19232 = vmatprep.subr.mxu0 %v22848_v2  ;;  %19250 = vmatpush3.msra.mxu1 %v22848_v2  ;;  %v503_v21 = vsel %vm501_vm2, %v502_v14, %v500_v8  ;;  %v2985_v27 = vrot.slane %v2971_v13, %v22893_v16 }
 0x125   :  { %19233 = vmatpush3.msra.mxu0 %v22848_v2  ;;  %19251 = vmatprep.subr.mxu1 %v22848_v2 }
 0x126   :  { %19234 = vmatprep.subr.mxu0 %v22848_v2  ;;  %19252 = vmatpush3.msra.mxu1 %v22848_v2  ;;  %v23819_v29 = vand.u32 4294901760, %v2985_v27 }
 0x127   :  { %19235 = vmatpush3.msra.mxu0 %v22848_v2  ;;  %19253 = vmatprep.subr.mxu1 %v22848_v2 }
 0x128   :  { %19236 = vmatprep.subr.mxu0 %v22848_v2  ;;  %19254 = vmatpush3.msra.mxu1 %v22848_v2 }
 0x129   :  { %19237 = vmatpush3.msra.mxu0 %v22848_v2  ;;  %19255 = vmatprep.subr.mxu1 %v22848_v2 }
 0x12a   :  { %19238 = vmatprep.subr.mxu0 %v22848_v2  ;;  %19256 = vmatpush3.msra.mxu1 %v22848_v2 }
 0x12b   :  { %19239 = vmatpush3.msra.mxu0 %v22848_v2  ;;  %2447 = vmatprep.mubr.f32.mxu0 %v23499_v58 }
 0x12c   :  { %19257 = vmatprep.subr.mxu1 %v22848_v2  ;;  %2449 = vmatmul.mubr.f32.vlgmr.msra.gmra.mxu0 %v23503_v59 }
 0x12d   :  { %19258 = vmatpush3.msra.mxu1 %v22848_v2  ;;  %2606 = vmatprep.subr.mxu0 %v22849_v3 }
 0x12e   :  { %19259 = vmatprep.subr.mxu1 %v22848_v2  ;;  %2607 = vmatpush1.msra.mxu0 %v22849_v3 }
 0x12f   :  { %19260 = vmatpush3.msra.mxu1 %v22848_v2  ;;  %2641 = vmatprep.mubr.f32.mxu0 %v23646_v37 }
 0x130   :  { %19261 = vmatprep.subr.mxu1 %v22848_v2  ;;  %2643 = vmatmul.mubr.f32.vlgmr.msra.gmra.mxu0 %v23650_v39 }
 0x131   :  { %19262 = vmatpush3.msra.mxu1 %v22848_v2  ;;  %2678 = vmatprep.subr.mxu0 %v22849_v3 }
 0x132   :  { %19263 = vmatprep.subr.mxu1 %v22848_v2  ;;  %2679 = vmatpush1.msra.mxu0 %v22849_v3  ;;  %v18890_v44 = vpop.f32.mrf.mxu0 }
 0x133   :  { %19264 = vmatpush3.msra.mxu1 %v22848_v2  ;;  %2714 = vmatprep.mubr.f32.mxu0 %v23659_v41 }
 0x134   :  { %19265 = vmatprep.subr.mxu1 %v22848_v2  ;;  %19278 = vmatprep.subr.mxu0 %v22848_v2  ;;  %v18891_v46 = vpop.f32.mrf.mxu0 }
 0x135   :  { %19266 = vmatpush3.msra.mxu1 %v22848_v2  ;;  %2717 = vmatmul.mubr.f32.vlgmr.msra.gmra.mxu0 %v23666_v42  ;;  %v18892_v47 = vadd.f32 %v18891_v46, %v18890_v44 }
 0x136   :  { %19279 = vmatpush3.msra.mxu0 %v22848_v2  ;;  %19267 = vmatprep.subr.mxu1 %v22848_v2 }
 0x137   :  { %19280 = vmatprep.subr.mxu0 %v22848_v2  ;;  %19268 = vmatpush3.msra.mxu1 %v22848_v2  ;;  %v838_v50 = vadd.f32 %v18892_v47, %v23613_v30  ;;  %v23823_v30 = vand.u32 4294901760, %v2978_v28 }
 0x138   :  { %19281 = vmatpush3.msra.mxu0 %v22848_v2  ;;  %19269 = vmatprep.subr.mxu1 %v22848_v2 }
 0x139   :  { %19282 = vmatprep.subr.mxu0 %v22848_v2  ;;  %19270 = vmatpush3.msra.mxu1 %v22848_v2  ;;  %v910_v51 = vadd.f32 %v23617_v31, %v838_v50  ;;  %v23832_v31 = vsub.f32 %v2985_v27, %v23819_v29  ;;  %v23839_v32 = vsub.f32 %v2978_v28, %v23823_v30 }
 0x13a   :  { %19283 = vmatpush3.msra.mxu0 %v22848_v2  ;;  %19271 = vmatprep.subr.mxu1 %v22848_v2 }
 0x13b   :  { %19284 = vmatprep.subr.mxu0 %v22848_v2  ;;  %19272 = vmatpush3.msra.mxu1 %v22848_v2  ;;  %v3054_v34 = vand.u32 4294901760, %v23832_v31  ;;  %v3060_v36 = vand.u32 4294901760, %v23839_v32 }
 0x13c   :  { %19285 = vmatpush3.msra.mxu0 %v22848_v2  ;;  %19273 = vmatprep.subr.mxu1 %v22848_v2 }
 0x13d   :  { %19286 = vmatprep.subr.mxu0 %v22848_v2  ;;  %19274 = vmatpush3.msra.mxu1 %v22848_v2  ;;  %v3055_v41 = vsub.f32 %v23832_v31, %v3054_v34  ;;  %v3061_v42 = vsub.f32 %v23839_v32, %v3060_v36 }
 0x13e   :  { %2565 = vmatprep.mubr.f32.mxu1 %v2564_v52  ;;  %19287 = vmatpush3.msra.mxu0 %v22848_v2 }
 0x13f   :  { %2571 = vmatmul.mubr.f32.vlgmr.msra.gmra.mxu1 %v2570_v53  ;;  %19288 = vmatprep.subr.mxu0 %v22848_v2  ;;  %v3056_v44 = vand.u32 4294901760, %v3055_v41 }
 0x140   :  { %2828 = vmatprep.subr.mxu1 %v22849_v3  ;;  %19289 = vmatpush3.msra.mxu0 %v22848_v2  ;;  %v18925_v54 = vpop.f32.mrf.mxu1 }
 0x141   :  { %2829 = vmatpush1.msra.mxu1 %v22849_v3  ;;  %19290 = vmatprep.subr.mxu0 %v22848_v2 }
 0x142   :  { %19291 = vmatpush3.msra.mxu0 %v22848_v2  ;;  %2863 = vmatprep.mubr.f32.mxu1 %v23646_v37  ;;  %v18926_v55 = vpop.f32.mrf.mxu1 }
 0x143   :  { %19313 = vmatprep.subr.mxu1 %v22848_v2  ;;  %19292 = vmatprep.subr.mxu0 %v22848_v2  ;;  %v18927_v56 = vadd.f32 %v18926_v55, %v18925_v54  ;;  %v23909_v54 = vld [vmem:[%s28960_s0 + $0x25] ss:$8 sm:$0x3] }
 0x144   :  { %2865 = vmatmul.mubr.f32.vlgmr.msra.gmra.mxu1 %v23650_v39  ;;  %19293 = vmatpush3.msra.mxu0 %v22848_v2  ;;  %v23715_v57 = vpop.f32.mrf.mxu1  ;;  %v3445_v55 = vsub.f32 %v23731_v60, %v23909_v54 }
 0x145   :  { %19314 = vmatpush3.msra.mxu1 %v22848_v2  ;;  %19294 = vmatprep.subr.mxu0 %v22848_v2  ;;  %v23719_v58 = vadd.f32 %v18927_v56, %v910_v51  ;;  %v23916_v56 = vld [vmem:[%s28960_s0 + $0x55] ss:$8 sm:$0x3] }
 0x146   :  { %19315 = vmatprep.subr.mxu1 %v22848_v2  ;;  %19295 = vmatpush3.msra.mxu0 %v22848_v2  ;;  %v1178_v59 = vpop.f32.mrf.mxu1 }
 0x147   :  { %19316 = vmatpush3.msra.mxu1 %v22848_v2  ;;  %19296 = vmatprep.subr.mxu0 %v22848_v2  ;;  %22718 = vrsqrt.f32 %v23719_v58  ;;  %vm987_vm1 = vcmp.eq.f32.partialorder %v23719_v58, inf  ;;  %v990_v15 = vand.u32 2147483648, %v23719_v58  ;;  %vm989_vm3 = vcmp.eq.f32.partialorder %v23719_v58, 0.0 }
 0x148   :  { %19317 = vmatprep.subr.mxu1 %v22848_v2  ;;  %19297 = vmatpush3.msra.mxu0 %v22848_v2 }
 0x149   :  { %19318 = vmatpush3.msra.mxu1 %v22848_v2  ;;  %19298 = vmatprep.subr.mxu0 %v22848_v2  ;;  %v23740_v62 = vpop.f32.mrf.mxu1 }
 0x14a   :  { %19319 = vmatprep.subr.mxu1 %v22848_v2  ;;  %19299 = vmatpush3.msra.mxu0 %v22848_v2 }
 0x14b   :  { %19320 = vmatpush3.msra.mxu1 %v22848_v2  ;;  %19300 = vmatprep.subr.mxu0 %v22848_v2  ;;  %v1252_v63 = vpop.f32.mrf.mxu1 }
 0x14c   :  { %19321 = vmatprep.subr.mxu1 %v22848_v2  ;;  %19301 = vmatpush3.msra.mxu0 %v22848_v2 }
 0x14d   :  { %19322 = vmatpush3.msra.mxu1 %v22848_v2  ;;  %19302 = vmatprep.subr.mxu0 %v22848_v2 }
 0x14e   :  { %19323 = vmatprep.subr.mxu1 %v22848_v2  ;;  %19303 = vmatpush3.msra.mxu0 %v22848_v2 }
 0x14f   :  { %19324 = vmatpush3.msra.mxu1 %v22848_v2  ;;  %19304 = vmatprep.subr.mxu0 %v22848_v2 }
 0x150   :  { %19325 = vmatprep.subr.mxu1 %v22848_v2  ;;  %19305 = vmatpush3.msra.mxu0 %v22848_v2 }
 0x151   :  { %19326 = vmatpush3.msra.mxu1 %v22848_v2  ;;  %19306 = vmatprep.subr.mxu0 %v22848_v2 }
 0x152   :  { %19327 = vmatprep.subr.mxu1 %v22848_v2  ;;  %19307 = vmatpush3.msra.mxu0 %v22848_v2 }
 0x153   :  { %19328 = vmatpush3.msra.mxu1 %v22848_v2  ;;  %19308 = vmatprep.subr.mxu0 %v22848_v2 }
 0x154   :  { %v22719_v7 = vpop.eup %22718  ;;  %19329 = vmatprep.subr.mxu1 %v22848_v2  ;;  %19309 = vmatpush3.msra.mxu0 %v22848_v2 }
 0x155   :  { %v986_v9 = vmul.f32 %v22719_v7, %v23719_v58  ;;  %19330 = vmatpush3.msra.mxu1 %v22848_v2  ;;  %2789 = vmatprep.mubr.f32.mxu0 %v2562_v43  ;;  %v18960_v10 = vpop.f32.mrf.mxu0 }
 0x156   :  { %19331 = vmatprep.subr.mxu1 %v22848_v2  ;;  %2793 = vmatmul.mubr.f32.vlgmr.msra.gmra.mxu0 %v2568_v45  ;;  %v3062_v45 = vand.u32 4294901760, %v3061_v42 }
 0x157   :  { %v988_v17 = vsel %vm987_vm1, %v23719_v58, %v986_v9  ;;  %19332 = vmatpush3.msra.mxu1 %v22848_v2  ;;  %19348 = vmatprep.subr.mxu0 %v22848_v2  ;;  %v18961_v19 = vpop.f32.mrf.mxu0  ;;  %v3447_v58 = vmul.f32 %v3445_v55, %v3445_v55 }
 0x158   :  { %v991_v22 = vsel %vm989_vm3, %v990_v15, %v988_v17  ;;  %19333 = vmatprep.subr.mxu1 %v22848_v2  ;;  %19349 = vmatpush3.msra.mxu0 %v22848_v2  ;;  %v18962_v12 = vadd.f32 %v18961_v19, %v18960_v10 }
 0x159   :  { %v23789_v23 = vmin.f32 %v503_v21, %v991_v22  ;;  %19334 = vmatpush3.msra.mxu1 %v22848_v2  ;;  %19350 = vmatprep.subr.mxu0 %v22848_v2 }
 0x15a   :  { %19335 = vmatprep.subr.mxu1 %v22848_v2  ;;  %19351 = vmatpush3.msra.mxu0 %v22848_v2  ;;  %v1177_v18 = vadd.f32 %v18962_v12, %v23715_v57  ;;  %v23796_v24 = vpop.f32.mrf.mxu0  ;;  %v3446_v57 = vsub.f32 %v23736_v61, %v23916_v56 }
 0x15b   :  { %19336 = vmatpush3.msra.mxu1 %v22848_v2  ;;  %19352 = vmatprep.subr.mxu0 %v22848_v2 }
 0x15c   :  { %19337 = vmatprep.subr.mxu1 %v22848_v2  ;;  %19353 = vmatpush3.msra.mxu0 %v22848_v2  ;;  %v1400_v25 = vpop.f32.mrf.mxu0  ;;  %v1251_v26 = vadd.f32 %v23740_v62, %v1177_v18  ;;  %v3448_v59 = vmul.f32 %v3446_v57, %v3446_v57 }
 0x15d   :  { %19338 = vmatpush3.msra.mxu1 %v22848_v2  ;;  %19354 = vmatprep.subr.mxu0 %v22848_v2 }
 0x15e   :  { %19339 = vmatprep.subr.mxu1 %v22848_v2  ;;  %19355 = vmatpush3.msra.mxu0 %v22848_v2  ;;  %v3451_v61 = vcombine.low %v3447_v58, %v3448_v59 }
 0x15f   :  { %19340 = vmatpush3.msra.mxu1 %v22848_v2  ;;  %19356 = vmatprep.subr.mxu0 %v22848_v2 }
 0x160   :  { %19341 = vmatprep.subr.mxu1 %v22848_v2  ;;  %19357 = vmatpush3.msra.mxu0 %v22848_v2  ;;  %v3458_v0 = vrot.slane %v3451_v61, %v22893_v16 }
 0x161   :  { %19342 = vmatpush3.msra.mxu1 %v22848_v2  ;;  %19358 = vmatprep.subr.mxu0 %v22848_v2 }
 0x162   :  { %19343 = vmatprep.subr.mxu1 %v22848_v2  ;;  %19359 = vmatpush3.msra.mxu0 %v22848_v2  ;;  %v3459_v40 = vcombine.high %v3458_v0, %v3458_v0  ;;  %v3466_v7 = vrot.slane %v3458_v0, %v22893_v16 }
 0x163   :  { %19344 = vmatpush3.msra.mxu1 %v22848_v2  ;;  %2935 = vmatprep.mubr.f32.mxu1 %v23646_v37 }
 0x164   :  { %19360 = vmatprep.subr.mxu0 %v22848_v2  ;;  %2937 = vmatmul.mubr.f32.vlgmr.msra.gmra.mxu1 %v23650_v39  ;;  %v3473_v6 = vrot.slane %v3459_v40, %v22893_v16  ;;  %v23979_v9 = vand.u32 4294901760, %v3466_v7 }
 0x165   :  { %19361 = vmatpush3.msra.mxu0 %v22848_v2  ;;  %3098 = vmatprep.subr.mxu1 %v22849_v3 }
 0x166   :  { %19362 = vmatprep.subr.mxu0 %v22848_v2  ;;  %3099 = vmatpush1.msra.mxu1 %v22849_v3  ;;  %v23975_v8 = vand.u32 4294901760, %v3473_v6  ;;  %v23995_v14 = vsub.f32 %v3466_v7, %v23979_v9 }
 0x167   :  { %19363 = vmatpush3.msra.mxu0 %v22848_v2  ;;  %3133 = vmatprep.mubr.f32.mxu1 %v23819_v29 }
 0x168   :  { %19364 = vmatprep.subr.mxu0 %v22848_v2  ;;  %3135 = vmatmul.mubr.f32.vlgmr.msra.gmra.mxu1 %v23823_v30  ;;  %v23988_v10 = vsub.f32 %v3473_v6, %v23975_v8  ;;  %v3548_v19 = vand.u32 4294901760, %v23995_v14 }
 0x169   :  { %19365 = vmatpush3.msra.mxu0 %v22848_v2  ;;  %3170 = vmatprep.subr.mxu1 %v22849_v3 }
 0x16a   :  { %19366 = vmatprep.subr.mxu0 %v22848_v2  ;;  %3171 = vmatpush1.msra.mxu1 %v22849_v3  ;;  %v18995_v33 = vpop.f32.mrf.mxu1  ;;  %v3542_v15 = vand.u32 4294901760, %v23988_v10  ;;  %v3549_v12 = vsub.f32 %v23995_v14, %v3548_v19 }
 0x16b   :  { %19367 = vmatpush3.msra.mxu0 %v22848_v2  ;;  %3206 = vmatprep.mubr.f32.mxu1 %v23832_v31 }
 0x16c   :  { %19368 = vmatprep.subr.mxu0 %v22848_v2  ;;  %19383 = vmatprep.subr.mxu1 %v22848_v2  ;;  %v18996_v35 = vpop.f32.mrf.mxu1  ;;  %v3543_v22 = vsub.f32 %v23988_v10, %v3542_v15  ;;  %v3550_v25 = vand.u32 4294901760, %v3549_v12 }
 0x16d   :  { %19369 = vmatpush3.msra.mxu0 %v22848_v2  ;;  %3209 = vmatmul.mubr.f32.vlgmr.msra.gmra.mxu1 %v23839_v32  ;;  %v18997_v37 = vadd.f32 %v18996_v35, %v18995_v33  ;;  %v24055_v32 = vld [vmem:[%s28960_s0 + $0x6] ss:$8 sm:$0x3]  ;;  %v24060_v33 = vld [vmem:[%s28960_s0 + $0x36] ss:$8 sm:$0x3] }
 0x16e   :  { %19384 = vmatpush3.msra.mxu1 %v22848_v2  ;;  %19370 = vmatprep.subr.mxu0 %v22848_v2  ;;  %v3544_v13 = vand.u32 4294901760, %v3543_v22 }
 0x16f   :  { %19385 = vmatprep.subr.mxu1 %v22848_v2  ;;  %19371 = vmatpush3.msra.mxu0 %v22848_v2  ;;  %v1327_v39 = vadd.f32 %v18997_v37, %v1251_v26 }
 0x170   :  { %19386 = vmatpush3.msra.mxu1 %v22848_v2  ;;  %19372 = vmatprep.subr.mxu0 %v22848_v2 }
 0x171   :  { %19387 = vmatprep.subr.mxu1 %v22848_v2  ;;  %19373 = vmatpush3.msra.mxu0 %v22848_v2  ;;  %v1399_v43 = vadd.f32 %v23796_v24, %v1327_v39  ;;  %v24078_v39 = vld [vmem:[%s28960_s0 + $0x30] ss:$8 sm:$0x3] }
 0x172   :  { %19388 = vmatpush3.msra.mxu1 %v22848_v2  ;;  %19374 = vmatprep.subr.mxu0 %v22848_v2  ;;  %v3938_v41 = vsub.f32 %v24078_v39, %v24060_v33 }
 0x173   :  { %19389 = vmatprep.subr.mxu1 %v22848_v2  ;;  %19375 = vmatpush3.msra.mxu0 %v22848_v2 }
 0x174   :  { %19390 = vmatpush3.msra.mxu1 %v22848_v2  ;;  %19376 = vmatprep.subr.mxu0 %v22848_v2 }
 0x175   :  { %19391 = vmatprep.subr.mxu1 %v22848_v2  ;;  %19377 = vmatpush3.msra.mxu0 %v22848_v2 }
 0x176   :  { %19392 = vmatpush3.msra.mxu1 %v22848_v2  ;;  %19378 = vmatprep.subr.mxu0 %v22848_v2 }
 0x177   :  { %19393 = vmatprep.subr.mxu1 %v22848_v2  ;;  %19379 = vmatpush3.msra.mxu0 %v22848_v2 }
 0x178   :  { %3057 = vmatprep.mubr.f32.mxu0 %v3056_v44  ;;  %19394 = vmatpush3.msra.mxu1 %v22848_v2 }
 0x179   :  { %3063 = vmatmul.mubr.f32.vlgmr.msra.gmra.mxu0 %v3062_v45  ;;  %19395 = vmatprep.subr.mxu1 %v22848_v2 }
 0x17a   :  { %19396 = vmatpush3.msra.mxu1 %v22848_v2  ;;  %3320 = vmatprep.subr.mxu0 %v22849_v3  ;;  %v19030_v46 = vpop.f32.mrf.mxu0 }
 0x17b   :  { %19397 = vmatprep.subr.mxu1 %v22848_v2  ;;  %3321 = vmatpush1.msra.mxu0 %v22849_v3 }
 0x17c   :  { %19398 = vmatpush3.msra.mxu1 %v22848_v2  ;;  %3355 = vmatprep.mubr.f32.mxu0 %v23819_v29  ;;  %v19031_v47 = vpop.f32.mrf.mxu0 }
 0x17d   :  { %19418 = vmatprep.subr.mxu0 %v22848_v2  ;;  %19399 = vmatprep.subr.mxu1 %v22848_v2  ;;  %v19032_v48 = vadd.f32 %v19031_v47, %v19030_v46 }
 0x17e   :  { %3357 = vmatmul.mubr.f32.vlgmr.msra.gmra.mxu0 %v23823_v30  ;;  %19400 = vmatpush3.msra.mxu1 %v22848_v2  ;;  %v1664_v49 = vpop.f32.mrf.mxu0 }
 0x17f   :  { %19419 = vmatpush3.msra.mxu0 %v22848_v2  ;;  %19401 = vmatprep.subr.mxu1 %v22848_v2  ;;  %v23892_v50 = vadd.f32 %v19032_v48, %v1399_v43  ;;  %v3940_v43 = vmul.f32 %v3938_v41, %v3938_v41 }
 0x180   :  { %19420 = vmatprep.subr.mxu0 %v22848_v2  ;;  %19402 = vmatpush3.msra.mxu1 %v22848_v2  ;;  %v1666_v51 = vpop.f32.mrf.mxu0 }
 0x181   :  { %19421 = vmatpush3.msra.mxu0 %v22848_v2  ;;  %19403 = vmatprep.subr.mxu1 %v22848_v2  ;;  %22720 = vrsqrt.f32 %v23892_v50  ;;  %vm1476_vm4 = vcmp.eq.f32.partialorder %v23892_v50, inf  ;;  %vm1478_vm5 = vcmp.eq.f32.partialorder %v23892_v50, 0.0 }
 0x182   :  { %19422 = vmatprep.subr.mxu0 %v22848_v2  ;;  %19404 = vmatpush3.msra.mxu1 %v22848_v2 }
 0x183   :  { %19423 = vmatpush3.msra.mxu0 %v22848_v2  ;;  %19405 = vmatprep.subr.mxu1 %v22848_v2  ;;  %v1738_v52 = vpop.f32.mrf.mxu0 }
 0x184   :  { %19424 = vmatprep.subr.mxu0 %v22848_v2  ;;  %19406 = vmatpush3.msra.mxu1 %v22848_v2 }
 0x185   :  { %19425 = vmatpush3.msra.mxu0 %v22848_v2  ;;  %19407 = vmatprep.subr.mxu1 %v22848_v2  ;;  %v1740_v53 = vpop.f32.mrf.mxu0 }
 0x186   :  { %19426 = vmatprep.subr.mxu0 %v22848_v2  ;;  %19408 = vmatpush3.msra.mxu1 %v22848_v2 }
 0x187   :  { %19427 = vmatpush3.msra.mxu0 %v22848_v2  ;;  %19409 = vmatprep.subr.mxu1 %v22848_v2 }
 0x188   :  { %19428 = vmatprep.subr.mxu0 %v22848_v2  ;;  %19410 = vmatpush3.msra.mxu1 %v22848_v2 }
 0x189   :  { %19429 = vmatpush3.msra.mxu0 %v22848_v2  ;;  %19411 = vmatprep.subr.mxu1 %v22848_v2 }
 0x18a   :  { %19430 = vmatprep.subr.mxu0 %v22848_v2  ;;  %19412 = vmatpush3.msra.mxu1 %v22848_v2 }
 0x18b   :  { %19431 = vmatpush3.msra.mxu0 %v22848_v2  ;;  %19413 = vmatprep.subr.mxu1 %v22848_v2 }
 0x18c   :  { %19432 = vmatprep.subr.mxu0 %v22848_v2  ;;  %19414 = vmatpush3.msra.mxu1 %v22848_v2 }
 0x18d   :  { %19433 = vmatpush3.msra.mxu0 %v22848_v2  ;;  %3281 = vmatprep.mubr.f32.mxu1 %v3054_v34  ;;  %v19065_v60 = vpop.f32.mrf.mxu1 }
 0x18e   :  { %19434 = vmatprep.subr.mxu0 %v22848_v2  ;;  %3285 = vmatmul.mubr.f32.vlgmr.msra.gmra.mxu1 %v3060_v36  ;;  %v24071_v36 = vld [vmem:[%s28960_s0] ss:$8 sm:$0x3] }
 0x18f   :  { %19435 = vmatpush3.msra.mxu0 %v22848_v2  ;;  %19453 = vmatprep.subr.mxu1 %v22848_v2  ;;  %v19066_v62 = vpop.f32.mrf.mxu1  ;;  %v3937_v37 = vsub.f32 %v24071_v36, %v24055_v32 }
 0x190   :  { %19436 = vmatprep.subr.mxu0 %v22848_v2  ;;  %19454 = vmatpush3.msra.mxu1 %v22848_v2  ;;  %v19067_v63 = vadd.f32 %v19066_v62, %v19065_v60 }
 0x191   :  { %19437 = vmatpush3.msra.mxu0 %v22848_v2  ;;  %19455 = vmatprep.subr.mxu1 %v22848_v2  ;;  %v3939_v42 = vmul.f32 %v3937_v37, %v3937_v37 }
 0x192   :  { %19438 = vmatprep.subr.mxu0 %v22848_v2  ;;  %19456 = vmatpush3.msra.mxu1 %v22848_v2  ;;  %v1665_v1 = vadd.f32 %v19067_v63, %v1664_v49  ;;  %v23949_v4 = vpop.f32.mrf.mxu1 }
 0x193   :  { %19439 = vmatpush3.msra.mxu0 %v22848_v2  ;;  %19457 = vmatprep.subr.mxu1 %v22848_v2  ;;  %v3943_v44 = vcombine.low %v3939_v42, %v3940_v43 }
 0x194   :  { %19440 = vmatprep.subr.mxu0 %v22848_v2  ;;  %19458 = vmatpush3.msra.mxu1 %v22848_v2  ;;  %v1888_v38 = vpop.f32.mrf.mxu1  ;;  %v1739_v5 = vadd.f32 %v1738_v52, %v1665_v1 }
 0x195   :  { %19441 = vmatpush3.msra.mxu0 %v22848_v2  ;;  %19459 = vmatprep.subr.mxu1 %v22848_v2  ;;  %v3950_v47 = vrot.slane %v3943_v44, %v22893_v16 }
 0x196   :  { %19442 = vmatprep.subr.mxu0 %v22848_v2  ;;  %19460 = vmatpush3.msra.mxu1 %v22848_v2 }
 0x197   :  { %19443 = vmatpush3.msra.mxu0 %v22848_v2  ;;  %19461 = vmatprep.subr.mxu1 %v22848_v2  ;;  %v3951_v52 = vcombine.high %v3950_v47, %v3950_v47  ;;  %v3958_v58 = vrot.slane %v3950_v47, %v22893_v16 }
 0x198   :  { %19444 = vmatprep.subr.mxu0 %v22848_v2  ;;  %19462 = vmatpush3.msra.mxu1 %v22848_v2 }
 0x199   :  { %19445 = vmatpush3.msra.mxu0 %v22848_v2  ;;  %19463 = vmatprep.subr.mxu1 %v22848_v2  ;;  %v3965_v57 = vrot.slane %v3951_v52, %v22893_v16  ;;  %v24141_v60 = vand.u32 4294901760, %v3958_v58 }
 0x19a   :  { %19446 = vmatprep.subr.mxu0 %v22848_v2  ;;  %19464 = vmatpush3.msra.mxu1 %v22848_v2 }
 0x19b   :  { %19447 = vmatpush3.msra.mxu0 %v22848_v2  ;;  %19465 = vmatprep.subr.mxu1 %v22848_v2  ;;  %v24137_v59 = vand.u32 4294901760, %v3965_v57  ;;  %v24157_v62 = vsub.f32 %v3958_v58, %v24141_v60 }
 0x19c   :  { %19448 = vmatprep.subr.mxu0 %v22848_v2  ;;  %19466 = vmatpush3.msra.mxu1 %v22848_v2 }
 0x19d   :  { %19449 = vmatpush3.msra.mxu0 %v22848_v2  ;;  %3427 = vmatprep.mubr.f32.mxu0 %v23819_v29  ;;  %v24150_v61 = vsub.f32 %v3965_v57, %v24137_v59 }
 0x19e   :  { %19467 = vmatprep.subr.mxu1 %v22848_v2  ;;  %3429 = vmatmul.mubr.f32.vlgmr.msra.gmra.mxu0 %v23823_v30 }
 0x19f   :  { %19468 = vmatpush3.msra.mxu1 %v22848_v2  ;;  %3586 = vmatprep.subr.mxu0 %v22849_v3  ;;  %v4034_v0 = vand.u32 4294901760, %v24150_v61 }
 0x1a0   :  { %19469 = vmatprep.subr.mxu1 %v22848_v2  ;;  %3587 = vmatpush1.msra.mxu0 %v22849_v3 }
 0x1a1   :  { %19470 = vmatpush3.msra.mxu1 %v22848_v2  ;;  %3621 = vmatprep.mubr.f32.mxu0 %v23975_v8  ;;  %v4035_v40 = vsub.f32 %v24150_v61, %v4034_v0 }
 0x1a2   :  { %19471 = vmatprep.subr.mxu1 %v22848_v2  ;;  %3623 = vmatmul.mubr.f32.vlgmr.msra.gmra.mxu0 %v23979_v9 }
 0x1a3   :  { %19472 = vmatpush3.msra.mxu1 %v22848_v2  ;;  %3658 = vmatprep.subr.mxu0 %v22849_v3 }
 0x1a4   :  { %19473 = vmatprep.subr.mxu1 %v22848_v2  ;;  %3659 = vmatpush1.msra.mxu0 %v22849_v3  ;;  %v19100_v17 = vpop.f32.mrf.mxu0 }
 0x1a5   :  { %19474 = vmatpush3.msra.mxu1 %v22848_v2  ;;  %3694 = vmatprep.mubr.f32.mxu0 %v23988_v10 }
 0x1a6   :  { %19475 = vmatprep.subr.mxu1 %v22848_v2  ;;  %19488 = vmatprep.subr.mxu0 %v22848_v2  ;;  %v19101_v20 = vpop.f32.mrf.mxu0 }
 0x1a7   :  { %19476 = vmatpush3.msra.mxu1 %v22848_v2  ;;  %3697 = vmatmul.mubr.f32.vlgmr.msra.gmra.mxu0 %v23995_v14  ;;  %v19102_v21 = vadd.f32 %v19101_v20, %v19100_v17 }
 0x1a8   :  { %19489 = vmatpush3.msra.mxu0 %v22848_v2  ;;  %19477 = vmatprep.subr.mxu1 %v22848_v2 }
 0x1a9   :  { %19490 = vmatprep.subr.mxu0 %v22848_v2  ;;  %19478 = vmatpush3.msra.mxu1 %v22848_v2  ;;  %v1815_v18 = vadd.f32 %v19102_v21, %v1739_v5  ;;  %v22721_v21 = vpop.eup %22720 }
 0x1aa   :  { %19491 = vmatpush3.msra.mxu0 %v22848_v2  ;;  %19479 = vmatprep.subr.mxu1 %v22848_v2  ;;  %v1475_v12 = vmul.f32 %v22721_v21, %v23892_v50 }
 0x1ab   :  { %19492 = vmatprep.subr.mxu0 %v22848_v2  ;;  %19480 = vmatpush3.msra.mxu1 %v22848_v2  ;;  %v1887_v24 = vadd.f32 %v23949_v4, %v1815_v18  ;;  %v4040_v4 = vand.u32 4294901760, %v24157_v62 }
 0x1ac   :  { %19493 = vmatpush3.msra.mxu0 %v22848_v2  ;;  %19481 = vmatprep.subr.mxu1 %v22848_v2 }
 0x1ad   :  { %19494 = vmatprep.subr.mxu0 %v22848_v2  ;;  %19482 = vmatpush3.msra.mxu1 %v22848_v2  ;;  %v4041_v6 = vsub.f32 %v24157_v62, %v4040_v4 }
 0x1ae   :  { %19495 = vmatpush3.msra.mxu0 %v22848_v2  ;;  %19483 = vmatprep.subr.mxu1 %v22848_v2 }
 0x1af   :  { %19496 = vmatprep.subr.mxu0 %v22848_v2  ;;  %19484 = vmatpush3.msra.mxu1 %v22848_v2 }
 0x1b0   :  { %3545 = vmatprep.mubr.f32.mxu1 %v3544_v13  ;;  %19497 = vmatpush3.msra.mxu0 %v22848_v2  ;;  %v4426_v13 = vsub.f32 %v24060_v33, %v23916_v56 }
 0x1b1   :  { %3551 = vmatmul.mubr.f32.vlgmr.msra.gmra.mxu1 %v3550_v25  ;;  %19498 = vmatprep.subr.mxu0 %v22848_v2  ;;  %v1477_v25 = vsel %vm1476_vm4, %v23892_v50, %v1475_v12  ;;  %v24394_v12 = vld [vmem:[%s28960_s0 + $0x37] ss:$8 sm:$0x3] }
 0x1b2   :  { %3808 = vmatprep.subr.mxu1 %v22849_v3  ;;  %19499 = vmatpush3.msra.mxu0 %v22848_v2  ;;  %v19135_v26 = vpop.f32.mrf.mxu1  ;;  %v4428_v56 = vmul.f32 %v4426_v13, %v4426_v13 }
 0x1b3   :  { %3809 = vmatpush1.msra.mxu1 %v22849_v3  ;;  %19500 = vmatprep.subr.mxu0 %v22848_v2 }
 0x1b4   :  { %19501 = vmatpush3.msra.mxu0 %v22848_v2  ;;  %3843 = vmatprep.mubr.f32.mxu1 %v23975_v8  ;;  %v19136_v27 = vpop.f32.mrf.mxu1 }
 0x1b5   :  { %19523 = vmatprep.subr.mxu1 %v22848_v2  ;;  %19502 = vmatprep.subr.mxu0 %v22848_v2  ;;  %v19137_v28 = vadd.f32 %v19136_v27, %v19135_v26  ;;  %v1479_v26 = vand.u32 2147483648, %v23892_v50 }
 0x1b6   :  { %3845 = vmatmul.mubr.f32.vlgmr.msra.gmra.mxu1 %v23979_v9  ;;  %19503 = vmatpush3.msra.mxu0 %v22848_v2  ;;  %v2156_v29 = vpop.f32.mrf.mxu1 }
 0x1b7   :  { %19524 = vmatpush3.msra.mxu1 %v22848_v2  ;;  %19504 = vmatprep.subr.mxu0 %v22848_v2  ;;  %v24044_v30 = vadd.f32 %v19137_v28, %v1887_v24  ;;  %v4425_v24 = vsub.f32 %v24055_v32, %v23909_v54  ;;  %v1480_v27 = vsel %vm1478_vm5, %v1479_v26, %v1477_v25 }
 0x1b8   :  { %19525 = vmatprep.subr.mxu1 %v22848_v2  ;;  %19505 = vmatpush3.msra.mxu0 %v22848_v2  ;;  %v2158_v31 = vpop.f32.mrf.mxu1  ;;  %v1481_v50 = vsub.f32 %v23789_v23, %v1480_v27 }
 0x1b9   :  { %19526 = vmatpush3.msra.mxu1 %v22848_v2  ;;  %19506 = vmatprep.subr.mxu0 %v22848_v2  ;;  %v4427_v54 = vmul.f32 %v4425_v24, %v4425_v24  ;;  %vm1964_vm8 = vcmp.eq.f32.partialorder %v24044_v30, inf  ;;  %v1967_v26 = vand.u32 2147483648, %v24044_v30  ;;  %vm1966_vm9 = vcmp.eq.f32.partialorder %v24044_v30, 0.0 }
 0x1ba   :  { %19527 = vmatprep.subr.mxu1 %v22848_v2  ;;  %19507 = vmatpush3.msra.mxu0 %v22848_v2 }
 0x1bb   :  { %19528 = vmatpush3.msra.mxu1 %v22848_v2  ;;  %19508 = vmatprep.subr.mxu0 %v22848_v2  ;;  %v2230_v34 = vpop.f32.mrf.mxu1 }
 0x1bc   :  { %19529 = vmatprep.subr.mxu1 %v22848_v2  ;;  %19509 = vmatpush3.msra.mxu0 %v22848_v2 }
 0x1bd   :  { %19530 = vmatpush3.msra.mxu1 %v22848_v2  ;;  %19510 = vmatprep.subr.mxu0 %v22848_v2  ;;  %v2232_v35 = vpop.f32.mrf.mxu1 }
 0x1be   :  { %19531 = vmatprep.subr.mxu1 %v22848_v2  ;;  %19511 = vmatpush3.msra.mxu0 %v22848_v2 }
 0x1bf   :  { %19532 = vmatpush3.msra.mxu1 %v22848_v2  ;;  %19512 = vmatprep.subr.mxu0 %v22848_v2 }
 0x1c0   :  { %19533 = vmatprep.subr.mxu1 %v22848_v2  ;;  %19513 = vmatpush3.msra.mxu0 %v22848_v2 }
 0x1c1   :  { %19534 = vmatpush3.msra.mxu1 %v22848_v2  ;;  %19514 = vmatprep.subr.mxu0 %v22848_v2 }
 0x1c2   :  { %19535 = vmatprep.subr.mxu1 %v22848_v2  ;;  %19515 = vmatpush3.msra.mxu0 %v22848_v2 }
 0x1c3   :  { %19536 = vmatpush3.msra.mxu1 %v22848_v2  ;;  %19516 = vmatprep.subr.mxu0 %v22848_v2 }
 0x1c4   :  { %19537 = vmatprep.subr.mxu1 %v22848_v2  ;;  %19517 = vmatpush3.msra.mxu0 %v22848_v2 }
 0x1c5   :  { %19538 = vmatpush3.msra.mxu1 %v22848_v2  ;;  %19518 = vmatprep.subr.mxu0 %v22848_v2 }
 0x1c6   :  { %19539 = vmatprep.subr.mxu1 %v22848_v2  ;;  %19519 = vmatpush3.msra.mxu0 %v22848_v2 }
 0x1c7   :  { %19540 = vmatpush3.msra.mxu1 %v22848_v2  ;;  %3769 = vmatprep.mubr.f32.mxu0 %v3542_v15  ;;  %v19170_v45 = vpop.f32.mrf.mxu0 }
 0x1c8   :  { %19541 = vmatprep.subr.mxu1 %v22848_v2  ;;  %3773 = vmatmul.mubr.f32.vlgmr.msra.gmra.mxu0 %v3548_v19 }
 0x1c9   :  { %19542 = vmatpush3.msra.mxu1 %v22848_v2  ;;  %19558 = vmatprep.subr.mxu0 %v22848_v2  ;;  %v19171_v46 = vpop.f32.mrf.mxu0 }
 0x1ca   :  { %19543 = vmatprep.subr.mxu1 %v22848_v2  ;;  %19559 = vmatpush3.msra.mxu0 %v22848_v2  ;;  %v19172_v48 = vadd.f32 %v19171_v46, %v19170_v45  ;;  %v1482_v45 = vadd.f32 0.5, %v1481_v50 }
 0x1cb   :  { %19544 = vmatpush3.msra.mxu1 %v22848_v2  ;;  %19560 = vmatprep.subr.mxu0 %v22848_v2 }
 0x1cc   :  { %19545 = vmatprep.subr.mxu1 %v22848_v2  ;;  %19561 = vmatpush3.msra.mxu0 %v22848_v2  ;;  %v2157_v49 = vadd.f32 %v19172_v48, %v2156_v29  ;;  %v24115_v51 = vpop.f32.mrf.mxu0  ;;  %v4431_v29 = vcombine.low %v4427_v54, %v4428_v56  ;;  %v1483_v52 = vmax.f32 %v1482_v45, 0.0  ;;  %v4918_v54 = vsub.f32 %v24078_v39, %v24394_v12 }
 0x1cd   :  { %19546 = vmatpush3.msra.mxu1 %v22848_v2  ;;  %19562 = vmatprep.subr.mxu0 %v22848_v2 }
 0x1ce   :  { %19547 = vmatprep.subr.mxu1 %v22848_v2  ;;  %19563 = vmatpush3.msra.mxu0 %v22848_v2  ;;  %v2380_v53 = vpop.f32.mrf.mxu0  ;;  %v2231_v55 = vadd.f32 %v2230_v34, %v2157_v49  ;;  %v4438_v41 = vrot.slane %v4431_v29, %v22893_v16  ;;  %v4920_v39 = vmul.f32 %v4918_v54, %v4918_v54 }
 0x1cf   :  { %19548 = vmatpush3.msra.mxu1 %v22848_v2  ;;  %19564 = vmatprep.subr.mxu0 %v22848_v2 }
 0x1d0   :  { %19549 = vmatprep.subr.mxu1 %v22848_v2  ;;  %19565 = vmatpush3.msra.mxu0 %v22848_v2  ;;  %v4446_v58 = vrot.slane %v4438_v41, %v22893_v16 }
 0x1d1   :  { %19550 = vmatpush3.msra.mxu1 %v22848_v2  ;;  %19566 = vmatprep.subr.mxu0 %v22848_v2 }
 0x1d2   :  { %19551 = vmatprep.subr.mxu1 %v22848_v2  ;;  %19567 = vmatpush3.msra.mxu0 %v22848_v2 }
 0x1d3   :  { %19552 = vmatpush3.msra.mxu1 %v22848_v2  ;;  %19568 = vmatprep.subr.mxu0 %v22848_v2 }
 0x1d4   :  { %19553 = vmatprep.subr.mxu1 %v22848_v2  ;;  %19569 = vmatpush3.msra.mxu0 %v22848_v2 }
 0x1d5   :  { %19554 = vmatpush3.msra.mxu1 %v22848_v2  ;;  %3915 = vmatprep.mubr.f32.mxu1 %v23975_v8  ;;  %v4036_v8 = vand.u32 4294901760, %v4035_v40 }
 0x1d6   :  { %19570 = vmatprep.subr.mxu0 %v22848_v2  ;;  %3917 = vmatmul.mubr.f32.vlgmr.msra.gmra.mxu1 %v23979_v9  ;;  %v4042_v9 = vand.u32 4294901760, %v4041_v6 }
 0x1d7   :  { %19571 = vmatpush3.msra.mxu0 %v22848_v2  ;;  %4078 = vmatprep.subr.mxu1 %v22849_v3 }
 0x1d8   :  { %19572 = vmatprep.subr.mxu0 %v22848_v2  ;;  %4079 = vmatpush1.msra.mxu1 %v22849_v3 }
 0x1d9   :  { %19573 = vmatpush3.msra.mxu0 %v22848_v2  ;;  %4113 = vmatprep.mubr.f32.mxu1 %v24137_v59 }
 0x1da   :  { %19574 = vmatprep.subr.mxu0 %v22848_v2  ;;  %4115 = vmatmul.mubr.f32.vlgmr.msra.gmra.mxu1 %v24141_v60 }
 0x1db   :  { %19575 = vmatpush3.msra.mxu0 %v22848_v2  ;;  %4150 = vmatprep.subr.mxu1 %v22849_v3 }
 0x1dc   :  { %19576 = vmatprep.subr.mxu0 %v22848_v2  ;;  %4151 = vmatpush1.msra.mxu1 %v22849_v3  ;;  %v19205_v63 = vpop.f32.mrf.mxu1 }
 0x1dd   :  { %19577 = vmatpush3.msra.mxu0 %v22848_v2  ;;  %4186 = vmatprep.mubr.f32.mxu1 %v24150_v61 }
 0x1de   :  { %19578 = vmatprep.subr.mxu0 %v22848_v2  ;;  %19593 = vmatprep.subr.mxu1 %v22848_v2  ;;  %v19206_v1 = vpop.f32.mrf.mxu1 }
 0x1df   :  { %19579 = vmatpush3.msra.mxu0 %v22848_v2  ;;  %4189 = vmatmul.mubr.f32.vlgmr.msra.gmra.mxu1 %v24157_v62  ;;  %v19207_v38 = vadd.f32 %v19206_v1, %v19205_v63  ;;  %v24309_v62 = vand.u32 4294901760, %v4446_v58 }
 0x1e0   :  { %19594 = vmatpush3.msra.mxu1 %v22848_v2  ;;  %19580 = vmatprep.subr.mxu0 %v22848_v2 }
 0x1e1   :  { %19595 = vmatprep.subr.mxu1 %v22848_v2  ;;  %19581 = vmatpush3.msra.mxu0 %v22848_v2  ;;  %v2307_v5 = vadd.f32 %v19207_v38, %v2231_v55 }
 0x1e2   :  { %19596 = vmatpush3.msra.mxu1 %v22848_v2  ;;  %19582 = vmatprep.subr.mxu0 %v22848_v2 }
 0x1e3   :  { %19597 = vmatprep.subr.mxu1 %v22848_v2  ;;  %19583 = vmatpush3.msra.mxu0 %v22848_v2  ;;  %v2379_v7 = vadd.f32 %v24115_v51, %v2307_v5  ;;  %v4439_v51 = vcombine.high %v4438_v41, %v4438_v41 }
 0x1e4   :  { %19598 = vmatpush3.msra.mxu1 %v22848_v2  ;;  %19584 = vmatprep.subr.mxu0 %v22848_v2 }
 0x1e5   :  { %19599 = vmatprep.subr.mxu1 %v22848_v2  ;;  %19585 = vmatpush3.msra.mxu0 %v22848_v2  ;;  %v4453_v57 = vrot.slane %v4439_v51, %v22893_v16 }
 0x1e6   :  { %19600 = vmatpush3.msra.mxu1 %v22848_v2  ;;  %19586 = vmatprep.subr.mxu0 %v22848_v2 }
 0x1e7   :  { %19601 = vmatprep.subr.mxu1 %v22848_v2  ;;  %19587 = vmatpush3.msra.mxu0 %v22848_v2  ;;  %v24305_v61 = vand.u32 4294901760, %v4453_v57 }
 0x1e8   :  { %19602 = vmatpush3.msra.mxu1 %v22848_v2  ;;  %19588 = vmatprep.subr.mxu0 %v22848_v2 }
 0x1e9   :  { %19603 = vmatprep.subr.mxu1 %v22848_v2  ;;  %19589 = vmatpush3.msra.mxu0 %v22848_v2 }
 0x1ea   :  { %4037 = vmatprep.mubr.f32.mxu0 %v4036_v8  ;;  %19604 = vmatpush3.msra.mxu1 %v22848_v2 }
 0x1eb   :  { %4043 = vmatmul.mubr.f32.vlgmr.msra.gmra.mxu0 %v4042_v9  ;;  %19605 = vmatprep.subr.mxu1 %v22848_v2 }
 0x1ec   :  { %19606 = vmatpush3.msra.mxu1 %v22848_v2  ;;  %4300 = vmatprep.subr.mxu0 %v22849_v3  ;;  %v19240_v10 = vpop.f32.mrf.mxu0 }
 0x1ed   :  { %19607 = vmatprep.subr.mxu1 %v22848_v2  ;;  %4301 = vmatpush1.msra.mxu0 %v22849_v3 }
 0x1ee   :  { %19608 = vmatpush3.msra.mxu1 %v22848_v2  ;;  %4335 = vmatprep.mubr.f32.mxu0 %v24137_v59  ;;  %v19241_v14 = vpop.f32.mrf.mxu0 }
 0x1ef   :  { %19628 = vmatprep.subr.mxu0 %v22848_v2  ;;  %19609 = vmatprep.subr.mxu1 %v22848_v2  ;;  %v19242_v15 = vadd.f32 %v19241_v14, %v19240_v10 }
 0x1f0   :  { %4337 = vmatmul.mubr.f32.vlgmr.msra.gmra.mxu0 %v24141_v60  ;;  %19610 = vmatpush3.msra.mxu1 %v22848_v2  ;;  %v24209_v17 = vpop.f32.mrf.mxu0 }
 0x1f1   :  { %19629 = vmatpush3.msra.mxu0 %v22848_v2  ;;  %19611 = vmatprep.subr.mxu1 %v22848_v2  ;;  %v24213_v19 = vadd.f32 %v19242_v15, %v2379_v7 }
 0x1f2   :  { %19630 = vmatprep.subr.mxu0 %v22848_v2  ;;  %19612 = vmatpush3.msra.mxu1 %v22848_v2  ;;  %v2646_v20 = vpop.f32.mrf.mxu0 }
 0x1f3   :  { %19631 = vmatpush3.msra.mxu0 %v22848_v2  ;;  %19613 = vmatprep.subr.mxu1 %v22848_v2  ;;  %22722 = vrsqrt.f32 %v24213_v19  ;;  %vm2456_vm6 = vcmp.eq.f32.partialorder %v24213_v19, inf  ;;  %v2459_v34 = vand.u32 2147483648, %v24213_v19  ;;  %vm2458_vm7 = vcmp.eq.f32.partialorder %v24213_v19, 0.0 }
 0x1f4   :  { %19632 = vmatprep.subr.mxu0 %v22848_v2  ;;  %19614 = vmatpush3.msra.mxu1 %v22848_v2  ;;  %22724 = vrsqrt.f32 %v24044_v30 }
 0x1f5   :  { %19633 = vmatpush3.msra.mxu0 %v22848_v2  ;;  %19615 = vmatprep.subr.mxu1 %v22848_v2  ;;  %v24224_v22 = vpop.f32.mrf.mxu0 }
 0x1f6   :  { %19634 = vmatprep.subr.mxu0 %v22848_v2  ;;  %19616 = vmatpush3.msra.mxu1 %v22848_v2 }
 0x1f7   :  { %19635 = vmatpush3.msra.mxu0 %v22848_v2  ;;  %19617 = vmatprep.subr.mxu1 %v22848_v2  ;;  %v2720_v18 = vpop.f32.mrf.mxu0 }
 0x1f8   :  { %19636 = vmatprep.subr.mxu0 %v22848_v2  ;;  %19618 = vmatpush3.msra.mxu1 %v22848_v2 }
 0x1f9   :  { %19637 = vmatpush3.msra.mxu0 %v22848_v2  ;;  %19619 = vmatprep.subr.mxu1 %v22848_v2 }
 0x1fa   :  { %19638 = vmatprep.subr.mxu0 %v22848_v2  ;;  %19620 = vmatpush3.msra.mxu1 %v22848_v2 }
 0x1fb   :  { %19639 = vmatpush3.msra.mxu0 %v22848_v2  ;;  %19621 = vmatprep.subr.mxu1 %v22848_v2 }
 0x1fc   :  { %19640 = vmatprep.subr.mxu0 %v22848_v2  ;;  %19622 = vmatpush3.msra.mxu1 %v22848_v2 }
 0x1fd   :  { %19641 = vmatpush3.msra.mxu0 %v22848_v2  ;;  %19623 = vmatprep.subr.mxu1 %v22848_v2 }
 0x1fe   :  { %19642 = vmatprep.subr.mxu0 %v22848_v2  ;;  %19624 = vmatpush3.msra.mxu1 %v22848_v2 }
 0x1ff   :  { %19643 = vmatpush3.msra.mxu0 %v22848_v2  ;;  %4261 = vmatprep.mubr.f32.mxu1 %v4034_v0  ;;  %v19275_v28 = vpop.f32.mrf.mxu1 }
 0x200   :  { %v22723_v31 = vpop.eup %22722  ;;  %19644 = vmatprep.subr.mxu0 %v22848_v2  ;;  %4265 = vmatmul.mubr.f32.vlgmr.msra.gmra.mxu1 %v4040_v4 }
 0x201   :  { %v2455_v32 = vmul.f32 %v22723_v31, %v24213_v19  ;;  %19645 = vmatpush3.msra.mxu0 %v22848_v2  ;;  %19663 = vmatprep.subr.mxu1 %v22848_v2  ;;  %v19276_v33 = vpop.f32.mrf.mxu1  ;;  %v22725_v21 = vpop.eup %22724 }
 0x202   :  { %19646 = vmatprep.subr.mxu0 %v22848_v2  ;;  %19664 = vmatpush3.msra.mxu1 %v22848_v2  ;;  %v19277_v35 = vadd.f32 %v19276_v33, %v19275_v28  ;;  %v1963_v24 = vmul.f32 %v22725_v21, %v24044_v30 }
 0x203   :  { %v2457_v37 = vsel %vm2456_vm6, %v24213_v19, %v2455_v32  ;;  %19647 = vmatpush3.msra.mxu0 %v22848_v2  ;;  %19665 = vmatprep.subr.mxu1 %v22848_v2 }
 0x204   :  { %v2460_v42 = vsel %vm2458_vm7, %v2459_v34, %v2457_v37  ;;  %19648 = vmatprep.subr.mxu0 %v22848_v2  ;;  %19666 = vmatpush3.msra.mxu1 %v22848_v2  ;;  %v2645_v43 = vadd.f32 %v19277_v35, %v24209_v17  ;;  %v24275_v44 = vpop.f32.mrf.mxu1  ;;  %v1965_v56 = vsel %vm1964_vm8, %v24044_v30, %v1963_v24  ;;  %v24569_v24 = vld [vmem:[%s28960_s0 + $0x25] ss:$8 sm:$0x3] }
 0x205   :  { %v2461_v46 = vsub.f32 %v23789_v23, %v2460_v42  ;;  %19649 = vmatpush3.msra.mxu0 %v22848_v2  ;;  %19667 = vmatprep.subr.mxu1 %v22848_v2  ;;  %v1968_v27 = vsel %vm1966_vm9, %v1967_v26, %v1965_v56 }
 0x206   :  { %19650 = vmatprep.subr.mxu0 %v22848_v2  ;;  %19668 = vmatpush3.msra.mxu1 %v22848_v2  ;;  %v2868_v47 = vpop.f32.mrf.mxu1  ;;  %v2719_v48 = vadd.f32 %v24224_v22, %v2645_v43  ;;  %v24389_v22 = vld [vmem:[%s28960_s0 + $0x7] ss:$8 sm:$0x3]  ;;  %v1969_v30 = vsub.f32 %v23789_v23, %v1968_v27 }
 0x207   :  { %v2462_v49 = vadd.f32 0.5, %v2461_v46  ;;  %19651 = vmatpush3.msra.mxu0 %v22848_v2  ;;  %19669 = vmatprep.subr.mxu1 %v22848_v2  ;;  %v4917_v25 = vsub.f32 %v24071_v36, %v24389_v22 }
 0x208   :  { %19652 = vmatprep.subr.mxu0 %v22848_v2  ;;  %19670 = vmatpush3.msra.mxu1 %v22848_v2  ;;  %v1970_v42 = vadd.f32 0.2, %v1969_v30 }
 0x209   :  { %v2463_v53 = vmax.f32 %v2462_v49, 0.0  ;;  %19653 = vmatpush3.msra.mxu0 %v22848_v2  ;;  %19671 = vmatprep.subr.mxu1 %v22848_v2  ;;  %v4919_v36 = vmul.f32 %v4917_v25, %v4917_v25  ;;  %v24576_v25 = vld [vmem:[%s28960_s0 + $0x55] ss:$8 sm:$0x3] }
 0x20a   :  { %19654 = vmatprep.subr.mxu0 %v22848_v2  ;;  %19672 = vmatpush3.msra.mxu1 %v22848_v2  ;;  %v1971_v51 = vmax.f32 %v1970_v42, 0.0  ;;  %v5406_v54 = vsub.f32 %v24394_v12, %v24576_v25 }
 0x20b   :  { %v24291_v55 = vadd.f32 %v2463_v53, %v1483_v52  ;;  %19655 = vmatpush3.msra.mxu0 %v22848_v2  ;;  %19673 = vmatprep.subr.mxu1 %v22848_v2  ;;  %v4923_v28 = vcombine.low %v4919_v36, %v4920_v39 }
 0x20c   :  { %19656 = vmatprep.subr.mxu0 %v22848_v2  ;;  %19674 = vmatpush3.msra.mxu1 %v22848_v2  ;;  %v5408_v56 = vmul.f32 %v5406_v54, %v5406_v54 }
 0x20d   :  { %19657 = vmatpush3.msra.mxu0 %v22848_v2  ;;  %19675 = vmatprep.subr.mxu1 %v22848_v2  ;;  %v4930_v35 = vrot.slane %v4923_v28, %v22893_v16 }
 0x20e   :  { %19658 = vmatprep.subr.mxu0 %v22848_v2  ;;  %19676 = vmatpush3.msra.mxu1 %v22848_v2 }
 0x20f   :  { %19659 = vmatpush3.msra.mxu0 %v22848_v2  ;;  %4407 = vmatprep.mubr.f32.mxu0 %v24137_v59  ;;  %v24318_v59 = vsub.f32 %v4453_v57, %v24305_v61  ;;  %v4931_v47 = vcombine.high %v4930_v35, %v4930_v35 }
 0x210   :  { %19677 = vmatprep.subr.mxu1 %v22848_v2  ;;  %4409 = vmatmul.mubr.f32.vlgmr.msra.gmra.mxu0 %v24141_v60  ;;  %v24325_v60 = vsub.f32 %v4446_v58, %v24309_v62  ;;  %v4938_v58 = vrot.slane %v4930_v35, %v22893_v16 }
 0x211   :  { %19678 = vmatpush3.msra.mxu1 %v22848_v2  ;;  %4566 = vmatprep.subr.mxu0 %v22849_v3  ;;  %v4522_v63 = vand.u32 4294901760, %v24318_v59  ;;  %v4945_v57 = vrot.slane %v4931_v47, %v22893_v16 }
 0x212   :  { %19679 = vmatprep.subr.mxu1 %v22848_v2  ;;  %4567 = vmatpush1.msra.mxu0 %v22849_v3  ;;  %v4528_v1 = vand.u32 4294901760, %v24325_v60 }
 0x213   :  { %19680 = vmatpush3.msra.mxu1 %v22848_v2  ;;  %4601 = vmatprep.mubr.f32.mxu0 %v24305_v61  ;;  %v4523_v5 = vsub.f32 %v24318_v59, %v4522_v63 }
 0x214   :  { %19681 = vmatprep.subr.mxu1 %v22848_v2  ;;  %4603 = vmatmul.mubr.f32.vlgmr.msra.gmra.mxu0 %v24309_v62  ;;  %v4529_v40 = vsub.f32 %v24325_v60, %v4528_v1 }
 0x215   :  { %19682 = vmatpush3.msra.mxu1 %v22848_v2  ;;  %4638 = vmatprep.subr.mxu0 %v22849_v3  ;;  %v4524_v8 = vand.u32 4294901760, %v4523_v5 }
 0x216   :  { %19683 = vmatprep.subr.mxu1 %v22848_v2  ;;  %4639 = vmatpush1.msra.mxu0 %v22849_v3  ;;  %v19310_v0 = vpop.f32.mrf.mxu0  ;;  %v4530_v9 = vand.u32 4294901760, %v4529_v40 }
 0x217   :  { %19684 = vmatpush3.msra.mxu1 %v22848_v2  ;;  %4674 = vmatprep.mubr.f32.mxu0 %v24318_v59  ;;  %v24479_v59 = vand.u32 4294901760, %v4945_v57 }
 0x218   :  { %19685 = vmatprep.subr.mxu1 %v22848_v2  ;;  %19698 = vmatprep.subr.mxu0 %v22848_v2  ;;  %v19311_v4 = vpop.f32.mrf.mxu0 }
 0x219   :  { %19686 = vmatpush3.msra.mxu1 %v22848_v2  ;;  %4677 = vmatmul.mubr.f32.vlgmr.msra.gmra.mxu0 %v24325_v60  ;;  %v19312_v38 = vadd.f32 %v19311_v4, %v19310_v0  ;;  %v24483_v60 = vand.u32 4294901760, %v4938_v58 }
 0x21a   :  { %19699 = vmatpush3.msra.mxu0 %v22848_v2  ;;  %19687 = vmatprep.subr.mxu1 %v22848_v2 }
 0x21b   :  { %19700 = vmatprep.subr.mxu0 %v22848_v2  ;;  %19688 = vmatpush3.msra.mxu1 %v22848_v2  ;;  %v2795_v6 = vadd.f32 %v19312_v38, %v2719_v48 }
 0x21c   :  { %19701 = vmatpush3.msra.mxu0 %v22848_v2  ;;  %19689 = vmatprep.subr.mxu1 %v22848_v2 }
 0x21d   :  { %19702 = vmatprep.subr.mxu0 %v22848_v2  ;;  %19690 = vmatpush3.msra.mxu1 %v22848_v2  ;;  %v2867_v7 = vadd.f32 %v24275_v44, %v2795_v6 }
 0x21e   :  { %19703 = vmatpush3.msra.mxu0 %v22848_v2  ;;  %19691 = vmatprep.subr.mxu1 %v22848_v2 }
 0x21f   :  { %19704 = vmatprep.subr.mxu0 %v22848_v2  ;;  %19692 = vmatpush3.msra.mxu1 %v22848_v2 }
 0x220   :  { %19705 = vmatpush3.msra.mxu0 %v22848_v2  ;;  %19693 = vmatprep.subr.mxu1 %v22848_v2 }
 0x221   :  { %19706 = vmatprep.subr.mxu0 %v22848_v2  ;;  %19694 = vmatpush3.msra.mxu1 %v22848_v2 }
 0x222   :  { %4525 = vmatprep.mubr.f32.mxu1 %v4524_v8  ;;  %19707 = vmatpush3.msra.mxu0 %v22848_v2 }
 0x223   :  { %4531 = vmatmul.mubr.f32.vlgmr.msra.gmra.mxu1 %v4530_v9  ;;  %19708 = vmatprep.subr.mxu0 %v22848_v2 }
 0x224   :  { %4788 = vmatprep.subr.mxu1 %v22849_v3  ;;  %19709 = vmatpush3.msra.mxu0 %v22848_v2  ;;  %v19345_v10 = vpop.f32.mrf.mxu1 }
 0x225   :  { %4789 = vmatpush1.msra.mxu1 %v22849_v3  ;;  %19710 = vmatprep.subr.mxu0 %v22848_v2 }
 0x226   :  { %19711 = vmatpush3.msra.mxu0 %v22848_v2  ;;  %4823 = vmatprep.mubr.f32.mxu1 %v24305_v61  ;;  %v19346_v14 = vpop.f32.mrf.mxu1 }
 0x227   :  { %19733 = vmatprep.subr.mxu1 %v22848_v2  ;;  %19712 = vmatprep.subr.mxu0 %v22848_v2  ;;  %v19347_v15 = vadd.f32 %v19346_v14, %v19345_v10 }
 0x228   :  { %4825 = vmatmul.mubr.f32.vlgmr.msra.gmra.mxu1 %v24309_v62  ;;  %19713 = vmatpush3.msra.mxu0 %v22848_v2  ;;  %v24373_v17 = vpop.f32.mrf.mxu1 }
 0x229   :  { %19734 = vmatpush3.msra.mxu1 %v22848_v2  ;;  %19714 = vmatprep.subr.mxu0 %v22848_v2  ;;  %v24377_v19 = vadd.f32 %v19347_v15, %v2867_v7 }
 0x22a   :  { %19735 = vmatprep.subr.mxu1 %v22848_v2  ;;  %19715 = vmatpush3.msra.mxu0 %v22848_v2  ;;  %v3138_v20 = vpop.f32.mrf.mxu1 }
 0x22b   :  { %19736 = vmatpush3.msra.mxu1 %v22848_v2  ;;  %19716 = vmatprep.subr.mxu0 %v22848_v2  ;;  %22726 = vrsqrt.f32 %v24377_v19  ;;  %vm2944_vm10 = vcmp.eq.f32.partialorder %v24377_v19, inf  ;;  %v2947_v32 = vand.u32 2147483648, %v24377_v19  ;;  %vm2946_vm11 = vcmp.eq.f32.partialorder %v24377_v19, 0.0 }
 0x22c   :  { %19737 = vmatprep.subr.mxu1 %v22848_v2  ;;  %19717 = vmatpush3.msra.mxu0 %v22848_v2 }
 0x22d   :  { %19738 = vmatpush3.msra.mxu1 %v22848_v2  ;;  %19718 = vmatprep.subr.mxu0 %v22848_v2  ;;  %v24398_v18 = vpop.f32.mrf.mxu1 }
 0x22e   :  { %19739 = vmatprep.subr.mxu1 %v22848_v2  ;;  %19719 = vmatpush3.msra.mxu0 %v22848_v2 }
 0x22f   :  { %19740 = vmatpush3.msra.mxu1 %v22848_v2  ;;  %19720 = vmatprep.subr.mxu0 %v22848_v2  ;;  %v3212_v13 = vpop.f32.mrf.mxu1 }
 0x230   :  { %19741 = vmatprep.subr.mxu1 %v22848_v2  ;;  %19721 = vmatpush3.msra.mxu0 %v22848_v2  ;;  %v5405_v13 = vsub.f32 %v24389_v22, %v24569_v24 }
 0x231   :  { %19742 = vmatpush3.msra.mxu1 %v22848_v2  ;;  %19722 = vmatprep.subr.mxu0 %v22848_v2 }
 0x232   :  { %19743 = vmatprep.subr.mxu1 %v22848_v2  ;;  %19723 = vmatpush3.msra.mxu0 %v22848_v2  ;;  %v5407_v22 = vmul.f32 %v5405_v13, %v5405_v13 }
 0x233   :  { %19744 = vmatpush3.msra.mxu1 %v22848_v2  ;;  %19724 = vmatprep.subr.mxu0 %v22848_v2 }
 0x234   :  { %19745 = vmatprep.subr.mxu1 %v22848_v2  ;;  %19725 = vmatpush3.msra.mxu0 %v22848_v2  ;;  %v5411_v36 = vcombine.low %v5407_v22, %v5408_v56 }
 0x235   :  { %19746 = vmatpush3.msra.mxu1 %v22848_v2  ;;  %19726 = vmatprep.subr.mxu0 %v22848_v2 }
 0x236   :  { %19747 = vmatprep.subr.mxu1 %v22848_v2  ;;  %19727 = vmatpush3.msra.mxu0 %v22848_v2 }
 0x237   :  { %19748 = vmatpush3.msra.mxu1 %v22848_v2  ;;  %19728 = vmatprep.subr.mxu0 %v22848_v2 }
 0x238   :  { %v22727_v29 = vpop.eup %22726  ;;  %19749 = vmatprep.subr.mxu1 %v22848_v2  ;;  %19729 = vmatpush3.msra.mxu0 %v22848_v2 }
 0x239   :  { %v2943_v31 = vmul.f32 %v22727_v29, %v24377_v19  ;;  %19750 = vmatpush3.msra.mxu1 %v22848_v2  ;;  %4749 = vmatprep.mubr.f32.mxu0 %v4522_v63  ;;  %v19380_v50 = vpop.f32.mrf.mxu0 }
 0x23a   :  { %19751 = vmatprep.subr.mxu1 %v22848_v2  ;;  %4753 = vmatmul.mubr.f32.vlgmr.msra.gmra.mxu0 %v4528_v1 }
 0x23b   :  { %v2945_v33 = vsel %vm2944_vm10, %v24377_v19, %v2943_v31  ;;  %19752 = vmatpush3.msra.mxu1 %v22848_v2  ;;  %19768 = vmatprep.subr.mxu0 %v22848_v2  ;;  %v19381_v34 = vpop.f32.mrf.mxu0  ;;  %v5418_v31 = vrot.slane %v5411_v36, %v22893_v16 }
 0x23c   :  { %v2948_v37 = vsel %vm2946_vm11, %v2947_v32, %v2945_v33  ;;  %19753 = vmatprep.subr.mxu1 %v22848_v2  ;;  %19769 = vmatpush3.msra.mxu0 %v22848_v2  ;;  %v19382_v41 = vadd.f32 %v19381_v34, %v19380_v50 }
 0x23d   :  { %v2949_v43 = vsub.f32 %v23789_v23, %v2948_v37  ;;  %19754 = vmatpush3.msra.mxu1 %v22848_v2  ;;  %19770 = vmatprep.subr.mxu0 %v22848_v2  ;;  %v5419_v42 = vcombine.high %v5418_v31, %v5418_v31 }
 0x23e   :  { %19755 = vmatprep.subr.mxu1 %v22848_v2  ;;  %19771 = vmatpush3.msra.mxu0 %v22848_v2  ;;  %v3137_v44 = vadd.f32 %v19382_v41, %v24373_v17  ;;  %v24454_v45 = vpop.f32.mrf.mxu0 }
 0x23f   :  { %v2950_v46 = vadd.f32 0.2, %v2949_v43  ;;  %19756 = vmatpush3.msra.mxu1 %v22848_v2  ;;  %19772 = vmatprep.subr.mxu0 %v22848_v2 }
 0x240   :  { %19757 = vmatprep.subr.mxu1 %v22848_v2  ;;  %19773 = vmatpush3.msra.mxu0 %v22848_v2  ;;  %v3360_v48 = vpop.f32.mrf.mxu0  ;;  %v3211_v49 = vadd.f32 %v24398_v18, %v3137_v44 }
 0x241   :  { %v2951_v52 = vmax.f32 %v2950_v46, 0.0  ;;  %19758 = vmatpush3.msra.mxu1 %v22848_v2  ;;  %19774 = vmatprep.subr.mxu0 %v22848_v2  ;;  %v5426_v46 = vrot.slane %v5418_v31, %v22893_v16 }
 0x242   :  { %19759 = vmatprep.subr.mxu1 %v22848_v2  ;;  %19775 = vmatpush3.msra.mxu0 %v22848_v2 }
 0x243   :  { %v24465_v53 = vadd.f32 %v2951_v52, %v1971_v51  ;;  %19760 = vmatpush3.msra.mxu1 %v22848_v2  ;;  %19776 = vmatprep.subr.mxu0 %v22848_v2  ;;  %v24644_v47 = vand.u32 4294901760, %v5426_v46 }
 0x244   :  { %19761 = vmatprep.subr.mxu1 %v22848_v2  ;;  %19777 = vmatpush3.msra.mxu0 %v22848_v2 }
 0x245   :  { %19762 = vmatpush3.msra.mxu1 %v22848_v2  ;;  %19778 = vmatprep.subr.mxu0 %v22848_v2 }
 0x246   :  { %19763 = vmatprep.subr.mxu1 %v22848_v2  ;;  %19779 = vmatpush3.msra.mxu0 %v22848_v2 }
 0x247   :  { %19764 = vmatpush3.msra.mxu1 %v22848_v2  ;;  %4895 = vmatprep.mubr.f32.mxu1 %v24305_v61  ;;  %v24492_v61 = vsub.f32 %v4945_v57, %v24479_v59 }
 0x248   :  { %19780 = vmatprep.subr.mxu0 %v22848_v2  ;;  %4897 = vmatmul.mubr.f32.vlgmr.msra.gmra.mxu1 %v24309_v62  ;;  %v24499_v62 = vsub.f32 %v4938_v58, %v24483_v60 }
 0x249   :  { %19781 = vmatpush3.msra.mxu0 %v22848_v2  ;;  %5058 = vmatprep.subr.mxu1 %v22849_v3  ;;  %v5014_v0 = vand.u32 4294901760, %v24492_v61 }
 0x24a   :  { %19782 = vmatprep.subr.mxu0 %v22848_v2  ;;  %5059 = vmatpush1.msra.mxu1 %v22849_v3  ;;  %v5020_v4 = vand.u32 4294901760, %v24499_v62 }
 0x24b   :  { %19783 = vmatpush3.msra.mxu0 %v22848_v2  ;;  %5093 = vmatprep.mubr.f32.mxu1 %v24479_v59  ;;  %v5015_v40 = vsub.f32 %v24492_v61, %v5014_v0 }
 0x24c   :  { %19784 = vmatprep.subr.mxu0 %v22848_v2  ;;  %5095 = vmatmul.mubr.f32.vlgmr.msra.gmra.mxu1 %v24483_v60  ;;  %v5021_v6 = vsub.f32 %v24499_v62, %v5020_v4 }
 0x24d   :  { %19785 = vmatpush3.msra.mxu0 %v22848_v2  ;;  %5130 = vmatprep.subr.mxu1 %v22849_v3  ;;  %v5016_v8 = vand.u32 4294901760, %v5015_v40 }
 0x24e   :  { %19786 = vmatprep.subr.mxu0 %v22848_v2  ;;  %5131 = vmatpush1.msra.mxu1 %v22849_v3  ;;  %v19415_v63 = vpop.f32.mrf.mxu1  ;;  %v5022_v9 = vand.u32 4294901760, %v5021_v6 }
 0x24f   :  { %19787 = vmatpush3.msra.mxu0 %v22848_v2  ;;  %5166 = vmatprep.mubr.f32.mxu1 %v24492_v61 }
 0x250   :  { %19788 = vmatprep.subr.mxu0 %v22848_v2  ;;  %19803 = vmatprep.subr.mxu1 %v22848_v2  ;;  %v19416_v1 = vpop.f32.mrf.mxu1 }
 0x251   :  { %19789 = vmatpush3.msra.mxu0 %v22848_v2  ;;  %5169 = vmatmul.mubr.f32.vlgmr.msra.gmra.mxu1 %v24499_v62  ;;  %v19417_v38 = vadd.f32 %v19416_v1, %v19415_v63 }
 0x252   :  { %19804 = vmatpush3.msra.mxu1 %v22848_v2  ;;  %19790 = vmatprep.subr.mxu0 %v22848_v2 }
 0x253   :  { %19805 = vmatprep.subr.mxu1 %v22848_v2  ;;  %19791 = vmatpush3.msra.mxu0 %v22848_v2  ;;  %v3287_v5 = vadd.f32 %v19417_v38, %v3211_v49  ;;  %v24660_v49 = vsub.f32 %v5426_v46, %v24644_v47 }
 0x254   :  { %19806 = vmatpush3.msra.mxu1 %v22848_v2  ;;  %19792 = vmatprep.subr.mxu0 %v22848_v2 }
 0x255   :  { %19807 = vmatprep.subr.mxu1 %v22848_v2  ;;  %19793 = vmatpush3.msra.mxu0 %v22848_v2  ;;  %v3359_v7 = vadd.f32 %v24454_v45, %v3287_v5  ;;  %v5433_v45 = vrot.slane %v5419_v42, %v22893_v16  ;;  %v5508_v57 = vand.u32 4294901760, %v24660_v49 }
 0x256   :  { %19808 = vmatpush3.msra.mxu1 %v22848_v2  ;;  %19794 = vmatprep.subr.mxu0 %v22848_v2 }
 0x257   :  { %19809 = vmatprep.subr.mxu1 %v22848_v2  ;;  %19795 = vmatpush3.msra.mxu0 %v22848_v2  ;;  %v5509_v61 = vsub.f32 %v24660_v49, %v5508_v57 }
 0x258   :  { %19810 = vmatpush3.msra.mxu1 %v22848_v2  ;;  %19796 = vmatprep.subr.mxu0 %v22848_v2 }
 0x259   :  { %19811 = vmatprep.subr.mxu1 %v22848_v2  ;;  %19797 = vmatpush3.msra.mxu0 %v22848_v2  ;;  %v5510_v1 = vand.u32 4294901760, %v5509_v61 }
 0x25a   :  { %19812 = vmatpush3.msra.mxu1 %v22848_v2  ;;  %19798 = vmatprep.subr.mxu0 %v22848_v2 }
 0x25b   :  { %19813 = vmatprep.subr.mxu1 %v22848_v2  ;;  %19799 = vmatpush3.msra.mxu0 %v22848_v2 }
 0x25c   :  { %5017 = vmatprep.mubr.f32.mxu0 %v5016_v8  ;;  %19814 = vmatpush3.msra.mxu1 %v22848_v2  ;;  %v24720_v8 = vld [vmem:[%s28960_s0 + $0x10] ss:$8 sm:$0x3] }
 0x25d   :  { %5023 = vmatmul.mubr.f32.vlgmr.msra.gmra.mxu0 %v5022_v9  ;;  %19815 = vmatprep.subr.mxu1 %v22848_v2  ;;  %v24725_v9 = vld [vmem:[%s28960_s0 + $0x40] ss:$8 sm:$0x3] }
 0x25e   :  { %19816 = vmatpush3.msra.mxu1 %v22848_v2  ;;  %5280 = vmatprep.subr.mxu0 %v22849_v3  ;;  %v19450_v10 = vpop.f32.mrf.mxu0 }
 0x25f   :  { %19817 = vmatprep.subr.mxu1 %v22848_v2  ;;  %5281 = vmatpush1.msra.mxu0 %v22849_v3 }
 0x260   :  { %19818 = vmatpush3.msra.mxu1 %v22848_v2  ;;  %5315 = vmatprep.mubr.f32.mxu0 %v24479_v59  ;;  %v19451_v14 = vpop.f32.mrf.mxu0 }
 0x261   :  { %19838 = vmatprep.subr.mxu0 %v22848_v2  ;;  %19819 = vmatprep.subr.mxu1 %v22848_v2  ;;  %v19452_v15 = vadd.f32 %v19451_v14, %v19450_v10 }
 0x262   :  { %5317 = vmatmul.mubr.f32.vlgmr.msra.gmra.mxu0 %v24483_v60  ;;  %19820 = vmatpush3.msra.mxu1 %v22848_v2  ;;  %v24550_v17 = vpop.f32.mrf.mxu0 }
 0x263   :  { %19839 = vmatpush3.msra.mxu0 %v22848_v2  ;;  %19821 = vmatprep.subr.mxu1 %v22848_v2  ;;  %v3431_v19 = vadd.f32 %v19452_v15, %v3359_v7  ;;  %v24738_v15 = vld [vmem:[%s28960_s0] ss:$8 sm:$0x3] }
 0x264   :  { %19840 = vmatprep.subr.mxu0 %v22848_v2  ;;  %19822 = vmatpush3.msra.mxu1 %v22848_v2  ;;  %v3626_v20 = vpop.f32.mrf.mxu0 }
 0x265   :  { %19841 = vmatpush3.msra.mxu0 %v22848_v2  ;;  %19823 = vmatprep.subr.mxu1 %v22848_v2  ;;  %22728 = vrsqrt.f32 %v3431_v19  ;;  %vm3436_vm12 = vcmp.eq.f32.partialorder %v3431_v19, inf  ;;  %v3439_v28 = vand.u32 2147483648, %v3431_v19  ;;  %vm3438_vm13 = vcmp.eq.f32.partialorder %v3431_v19, 0.0 }
 0x266   :  { %19842 = vmatprep.subr.mxu0 %v22848_v2  ;;  %19824 = vmatpush3.msra.mxu1 %v22848_v2 }
 0x267   :  { %19843 = vmatpush3.msra.mxu0 %v22848_v2  ;;  %19825 = vmatprep.subr.mxu1 %v22848_v2  ;;  %v3698_v21 = vpop.f32.mrf.mxu0 }
 0x268   :  { %19844 = vmatprep.subr.mxu0 %v22848_v2  ;;  %19826 = vmatpush3.msra.mxu1 %v22848_v2 }
 0x269   :  { %19845 = vmatpush3.msra.mxu0 %v22848_v2  ;;  %19827 = vmatprep.subr.mxu1 %v22848_v2  ;;  %v3700_v18 = vpop.f32.mrf.mxu0 }
 0x26a   :  { %19846 = vmatprep.subr.mxu0 %v22848_v2  ;;  %19828 = vmatpush3.msra.mxu1 %v22848_v2 }
 0x26b   :  { %19847 = vmatpush3.msra.mxu0 %v22848_v2  ;;  %19829 = vmatprep.subr.mxu1 %v22848_v2 }
 0x26c   :  { %19848 = vmatprep.subr.mxu0 %v22848_v2  ;;  %19830 = vmatpush3.msra.mxu1 %v22848_v2 }
 0x26d   :  { %19849 = vmatpush3.msra.mxu0 %v22848_v2  ;;  %19831 = vmatprep.subr.mxu1 %v22848_v2 }
 0x26e   :  { %19850 = vmatprep.subr.mxu0 %v22848_v2  ;;  %19832 = vmatpush3.msra.mxu1 %v22848_v2 }
 0x26f   :  { %19851 = vmatpush3.msra.mxu0 %v22848_v2  ;;  %19833 = vmatprep.subr.mxu1 %v22848_v2 }
 0x270   :  { %19852 = vmatprep.subr.mxu0 %v22848_v2  ;;  %19834 = vmatpush3.msra.mxu1 %v22848_v2 }
 0x271   :  { %19853 = vmatpush3.msra.mxu0 %v22848_v2  ;;  %5241 = vmatprep.mubr.f32.mxu1 %v5014_v0  ;;  %v19485_v12 = vpop.f32.mrf.mxu1 }
 0x272   :  { %v22729_v39 = vpop.eup %22728  ;;  %19854 = vmatprep.subr.mxu0 %v22848_v2  ;;  %5245 = vmatmul.mubr.f32.vlgmr.msra.gmra.mxu1 %v5020_v4 }
 0x273   :  { %v3435_v26 = vmul.f32 %v22729_v39, %v3431_v19  ;;  %19855 = vmatpush3.msra.mxu0 %v22848_v2  ;;  %19873 = vmatprep.subr.mxu1 %v22848_v2  ;;  %v19486_v27 = vpop.f32.mrf.mxu1 }
 0x274   :  { %19856 = vmatprep.subr.mxu0 %v22848_v2  ;;  %19874 = vmatpush3.msra.mxu1 %v22848_v2  ;;  %v19487_v29 = vadd.f32 %v19486_v27, %v19485_v12 }
 0x275   :  { %v3437_v30 = vsel %vm3436_vm12, %v3431_v19, %v3435_v26  ;;  %19857 = vmatpush3.msra.mxu0 %v22848_v2  ;;  %19875 = vmatprep.subr.mxu1 %v22848_v2  ;;  %v24745_v19 = vld [vmem:[%s28960_s0 + $0x30] ss:$8 sm:$0x3] }
 0x276   :  { %v3440_v50 = vsel %vm3438_vm13, %v3439_v28, %v3437_v30  ;;  %19858 = vmatprep.subr.mxu0 %v22848_v2  ;;  %19876 = vmatpush3.msra.mxu1 %v22848_v2  ;;  %v3625_v32 = vadd.f32 %v19487_v29, %v24550_v17  ;;  %v24610_v33 = vpop.f32.mrf.mxu1  ;;  %v5897_v17 = vsub.f32 %v24738_v15, %v24720_v8 }
 0x277   :  { %v3441_v34 = vsub.f32 %v23789_v23, %v3440_v50  ;;  %19859 = vmatpush3.msra.mxu0 %v22848_v2  ;;  %19877 = vmatprep.subr.mxu1 %v22848_v2  ;;  %v5898_v20 = vsub.f32 %v24745_v19, %v24725_v9 }
 0x278   :  { %19860 = vmatprep.subr.mxu0 %v22848_v2  ;;  %19878 = vmatpush3.msra.mxu1 %v22848_v2  ;;  %v3848_v35 = vpop.f32.mrf.mxu1  ;;  %v3699_v37 = vadd.f32 %v3698_v21, %v3625_v32  ;;  %v5899_v21 = vmul.f32 %v5897_v17, %v5897_v17 }
 0x279   :  { %v3442_v41 = vadd.f32 0.5, %v3441_v34  ;;  %19861 = vmatpush3.msra.mxu0 %v22848_v2  ;;  %19879 = vmatprep.subr.mxu1 %v22848_v2  ;;  %v5900_v18 = vmul.f32 %v5898_v20, %v5898_v20 }
 0x27a   :  { %19862 = vmatprep.subr.mxu0 %v22848_v2  ;;  %19880 = vmatpush3.msra.mxu1 %v22848_v2 }
 0x27b   :  { %v3443_v43 = vmax.f32 %v3442_v41, 0.0  ;;  %19863 = vmatpush3.msra.mxu0 %v22848_v2  ;;  %19881 = vmatprep.subr.mxu1 %v22848_v2  ;;  %v5903_v13 = vcombine.low %v5899_v21, %v5900_v18 }
 0x27c   :  { %19864 = vmatprep.subr.mxu0 %v22848_v2  ;;  %19882 = vmatpush3.msra.mxu1 %v22848_v2 }
 0x27d   :  { %v24626_v44 = vadd.f32 %v3443_v43, %v24291_v55  ;;  %19865 = vmatpush3.msra.mxu0 %v22848_v2  ;;  %19883 = vmatprep.subr.mxu1 %v22848_v2  ;;  %v24640_v55 = vand.u32 4294901760, %v5433_v45  ;;  %v5910_v26 = vrot.slane %v5903_v13, %v22893_v16 }
 0x27e   :  { %19866 = vmatprep.subr.mxu0 %v22848_v2  ;;  %19884 = vmatpush3.msra.mxu1 %v22848_v2 }
 0x27f   :  { %19867 = vmatpush3.msra.mxu0 %v22848_v2  ;;  %19885 = vmatprep.subr.mxu1 %v22848_v2  ;;  %v24653_v48 = vsub.f32 %v5433_v45, %v24640_v55  ;;  %v5911_v32 = vcombine.high %v5910_v26, %v5910_v26  ;;  %v5918_v42 = vrot.slane %v5910_v26, %v22893_v16 }
 0x280   :  { %19868 = vmatprep.subr.mxu0 %v22848_v2  ;;  %19886 = vmatpush3.msra.mxu1 %v22848_v2 }
 0x281   :  { %19869 = vmatpush3.msra.mxu0 %v22848_v2  ;;  %5387 = vmatprep.mubr.f32.mxu0 %v24479_v59  ;;  %v5502_v51 = vand.u32 4294901760, %v24653_v48  ;;  %v5925_v41 = vrot.slane %v5911_v32, %v22893_v16  ;;  %v24814_v43 = vand.u32 4294901760, %v5918_v42 }
 0x282   :  { %19887 = vmatprep.subr.mxu1 %v22848_v2  ;;  %5389 = vmatmul.mubr.f32.vlgmr.msra.gmra.mxu0 %v24483_v60 }
 0x283   :  { %19888 = vmatpush3.msra.mxu1 %v22848_v2  ;;  %5546 = vmatprep.subr.mxu0 %v22849_v3  ;;  %v5503_v60 = vsub.f32 %v24653_v48, %v5502_v51  ;;  %v24830_v46 = vsub.f32 %v5918_v42, %v24814_v43 }
 0x284   :  { %19889 = vmatprep.subr.mxu1 %v22848_v2  ;;  %5547 = vmatpush1.msra.mxu0 %v22849_v3 }
 0x285   :  { %19890 = vmatpush3.msra.mxu1 %v22848_v2  ;;  %5581 = vmatprep.mubr.f32.mxu0 %v24640_v55  ;;  %v5504_v0 = vand.u32 4294901760, %v5503_v60 }
 0x286   :  { %19891 = vmatprep.subr.mxu1 %v22848_v2  ;;  %5583 = vmatmul.mubr.f32.vlgmr.msra.gmra.mxu0 %v24644_v47 }
 0x287   :  { %19892 = vmatpush3.msra.mxu1 %v22848_v2  ;;  %5618 = vmatprep.subr.mxu0 %v22849_v3 }
 0x288   :  { %19893 = vmatprep.subr.mxu1 %v22848_v2  ;;  %5619 = vmatpush1.msra.mxu0 %v22849_v3  ;;  %v19520_v52 = vpop.f32.mrf.mxu0 }
 0x289   :  { %19894 = vmatpush3.msra.mxu1 %v22848_v2  ;;  %5654 = vmatprep.mubr.f32.mxu0 %v24653_v48 }
 0x28a   :  { %19895 = vmatprep.subr.mxu1 %v22848_v2  ;;  %19908 = vmatprep.subr.mxu0 %v22848_v2  ;;  %v19521_v58 = vpop.f32.mrf.mxu0 }
 0x28b   :  { %19896 = vmatpush3.msra.mxu1 %v22848_v2  ;;  %5657 = vmatmul.mubr.f32.vlgmr.msra.gmra.mxu0 %v24660_v49  ;;  %v19522_v59 = vadd.f32 %v19521_v58, %v19520_v52  ;;  %v6000_v49 = vand.u32 4294901760, %v24830_v46 }
 0x28c   :  { %19909 = vmatpush3.msra.mxu0 %v22848_v2  ;;  %19897 = vmatprep.subr.mxu1 %v22848_v2 }
 0x28d   :  { %19910 = vmatprep.subr.mxu0 %v22848_v2  ;;  %19898 = vmatpush3.msra.mxu1 %v22848_v2  ;;  %v3775_v62 = vadd.f32 %v19522_v59, %v3699_v37  ;;  %v6001_v58 = vsub.f32 %v24830_v46, %v6000_v49 }
 0x28e   :  { %19911 = vmatpush3.msra.mxu0 %v22848_v2  ;;  %19899 = vmatprep.subr.mxu1 %v22848_v2 }
 0x28f   :  { %19912 = vmatprep.subr.mxu0 %v22848_v2  ;;  %19900 = vmatpush3.msra.mxu1 %v22848_v2  ;;  %v3847_v63 = vadd.f32 %v24610_v33, %v3775_v62  ;;  %v6002_v61 = vand.u32 4294901760, %v6001_v58 }
 0x290   :  { %19913 = vmatpush3.msra.mxu0 %v22848_v2  ;;  %19901 = vmatprep.subr.mxu1 %v22848_v2 }
 0x291   :  { %19914 = vmatprep.subr.mxu0 %v22848_v2  ;;  %19902 = vmatpush3.msra.mxu1 %v22848_v2 }
 0x292   :  { %19915 = vmatpush3.msra.mxu0 %v22848_v2  ;;  %19903 = vmatprep.subr.mxu1 %v22848_v2 }
 0x293   :  { %19916 = vmatprep.subr.mxu0 %v22848_v2  ;;  %19904 = vmatpush3.msra.mxu1 %v22848_v2 }
 0x294   :  { %5505 = vmatprep.mubr.f32.mxu1 %v5504_v0  ;;  %19917 = vmatpush3.msra.mxu0 %v22848_v2 }
 0x295   :  { %5511 = vmatmul.mubr.f32.vlgmr.msra.gmra.mxu1 %v5510_v1  ;;  %19918 = vmatprep.subr.mxu0 %v22848_v2 }
 0x296   :  { %5768 = vmatprep.subr.mxu1 %v22849_v3  ;;  %19919 = vmatpush3.msra.mxu0 %v22848_v2  ;;  %v19555_v4 = vpop.f32.mrf.mxu1 }
 0x297   :  { %5769 = vmatpush1.msra.mxu1 %v22849_v3  ;;  %19920 = vmatprep.subr.mxu0 %v22848_v2 }
 0x298   :  { %19921 = vmatpush3.msra.mxu0 %v22848_v2  ;;  %5803 = vmatprep.mubr.f32.mxu1 %v24640_v55  ;;  %v19556_v38 = vpop.f32.mrf.mxu1 }
 0x299   :  { %19943 = vmatprep.subr.mxu1 %v22848_v2  ;;  %19922 = vmatprep.subr.mxu0 %v22848_v2  ;;  %v19557_v5 = vadd.f32 %v19556_v38, %v19555_v4 }
 0x29a   :  { %5805 = vmatmul.mubr.f32.vlgmr.msra.gmra.mxu1 %v24644_v47  ;;  %19923 = vmatpush3.msra.mxu0 %v22848_v2  ;;  %v24707_v40 = vpop.f32.mrf.mxu1 }
 0x29b   :  { %19944 = vmatpush3.msra.mxu1 %v22848_v2  ;;  %19924 = vmatprep.subr.mxu0 %v22848_v2  ;;  %v3919_v6 = vadd.f32 %v19557_v5, %v3847_v63 }
 0x29c   :  { %19945 = vmatprep.subr.mxu1 %v22848_v2  ;;  %19925 = vmatpush3.msra.mxu0 %v22848_v2  ;;  %v4118_v7 = vpop.f32.mrf.mxu1 }
 0x29d   :  { %19946 = vmatpush3.msra.mxu1 %v22848_v2  ;;  %19926 = vmatprep.subr.mxu0 %v22848_v2  ;;  %22730 = vrsqrt.f32 %v3919_v6  ;;  %vm3924_vm14 = vcmp.eq.f32.partialorder %v3919_v6, inf  ;;  %v3927_v12 = vand.u32 2147483648, %v3919_v6  ;;  %vm3926_vm15 = vcmp.eq.f32.partialorder %v3919_v6, 0.0 }
 0x29e   :  { %19947 = vmatprep.subr.mxu1 %v22848_v2  ;;  %19927 = vmatpush3.msra.mxu0 %v22848_v2  ;;  %v6386_v7 = vsub.f32 %v24725_v9, %v24576_v25 }
 0x29f   :  { %19948 = vmatpush3.msra.mxu1 %v22848_v2  ;;  %19928 = vmatprep.subr.mxu0 %v22848_v2  ;;  %v24729_v10 = vpop.f32.mrf.mxu1 }
 0x2a0   :  { %19949 = vmatprep.subr.mxu1 %v22848_v2  ;;  %19929 = vmatpush3.msra.mxu0 %v22848_v2 }
 0x2a1   :  { %19950 = vmatpush3.msra.mxu1 %v22848_v2  ;;  %19930 = vmatprep.subr.mxu0 %v22848_v2  ;;  %v4192_v14 = vpop.f32.mrf.mxu1 }
 0x2a2   :  { %19951 = vmatprep.subr.mxu1 %v22848_v2  ;;  %19931 = vmatpush3.msra.mxu0 %v22848_v2 }
 0x2a3   :  { %19952 = vmatpush3.msra.mxu1 %v22848_v2  ;;  %19932 = vmatprep.subr.mxu0 %v22848_v2 }
 0x2a4   :  { %19953 = vmatprep.subr.mxu1 %v22848_v2  ;;  %19933 = vmatpush3.msra.mxu0 %v22848_v2 }
 0x2a5   :  { %19954 = vmatpush3.msra.mxu1 %v22848_v2  ;;  %19934 = vmatprep.subr.mxu0 %v22848_v2 }
 0x2a6   :  { %19955 = vmatprep.subr.mxu1 %v22848_v2  ;;  %19935 = vmatpush3.msra.mxu0 %v22848_v2 }
 0x2a7   :  { %19956 = vmatpush3.msra.mxu1 %v22848_v2  ;;  %19936 = vmatprep.subr.mxu0 %v22848_v2 }
 0x2a8   :  { %19957 = vmatprep.subr.mxu1 %v22848_v2  ;;  %19937 = vmatpush3.msra.mxu0 %v22848_v2 }
 0x2a9   :  { %19958 = vmatpush3.msra.mxu1 %v22848_v2  ;;  %19938 = vmatprep.subr.mxu0 %v22848_v2 }
 0x2aa   :  { %v22731_v54 = vpop.eup %22730  ;;  %19959 = vmatprep.subr.mxu1 %v22848_v2  ;;  %19939 = vmatpush3.msra.mxu0 %v22848_v2 }
 0x2ab   :  { %v3923_v22 = vmul.f32 %v22731_v54, %v3919_v6  ;;  %19960 = vmatpush3.msra.mxu1 %v22848_v2  ;;  %5729 = vmatprep.mubr.f32.mxu0 %v5502_v51  ;;  %v19590_v56 = vpop.f32.mrf.mxu0 }
 0x2ac   :  { %19961 = vmatprep.subr.mxu1 %v22848_v2  ;;  %5733 = vmatmul.mubr.f32.vlgmr.msra.gmra.mxu0 %v5508_v57 }
 0x2ad   :  { %v3925_v36 = vsel %vm3924_vm14, %v3919_v6, %v3923_v22  ;;  %19962 = vmatpush3.msra.mxu1 %v22848_v2  ;;  %19978 = vmatprep.subr.mxu0 %v22848_v2  ;;  %v19591_v39 = vpop.f32.mrf.mxu0  ;;  %v6385_v6 = vsub.f32 %v24720_v8, %v24569_v24  ;;  %v6388_v8 = vmul.f32 %v6386_v7, %v6386_v7 }
 0x2ae   :  { %v3928_v27 = vsel %vm3926_vm15, %v3927_v12, %v3925_v36  ;;  %19963 = vmatprep.subr.mxu1 %v22848_v2  ;;  %19979 = vmatpush3.msra.mxu0 %v22848_v2  ;;  %v19592_v28 = vadd.f32 %v19591_v39, %v19590_v56 }
 0x2af   :  { %v3929_v29 = vsub.f32 %v23789_v23, %v3928_v27  ;;  %19964 = vmatpush3.msra.mxu1 %v22848_v2  ;;  %19980 = vmatprep.subr.mxu0 %v22848_v2  ;;  %v6387_v24 = vmul.f32 %v6385_v6, %v6385_v6 }
 0x2b0   :  { %19965 = vmatprep.subr.mxu1 %v22848_v2  ;;  %19981 = vmatpush3.msra.mxu0 %v22848_v2  ;;  %v4117_v30 = vadd.f32 %v19592_v28, %v24707_v40  ;;  %v24784_v31 = vpop.f32.mrf.mxu0 }
 0x2b1   :  { %v3930_v50 = vadd.f32 0.2, %v3929_v29  ;;  %19966 = vmatpush3.msra.mxu1 %v22848_v2  ;;  %19982 = vmatprep.subr.mxu0 %v22848_v2  ;;  %v6391_v9 = vcombine.low %v6387_v24, %v6388_v8 }
 0x2b2   :  { %19967 = vmatprep.subr.mxu1 %v22848_v2  ;;  %19983 = vmatpush3.msra.mxu0 %v22848_v2  ;;  %v4340_v33 = vpop.f32.mrf.mxu0  ;;  %v4191_v34 = vadd.f32 %v24729_v10, %v4117_v30 }
 0x2b3   :  { %v3931_v35 = vmax.f32 %v3930_v50, 0.0  ;;  %19968 = vmatpush3.msra.mxu1 %v22848_v2  ;;  %19984 = vmatprep.subr.mxu0 %v22848_v2  ;;  %v6398_v13 = vrot.slane %v6391_v9, %v22893_v16 }
 0x2b4   :  { %19969 = vmatprep.subr.mxu1 %v22848_v2  ;;  %19985 = vmatpush3.msra.mxu0 %v22848_v2 }
 0x2b5   :  { %v24796_v37 = vadd.f32 %v3931_v35, %v24465_v53  ;;  %19970 = vmatpush3.msra.mxu1 %v22848_v2  ;;  %19986 = vmatprep.subr.mxu0 %v22848_v2  ;;  %v24810_v53 = vand.u32 4294901760, %v5925_v41  ;;  %v6399_v27 = vcombine.high %v6398_v13, %v6398_v13 }
 0x2b6   :  { %19971 = vmatprep.subr.mxu1 %v22848_v2  ;;  %19987 = vmatpush3.msra.mxu0 %v22848_v2 }
 0x2b7   :  { %19972 = vmatpush3.msra.mxu1 %v22848_v2  ;;  %19988 = vmatprep.subr.mxu0 %v22848_v2  ;;  %v24823_v45 = vsub.f32 %v5925_v41, %v24810_v53  ;;  %v6413_v30 = vrot.slane %v6399_v27, %v22893_v16 }
 0x2b8   :  { %19973 = vmatprep.subr.mxu1 %v22848_v2  ;;  %19989 = vmatpush3.msra.mxu0 %v22848_v2 }
 0x2b9   :  { %19974 = vmatpush3.msra.mxu1 %v22848_v2  ;;  %5875 = vmatprep.mubr.f32.mxu1 %v24640_v55 }
 0x2ba   :  { %19990 = vmatprep.subr.mxu0 %v22848_v2  ;;  %5877 = vmatmul.mubr.f32.vlgmr.msra.gmra.mxu1 %v24644_v47  ;;  %v5994_v47 = vand.u32 4294901760, %v24823_v45 }
 0x2bb   :  { %19991 = vmatpush3.msra.mxu0 %v22848_v2  ;;  %6038 = vmatprep.subr.mxu1 %v22849_v3 }
 0x2bc   :  { %19992 = vmatprep.subr.mxu0 %v22848_v2  ;;  %6039 = vmatpush1.msra.mxu1 %v22849_v3  ;;  %v5995_v57 = vsub.f32 %v24823_v45, %v5994_v47 }
 0x2bd   :  { %19993 = vmatpush3.msra.mxu0 %v22848_v2  ;;  %6073 = vmatprep.mubr.f32.mxu1 %v24810_v53 }
 0x2be   :  { %19994 = vmatprep.subr.mxu0 %v22848_v2  ;;  %6075 = vmatmul.mubr.f32.vlgmr.msra.gmra.mxu1 %v24814_v43  ;;  %v5996_v60 = vand.u32 4294901760, %v5995_v57 }
 0x2bf   :  { %19995 = vmatpush3.msra.mxu0 %v22848_v2  ;;  %6110 = vmatprep.subr.mxu1 %v22849_v3 }
 0x2c0   :  { %19996 = vmatprep.subr.mxu0 %v22848_v2  ;;  %6111 = vmatpush1.msra.mxu1 %v22849_v3  ;;  %v19625_v55 = vpop.f32.mrf.mxu1 }
 0x2c1   :  { %19997 = vmatpush3.msra.mxu0 %v22848_v2  ;;  %6146 = vmatprep.mubr.f32.mxu1 %v24823_v45 }
 0x2c2   :  { %19998 = vmatprep.subr.mxu0 %v22848_v2  ;;  %20013 = vmatprep.subr.mxu1 %v22848_v2  ;;  %v19626_v48 = vpop.f32.mrf.mxu1 }
 0x2c3   :  { %19999 = vmatpush3.msra.mxu0 %v22848_v2  ;;  %6149 = vmatmul.mubr.f32.vlgmr.msra.gmra.mxu1 %v24830_v46  ;;  %v19627_v51 = vadd.f32 %v19626_v48, %v19625_v55 }
 0x2c4   :  { %20014 = vmatpush3.msra.mxu1 %v22848_v2  ;;  %20000 = vmatprep.subr.mxu0 %v22848_v2 }
 0x2c5   :  { %20015 = vmatprep.subr.mxu1 %v22848_v2  ;;  %20001 = vmatpush3.msra.mxu0 %v22848_v2  ;;  %v4267_v52 = vadd.f32 %v19627_v51, %v4191_v34 }
 0x2c6   :  { %20016 = vmatpush3.msra.mxu1 %v22848_v2  ;;  %20002 = vmatprep.subr.mxu0 %v22848_v2 }
 0x2c7   :  { %20017 = vmatprep.subr.mxu1 %v22848_v2  ;;  %20003 = vmatpush3.msra.mxu0 %v22848_v2  ;;  %v4339_v59 = vadd.f32 %v24784_v31, %v4267_v52  ;;  %v6406_v31 = vrot.slane %v6398_v13, %v22893_v16 }
 0x2c8   :  { %20018 = vmatpush3.msra.mxu1 %v22848_v2  ;;  %20004 = vmatprep.subr.mxu0 %v22848_v2 }
 0x2c9   :  { %20019 = vmatprep.subr.mxu1 %v22848_v2  ;;  %20005 = vmatpush3.msra.mxu0 %v22848_v2  ;;  %v24962_v50 = vand.u32 4294901760, %v6406_v31 }
 0x2ca   :  { %20020 = vmatpush3.msra.mxu1 %v22848_v2  ;;  %20006 = vmatprep.subr.mxu0 %v22848_v2 }
 0x2cb   :  { %20021 = vmatprep.subr.mxu1 %v22848_v2  ;;  %20007 = vmatpush3.msra.mxu0 %v22848_v2  ;;  %v24978_v33 = vsub.f32 %v6406_v31, %v24962_v50 }
 0x2cc   :  { %20022 = vmatpush3.msra.mxu1 %v22848_v2  ;;  %20008 = vmatprep.subr.mxu0 %v22848_v2 }
 0x2cd   :  { %20023 = vmatprep.subr.mxu1 %v22848_v2  ;;  %20009 = vmatpush3.msra.mxu0 %v22848_v2  ;;  %v6488_v41 = vand.u32 4294901760, %v24978_v33 }
 0x2ce   :  { %5997 = vmatprep.mubr.f32.mxu0 %v5996_v60  ;;  %20024 = vmatpush3.msra.mxu1 %v22848_v2  ;;  %v25038_v60 = vld [vmem:[%s28960_s0 + $0x11] ss:$8 sm:$0x3] }
 0x2cf   :  { %6003 = vmatmul.mubr.f32.vlgmr.msra.gmra.mxu0 %v6002_v61  ;;  %20025 = vmatprep.subr.mxu1 %v22848_v2  ;;  %v6489_v45 = vsub.f32 %v24978_v33, %v6488_v41  ;;  %v25043_v61 = vld [vmem:[%s28960_s0 + $0x41] ss:$8 sm:$0x3] }
 0x2d0   :  { %20026 = vmatpush3.msra.mxu1 %v22848_v2  ;;  %6260 = vmatprep.subr.mxu0 %v22849_v3  ;;  %v19660_v62 = vpop.f32.mrf.mxu0 }
 0x2d1   :  { %20027 = vmatprep.subr.mxu1 %v22848_v2  ;;  %6261 = vmatpush1.msra.mxu0 %v22849_v3  ;;  %v6490_v48 = vand.u32 4294901760, %v6489_v45 }
 0x2d2   :  { %20028 = vmatpush3.msra.mxu1 %v22848_v2  ;;  %6295 = vmatprep.mubr.f32.mxu0 %v24810_v53  ;;  %v19661_v63 = vpop.f32.mrf.mxu0 }
 0x2d3   :  { %20048 = vmatprep.subr.mxu0 %v22848_v2  ;;  %20029 = vmatprep.subr.mxu1 %v22848_v2  ;;  %v19662_v0 = vadd.f32 %v19661_v63, %v19660_v62 }
 0x2d4   :  { %6297 = vmatmul.mubr.f32.vlgmr.msra.gmra.mxu0 %v24814_v43  ;;  %20030 = vmatpush3.msra.mxu1 %v22848_v2  ;;  %v4604_v1 = vpop.f32.mrf.mxu0 }
 0x2d5   :  { %20049 = vmatpush3.msra.mxu0 %v22848_v2  ;;  %20031 = vmatprep.subr.mxu1 %v22848_v2  ;;  %v4411_v4 = vadd.f32 %v19662_v0, %v4339_v59  ;;  %v6877_v0 = vsub.f32 %v24738_v15, %v25038_v60 }
 0x2d6   :  { %20050 = vmatprep.subr.mxu0 %v22848_v2  ;;  %20032 = vmatpush3.msra.mxu1 %v22848_v2  ;;  %v4606_v38 = vpop.f32.mrf.mxu0 }
 0x2d7   :  { %20051 = vmatpush3.msra.mxu0 %v22848_v2  ;;  %20033 = vmatprep.subr.mxu1 %v22848_v2  ;;  %22732 = vrsqrt.f32 %v4411_v4  ;;  %vm4416_vm0 = vcmp.eq.f32.partialorder %v4411_v4, inf  ;;  %v4419_v20 = vand.u32 2147483648, %v4411_v4  ;;  %vm4418_vm1 = vcmp.eq.f32.partialorder %v4411_v4, 0.0 }
 0x2d8   :  { %20052 = vmatprep.subr.mxu0 %v22848_v2  ;;  %20034 = vmatpush3.msra.mxu1 %v22848_v2  ;;  %v6879_v15 = vmul.f32 %v6877_v0, %v6877_v0 }
 0x2d9   :  { %20053 = vmatpush3.msra.mxu0 %v22848_v2  ;;  %20035 = vmatprep.subr.mxu1 %v22848_v2  ;;  %v4678_v5 = vpop.f32.mrf.mxu0 }
 0x2da   :  { %20054 = vmatprep.subr.mxu0 %v22848_v2  ;;  %20036 = vmatpush3.msra.mxu1 %v22848_v2 }
 0x2db   :  { %20055 = vmatpush3.msra.mxu0 %v22848_v2  ;;  %20037 = vmatprep.subr.mxu1 %v22848_v2  ;;  %v4680_v40 = vpop.f32.mrf.mxu0 }
 0x2dc   :  { %20056 = vmatprep.subr.mxu0 %v22848_v2  ;;  %20038 = vmatpush3.msra.mxu1 %v22848_v2 }
 0x2dd   :  { %20057 = vmatpush3.msra.mxu0 %v22848_v2  ;;  %20039 = vmatprep.subr.mxu1 %v22848_v2 }
 0x2de   :  { %20058 = vmatprep.subr.mxu0 %v22848_v2  ;;  %20040 = vmatpush3.msra.mxu1 %v22848_v2 }
 0x2df   :  { %20059 = vmatpush3.msra.mxu0 %v22848_v2  ;;  %20041 = vmatprep.subr.mxu1 %v22848_v2 }
 0x2e0   :  { %20060 = vmatprep.subr.mxu0 %v22848_v2  ;;  %20042 = vmatpush3.msra.mxu1 %v22848_v2 }
 0x2e1   :  { %20061 = vmatpush3.msra.mxu0 %v22848_v2  ;;  %20043 = vmatprep.subr.mxu1 %v22848_v2 }
 0x2e2   :  { %20062 = vmatprep.subr.mxu0 %v22848_v2  ;;  %20044 = vmatpush3.msra.mxu1 %v22848_v2 }
 0x2e3   :  { %20063 = vmatpush3.msra.mxu0 %v22848_v2  ;;  %6221 = vmatprep.mubr.f32.mxu1 %v5994_v47  ;;  %v19695_v25 = vpop.f32.mrf.mxu1 }
 0x2e4   :  { %v22733_v10 = vpop.eup %22732  ;;  %20064 = vmatprep.subr.mxu0 %v22848_v2  ;;  %6225 = vmatmul.mubr.f32.vlgmr.msra.gmra.mxu1 %v6000_v49 }
 0x2e5   :  { %v4415_v14 = vmul.f32 %v22733_v10, %v4411_v4  ;;  %20065 = vmatpush3.msra.mxu0 %v22848_v2  ;;  %20083 = vmatprep.subr.mxu1 %v22848_v2  ;;  %v19696_v17 = vpop.f32.mrf.mxu1 }
 0x2e6   :  { %20066 = vmatprep.subr.mxu0 %v22848_v2  ;;  %20084 = vmatpush3.msra.mxu1 %v22848_v2  ;;  %v19697_v21 = vadd.f32 %v19696_v17, %v19695_v25 }
 0x2e7   :  { %v4417_v18 = vsel %vm4416_vm0, %v4411_v4, %v4415_v14  ;;  %20067 = vmatpush3.msra.mxu0 %v22848_v2  ;;  %20085 = vmatprep.subr.mxu1 %v22848_v2 }
 0x2e8   :  { %v4420_v54 = vsel %vm4418_vm1, %v4419_v20, %v4417_v18  ;;  %20068 = vmatprep.subr.mxu0 %v22848_v2  ;;  %20086 = vmatpush3.msra.mxu1 %v22848_v2  ;;  %v4605_v22 = vadd.f32 %v19697_v21, %v4604_v1  ;;  %v24928_v56 = vpop.f32.mrf.mxu1  ;;  %v6878_v1 = vsub.f32 %v24745_v19, %v25043_v61 }
 0x2e9   :  { %v4421_v12 = vsub.f32 %v23789_v23, %v4420_v54  ;;  %20069 = vmatpush3.msra.mxu0 %v22848_v2  ;;  %20087 = vmatprep.subr.mxu1 %v22848_v2 }
 0x2ea   :  { %20070 = vmatprep.subr.mxu0 %v22848_v2  ;;  %20088 = vmatpush3.msra.mxu1 %v22848_v2  ;;  %v4828_v36 = vpop.f32.mrf.mxu1  ;;  %v4679_v39 = vadd.f32 %v4678_v5, %v4605_v22  ;;  %v6880_v4 = vmul.f32 %v6878_v1, %v6878_v1 }
 0x2eb   :  { %v4422_v26 = vadd.f32 0.5, %v4421_v12  ;;  %20071 = vmatpush3.msra.mxu0 %v22848_v2  ;;  %20089 = vmatprep.subr.mxu1 %v22848_v2 }
 0x2ec   :  { %20072 = vmatprep.subr.mxu0 %v22848_v2  ;;  %20090 = vmatpush3.msra.mxu1 %v22848_v2  ;;  %v6883_v19 = vcombine.low %v6879_v15, %v6880_v4 }
 0x2ed   :  { %v4423_v28 = vmax.f32 %v4422_v26, 0.0  ;;  %20073 = vmatpush3.msra.mxu0 %v22848_v2  ;;  %20091 = vmatprep.subr.mxu1 %v22848_v2 }
 0x2ee   :  { %20074 = vmatprep.subr.mxu0 %v22848_v2  ;;  %20092 = vmatpush3.msra.mxu1 %v22848_v2  ;;  %v6890_v8 = vrot.slane %v6883_v19, %v22893_v16 }
 0x2ef   :  { %v24944_v29 = vadd.f32 %v4423_v28, %v24626_v44  ;;  %20075 = vmatpush3.msra.mxu0 %v22848_v2  ;;  %20093 = vmatprep.subr.mxu1 %v22848_v2  ;;  %v24958_v44 = vand.u32 4294901760, %v6413_v30 }
 0x2f0   :  { %20076 = vmatprep.subr.mxu0 %v22848_v2  ;;  %20094 = vmatpush3.msra.mxu1 %v22848_v2  ;;  %v6891_v21 = vcombine.high %v6890_v8, %v6890_v8  ;;  %v6898_v12 = vrot.slane %v6890_v8, %v22893_v16 }
 0x2f1   :  { %20077 = vmatpush3.msra.mxu0 %v22848_v2  ;;  %20095 = vmatprep.subr.mxu1 %v22848_v2  ;;  %v24971_v32 = vsub.f32 %v6413_v30, %v24958_v44 }
 0x2f2   :  { %20078 = vmatprep.subr.mxu0 %v22848_v2  ;;  %20096 = vmatpush3.msra.mxu1 %v22848_v2  ;;  %v25119_v36 = vand.u32 4294901760, %v6898_v12 }
 0x2f3   :  { %20079 = vmatpush3.msra.mxu0 %v22848_v2  ;;  %6367 = vmatprep.mubr.f32.mxu0 %v24810_v53  ;;  %v6482_v34 = vand.u32 4294901760, %v24971_v32 }
 0x2f4   :  { %20097 = vmatprep.subr.mxu1 %v22848_v2  ;;  %6369 = vmatmul.mubr.f32.vlgmr.msra.gmra.mxu0 %v24814_v43  ;;  %v25135_v26 = vsub.f32 %v6898_v12, %v25119_v36 }
 0x2f5   :  { %20098 = vmatpush3.msra.mxu1 %v22848_v2  ;;  %6526 = vmatprep.subr.mxu0 %v22849_v3  ;;  %v6483_v43 = vsub.f32 %v24971_v32, %v6482_v34 }
 0x2f6   :  { %20099 = vmatprep.subr.mxu1 %v22848_v2  ;;  %6527 = vmatpush1.msra.mxu0 %v22849_v3  ;;  %v6980_v31 = vand.u32 4294901760, %v25135_v26 }
 0x2f7   :  { %20100 = vmatpush3.msra.mxu1 %v22848_v2  ;;  %6561 = vmatprep.mubr.f32.mxu0 %v24958_v44  ;;  %v6484_v47 = vand.u32 4294901760, %v6483_v43 }
 0x2f8   :  { %20101 = vmatprep.subr.mxu1 %v22848_v2  ;;  %6563 = vmatmul.mubr.f32.vlgmr.msra.gmra.mxu0 %v24962_v50 }
 0x2f9   :  { %20102 = vmatpush3.msra.mxu1 %v22848_v2  ;;  %6598 = vmatprep.subr.mxu0 %v22849_v3 }
 0x2fa   :  { %20103 = vmatprep.subr.mxu1 %v22848_v2  ;;  %6599 = vmatpush1.msra.mxu0 %v22849_v3  ;;  %v19730_v35 = vpop.f32.mrf.mxu0 }
 0x2fb   :  { %20104 = vmatpush3.msra.mxu1 %v22848_v2  ;;  %6634 = vmatprep.mubr.f32.mxu0 %v24971_v32 }
 0x2fc   :  { %20105 = vmatprep.subr.mxu1 %v22848_v2  ;;  %20118 = vmatprep.subr.mxu0 %v22848_v2  ;;  %v19731_v42 = vpop.f32.mrf.mxu0 }
 0x2fd   :  { %20106 = vmatpush3.msra.mxu1 %v22848_v2  ;;  %6637 = vmatmul.mubr.f32.vlgmr.msra.gmra.mxu0 %v24978_v33  ;;  %v19732_v53 = vadd.f32 %v19731_v42, %v19730_v35  ;;  %v6981_v33 = vsub.f32 %v25135_v26, %v6980_v31 }
 0x2fe   :  { %20119 = vmatpush3.msra.mxu0 %v22848_v2  ;;  %20107 = vmatprep.subr.mxu1 %v22848_v2 }
 0x2ff   :  { %20120 = vmatprep.subr.mxu0 %v22848_v2  ;;  %20108 = vmatpush3.msra.mxu1 %v22848_v2  ;;  %v4755_v46 = vadd.f32 %v19732_v53, %v4679_v39 }
 0x300   :  { %20121 = vmatpush3.msra.mxu0 %v22848_v2  ;;  %20109 = vmatprep.subr.mxu1 %v22848_v2 }
 0x301   :  { %20122 = vmatprep.subr.mxu0 %v22848_v2  ;;  %20110 = vmatpush3.msra.mxu1 %v22848_v2  ;;  %v4827_v55 = vadd.f32 %v24928_v56, %v4755_v46  ;;  %v6905_v56 = vrot.slane %v6891_v21, %v22893_v16 }
 0x302   :  { %20123 = vmatpush3.msra.mxu0 %v22848_v2  ;;  %20111 = vmatprep.subr.mxu1 %v22848_v2 }
 0x303   :  { %20124 = vmatprep.subr.mxu0 %v22848_v2  ;;  %20112 = vmatpush3.msra.mxu1 %v22848_v2 }
 0x304   :  { %20125 = vmatpush3.msra.mxu0 %v22848_v2  ;;  %20113 = vmatprep.subr.mxu1 %v22848_v2 }
 0x305   :  { %20126 = vmatprep.subr.mxu0 %v22848_v2  ;;  %20114 = vmatpush3.msra.mxu1 %v22848_v2 }
 0x306   :  { %6485 = vmatprep.mubr.f32.mxu1 %v6484_v47  ;;  %20127 = vmatpush3.msra.mxu0 %v22848_v2 }
 0x307   :  { %6491 = vmatmul.mubr.f32.vlgmr.msra.gmra.mxu1 %v6490_v48  ;;  %20128 = vmatprep.subr.mxu0 %v22848_v2 }
 0x308   :  { %6748 = vmatprep.subr.mxu1 %v22849_v3  ;;  %20129 = vmatpush3.msra.mxu0 %v22848_v2  ;;  %v19765_v49 = vpop.f32.mrf.mxu1 }
 0x309   :  { %6749 = vmatpush1.msra.mxu1 %v22849_v3  ;;  %20130 = vmatprep.subr.mxu0 %v22848_v2 }
 0x30a   :  { %20131 = vmatpush3.msra.mxu0 %v22848_v2  ;;  %6783 = vmatprep.mubr.f32.mxu1 %v24958_v44  ;;  %v19766_v51 = vpop.f32.mrf.mxu1 }
 0x30b   :  { %20153 = vmatprep.subr.mxu1 %v22848_v2  ;;  %20132 = vmatprep.subr.mxu0 %v22848_v2  ;;  %v19767_v52 = vadd.f32 %v19766_v51, %v19765_v49  ;;  %v25205_v49 = vld [vmem:[%s28960_s0 + $0x25] ss:$8 sm:$0x3] }
 0x30c   :  { %6785 = vmatmul.mubr.f32.vlgmr.msra.gmra.mxu1 %v24962_v50  ;;  %20133 = vmatpush3.msra.mxu0 %v22848_v2  ;;  %v25025_v57 = vpop.f32.mrf.mxu1  ;;  %v7365_v51 = vsub.f32 %v25038_v60, %v25205_v49 }
 0x30d   :  { %20154 = vmatpush3.msra.mxu1 %v22848_v2  ;;  %20134 = vmatprep.subr.mxu0 %v22848_v2  ;;  %v4899_v58 = vadd.f32 %v19767_v52, %v4827_v55  ;;  %v25212_v52 = vld [vmem:[%s28960_s0 + $0x55] ss:$8 sm:$0x3] }
 0x30e   :  { %20155 = vmatprep.subr.mxu1 %v22848_v2  ;;  %20135 = vmatpush3.msra.mxu0 %v22848_v2  ;;  %v5098_v59 = vpop.f32.mrf.mxu1 }
 0x30f   :  { %20156 = vmatpush3.msra.mxu1 %v22848_v2  ;;  %20136 = vmatprep.subr.mxu0 %v22848_v2  ;;  %22734 = vrsqrt.f32 %v4899_v58  ;;  %vm4904_vm2 = vcmp.eq.f32.partialorder %v4899_v58, inf  ;;  %v4907_v6 = vand.u32 2147483648, %v4899_v58  ;;  %vm4906_vm3 = vcmp.eq.f32.partialorder %v4899_v58, 0.0 }
 0x310   :  { %20157 = vmatprep.subr.mxu1 %v22848_v2  ;;  %20137 = vmatpush3.msra.mxu0 %v22848_v2 }
 0x311   :  { %20158 = vmatpush3.msra.mxu1 %v22848_v2  ;;  %20138 = vmatprep.subr.mxu0 %v22848_v2  ;;  %v5170_v62 = vpop.f32.mrf.mxu1 }
 0x312   :  { %20159 = vmatprep.subr.mxu1 %v22848_v2  ;;  %20139 = vmatpush3.msra.mxu0 %v22848_v2 }
 0x313   :  { %20160 = vmatpush3.msra.mxu1 %v22848_v2  ;;  %20140 = vmatprep.subr.mxu0 %v22848_v2  ;;  %v5172_v63 = vpop.f32.mrf.mxu1 }
 0x314   :  { %20161 = vmatprep.subr.mxu1 %v22848_v2  ;;  %20141 = vmatpush3.msra.mxu0 %v22848_v2 }
 0x315   :  { %20162 = vmatpush3.msra.mxu1 %v22848_v2  ;;  %20142 = vmatprep.subr.mxu0 %v22848_v2 }
 0x316   :  { %20163 = vmatprep.subr.mxu1 %v22848_v2  ;;  %20143 = vmatpush3.msra.mxu0 %v22848_v2 }
 0x317   :  { %20164 = vmatpush3.msra.mxu1 %v22848_v2  ;;  %20144 = vmatprep.subr.mxu0 %v22848_v2 }
 0x318   :  { %20165 = vmatprep.subr.mxu1 %v22848_v2  ;;  %20145 = vmatpush3.msra.mxu0 %v22848_v2 }
 0x319   :  { %20166 = vmatpush3.msra.mxu1 %v22848_v2  ;;  %20146 = vmatprep.subr.mxu0 %v22848_v2 }
 0x31a   :  { %20167 = vmatprep.subr.mxu1 %v22848_v2  ;;  %20147 = vmatpush3.msra.mxu0 %v22848_v2 }
 0x31b   :  { %20168 = vmatpush3.msra.mxu1 %v22848_v2  ;;  %20148 = vmatprep.subr.mxu0 %v22848_v2 }
 0x31c   :  { %v22735_v38 = vpop.eup %22734  ;;  %20169 = vmatprep.subr.mxu1 %v22848_v2  ;;  %20149 = vmatpush3.msra.mxu0 %v22848_v2 }
 0x31d   :  { %v4903_v5 = vmul.f32 %v22735_v38, %v4899_v58  ;;  %20170 = vmatpush3.msra.mxu1 %v22848_v2  ;;  %6709 = vmatprep.mubr.f32.mxu0 %v6482_v34  ;;  %v19800_v40 = vpop.f32.mrf.mxu0 }
 0x31e   :  { %20171 = vmatprep.subr.mxu1 %v22848_v2  ;;  %6713 = vmatmul.mubr.f32.vlgmr.msra.gmra.mxu0 %v6488_v41  ;;  %v6982_v41 = vand.u32 4294901760, %v6981_v33 }
 0x31f   :  { %v4905_v7 = vsel %vm4904_vm2, %v4899_v58, %v4903_v5  ;;  %20172 = vmatpush3.msra.mxu1 %v22848_v2  ;;  %20188 = vmatprep.subr.mxu0 %v22848_v2  ;;  %v19801_v24 = vpop.f32.mrf.mxu0  ;;  %v7367_v58 = vmul.f32 %v7365_v51, %v7365_v51 }
 0x320   :  { %v4908_v25 = vsel %vm4906_vm3, %v4907_v6, %v4905_v7  ;;  %20173 = vmatprep.subr.mxu1 %v22848_v2  ;;  %20189 = vmatpush3.msra.mxu0 %v22848_v2  ;;  %v19802_v9 = vadd.f32 %v19801_v24, %v19800_v40 }
 0x321   :  { %v4909_v10 = vsub.f32 %v23789_v23, %v4908_v25  ;;  %20174 = vmatpush3.msra.mxu1 %v22848_v2  ;;  %20190 = vmatprep.subr.mxu0 %v22848_v2 }
 0x322   :  { %20175 = vmatprep.subr.mxu1 %v22848_v2  ;;  %20191 = vmatpush3.msra.mxu0 %v22848_v2  ;;  %v5097_v14 = vadd.f32 %v19802_v9, %v25025_v57  ;;  %v25090_v17 = vpop.f32.mrf.mxu0  ;;  %v7366_v57 = vsub.f32 %v25043_v61, %v25212_v52 }
 0x323   :  { %v4910_v20 = vadd.f32 0.2, %v4909_v10  ;;  %20176 = vmatpush3.msra.mxu1 %v22848_v2  ;;  %20192 = vmatprep.subr.mxu0 %v22848_v2 }
 0x324   :  { %20177 = vmatprep.subr.mxu1 %v22848_v2  ;;  %20193 = vmatpush3.msra.mxu0 %v22848_v2  ;;  %v5320_v18 = vpop.f32.mrf.mxu0  ;;  %v5171_v13 = vadd.f32 %v5170_v62, %v5097_v14  ;;  %v7368_v59 = vmul.f32 %v7366_v57, %v7366_v57 }
 0x325   :  { %v4911_v54 = vmax.f32 %v4910_v20, 0.0  ;;  %20178 = vmatpush3.msra.mxu1 %v22848_v2  ;;  %20194 = vmatprep.subr.mxu0 %v22848_v2 }
 0x326   :  { %20179 = vmatprep.subr.mxu1 %v22848_v2  ;;  %20195 = vmatpush3.msra.mxu0 %v22848_v2  ;;  %v7371_v61 = vcombine.low %v7367_v58, %v7368_v59 }
 0x327   :  { %v25101_v22 = vadd.f32 %v4911_v54, %v24796_v37  ;;  %20180 = vmatpush3.msra.mxu1 %v22848_v2  ;;  %20196 = vmatprep.subr.mxu0 %v22848_v2  ;;  %v25115_v37 = vand.u32 4294901760, %v6905_v56 }
 0x328   :  { %20181 = vmatprep.subr.mxu1 %v22848_v2  ;;  %20197 = vmatpush3.msra.mxu0 %v22848_v2  ;;  %v7378_v19 = vrot.slane %v7371_v61, %v22893_v16 }
 0x329   :  { %20182 = vmatpush3.msra.mxu1 %v22848_v2  ;;  %20198 = vmatprep.subr.mxu0 %v22848_v2  ;;  %v25128_v39 = vsub.f32 %v6905_v56, %v25115_v37 }
 0x32a   :  { %20183 = vmatprep.subr.mxu1 %v22848_v2  ;;  %20199 = vmatpush3.msra.mxu0 %v22848_v2  ;;  %v7379_v25 = vcombine.high %v7378_v19, %v7378_v19 }
 0x32b   :  { %20184 = vmatpush3.msra.mxu1 %v22848_v2  ;;  %6855 = vmatprep.mubr.f32.mxu1 %v24958_v44  ;;  %v6974_v28 = vand.u32 4294901760, %v25128_v39 }
 0x32c   :  { %20200 = vmatprep.subr.mxu0 %v22848_v2  ;;  %6857 = vmatmul.mubr.f32.vlgmr.msra.gmra.mxu1 %v24962_v50  ;;  %v7393_v10 = vrot.slane %v7379_v25, %v22893_v16 }
 0x32d   :  { %20201 = vmatpush3.msra.mxu0 %v22848_v2  ;;  %7018 = vmatprep.subr.mxu1 %v22849_v3  ;;  %v6975_v32 = vsub.f32 %v25128_v39, %v6974_v28 }
 0x32e   :  { %20202 = vmatprep.subr.mxu0 %v22848_v2  ;;  %7019 = vmatpush1.msra.mxu1 %v22849_v3 }
 0x32f   :  { %20203 = vmatpush3.msra.mxu0 %v22848_v2  ;;  %7053 = vmatprep.mubr.f32.mxu1 %v25115_v37  ;;  %v6976_v35 = vand.u32 4294901760, %v6975_v32 }
 0x330   :  { %20204 = vmatprep.subr.mxu0 %v22848_v2  ;;  %7055 = vmatmul.mubr.f32.vlgmr.msra.gmra.mxu1 %v25119_v36 }
 0x331   :  { %20205 = vmatpush3.msra.mxu0 %v22848_v2  ;;  %7090 = vmatprep.subr.mxu1 %v22849_v3 }
 0x332   :  { %20206 = vmatprep.subr.mxu0 %v22848_v2  ;;  %7091 = vmatpush1.msra.mxu1 %v22849_v3  ;;  %v19835_v27 = vpop.f32.mrf.mxu1 }
 0x333   :  { %20207 = vmatpush3.msra.mxu0 %v22848_v2  ;;  %7126 = vmatprep.mubr.f32.mxu1 %v25128_v39 }
 0x334   :  { %20208 = vmatprep.subr.mxu0 %v22848_v2  ;;  %20223 = vmatprep.subr.mxu1 %v22848_v2  ;;  %v19836_v30 = vpop.f32.mrf.mxu1 }
 0x335   :  { %20209 = vmatpush3.msra.mxu0 %v22848_v2  ;;  %7129 = vmatmul.mubr.f32.vlgmr.msra.gmra.mxu1 %v25135_v26  ;;  %v19837_v44 = vadd.f32 %v19836_v30, %v19835_v27 }
 0x336   :  { %20224 = vmatpush3.msra.mxu1 %v22848_v2  ;;  %20210 = vmatprep.subr.mxu0 %v22848_v2 }
 0x337   :  { %20225 = vmatprep.subr.mxu1 %v22848_v2  ;;  %20211 = vmatpush3.msra.mxu0 %v22848_v2  ;;  %v5247_v50 = vadd.f32 %v19837_v44, %v5171_v13 }
 0x338   :  { %20226 = vmatpush3.msra.mxu1 %v22848_v2  ;;  %20212 = vmatprep.subr.mxu0 %v22848_v2 }
 0x339   :  { %20227 = vmatprep.subr.mxu1 %v22848_v2  ;;  %20213 = vmatpush3.msra.mxu0 %v22848_v2  ;;  %v5319_v34 = vadd.f32 %v25090_v17, %v5247_v50  ;;  %v7386_v17 = vrot.slane %v7378_v19, %v22893_v16 }
 0x33a   :  { %20228 = vmatpush3.msra.mxu1 %v22848_v2  ;;  %20214 = vmatprep.subr.mxu0 %v22848_v2 }
 0x33b   :  { %20229 = vmatprep.subr.mxu1 %v22848_v2  ;;  %20215 = vmatpush3.msra.mxu0 %v22848_v2  ;;  %v25280_v20 = vand.u32 4294901760, %v7386_v17 }
 0x33c   :  { %20230 = vmatpush3.msra.mxu1 %v22848_v2  ;;  %20216 = vmatprep.subr.mxu0 %v22848_v2 }
 0x33d   :  { %20231 = vmatprep.subr.mxu1 %v22848_v2  ;;  %20217 = vmatpush3.msra.mxu0 %v22848_v2  ;;  %v25296_v18 = vsub.f32 %v7386_v17, %v25280_v20 }
 0x33e   :  { %20232 = vmatpush3.msra.mxu1 %v22848_v2  ;;  %20218 = vmatprep.subr.mxu0 %v22848_v2 }
 0x33f   :  { %20233 = vmatprep.subr.mxu1 %v22848_v2  ;;  %20219 = vmatpush3.msra.mxu0 %v22848_v2  ;;  %v7468_v56 = vand.u32 4294901760, %v25296_v18 }
 0x340   :  { %6977 = vmatprep.mubr.f32.mxu0 %v6976_v35  ;;  %20234 = vmatpush3.msra.mxu1 %v22848_v2  ;;  %v25356_v35 = vld [vmem:[%s28960_s0 + $0x12] ss:$8 sm:$0x3] }
 0x341   :  { %6983 = vmatmul.mubr.f32.vlgmr.msra.gmra.mxu0 %v6982_v41  ;;  %20235 = vmatprep.subr.mxu1 %v22848_v2  ;;  %v7469_v39 = vsub.f32 %v25296_v18, %v7468_v56  ;;  %v25361_v41 = vld [vmem:[%s28960_s0 + $0x42] ss:$8 sm:$0x3] }
 0x342   :  { %20236 = vmatpush3.msra.mxu1 %v22848_v2  ;;  %7240 = vmatprep.subr.mxu0 %v22849_v3  ;;  %v19870_v42 = vpop.f32.mrf.mxu0 }
 0x343   :  { %20237 = vmatprep.subr.mxu1 %v22848_v2  ;;  %7241 = vmatpush1.msra.mxu0 %v22849_v3  ;;  %v7470_v30 = vand.u32 4294901760, %v7469_v39 }
 0x344   :  { %20238 = vmatpush3.msra.mxu1 %v22848_v2  ;;  %7275 = vmatprep.mubr.f32.mxu0 %v25115_v37  ;;  %v19871_v53 = vpop.f32.mrf.mxu0 }
 0x345   :  { %20258 = vmatprep.subr.mxu0 %v22848_v2  ;;  %20239 = vmatprep.subr.mxu1 %v22848_v2  ;;  %v19872_v43 = vadd.f32 %v19871_v53, %v19870_v42 }
 0x346   :  { %7277 = vmatmul.mubr.f32.vlgmr.msra.gmra.mxu0 %v25119_v36  ;;  %20240 = vmatpush3.msra.mxu1 %v22848_v2  ;;  %v25186_v45 = vpop.f32.mrf.mxu0 }
 0x347   :  { %20259 = vmatpush3.msra.mxu0 %v22848_v2  ;;  %20241 = vmatprep.subr.mxu1 %v22848_v2  ;;  %v5391_v46 = vadd.f32 %v19872_v43, %v5319_v34  ;;  %v25374_v43 = vld [vmem:[%s28960_s0] ss:$8 sm:$0x3] }
 0x348   :  { %20260 = vmatprep.subr.mxu0 %v22848_v2  ;;  %20242 = vmatpush3.msra.mxu1 %v22848_v2  ;;  %v5586_v55 = vpop.f32.mrf.mxu0 }
 0x349   :  { %20261 = vmatpush3.msra.mxu0 %v22848_v2  ;;  %20243 = vmatprep.subr.mxu1 %v22848_v2  ;;  %22736 = vrsqrt.f32 %v5391_v46  ;;  %vm5396_vm4 = vcmp.eq.f32.partialorder %v5391_v46, inf  ;;  %v5399_v1 = vand.u32 2147483648, %v5391_v46  ;;  %vm5398_vm5 = vcmp.eq.f32.partialorder %v5391_v46, 0.0 }
 0x34a   :  { %20262 = vmatprep.subr.mxu0 %v22848_v2  ;;  %20244 = vmatpush3.msra.mxu1 %v22848_v2 }
 0x34b   :  { %20263 = vmatpush3.msra.mxu0 %v22848_v2  ;;  %20245 = vmatprep.subr.mxu1 %v22848_v2  ;;  %v5658_v47 = vpop.f32.mrf.mxu0 }
 0x34c   :  { %20264 = vmatprep.subr.mxu0 %v22848_v2  ;;  %20246 = vmatpush3.msra.mxu1 %v22848_v2 }
 0x34d   :  { %20265 = vmatpush3.msra.mxu0 %v22848_v2  ;;  %20247 = vmatprep.subr.mxu1 %v22848_v2  ;;  %v5660_v48 = vpop.f32.mrf.mxu0 }
 0x34e   :  { %20266 = vmatprep.subr.mxu0 %v22848_v2  ;;  %20248 = vmatpush3.msra.mxu1 %v22848_v2 }
 0x34f   :  { %20267 = vmatpush3.msra.mxu0 %v22848_v2  ;;  %20249 = vmatprep.subr.mxu1 %v22848_v2 }
 0x350   :  { %20268 = vmatprep.subr.mxu0 %v22848_v2  ;;  %20250 = vmatpush3.msra.mxu1 %v22848_v2 }
 0x351   :  { %20269 = vmatpush3.msra.mxu0 %v22848_v2  ;;  %20251 = vmatprep.subr.mxu1 %v22848_v2 }
 0x352   :  { %20270 = vmatprep.subr.mxu0 %v22848_v2  ;;  %20252 = vmatpush3.msra.mxu1 %v22848_v2 }
 0x353   :  { %20271 = vmatpush3.msra.mxu0 %v22848_v2  ;;  %20253 = vmatprep.subr.mxu1 %v22848_v2 }
 0x354   :  { %20272 = vmatprep.subr.mxu0 %v22848_v2  ;;  %20254 = vmatpush3.msra.mxu1 %v22848_v2 }
 0x355   :  { %20273 = vmatpush3.msra.mxu0 %v22848_v2  ;;  %7201 = vmatprep.mubr.f32.mxu1 %v6974_v28  ;;  %v19905_v60 = vpop.f32.mrf.mxu1 }
 0x356   :  { %v22737_v62 = vpop.eup %22736  ;;  %20274 = vmatprep.subr.mxu0 %v22848_v2  ;;  %7205 = vmatmul.mubr.f32.vlgmr.msra.gmra.mxu1 %v6980_v31 }
 0x357   :  { %v5395_v63 = vmul.f32 %v22737_v62, %v5391_v46  ;;  %20275 = vmatpush3.msra.mxu0 %v22848_v2  ;;  %20293 = vmatprep.subr.mxu1 %v22848_v2  ;;  %v19906_v0 = vpop.f32.mrf.mxu1 }
 0x358   :  { %20276 = vmatprep.subr.mxu0 %v22848_v2  ;;  %20294 = vmatpush3.msra.mxu1 %v22848_v2  ;;  %v19907_v15 = vadd.f32 %v19906_v0, %v19905_v60 }
 0x359   :  { %v5397_v4 = vsel %vm5396_vm4, %v5391_v46, %v5395_v63  ;;  %20277 = vmatpush3.msra.mxu0 %v22848_v2  ;;  %20295 = vmatprep.subr.mxu1 %v22848_v2  ;;  %v25381_v46 = vld [vmem:[%s28960_s0 + $0x30] ss:$8 sm:$0x3] }
 0x35a   :  { %v5400_v38 = vsel %vm5398_vm5, %v5399_v1, %v5397_v4  ;;  %20278 = vmatprep.subr.mxu0 %v22848_v2  ;;  %20296 = vmatpush3.msra.mxu1 %v22848_v2  ;;  %v5585_v5 = vadd.f32 %v19907_v15, %v25186_v45  ;;  %v25246_v40 = vpop.f32.mrf.mxu1  ;;  %v7857_v45 = vsub.f32 %v25374_v43, %v25356_v35 }
 0x35b   :  { %v5401_v6 = vsub.f32 %v23789_v23, %v5400_v38  ;;  %20279 = vmatpush3.msra.mxu0 %v22848_v2  ;;  %20297 = vmatprep.subr.mxu1 %v22848_v2  ;;  %v7858_v55 = vsub.f32 %v25381_v46, %v25361_v41 }
 0x35c   :  { %20280 = vmatprep.subr.mxu0 %v22848_v2  ;;  %20298 = vmatpush3.msra.mxu1 %v22848_v2  ;;  %v5808_v7 = vpop.f32.mrf.mxu1  ;;  %v5659_v24 = vadd.f32 %v5658_v47, %v5585_v5  ;;  %v7859_v47 = vmul.f32 %v7857_v45, %v7857_v45 }
 0x35d   :  { %v5402_v8 = vadd.f32 0.5, %v5401_v6  ;;  %20281 = vmatpush3.msra.mxu0 %v22848_v2  ;;  %20299 = vmatprep.subr.mxu1 %v22848_v2  ;;  %v7860_v48 = vmul.f32 %v7858_v55, %v7858_v55 }
 0x35e   :  { %20282 = vmatprep.subr.mxu0 %v22848_v2  ;;  %20300 = vmatpush3.msra.mxu1 %v22848_v2 }
 0x35f   :  { %v5403_v9 = vmax.f32 %v5402_v8, 0.0  ;;  %20283 = vmatpush3.msra.mxu0 %v22848_v2  ;;  %20301 = vmatprep.subr.mxu1 %v22848_v2  ;;  %v7863_v51 = vcombine.low %v7859_v47, %v7860_v48 }
 0x360   :  { %20284 = vmatprep.subr.mxu0 %v22848_v2  ;;  %20302 = vmatpush3.msra.mxu1 %v22848_v2 }
 0x361   :  { %20285 = vmatpush3.msra.mxu0 %v22848_v2  ;;  %20303 = vmatprep.subr.mxu1 %v22848_v2  ;;  %v25265_v14 = vadd.f32 %v5403_v9, %v24944_v29  ;;  %v25276_v29 = vand.u32 4294901760, %v7393_v10  ;;  %v7870_v63 = vrot.slane %v7863_v51, %v22893_v16 }
 0x362   :  { %20286 = vmatprep.subr.mxu0 %v22848_v2  ;;  %20304 = vmatpush3.msra.mxu1 %v22848_v2 }
 0x363   :  { %20287 = vmatpush3.msra.mxu0 %v22848_v2  ;;  %20305 = vmatprep.subr.mxu1 %v22848_v2  ;;  %v25289_v21 = vsub.f32 %v7393_v10, %v25276_v29  ;;  %v7871_v5 = vcombine.high %v7870_v63, %v7870_v63  ;;  %v7878_v25 = vrot.slane %v7870_v63, %v22893_v16 }
 0x364   :  { %20288 = vmatprep.subr.mxu0 %v22848_v2  ;;  %20306 = vmatpush3.msra.mxu1 %v22848_v2 }
 0x365   :  { %20289 = vmatpush3.msra.mxu0 %v22848_v2  ;;  %7347 = vmatprep.mubr.f32.mxu0 %v25115_v37  ;;  %v7462_v13 = vand.u32 4294901760, %v25289_v21  ;;  %v7885_v8 = vrot.slane %v7871_v5, %v22893_v16  ;;  %v25450_v9 = vand.u32 4294901760, %v7878_v25 }
 0x366   :  { %20307 = vmatprep.subr.mxu1 %v22848_v2  ;;  %7349 = vmatmul.mubr.f32.vlgmr.msra.gmra.mxu0 %v25119_v36 }
 0x367   :  { %20308 = vmatpush3.msra.mxu1 %v22848_v2  ;;  %7506 = vmatprep.subr.mxu0 %v22849_v3  ;;  %v7463_v36 = vsub.f32 %v25289_v21, %v7462_v13  ;;  %v25466_v17 = vsub.f32 %v7878_v25, %v25450_v9 }
 0x368   :  { %20309 = vmatprep.subr.mxu1 %v22848_v2  ;;  %7507 = vmatpush1.msra.mxu0 %v22849_v3 }
 0x369   :  { %20310 = vmatpush3.msra.mxu1 %v22848_v2  ;;  %7541 = vmatprep.mubr.f32.mxu0 %v25276_v29  ;;  %v7464_v28 = vand.u32 4294901760, %v7463_v36 }
 0x36a   :  { %20311 = vmatprep.subr.mxu1 %v22848_v2  ;;  %7543 = vmatmul.mubr.f32.vlgmr.msra.gmra.mxu0 %v25280_v20 }
 0x36b   :  { %20312 = vmatpush3.msra.mxu1 %v22848_v2  ;;  %7578 = vmatprep.subr.mxu0 %v22849_v3 }
 0x36c   :  { %20313 = vmatprep.subr.mxu1 %v22848_v2  ;;  %7579 = vmatpush1.msra.mxu0 %v22849_v3  ;;  %v19940_v54 = vpop.f32.mrf.mxu0 }
 0x36d   :  { %20314 = vmatpush3.msra.mxu1 %v22848_v2  ;;  %7614 = vmatprep.mubr.f32.mxu0 %v25289_v21 }
 0x36e   :  { %20315 = vmatprep.subr.mxu1 %v22848_v2  ;;  %20328 = vmatprep.subr.mxu0 %v22848_v2  ;;  %v19941_v12 = vpop.f32.mrf.mxu0 }
 0x36f   :  { %20316 = vmatpush3.msra.mxu1 %v22848_v2  ;;  %7617 = vmatmul.mubr.f32.vlgmr.msra.gmra.mxu0 %v25296_v18  ;;  %v19942_v37 = vadd.f32 %v19941_v12, %v19940_v54  ;;  %v7960_v18 = vand.u32 4294901760, %v25466_v17 }
 0x370   :  { %20329 = vmatpush3.msra.mxu0 %v22848_v2  ;;  %20317 = vmatprep.subr.mxu1 %v22848_v2 }
 0x371   :  { %20330 = vmatprep.subr.mxu0 %v22848_v2  ;;  %20318 = vmatpush3.msra.mxu1 %v22848_v2  ;;  %v5735_v26 = vadd.f32 %v19942_v37, %v5659_v24  ;;  %v7961_v12 = vsub.f32 %v25466_v17, %v7960_v18 }
 0x372   :  { %20331 = vmatpush3.msra.mxu0 %v22848_v2  ;;  %20319 = vmatprep.subr.mxu1 %v22848_v2 }
 0x373   :  { %20332 = vmatprep.subr.mxu0 %v22848_v2  ;;  %20320 = vmatpush3.msra.mxu1 %v22848_v2  ;;  %v5807_v27 = vadd.f32 %v25246_v40, %v5735_v26  ;;  %v7962_v39 = vand.u32 4294901760, %v7961_v12 }
 0x374   :  { %20333 = vmatpush3.msra.mxu0 %v22848_v2  ;;  %20321 = vmatprep.subr.mxu1 %v22848_v2 }
 0x375   :  { %20334 = vmatprep.subr.mxu0 %v22848_v2  ;;  %20322 = vmatpush3.msra.mxu1 %v22848_v2 }
 0x376   :  { %20335 = vmatpush3.msra.mxu0 %v22848_v2  ;;  %20323 = vmatprep.subr.mxu1 %v22848_v2 }
 0x377   :  { %20336 = vmatprep.subr.mxu0 %v22848_v2  ;;  %20324 = vmatpush3.msra.mxu1 %v22848_v2 }
 0x378   :  { %7465 = vmatprep.mubr.f32.mxu1 %v7464_v28  ;;  %20337 = vmatpush3.msra.mxu0 %v22848_v2 }
 0x379   :  { %7471 = vmatmul.mubr.f32.vlgmr.msra.gmra.mxu1 %v7470_v30  ;;  %20338 = vmatprep.subr.mxu0 %v22848_v2 }
 0x37a   :  { %7728 = vmatprep.subr.mxu1 %v22849_v3  ;;  %20339 = vmatpush3.msra.mxu0 %v22848_v2  ;;  %v19975_v31 = vpop.f32.mrf.mxu1 }
 0x37b   :  { %7729 = vmatpush1.msra.mxu1 %v22849_v3  ;;  %20340 = vmatprep.subr.mxu0 %v22848_v2 }
 0x37c   :  { %20341 = vmatpush3.msra.mxu0 %v22848_v2  ;;  %7763 = vmatprep.mubr.f32.mxu1 %v25276_v29  ;;  %v19976_v44 = vpop.f32.mrf.mxu1 }
 0x37d   :  { %20363 = vmatprep.subr.mxu1 %v22848_v2  ;;  %20342 = vmatprep.subr.mxu0 %v22848_v2  ;;  %v19977_v50 = vadd.f32 %v19976_v44, %v19975_v31 }
 0x37e   :  { %7765 = vmatmul.mubr.f32.vlgmr.msra.gmra.mxu1 %v25280_v20  ;;  %20343 = vmatpush3.msra.mxu0 %v22848_v2  ;;  %v25343_v32 = vpop.f32.mrf.mxu1 }
 0x37f   :  { %20364 = vmatpush3.msra.mxu1 %v22848_v2  ;;  %20344 = vmatprep.subr.mxu0 %v22848_v2  ;;  %v5879_v33 = vadd.f32 %v19977_v50, %v5807_v27 }
 0x380   :  { %20365 = vmatprep.subr.mxu1 %v22848_v2  ;;  %20345 = vmatpush3.msra.mxu0 %v22848_v2  ;;  %v6078_v34 = vpop.f32.mrf.mxu1 }
 0x381   :  { %20366 = vmatpush3.msra.mxu1 %v22848_v2  ;;  %20346 = vmatprep.subr.mxu0 %v22848_v2  ;;  %22738 = vrsqrt.f32 %v5879_v33  ;;  %vm5884_vm6 = vcmp.eq.f32.partialorder %v5879_v33, inf  ;;  %v5887_v60 = vand.u32 2147483648, %v5879_v33  ;;  %vm5886_vm7 = vcmp.eq.f32.partialorder %v5879_v33, 0.0 }
 0x382   :  { %20367 = vmatprep.subr.mxu1 %v22848_v2  ;;  %20347 = vmatpush3.msra.mxu0 %v22848_v2  ;;  %v8346_v34 = vsub.f32 %v25361_v41, %v25212_v52 }
 0x383   :  { %20368 = vmatpush3.msra.mxu1 %v22848_v2  ;;  %20348 = vmatprep.subr.mxu0 %v22848_v2  ;;  %v25365_v42 = vpop.f32.mrf.mxu1 }
 0x384   :  { %20369 = vmatprep.subr.mxu1 %v22848_v2  ;;  %20349 = vmatpush3.msra.mxu0 %v22848_v2 }
 0x385   :  { %20370 = vmatpush3.msra.mxu1 %v22848_v2  ;;  %20350 = vmatprep.subr.mxu0 %v22848_v2  ;;  %v6152_v53 = vpop.f32.mrf.mxu1 }
 0x386   :  { %20371 = vmatprep.subr.mxu1 %v22848_v2  ;;  %20351 = vmatpush3.msra.mxu0 %v22848_v2 }
 0x387   :  { %20372 = vmatpush3.msra.mxu1 %v22848_v2  ;;  %20352 = vmatprep.subr.mxu0 %v22848_v2 }
 0x388   :  { %20373 = vmatprep.subr.mxu1 %v22848_v2  ;;  %20353 = vmatpush3.msra.mxu0 %v22848_v2 }
 0x389   :  { %20374 = vmatpush3.msra.mxu1 %v22848_v2  ;;  %20354 = vmatprep.subr.mxu0 %v22848_v2 }
 0x38a   :  { %20375 = vmatprep.subr.mxu1 %v22848_v2  ;;  %20355 = vmatpush3.msra.mxu0 %v22848_v2 }
 0x38b   :  { %20376 = vmatpush3.msra.mxu1 %v22848_v2  ;;  %20356 = vmatprep.subr.mxu0 %v22848_v2 }
 0x38c   :  { %20377 = vmatprep.subr.mxu1 %v22848_v2  ;;  %20357 = vmatpush3.msra.mxu0 %v22848_v2 }
 0x38d   :  { %20378 = vmatpush3.msra.mxu1 %v22848_v2  ;;  %20358 = vmatprep.subr.mxu0 %v22848_v2 }
 0x38e   :  { %v22739_v57 = vpop.eup %22738  ;;  %20379 = vmatprep.subr.mxu1 %v22848_v2  ;;  %20359 = vmatpush3.msra.mxu0 %v22848_v2 }
 0x38f   :  { %v5883_v58 = vmul.f32 %v22739_v57, %v5879_v33  ;;  %20380 = vmatpush3.msra.mxu1 %v22848_v2  ;;  %7689 = vmatprep.mubr.f32.mxu0 %v7462_v13  ;;  %v20010_v59 = vpop.f32.mrf.mxu0 }
 0x390   :  { %20381 = vmatprep.subr.mxu1 %v22848_v2  ;;  %7693 = vmatmul.mubr.f32.vlgmr.msra.gmra.mxu0 %v7468_v56 }
 0x391   :  { %v5885_v61 = vsel %vm5884_vm6, %v5879_v33, %v5883_v58  ;;  %20382 = vmatpush3.msra.mxu1 %v22848_v2  ;;  %20398 = vmatprep.subr.mxu0 %v22848_v2  ;;  %v20011_v62 = vpop.f32.mrf.mxu0  ;;  %v8345_v33 = vsub.f32 %v25356_v35, %v25205_v49  ;;  %v8348_v35 = vmul.f32 %v8346_v34, %v8346_v34 }
 0x392   :  { %v5888_v0 = vsel %vm5886_vm7, %v5887_v60, %v5885_v61  ;;  %20383 = vmatprep.subr.mxu1 %v22848_v2  ;;  %20399 = vmatpush3.msra.mxu0 %v22848_v2  ;;  %v20012_v1 = vadd.f32 %v20011_v62, %v20010_v59 }
 0x393   :  { %v5889_v15 = vsub.f32 %v23789_v23, %v5888_v0  ;;  %20384 = vmatpush3.msra.mxu1 %v22848_v2  ;;  %20400 = vmatprep.subr.mxu0 %v22848_v2  ;;  %v8347_v49 = vmul.f32 %v8345_v33, %v8345_v33 }
 0x394   :  { %20385 = vmatprep.subr.mxu1 %v22848_v2  ;;  %20401 = vmatpush3.msra.mxu0 %v22848_v2  ;;  %v6077_v4 = vadd.f32 %v20012_v1, %v25343_v32  ;;  %v25420_v19 = vpop.f32.mrf.mxu0 }
 0x395   :  { %v5890_v38 = vadd.f32 0.2, %v5889_v15  ;;  %20386 = vmatpush3.msra.mxu1 %v22848_v2  ;;  %20402 = vmatprep.subr.mxu0 %v22848_v2  ;;  %v8351_v41 = vcombine.low %v8347_v49, %v8348_v35 }
 0x396   :  { %20387 = vmatprep.subr.mxu1 %v22848_v2  ;;  %20403 = vmatpush3.msra.mxu0 %v22848_v2  ;;  %v6300_v40 = vpop.f32.mrf.mxu0  ;;  %v6151_v6 = vadd.f32 %v25365_v42, %v6077_v4 }
 0x397   :  { %v5891_v7 = vmax.f32 %v5890_v38, 0.0  ;;  %20388 = vmatpush3.msra.mxu1 %v22848_v2  ;;  %20404 = vmatprep.subr.mxu0 %v22848_v2  ;;  %v8358_v51 = vrot.slane %v8351_v41, %v22893_v16 }
 0x398   :  { %20389 = vmatprep.subr.mxu1 %v22848_v2  ;;  %20405 = vmatpush3.msra.mxu0 %v22848_v2 }
 0x399   :  { %v25432_v24 = vadd.f32 %v5891_v7, %v25101_v22  ;;  %20390 = vmatpush3.msra.mxu1 %v22848_v2  ;;  %20406 = vmatprep.subr.mxu0 %v22848_v2  ;;  %v25446_v22 = vand.u32 4294901760, %v7885_v8  ;;  %v8359_v0 = vcombine.high %v8358_v51, %v8358_v51 }
 0x39a   :  { %20391 = vmatprep.subr.mxu1 %v22848_v2  ;;  %20407 = vmatpush3.msra.mxu0 %v22848_v2 }
 0x39b   :  { %20392 = vmatpush3.msra.mxu1 %v22848_v2  ;;  %20408 = vmatprep.subr.mxu0 %v22848_v2  ;;  %v25459_v10 = vsub.f32 %v7885_v8, %v25446_v22  ;;  %v8373_v15 = vrot.slane %v8359_v0, %v22893_v16 }
 0x39c   :  { %20393 = vmatprep.subr.mxu1 %v22848_v2  ;;  %20409 = vmatpush3.msra.mxu0 %v22848_v2 }
 0x39d   :  { %20394 = vmatpush3.msra.mxu1 %v22848_v2  ;;  %7835 = vmatprep.mubr.f32.mxu1 %v25276_v29 }
 0x39e   :  { %20410 = vmatprep.subr.mxu0 %v22848_v2  ;;  %7837 = vmatmul.mubr.f32.vlgmr.msra.gmra.mxu1 %v25280_v20  ;;  %v7954_v20 = vand.u32 4294901760, %v25459_v10 }
 0x39f   :  { %20411 = vmatpush3.msra.mxu0 %v22848_v2  ;;  %7998 = vmatprep.subr.mxu1 %v22849_v3 }
 0x3a0   :  { %20412 = vmatprep.subr.mxu0 %v22848_v2  ;;  %7999 = vmatpush1.msra.mxu1 %v22849_v3  ;;  %v7955_v56 = vsub.f32 %v25459_v10, %v7954_v20 }
 0x3a1   :  { %20413 = vmatpush3.msra.mxu0 %v22848_v2  ;;  %8033 = vmatprep.mubr.f32.mxu1 %v25446_v22 }
 0x3a2   :  { %20414 = vmatprep.subr.mxu0 %v22848_v2  ;;  %8035 = vmatmul.mubr.f32.vlgmr.msra.gmra.mxu1 %v25450_v9  ;;  %v7956_v36 = vand.u32 4294901760, %v7955_v56 }
 0x3a3   :  { %20415 = vmatpush3.msra.mxu0 %v22848_v2  ;;  %8070 = vmatprep.subr.mxu1 %v22849_v3 }
 0x3a4   :  { %20416 = vmatprep.subr.mxu0 %v22848_v2  ;;  %8071 = vmatpush1.msra.mxu1 %v22849_v3  ;;  %v20045_v29 = vpop.f32.mrf.mxu1 }
 0x3a5   :  { %20417 = vmatpush3.msra.mxu0 %v22848_v2  ;;  %8106 = vmatprep.mubr.f32.mxu1 %v25459_v10 }
 0x3a6   :  { %20418 = vmatprep.subr.mxu0 %v22848_v2  ;;  %20433 = vmatprep.subr.mxu1 %v22848_v2  ;;  %v20046_v21 = vpop.f32.mrf.mxu1 }
 0x3a7   :  { %20419 = vmatpush3.msra.mxu0 %v22848_v2  ;;  %8109 = vmatmul.mubr.f32.vlgmr.msra.gmra.mxu1 %v25466_v17  ;;  %v20047_v13 = vadd.f32 %v20046_v21, %v20045_v29 }
 0x3a8   :  { %20434 = vmatpush3.msra.mxu1 %v22848_v2  ;;  %20420 = vmatprep.subr.mxu0 %v22848_v2 }
 0x3a9   :  { %20435 = vmatprep.subr.mxu1 %v22848_v2  ;;  %20421 = vmatpush3.msra.mxu0 %v22848_v2  ;;  %v6227_v54 = vadd.f32 %v20047_v13, %v6151_v6 }
 0x3aa   :  { %20436 = vmatpush3.msra.mxu1 %v22848_v2  ;;  %20422 = vmatprep.subr.mxu0 %v22848_v2 }
 0x3ab   :  { %20437 = vmatprep.subr.mxu1 %v22848_v2  ;;  %20423 = vmatpush3.msra.mxu0 %v22848_v2  ;;  %v6299_v37 = vadd.f32 %v25420_v19, %v6227_v54  ;;  %v8366_v19 = vrot.slane %v8358_v51, %v22893_v16 }
 0x3ac   :  { %20438 = vmatpush3.msra.mxu1 %v22848_v2  ;;  %20424 = vmatprep.subr.mxu0 %v22848_v2 }
 0x3ad   :  { %20439 = vmatprep.subr.mxu1 %v22848_v2  ;;  %20425 = vmatpush3.msra.mxu0 %v22848_v2  ;;  %v25598_v38 = vand.u32 4294901760, %v8366_v19 }
 0x3ae   :  { %20440 = vmatpush3.msra.mxu1 %v22848_v2  ;;  %20426 = vmatprep.subr.mxu0 %v22848_v2 }
 0x3af   :  { %20441 = vmatprep.subr.mxu1 %v22848_v2  ;;  %20427 = vmatpush3.msra.mxu0 %v22848_v2  ;;  %v25614_v40 = vsub.f32 %v8366_v19, %v25598_v38 }
 0x3b0   :  { %20442 = vmatpush3.msra.mxu1 %v22848_v2  ;;  %20428 = vmatprep.subr.mxu0 %v22848_v2 }
 0x3b1   :  { %20443 = vmatprep.subr.mxu1 %v22848_v2  ;;  %20429 = vmatpush3.msra.mxu0 %v22848_v2  ;;  %v8448_v8 = vand.u32 4294901760, %v25614_v40 }
 0x3b2   :  { %7957 = vmatprep.mubr.f32.mxu0 %v7956_v36  ;;  %20444 = vmatpush3.msra.mxu1 %v22848_v2  ;;  %v25674_v36 = vld [vmem:[%s28960_s0 + $0x13] ss:$8 sm:$0x3] }
 0x3b3   :  { %7963 = vmatmul.mubr.f32.vlgmr.msra.gmra.mxu0 %v7962_v39  ;;  %20445 = vmatprep.subr.mxu1 %v22848_v2  ;;  %v8449_v10 = vsub.f32 %v25614_v40, %v8448_v8  ;;  %v25679_v39 = vld [vmem:[%s28960_s0 + $0x43] ss:$8 sm:$0x3] }
 0x3b4   :  { %20446 = vmatpush3.msra.mxu1 %v22848_v2  ;;  %8220 = vmatprep.subr.mxu0 %v22849_v3  ;;  %v20080_v26 = vpop.f32.mrf.mxu0 }
 0x3b5   :  { %20447 = vmatprep.subr.mxu1 %v22848_v2  ;;  %8221 = vmatpush1.msra.mxu0 %v22849_v3  ;;  %v8450_v21 = vand.u32 4294901760, %v8449_v10 }
 0x3b6   :  { %20448 = vmatpush3.msra.mxu1 %v22848_v2  ;;  %8255 = vmatprep.mubr.f32.mxu0 %v25446_v22  ;;  %v20081_v27 = vpop.f32.mrf.mxu0 }
 0x3b7   :  { %20468 = vmatprep.subr.mxu0 %v22848_v2  ;;  %20449 = vmatprep.subr.mxu1 %v22848_v2  ;;  %v20082_v28 = vadd.f32 %v20081_v27, %v20080_v26 }
 0x3b8   :  { %8257 = vmatmul.mubr.f32.vlgmr.msra.gmra.mxu0 %v25450_v9  ;;  %20450 = vmatpush3.msra.mxu1 %v22848_v2  ;;  %v6564_v30 = vpop.f32.mrf.mxu0 }
 0x3b9   :  { %20469 = vmatpush3.msra.mxu0 %v22848_v2  ;;  %20451 = vmatprep.subr.mxu1 %v22848_v2  ;;  %v6371_v31 = vadd.f32 %v20082_v28, %v6299_v37  ;;  %v8837_v28 = vsub.f32 %v25374_v43, %v25674_v36 }
 0x3ba   :  { %20470 = vmatprep.subr.mxu0 %v22848_v2  ;;  %20452 = vmatpush3.msra.mxu1 %v22848_v2  ;;  %v6566_v44 = vpop.f32.mrf.mxu0 }
 0x3bb   :  { %20471 = vmatpush3.msra.mxu0 %v22848_v2  ;;  %20453 = vmatprep.subr.mxu1 %v22848_v2  ;;  %22740 = vrsqrt.f32 %v6371_v31  ;;  %vm6376_vm8 = vcmp.eq.f32.partialorder %v6371_v31, inf  ;;  %v6379_v55 = vand.u32 2147483648, %v6371_v31  ;;  %vm6378_vm9 = vcmp.eq.f32.partialorder %v6371_v31, 0.0 }
 0x3bc   :  { %20472 = vmatprep.subr.mxu0 %v22848_v2  ;;  %20454 = vmatpush3.msra.mxu1 %v22848_v2  ;;  %v8839_v43 = vmul.f32 %v8837_v28, %v8837_v28 }
 0x3bd   :  { %20473 = vmatpush3.msra.mxu0 %v22848_v2  ;;  %20455 = vmatprep.subr.mxu1 %v22848_v2  ;;  %v6638_v50 = vpop.f32.mrf.mxu0 }
 0x3be   :  { %20474 = vmatprep.subr.mxu0 %v22848_v2  ;;  %20456 = vmatpush3.msra.mxu1 %v22848_v2 }
 0x3bf   :  { %20475 = vmatpush3.msra.mxu0 %v22848_v2  ;;  %20457 = vmatprep.subr.mxu1 %v22848_v2  ;;  %v6640_v32 = vpop.f32.mrf.mxu0 }
 0x3c0   :  { %20476 = vmatprep.subr.mxu0 %v22848_v2  ;;  %20458 = vmatpush3.msra.mxu1 %v22848_v2 }
 0x3c1   :  { %20477 = vmatpush3.msra.mxu0 %v22848_v2  ;;  %20459 = vmatprep.subr.mxu1 %v22848_v2 }
 0x3c2   :  { %20478 = vmatprep.subr.mxu0 %v22848_v2  ;;  %20460 = vmatpush3.msra.mxu1 %v22848_v2 }
 0x3c3   :  { %20479 = vmatpush3.msra.mxu0 %v22848_v2  ;;  %20461 = vmatprep.subr.mxu1 %v22848_v2 }
 0x3c4   :  { %20480 = vmatprep.subr.mxu0 %v22848_v2  ;;  %20462 = vmatpush3.msra.mxu1 %v22848_v2 }
 0x3c5   :  { %20481 = vmatpush3.msra.mxu0 %v22848_v2  ;;  %20463 = vmatprep.subr.mxu1 %v22848_v2 }
 0x3c6   :  { %20482 = vmatprep.subr.mxu0 %v22848_v2  ;;  %20464 = vmatpush3.msra.mxu1 %v22848_v2 }
 0x3c7   :  { %20483 = vmatpush3.msra.mxu0 %v22848_v2  ;;  %8181 = vmatprep.mubr.f32.mxu1 %v7954_v20  ;;  %v20115_v52 = vpop.f32.mrf.mxu1 }
 0x3c8   :  { %v22741_v42 = vpop.eup %22740  ;;  %20484 = vmatprep.subr.mxu0 %v22848_v2  ;;  %8185 = vmatmul.mubr.f32.vlgmr.msra.gmra.mxu1 %v7960_v18 }
 0x3c9   :  { %v6375_v53 = vmul.f32 %v22741_v42, %v6371_v31  ;;  %20485 = vmatpush3.msra.mxu0 %v22848_v2  ;;  %20503 = vmatprep.subr.mxu1 %v22848_v2  ;;  %v20116_v45 = vpop.f32.mrf.mxu1 }
 0x3ca   :  { %20486 = vmatprep.subr.mxu0 %v22848_v2  ;;  %20504 = vmatpush3.msra.mxu1 %v22848_v2  ;;  %v20117_v47 = vadd.f32 %v20116_v45, %v20115_v52 }
 0x3cb   :  { %v6377_v48 = vsel %vm6376_vm8, %v6371_v31, %v6375_v53  ;;  %20487 = vmatpush3.msra.mxu0 %v22848_v2  ;;  %20505 = vmatprep.subr.mxu1 %v22848_v2 }
 0x3cc   :  { %v6380_v57 = vsel %vm6378_vm9, %v6379_v55, %v6377_v48  ;;  %20488 = vmatprep.subr.mxu0 %v22848_v2  ;;  %20506 = vmatpush3.msra.mxu1 %v22848_v2  ;;  %v6565_v58 = vadd.f32 %v20117_v47, %v6564_v30  ;;  %v25564_v59 = vpop.f32.mrf.mxu1  ;;  %v8838_v30 = vsub.f32 %v25381_v46, %v25679_v39 }
 0x3cd   :  { %v6381_v60 = vsub.f32 %v23789_v23, %v6380_v57  ;;  %20489 = vmatpush3.msra.mxu0 %v22848_v2  ;;  %20507 = vmatprep.subr.mxu1 %v22848_v2 }
 0x3ce   :  { %20490 = vmatprep.subr.mxu0 %v22848_v2  ;;  %20508 = vmatpush3.msra.mxu1 %v22848_v2  ;;  %v6788_v61 = vpop.f32.mrf.mxu1  ;;  %v6639_v62 = vadd.f32 %v6638_v50, %v6565_v58  ;;  %v8840_v31 = vmul.f32 %v8838_v30, %v8838_v30 }
 0x3cf   :  { %v6382_v63 = vadd.f32 0.5, %v6381_v60  ;;  %20491 = vmatpush3.msra.mxu0 %v22848_v2  ;;  %20509 = vmatprep.subr.mxu1 %v22848_v2 }
 0x3d0   :  { %20492 = vmatprep.subr.mxu0 %v22848_v2  ;;  %20510 = vmatpush3.msra.mxu1 %v22848_v2  ;;  %v8843_v46 = vcombine.low %v8839_v43, %v8840_v31 }
 0x3d1   :  { %v6383_v1 = vmax.f32 %v6382_v63, 0.0  ;;  %20493 = vmatpush3.msra.mxu0 %v22848_v2  ;;  %20511 = vmatprep.subr.mxu1 %v22848_v2 }
 0x3d2   :  { %20494 = vmatprep.subr.mxu0 %v22848_v2  ;;  %20512 = vmatpush3.msra.mxu1 %v22848_v2  ;;  %v8850_v35 = vrot.slane %v8843_v46, %v22893_v16 }
 0x3d3   :  { %20495 = vmatpush3.msra.mxu0 %v22848_v2  ;;  %20513 = vmatprep.subr.mxu1 %v22848_v2  ;;  %v25583_v4 = vadd.f32 %v6383_v1, %v25265_v14  ;;  %v25594_v14 = vand.u32 4294901760, %v8373_v15 }
 0x3d4   :  { %20496 = vmatprep.subr.mxu0 %v22848_v2  ;;  %20514 = vmatpush3.msra.mxu1 %v22848_v2  ;;  %v8851_v47 = vcombine.high %v8850_v35, %v8850_v35  ;;  %v8858_v60 = vrot.slane %v8850_v35, %v22893_v16 }
 0x3d5   :  { %20497 = vmatpush3.msra.mxu0 %v22848_v2  ;;  %20515 = vmatprep.subr.mxu1 %v22848_v2  ;;  %v25607_v5 = vsub.f32 %v8373_v15, %v25594_v14 }
 0x3d6   :  { %20498 = vmatprep.subr.mxu0 %v22848_v2  ;;  %20516 = vmatpush3.msra.mxu1 %v22848_v2  ;;  %v8865_v58 = vrot.slane %v8851_v47, %v22893_v16  ;;  %v25755_v61 = vand.u32 4294901760, %v8858_v60 }
 0x3d7   :  { %20499 = vmatpush3.msra.mxu0 %v22848_v2  ;;  %8327 = vmatprep.mubr.f32.mxu0 %v25446_v22  ;;  %v8442_v6 = vand.u32 4294901760, %v25607_v5 }
 0x3d8   :  { %20517 = vmatprep.subr.mxu1 %v22848_v2  ;;  %8329 = vmatmul.mubr.f32.vlgmr.msra.gmra.mxu0 %v25450_v9  ;;  %v25771_v63 = vsub.f32 %v8858_v60, %v25755_v61 }
 0x3d9   :  { %20518 = vmatpush3.msra.mxu1 %v22848_v2  ;;  %8486 = vmatprep.subr.mxu0 %v22849_v3  ;;  %v8443_v9 = vsub.f32 %v25607_v5, %v8442_v6 }
 0x3da   :  { %20519 = vmatprep.subr.mxu1 %v22848_v2  ;;  %8487 = vmatpush1.msra.mxu0 %v22849_v3  ;;  %v8940_v19 = vand.u32 4294901760, %v25771_v63 }
 0x3db   :  { %20520 = vmatpush3.msra.mxu1 %v22848_v2  ;;  %8521 = vmatprep.mubr.f32.mxu0 %v25594_v14  ;;  %v8444_v20 = vand.u32 4294901760, %v8443_v9 }
 0x3dc   :  { %20521 = vmatprep.subr.mxu1 %v22848_v2  ;;  %8523 = vmatmul.mubr.f32.vlgmr.msra.gmra.mxu0 %v25598_v38 }
 0x3dd   :  { %20522 = vmatpush3.msra.mxu1 %v22848_v2  ;;  %8558 = vmatprep.subr.mxu0 %v22849_v3 }
 0x3de   :  { %20523 = vmatprep.subr.mxu1 %v22848_v2  ;;  %8559 = vmatpush1.msra.mxu0 %v22849_v3  ;;  %v20150_v7 = vpop.f32.mrf.mxu0 }
 0x3df   :  { %20524 = vmatpush3.msra.mxu1 %v22848_v2  ;;  %8594 = vmatprep.mubr.f32.mxu0 %v25607_v5 }
 0x3e0   :  { %20525 = vmatprep.subr.mxu1 %v22848_v2  ;;  %20538 = vmatprep.subr.mxu0 %v22848_v2  ;;  %v20151_v25 = vpop.f32.mrf.mxu0 }
 0x3e1   :  { %20526 = vmatpush3.msra.mxu1 %v22848_v2  ;;  %8597 = vmatmul.mubr.f32.vlgmr.msra.gmra.mxu0 %v25614_v40  ;;  %v20152_v22 = vadd.f32 %v20151_v25, %v20150_v7  ;;  %v8941_v40 = vsub.f32 %v25771_v63, %v8940_v19 }
 0x3e2   :  { %20539 = vmatpush3.msra.mxu0 %v22848_v2  ;;  %20527 = vmatprep.subr.mxu1 %v22848_v2 }
 0x3e3   :  { %20540 = vmatprep.subr.mxu0 %v22848_v2  ;;  %20528 = vmatpush3.msra.mxu1 %v22848_v2  ;;  %v6715_v17 = vadd.f32 %v20152_v22, %v6639_v62 }
 0x3e4   :  { %20541 = vmatpush3.msra.mxu0 %v22848_v2  ;;  %20529 = vmatprep.subr.mxu1 %v22848_v2 }
 0x3e5   :  { %20542 = vmatprep.subr.mxu0 %v22848_v2  ;;  %20530 = vmatpush3.msra.mxu1 %v22848_v2  ;;  %v6787_v29 = vadd.f32 %v25564_v59, %v6715_v17 }
 0x3e6   :  { %20543 = vmatpush3.msra.mxu0 %v22848_v2  ;;  %20531 = vmatprep.subr.mxu1 %v22848_v2 }
 0x3e7   :  { %20544 = vmatprep.subr.mxu0 %v22848_v2  ;;  %20532 = vmatpush3.msra.mxu1 %v22848_v2 }
 0x3e8   :  { %20545 = vmatpush3.msra.mxu0 %v22848_v2  ;;  %20533 = vmatprep.subr.mxu1 %v22848_v2 }
 0x3e9   :  { %20546 = vmatprep.subr.mxu0 %v22848_v2  ;;  %20534 = vmatpush3.msra.mxu1 %v22848_v2 }
 0x3ea   :  { %8445 = vmatprep.mubr.f32.mxu1 %v8444_v20  ;;  %20547 = vmatpush3.msra.mxu0 %v22848_v2 }
 0x3eb   :  { %8451 = vmatmul.mubr.f32.vlgmr.msra.gmra.mxu1 %v8450_v21  ;;  %20548 = vmatprep.subr.mxu0 %v22848_v2 }
 0x3ec   :  { %8708 = vmatprep.subr.mxu1 %v22849_v3  ;;  %20549 = vmatpush3.msra.mxu0 %v22848_v2  ;;  %v20185_v18 = vpop.f32.mrf.mxu1 }
 0x3ed   :  { %8709 = vmatpush1.msra.mxu1 %v22849_v3  ;;  %20550 = vmatprep.subr.mxu0 %v22848_v2 }
 0x3ee   :  { %20551 = vmatpush3.msra.mxu0 %v22848_v2  ;;  %8743 = vmatprep.mubr.f32.mxu1 %v25594_v14  ;;  %v20186_v13 = vpop.f32.mrf.mxu1 }
 0x3ef   :  { %20573 = vmatprep.subr.mxu1 %v22848_v2  ;;  %20552 = vmatprep.subr.mxu0 %v22848_v2  ;;  %v20187_v54 = vadd.f32 %v20186_v13, %v20185_v18  ;;  %v25841_v18 = vld [vmem:[%s28960_s0 + $0x25] ss:$8 sm:$0x3] }
 0x3f0   :  { %8745 = vmatmul.mubr.f32.vlgmr.msra.gmra.mxu1 %v25598_v38  ;;  %20553 = vmatpush3.msra.mxu0 %v22848_v2  ;;  %v25661_v56 = vpop.f32.mrf.mxu1  ;;  %v9325_v13 = vsub.f32 %v25674_v36, %v25841_v18 }
 0x3f1   :  { %20574 = vmatpush3.msra.mxu1 %v22848_v2  ;;  %20554 = vmatprep.subr.mxu0 %v22848_v2  ;;  %v6859_v12 = vadd.f32 %v20187_v54, %v6787_v29  ;;  %v25848_v54 = vld [vmem:[%s28960_s0 + $0x55] ss:$8 sm:$0x3] }
 0x3f2   :  { %20575 = vmatprep.subr.mxu1 %v22848_v2  ;;  %20555 = vmatpush3.msra.mxu0 %v22848_v2  ;;  %v7058_v37 = vpop.f32.mrf.mxu1 }
 0x3f3   :  { %20576 = vmatpush3.msra.mxu1 %v22848_v2  ;;  %20556 = vmatprep.subr.mxu0 %v22848_v2  ;;  %22742 = vrsqrt.f32 %v6859_v12  ;;  %vm6864_vm10 = vcmp.eq.f32.partialorder %v6859_v12, inf  ;;  %v6867_v33 = vand.u32 2147483648, %v6859_v12  ;;  %vm6866_vm11 = vcmp.eq.f32.partialorder %v6859_v12, 0.0 }
 0x3f4   :  { %20577 = vmatprep.subr.mxu1 %v22848_v2  ;;  %20557 = vmatpush3.msra.mxu0 %v22848_v2 }
 0x3f5   :  { %20578 = vmatpush3.msra.mxu1 %v22848_v2  ;;  %20558 = vmatprep.subr.mxu0 %v22848_v2  ;;  %v7130_v26 = vpop.f32.mrf.mxu1 }
 0x3f6   :  { %20579 = vmatprep.subr.mxu1 %v22848_v2  ;;  %20559 = vmatpush3.msra.mxu0 %v22848_v2 }
 0x3f7   :  { %20580 = vmatpush3.msra.mxu1 %v22848_v2  ;;  %20560 = vmatprep.subr.mxu0 %v22848_v2  ;;  %v7132_v27 = vpop.f32.mrf.mxu1 }
 0x3f8   :  { %20581 = vmatprep.subr.mxu1 %v22848_v2  ;;  %20561 = vmatpush3.msra.mxu0 %v22848_v2 }
 0x3f9   :  { %20582 = vmatpush3.msra.mxu1 %v22848_v2  ;;  %20562 = vmatprep.subr.mxu0 %v22848_v2 }
 0x3fa   :  { %20583 = vmatprep.subr.mxu1 %v22848_v2  ;;  %20563 = vmatpush3.msra.mxu0 %v22848_v2 }
 0x3fb   :  { %20584 = vmatpush3.msra.mxu1 %v22848_v2  ;;  %20564 = vmatprep.subr.mxu0 %v22848_v2 }
 0x3fc   :  { %20585 = vmatprep.subr.mxu1 %v22848_v2  ;;  %20565 = vmatpush3.msra.mxu0 %v22848_v2 }
 0x3fd   :  { %20586 = vmatpush3.msra.mxu1 %v22848_v2  ;;  %20566 = vmatprep.subr.mxu0 %v22848_v2 }
 0x3fe   :  { %20587 = vmatprep.subr.mxu1 %v22848_v2  ;;  %20567 = vmatpush3.msra.mxu0 %v22848_v2 }
 0x3ff   :  { %20588 = vmatpush3.msra.mxu1 %v22848_v2  ;;  %20568 = vmatprep.subr.mxu0 %v22848_v2 }
 0x400   :  { %v22743_v44 = vpop.eup %22742  ;;  %20589 = vmatprep.subr.mxu1 %v22848_v2  ;;  %20569 = vmatpush3.msra.mxu0 %v22848_v2 }
 0x401   :  { %v6863_v50 = vmul.f32 %v22743_v44, %v6859_v12  ;;  %20590 = vmatpush3.msra.mxu1 %v22848_v2  ;;  %8669 = vmatprep.mubr.f32.mxu0 %v8442_v6  ;;  %v20220_v32 = vpop.f32.mrf.mxu0 }
 0x402   :  { %20591 = vmatprep.subr.mxu1 %v22848_v2  ;;  %8673 = vmatmul.mubr.f32.vlgmr.msra.gmra.mxu0 %v8448_v8  ;;  %v8942_v8 = vand.u32 4294901760, %v8941_v40 }
 0x403   :  { %v6865_v34 = vsel %vm6864_vm10, %v6859_v12, %v6863_v50  ;;  %20592 = vmatpush3.msra.mxu1 %v22848_v2  ;;  %20608 = vmatprep.subr.mxu0 %v22848_v2  ;;  %v20221_v49 = vpop.f32.mrf.mxu0  ;;  %v9327_v12 = vmul.f32 %v9325_v13, %v9325_v13 }
 0x404   :  { %v6868_v52 = vsel %vm6866_vm11, %v6867_v33, %v6865_v34  ;;  %20593 = vmatprep.subr.mxu1 %v22848_v2  ;;  %20609 = vmatpush3.msra.mxu0 %v22848_v2  ;;  %v20222_v41 = vadd.f32 %v20221_v49, %v20220_v32 }
 0x405   :  { %v6869_v42 = vsub.f32 %v23789_v23, %v6868_v52  ;;  %20594 = vmatpush3.msra.mxu1 %v22848_v2  ;;  %20610 = vmatprep.subr.mxu0 %v22848_v2 }
 0x406   :  { %20595 = vmatprep.subr.mxu1 %v22848_v2  ;;  %20611 = vmatpush3.msra.mxu0 %v22848_v2  ;;  %v7057_v53 = vadd.f32 %v20222_v41, %v25661_v56  ;;  %v25726_v45 = vpop.f32.mrf.mxu0  ;;  %v9326_v56 = vsub.f32 %v25679_v39, %v25848_v54 }
 0x407   :  { %v6870_v55 = vadd.f32 0.2, %v6869_v42  ;;  %20596 = vmatpush3.msra.mxu1 %v22848_v2  ;;  %20612 = vmatprep.subr.mxu0 %v22848_v2 }
 0x408   :  { %20597 = vmatprep.subr.mxu1 %v22848_v2  ;;  %20613 = vmatpush3.msra.mxu0 %v22848_v2  ;;  %v7280_v48 = vpop.f32.mrf.mxu0  ;;  %v7131_v51 = vadd.f32 %v7130_v26, %v7057_v53  ;;  %v9328_v37 = vmul.f32 %v9326_v56, %v9326_v56 }
 0x409   :  { %v6871_v57 = vmax.f32 %v6870_v55, 0.0  ;;  %20598 = vmatpush3.msra.mxu1 %v22848_v2  ;;  %20614 = vmatprep.subr.mxu0 %v22848_v2 }
 0x40a   :  { %20599 = vmatprep.subr.mxu1 %v22848_v2  ;;  %20615 = vmatpush3.msra.mxu0 %v22848_v2  ;;  %v9331_v39 = vcombine.low %v9327_v12, %v9328_v37 }
 0x40b   :  { %20600 = vmatpush3.msra.mxu1 %v22848_v2  ;;  %20616 = vmatprep.subr.mxu0 %v22848_v2  ;;  %v25740_v59 = vadd.f32 %v6871_v57, %v25432_v24  ;;  %v25751_v24 = vand.u32 4294901760, %v8865_v58 }
 0x40c   :  { %20601 = vmatprep.subr.mxu1 %v22848_v2  ;;  %20617 = vmatpush3.msra.mxu0 %v22848_v2  ;;  %v9338_v46 = vrot.slane %v9331_v39, %v22893_v16 }
 0x40d   :  { %20602 = vmatpush3.msra.mxu1 %v22848_v2  ;;  %20618 = vmatprep.subr.mxu0 %v22848_v2  ;;  %v25764_v62 = vsub.f32 %v8865_v58, %v25751_v24 }
 0x40e   :  { %20603 = vmatprep.subr.mxu1 %v22848_v2  ;;  %20619 = vmatpush3.msra.mxu0 %v22848_v2  ;;  %v9339_v52 = vcombine.high %v9338_v46, %v9338_v46 }
 0x40f   :  { %20604 = vmatpush3.msra.mxu1 %v22848_v2  ;;  %8815 = vmatprep.mubr.f32.mxu1 %v25594_v14  ;;  %v8934_v1 = vand.u32 4294901760, %v25764_v62 }
 0x410   :  { %20620 = vmatprep.subr.mxu0 %v22848_v2  ;;  %8817 = vmatmul.mubr.f32.vlgmr.msra.gmra.mxu1 %v25598_v38  ;;  %v9353_v42 = vrot.slane %v9339_v52, %v22893_v16 }
 0x411   :  { %20621 = vmatpush3.msra.mxu0 %v22848_v2  ;;  %8978 = vmatprep.subr.mxu1 %v22849_v3  ;;  %v8935_v5 = vsub.f32 %v25764_v62, %v8934_v1 }
 0x412   :  { %20622 = vmatprep.subr.mxu0 %v22848_v2  ;;  %8979 = vmatpush1.msra.mxu1 %v22849_v3 }
 0x413   :  { %20623 = vmatpush3.msra.mxu0 %v22848_v2  ;;  %9013 = vmatprep.mubr.f32.mxu1 %v25751_v24  ;;  %v8936_v7 = vand.u32 4294901760, %v8935_v5 }
 0x414   :  { %20624 = vmatprep.subr.mxu0 %v22848_v2  ;;  %9015 = vmatmul.mubr.f32.vlgmr.msra.gmra.mxu1 %v25755_v61 }
 0x415   :  { %20625 = vmatpush3.msra.mxu0 %v22848_v2  ;;  %9050 = vmatprep.subr.mxu1 %v22849_v3 }
 0x416   :  { %20626 = vmatprep.subr.mxu0 %v22848_v2  ;;  %9051 = vmatpush1.msra.mxu1 %v22849_v3  ;;  %v20255_v0 = vpop.f32.mrf.mxu1 }
 0x417   :  { %20627 = vmatpush3.msra.mxu0 %v22848_v2  ;;  %9086 = vmatprep.mubr.f32.mxu1 %v25764_v62 }
 0x418   :  { %20628 = vmatprep.subr.mxu0 %v22848_v2  ;;  %20643 = vmatprep.subr.mxu1 %v22848_v2  ;;  %v20256_v15 = vpop.f32.mrf.mxu1 }
 0x419   :  { %20629 = vmatpush3.msra.mxu0 %v22848_v2  ;;  %9089 = vmatmul.mubr.f32.vlgmr.msra.gmra.mxu1 %v25771_v63  ;;  %v20257_v14 = vadd.f32 %v20256_v15, %v20255_v0 }
 0x41a   :  { %20644 = vmatpush3.msra.mxu1 %v22848_v2  ;;  %20630 = vmatprep.subr.mxu0 %v22848_v2 }
 0x41b   :  { %20645 = vmatprep.subr.mxu1 %v22848_v2  ;;  %20631 = vmatpush3.msra.mxu0 %v22848_v2  ;;  %v7207_v38 = vadd.f32 %v20257_v14, %v7131_v51 }
 0x41c   :  { %20646 = vmatpush3.msra.mxu1 %v22848_v2  ;;  %20632 = vmatprep.subr.mxu0 %v22848_v2 }
 0x41d   :  { %20647 = vmatprep.subr.mxu1 %v22848_v2  ;;  %20633 = vmatpush3.msra.mxu0 %v22848_v2  ;;  %v7279_v6 = vadd.f32 %v25726_v45, %v7207_v38  ;;  %v9346_v45 = vrot.slane %v9338_v46, %v22893_v16 }
 0x41e   :  { %20648 = vmatpush3.msra.mxu1 %v22848_v2  ;;  %20634 = vmatprep.subr.mxu0 %v22848_v2 }
 0x41f   :  { %20649 = vmatprep.subr.mxu1 %v22848_v2  ;;  %20635 = vmatpush3.msra.mxu0 %v22848_v2  ;;  %v25916_v55 = vand.u32 4294901760, %v9346_v45 }
 0x420   :  { %20650 = vmatpush3.msra.mxu1 %v22848_v2  ;;  %20636 = vmatprep.subr.mxu0 %v22848_v2 }
 0x421   :  { %20651 = vmatprep.subr.mxu1 %v22848_v2  ;;  %20637 = vmatpush3.msra.mxu0 %v22848_v2  ;;  %v25932_v48 = vsub.f32 %v9346_v45, %v25916_v55 }
 0x422   :  { %20652 = vmatpush3.msra.mxu1 %v22848_v2  ;;  %20638 = vmatprep.subr.mxu0 %v22848_v2 }
 0x423   :  { %20653 = vmatprep.subr.mxu1 %v22848_v2  ;;  %20639 = vmatpush3.msra.mxu0 %v22848_v2  ;;  %v9428_v58 = vand.u32 4294901760, %v25932_v48 }
 0x424   :  { %8937 = vmatprep.mubr.f32.mxu0 %v8936_v7  ;;  %20654 = vmatpush3.msra.mxu1 %v22848_v2  ;;  %v25992_v7 = vld [vmem:[%s28960_s0 + $0x14] ss:$8 sm:$0x3] }
 0x425   :  { %8943 = vmatmul.mubr.f32.vlgmr.msra.gmra.mxu0 %v8942_v8  ;;  %20655 = vmatprep.subr.mxu1 %v22848_v2  ;;  %v9429_v62 = vsub.f32 %v25932_v48, %v9428_v58  ;;  %v25997_v8 = vld [vmem:[%s28960_s0 + $0x44] ss:$8 sm:$0x3] }
 0x426   :  { %20656 = vmatpush3.msra.mxu1 %v22848_v2  ;;  %9200 = vmatprep.subr.mxu0 %v22849_v3  ;;  %v20290_v25 = vpop.f32.mrf.mxu0 }
 0x427   :  { %20657 = vmatprep.subr.mxu1 %v22848_v2  ;;  %9201 = vmatpush1.msra.mxu0 %v22849_v3  ;;  %v9430_v15 = vand.u32 4294901760, %v9429_v62 }
 0x428   :  { %20658 = vmatpush3.msra.mxu1 %v22848_v2  ;;  %9235 = vmatprep.mubr.f32.mxu0 %v25751_v24  ;;  %v20291_v22 = vpop.f32.mrf.mxu0 }
 0x429   :  { %20678 = vmatprep.subr.mxu0 %v22848_v2  ;;  %20659 = vmatprep.subr.mxu1 %v22848_v2  ;;  %v20292_v9 = vadd.f32 %v20291_v22, %v20290_v25 }
 0x42a   :  { %9237 = vmatmul.mubr.f32.vlgmr.msra.gmra.mxu0 %v25755_v61  ;;  %20660 = vmatpush3.msra.mxu1 %v22848_v2  ;;  %v25822_v10 = vpop.f32.mrf.mxu0 }
 0x42b   :  { %20679 = vmatpush3.msra.mxu0 %v22848_v2  ;;  %20661 = vmatprep.subr.mxu1 %v22848_v2  ;;  %v7351_v17 = vadd.f32 %v20292_v9, %v7279_v6  ;;  %v26010_v9 = vld [vmem:[%s28960_s0] ss:$8 sm:$0x3] }
 0x42c   :  { %20680 = vmatprep.subr.mxu0 %v22848_v2  ;;  %20662 = vmatpush3.msra.mxu1 %v22848_v2  ;;  %v7546_v29 = vpop.f32.mrf.mxu0 }
 0x42d   :  { %20681 = vmatpush3.msra.mxu0 %v22848_v2  ;;  %20663 = vmatprep.subr.mxu1 %v22848_v2  ;;  %22744 = vrsqrt.f32 %v7351_v17  ;;  %vm7356_vm12 = vcmp.eq.f32.partialorder %v7351_v17, inf  ;;  %v7359_v30 = vand.u32 2147483648, %v7351_v17  ;;  %vm7358_vm13 = vcmp.eq.f32.partialorder %v7351_v17, 0.0 }
 0x42e   :  { %20682 = vmatprep.subr.mxu0 %v22848_v2  ;;  %20664 = vmatpush3.msra.mxu1 %v22848_v2 }
 0x42f   :  { %20683 = vmatpush3.msra.mxu0 %v22848_v2  ;;  %20665 = vmatprep.subr.mxu1 %v22848_v2  ;;  %v7618_v20 = vpop.f32.mrf.mxu0 }
 0x430   :  { %20684 = vmatprep.subr.mxu0 %v22848_v2  ;;  %20666 = vmatpush3.msra.mxu1 %v22848_v2 }
 0x431   :  { %20685 = vmatpush3.msra.mxu0 %v22848_v2  ;;  %20667 = vmatprep.subr.mxu1 %v22848_v2  ;;  %v7620_v21 = vpop.f32.mrf.mxu0 }
 0x432   :  { %20686 = vmatprep.subr.mxu0 %v22848_v2  ;;  %20668 = vmatpush3.msra.mxu1 %v22848_v2 }
 0x433   :  { %20687 = vmatpush3.msra.mxu0 %v22848_v2  ;;  %20669 = vmatprep.subr.mxu1 %v22848_v2 }
 0x434   :  { %20688 = vmatprep.subr.mxu0 %v22848_v2  ;;  %20670 = vmatpush3.msra.mxu1 %v22848_v2 }
 0x435   :  { %20689 = vmatpush3.msra.mxu0 %v22848_v2  ;;  %20671 = vmatprep.subr.mxu1 %v22848_v2 }
 0x436   :  { %20690 = vmatprep.subr.mxu0 %v22848_v2  ;;  %20672 = vmatpush3.msra.mxu1 %v22848_v2 }
 0x437   :  { %20691 = vmatpush3.msra.mxu0 %v22848_v2  ;;  %20673 = vmatprep.subr.mxu1 %v22848_v2 }
 0x438   :  { %20692 = vmatprep.subr.mxu0 %v22848_v2  ;;  %20674 = vmatpush3.msra.mxu1 %v22848_v2 }
 0x439   :  { %20693 = vmatpush3.msra.mxu0 %v22848_v2  ;;  %9161 = vmatprep.mubr.f32.mxu1 %v8934_v1  ;;  %v20325_v36 = vpop.f32.mrf.mxu1 }
 0x43a   :  { %v22745_v26 = vpop.eup %22744  ;;  %20694 = vmatprep.subr.mxu0 %v22848_v2  ;;  %9165 = vmatmul.mubr.f32.vlgmr.msra.gmra.mxu1 %v8940_v19 }
 0x43b   :  { %v7355_v27 = vmul.f32 %v22745_v26, %v7351_v17  ;;  %20695 = vmatpush3.msra.mxu0 %v22848_v2  ;;  %20713 = vmatprep.subr.mxu1 %v22848_v2  ;;  %v20326_v28 = vpop.f32.mrf.mxu1 }
 0x43c   :  { %20696 = vmatprep.subr.mxu0 %v22848_v2  ;;  %20714 = vmatpush3.msra.mxu1 %v22848_v2  ;;  %v20327_v43 = vadd.f32 %v20326_v28, %v20325_v36 }
 0x43d   :  { %v7357_v31 = vsel %vm7356_vm12, %v7351_v17, %v7355_v27  ;;  %20697 = vmatpush3.msra.mxu0 %v22848_v2  ;;  %20715 = vmatprep.subr.mxu1 %v22848_v2  ;;  %v26017_v17 = vld [vmem:[%s28960_s0 + $0x30] ss:$8 sm:$0x3] }
 0x43e   :  { %v7360_v44 = vsel %vm7358_vm13, %v7359_v30, %v7357_v31  ;;  %20698 = vmatprep.subr.mxu0 %v22848_v2  ;;  %20716 = vmatpush3.msra.mxu1 %v22848_v2  ;;  %v7545_v50 = vadd.f32 %v20327_v43, %v25822_v10  ;;  %v25882_v32 = vpop.f32.mrf.mxu1  ;;  %v9817_v10 = vsub.f32 %v26010_v9, %v25992_v7 }
 0x43f   :  { %v7361_v33 = vsub.f32 %v23789_v23, %v7360_v44  ;;  %20699 = vmatpush3.msra.mxu0 %v22848_v2  ;;  %20717 = vmatprep.subr.mxu1 %v22848_v2  ;;  %v9818_v29 = vsub.f32 %v26017_v17, %v25997_v8 }
 0x440   :  { %20700 = vmatprep.subr.mxu0 %v22848_v2  ;;  %20718 = vmatpush3.msra.mxu1 %v22848_v2  ;;  %v7768_v34 = vpop.f32.mrf.mxu1  ;;  %v7619_v49 = vadd.f32 %v7618_v20, %v7545_v50  ;;  %v9819_v20 = vmul.f32 %v9817_v10, %v9817_v10 }
 0x441   :  { %v7362_v35 = vadd.f32 0.5, %v7361_v33  ;;  %20701 = vmatpush3.msra.mxu0 %v22848_v2  ;;  %20719 = vmatprep.subr.mxu1 %v22848_v2  ;;  %v9820_v21 = vmul.f32 %v9818_v29, %v9818_v29 }
 0x442   :  { %20702 = vmatprep.subr.mxu0 %v22848_v2  ;;  %20720 = vmatpush3.msra.mxu1 %v22848_v2 }
 0x443   :  { %20703 = vmatpush3.msra.mxu0 %v22848_v2  ;;  %20721 = vmatprep.subr.mxu1 %v22848_v2  ;;  %v7363_v41 = vmax.f32 %v7362_v35, 0.0  ;;  %v9823_v13 = vcombine.low %v9819_v20, %v9820_v21 }
 0x444   :  { %20704 = vmatprep.subr.mxu0 %v22848_v2  ;;  %20722 = vmatpush3.msra.mxu1 %v22848_v2 }
 0x445   :  { %20705 = vmatpush3.msra.mxu0 %v22848_v2  ;;  %20723 = vmatprep.subr.mxu1 %v22848_v2  ;;  %v25901_v53 = vadd.f32 %v7363_v41, %v25583_v4  ;;  %v25912_v4 = vand.u32 4294901760, %v9353_v42  ;;  %v9830_v27 = vrot.slane %v9823_v13, %v22893_v16 }
 0x446   :  { %20706 = vmatprep.subr.mxu0 %v22848_v2  ;;  %20724 = vmatpush3.msra.mxu1 %v22848_v2 }
 0x447   :  { %20707 = vmatpush3.msra.mxu0 %v22848_v2  ;;  %20725 = vmatprep.subr.mxu1 %v22848_v2  ;;  %v25925_v47 = vsub.f32 %v9353_v42, %v25912_v4  ;;  %v9831_v50 = vcombine.high %v9830_v27, %v9830_v27  ;;  %v9838_v52 = vrot.slane %v9830_v27, %v22893_v16 }
 0x448   :  { %20708 = vmatprep.subr.mxu0 %v22848_v2  ;;  %20726 = vmatpush3.msra.mxu1 %v22848_v2 }
 0x449   :  { %20709 = vmatpush3.msra.mxu0 %v22848_v2  ;;  %9307 = vmatprep.mubr.f32.mxu0 %v25751_v24  ;;  %v9422_v51 = vand.u32 4294901760, %v25925_v47  ;;  %v26086_v41 = vand.u32 4294901760, %v9838_v52 }
 0x44a   :  { %20727 = vmatprep.subr.mxu1 %v22848_v2  ;;  %9309 = vmatmul.mubr.f32.vlgmr.msra.gmra.mxu0 %v25755_v61 }
 0x44b   :  { %20728 = vmatpush3.msra.mxu1 %v22848_v2  ;;  %9466 = vmatprep.subr.mxu0 %v22849_v3  ;;  %v9423_v61 = vsub.f32 %v25925_v47, %v9422_v51  ;;  %v26102_v45 = vsub.f32 %v9838_v52, %v26086_v41 }
 0x44c   :  { %20729 = vmatprep.subr.mxu1 %v22848_v2  ;;  %9467 = vmatpush1.msra.mxu0 %v22849_v3 }
 0x44d   :  { %20730 = vmatpush3.msra.mxu1 %v22848_v2  ;;  %9501 = vmatprep.mubr.f32.mxu0 %v25912_v4  ;;  %v9424_v1 = vand.u32 4294901760, %v9423_v61 }
 0x44e   :  { %20731 = vmatprep.subr.mxu1 %v22848_v2  ;;  %9503 = vmatmul.mubr.f32.vlgmr.msra.gmra.mxu0 %v25916_v55 }
 0x44f   :  { %20732 = vmatpush3.msra.mxu1 %v22848_v2  ;;  %9538 = vmatprep.subr.mxu0 %v22849_v3 }
 0x450   :  { %20733 = vmatprep.subr.mxu1 %v22848_v2  ;;  %9539 = vmatpush1.msra.mxu0 %v22849_v3  ;;  %v20360_v57 = vpop.f32.mrf.mxu0 }
 0x451   :  { %20734 = vmatpush3.msra.mxu1 %v22848_v2  ;;  %9574 = vmatprep.mubr.f32.mxu0 %v25925_v47 }
 0x452   :  { %20735 = vmatprep.subr.mxu1 %v22848_v2  ;;  %20748 = vmatprep.subr.mxu0 %v22848_v2  ;;  %v20361_v60 = vpop.f32.mrf.mxu0 }
 0x453   :  { %20736 = vmatpush3.msra.mxu1 %v22848_v2  ;;  %9577 = vmatmul.mubr.f32.vlgmr.msra.gmra.mxu0 %v25932_v48  ;;  %v20362_v24 = vadd.f32 %v20361_v60, %v20360_v57  ;;  %v9920_v48 = vand.u32 4294901760, %v26102_v45 }
 0x454   :  { %20749 = vmatpush3.msra.mxu0 %v22848_v2  ;;  %20737 = vmatprep.subr.mxu1 %v22848_v2 }
 0x455   :  { %20750 = vmatprep.subr.mxu0 %v22848_v2  ;;  %20738 = vmatpush3.msra.mxu1 %v22848_v2  ;;  %v7695_v63 = vadd.f32 %v20362_v24, %v7619_v49  ;;  %v9845_v49 = vrot.slane %v9831_v50, %v22893_v16  ;;  %v9921_v60 = vsub.f32 %v26102_v45, %v9920_v48 }
 0x456   :  { %20751 = vmatpush3.msra.mxu0 %v22848_v2  ;;  %20739 = vmatprep.subr.mxu1 %v22848_v2 }
 0x457   :  { %20752 = vmatprep.subr.mxu0 %v22848_v2  ;;  %20740 = vmatpush3.msra.mxu1 %v22848_v2  ;;  %v7767_v0 = vadd.f32 %v25882_v32, %v7695_v63  ;;  %v9922_v62 = vand.u32 4294901760, %v9921_v60 }
 0x458   :  { %20753 = vmatpush3.msra.mxu0 %v22848_v2  ;;  %20741 = vmatprep.subr.mxu1 %v22848_v2 }
 0x459   :  { %20754 = vmatprep.subr.mxu0 %v22848_v2  ;;  %20742 = vmatpush3.msra.mxu1 %v22848_v2 }
 0x45a   :  { %20755 = vmatpush3.msra.mxu0 %v22848_v2  ;;  %20743 = vmatprep.subr.mxu1 %v22848_v2 }
 0x45b   :  { %20756 = vmatprep.subr.mxu0 %v22848_v2  ;;  %20744 = vmatpush3.msra.mxu1 %v22848_v2 }
 0x45c   :  { %9425 = vmatprep.mubr.f32.mxu1 %v9424_v1  ;;  %20757 = vmatpush3.msra.mxu0 %v22848_v2 }
 0x45d   :  { %9431 = vmatmul.mubr.f32.vlgmr.msra.gmra.mxu1 %v9430_v15  ;;  %20758 = vmatprep.subr.mxu0 %v22848_v2 }
 0x45e   :  { %9688 = vmatprep.subr.mxu1 %v22849_v3  ;;  %20759 = vmatpush3.msra.mxu0 %v22848_v2  ;;  %v20395_v19 = vpop.f32.mrf.mxu1 }
 0x45f   :  { %9689 = vmatpush1.msra.mxu1 %v22849_v3  ;;  %20760 = vmatprep.subr.mxu0 %v22848_v2 }
 0x460   :  { %20761 = vmatpush3.msra.mxu0 %v22848_v2  ;;  %9723 = vmatprep.mubr.f32.mxu1 %v25912_v4  ;;  %v20396_v14 = vpop.f32.mrf.mxu1 }
 0x461   :  { %20783 = vmatprep.subr.mxu1 %v22848_v2  ;;  %20762 = vmatprep.subr.mxu0 %v22848_v2  ;;  %v20397_v38 = vadd.f32 %v20396_v14, %v20395_v19 }
 0x462   :  { %9725 = vmatmul.mubr.f32.vlgmr.msra.gmra.mxu1 %v25916_v55  ;;  %20763 = vmatpush3.msra.mxu0 %v22848_v2  ;;  %v25979_v5 = vpop.f32.mrf.mxu1 }
 0x463   :  { %20784 = vmatpush3.msra.mxu1 %v22848_v2  ;;  %20764 = vmatprep.subr.mxu0 %v22848_v2  ;;  %v7839_v40 = vadd.f32 %v20397_v38, %v7767_v0 }
 0x464   :  { %20785 = vmatprep.subr.mxu1 %v22848_v2  ;;  %20765 = vmatpush3.msra.mxu0 %v22848_v2  ;;  %v8038_v6 = vpop.f32.mrf.mxu1 }
 0x465   :  { %20786 = vmatpush3.msra.mxu1 %v22848_v2  ;;  %20766 = vmatprep.subr.mxu0 %v22848_v2  ;;  %22746 = vrsqrt.f32 %v7839_v40  ;;  %vm7844_vm14 = vcmp.eq.f32.partialorder %v7839_v40, inf  ;;  %v7847_v36 = vand.u32 2147483648, %v7839_v40  ;;  %vm7846_vm15 = vcmp.eq.f32.partialorder %v7839_v40, 0.0 }
 0x466   :  { %20787 = vmatprep.subr.mxu1 %v22848_v2  ;;  %20767 = vmatpush3.msra.mxu0 %v22848_v2  ;;  %v10306_v6 = vsub.f32 %v25997_v8, %v25848_v54 }
 0x467   :  { %20788 = vmatpush3.msra.mxu1 %v22848_v2  ;;  %20768 = vmatprep.subr.mxu0 %v22848_v2  ;;  %v26001_v25 = vpop.f32.mrf.mxu1 }
 0x468   :  { %20789 = vmatprep.subr.mxu1 %v22848_v2  ;;  %20769 = vmatpush3.msra.mxu0 %v22848_v2 }
 0x469   :  { %20790 = vmatpush3.msra.mxu1 %v22848_v2  ;;  %20770 = vmatprep.subr.mxu0 %v22848_v2  ;;  %v8112_v22 = vpop.f32.mrf.mxu1 }
 0x46a   :  { %20791 = vmatprep.subr.mxu1 %v22848_v2  ;;  %20771 = vmatpush3.msra.mxu0 %v22848_v2 }
 0x46b   :  { %20792 = vmatpush3.msra.mxu1 %v22848_v2  ;;  %20772 = vmatprep.subr.mxu0 %v22848_v2 }
 0x46c   :  { %20793 = vmatprep.subr.mxu1 %v22848_v2  ;;  %20773 = vmatpush3.msra.mxu0 %v22848_v2 }
 0x46d   :  { %20794 = vmatpush3.msra.mxu1 %v22848_v2  ;;  %20774 = vmatprep.subr.mxu0 %v22848_v2 }
 0x46e   :  { %20795 = vmatprep.subr.mxu1 %v22848_v2  ;;  %20775 = vmatpush3.msra.mxu0 %v22848_v2 }
 0x46f   :  { %20796 = vmatpush3.msra.mxu1 %v22848_v2  ;;  %20776 = vmatprep.subr.mxu0 %v22848_v2 }
 0x470   :  { %20797 = vmatprep.subr.mxu1 %v22848_v2  ;;  %20777 = vmatpush3.msra.mxu0 %v22848_v2 }
 0x471   :  { %20798 = vmatpush3.msra.mxu1 %v22848_v2  ;;  %20778 = vmatprep.subr.mxu0 %v22848_v2 }
 0x472   :  { %v22747_v56 = vpop.eup %22746  ;;  %20799 = vmatprep.subr.mxu1 %v22848_v2  ;;  %20779 = vmatpush3.msra.mxu0 %v22848_v2 }
 0x473   :  { %v7843_v12 = vmul.f32 %v22747_v56, %v7839_v40  ;;  %20800 = vmatpush3.msra.mxu1 %v22848_v2  ;;  %9649 = vmatprep.mubr.f32.mxu0 %v9422_v51  ;;  %v20430_v37 = vpop.f32.mrf.mxu0 }
 0x474   :  { %20801 = vmatprep.subr.mxu1 %v22848_v2  ;;  %9653 = vmatmul.mubr.f32.vlgmr.msra.gmra.mxu0 %v9428_v58 }
 0x475   :  { %v7845_v39 = vsel %vm7844_vm14, %v7839_v40, %v7843_v12  ;;  %20802 = vmatpush3.msra.mxu1 %v22848_v2  ;;  %20818 = vmatprep.subr.mxu0 %v22848_v2  ;;  %v20431_v26 = vpop.f32.mrf.mxu0  ;;  %v10305_v40 = vsub.f32 %v25992_v7, %v25841_v18  ;;  %v10308_v7 = vmul.f32 %v10306_v6, %v10306_v6 }
 0x476   :  { %v7848_v28 = vsel %vm7846_vm15, %v7847_v36, %v7845_v39  ;;  %20803 = vmatprep.subr.mxu1 %v22848_v2  ;;  %20819 = vmatpush3.msra.mxu0 %v22848_v2  ;;  %v20432_v30 = vadd.f32 %v20431_v26, %v20430_v37 }
 0x477   :  { %v7849_v43 = vsub.f32 %v23789_v23, %v7848_v28  ;;  %20804 = vmatpush3.msra.mxu1 %v22848_v2  ;;  %20820 = vmatprep.subr.mxu0 %v22848_v2  ;;  %v10307_v18 = vmul.f32 %v10305_v40, %v10305_v40 }
 0x478   :  { %20805 = vmatprep.subr.mxu1 %v22848_v2  ;;  %20821 = vmatpush3.msra.mxu0 %v22848_v2  ;;  %v8037_v31 = vadd.f32 %v20432_v30, %v25979_v5  ;;  %v26056_v46 = vpop.f32.mrf.mxu0 }
 0x479   :  { %v7850_v44 = vadd.f32 0.2, %v7849_v43  ;;  %20806 = vmatpush3.msra.mxu1 %v22848_v2  ;;  %20822 = vmatprep.subr.mxu0 %v22848_v2  ;;  %v10311_v8 = vcombine.low %v10307_v18, %v10308_v7 }
 0x47a   :  { %20807 = vmatprep.subr.mxu1 %v22848_v2  ;;  %20823 = vmatpush3.msra.mxu0 %v22848_v2  ;;  %v8260_v32 = vpop.f32.mrf.mxu0  ;;  %v8111_v33 = vadd.f32 %v26001_v25, %v8037_v31 }
 0x47b   :  { %v7851_v34 = vmax.f32 %v7850_v44, 0.0  ;;  %20808 = vmatpush3.msra.mxu1 %v22848_v2  ;;  %20824 = vmatprep.subr.mxu0 %v22848_v2  ;;  %v10318_v13 = vrot.slane %v10311_v8, %v22893_v16 }
 0x47c   :  { %20809 = vmatprep.subr.mxu1 %v22848_v2  ;;  %20825 = vmatpush3.msra.mxu0 %v22848_v2 }
 0x47d   :  { %20810 = vmatpush3.msra.mxu1 %v22848_v2  ;;  %20826 = vmatprep.subr.mxu0 %v22848_v2  ;;  %v26071_v35 = vadd.f32 %v7851_v34, %v25740_v59  ;;  %v26082_v59 = vand.u32 4294901760, %v9845_v49  ;;  %v10319_v27 = vcombine.high %v10318_v13, %v10318_v13 }
 0x47e   :  { %20811 = vmatprep.subr.mxu1 %v22848_v2  ;;  %20827 = vmatpush3.msra.mxu0 %v22848_v2 }
 0x47f   :  { %20812 = vmatpush3.msra.mxu1 %v22848_v2  ;;  %20828 = vmatprep.subr.mxu0 %v22848_v2  ;;  %v26095_v42 = vsub.f32 %v9845_v49, %v26082_v59  ;;  %v10333_v43 = vrot.slane %v10319_v27, %v22893_v16 }
 0x480   :  { %20813 = vmatprep.subr.mxu1 %v22848_v2  ;;  %20829 = vmatpush3.msra.mxu0 %v22848_v2 }
 0x481   :  { %20814 = vmatpush3.msra.mxu1 %v22848_v2  ;;  %9795 = vmatprep.mubr.f32.mxu1 %v25912_v4 }
 0x482   :  { %20830 = vmatprep.subr.mxu0 %v22848_v2  ;;  %9797 = vmatmul.mubr.f32.vlgmr.msra.gmra.mxu1 %v25916_v55  ;;  %v9914_v55 = vand.u32 4294901760, %v26095_v42 }
 0x483   :  { %20831 = vmatpush3.msra.mxu0 %v22848_v2  ;;  %9958 = vmatprep.subr.mxu1 %v22849_v3 }
 0x484   :  { %20832 = vmatprep.subr.mxu0 %v22848_v2  ;;  %9959 = vmatpush1.msra.mxu1 %v22849_v3  ;;  %v9915_v58 = vsub.f32 %v26095_v42, %v9914_v55 }
 0x485   :  { %20833 = vmatpush3.msra.mxu0 %v22848_v2  ;;  %9993 = vmatprep.mubr.f32.mxu1 %v26082_v59 }
 0x486   :  { %20834 = vmatprep.subr.mxu0 %v22848_v2  ;;  %9995 = vmatmul.mubr.f32.vlgmr.msra.gmra.mxu1 %v26086_v41  ;;  %v9916_v61 = vand.u32 4294901760, %v9915_v58 }
 0x487   :  { %20835 = vmatpush3.msra.mxu0 %v22848_v2  ;;  %10030 = vmatprep.subr.mxu1 %v22849_v3 }
 0x488   :  { %20836 = vmatprep.subr.mxu0 %v22848_v2  ;;  %10031 = vmatpush1.msra.mxu1 %v22849_v3  ;;  %v20465_v4 = vpop.f32.mrf.mxu1 }
 0x489   :  { %20837 = vmatpush3.msra.mxu0 %v22848_v2  ;;  %10066 = vmatprep.mubr.f32.mxu1 %v26095_v42 }
 0x48a   :  { %20838 = vmatprep.subr.mxu0 %v22848_v2  ;;  %20853 = vmatprep.subr.mxu1 %v22848_v2  ;;  %v20466_v47 = vpop.f32.mrf.mxu1 }
 0x48b   :  { %20839 = vmatpush3.msra.mxu0 %v22848_v2  ;;  %10069 = vmatmul.mubr.f32.vlgmr.msra.gmra.mxu1 %v26102_v45  ;;  %v20467_v51 = vadd.f32 %v20466_v47, %v20465_v4 }
 0x48c   :  { %20854 = vmatpush3.msra.mxu1 %v22848_v2  ;;  %20840 = vmatprep.subr.mxu0 %v22848_v2 }
 0x48d   :  { %20855 = vmatprep.subr.mxu1 %v22848_v2  ;;  %20841 = vmatpush3.msra.mxu0 %v22848_v2  ;;  %v8187_v57 = vadd.f32 %v20467_v51, %v8111_v33 }
 0x48e   :  { %20856 = vmatpush3.msra.mxu1 %v22848_v2  ;;  %20842 = vmatprep.subr.mxu0 %v22848_v2 }
 0x48f   :  { %20857 = vmatprep.subr.mxu1 %v22848_v2  ;;  %20843 = vmatpush3.msra.mxu0 %v22848_v2  ;;  %v8259_v24 = vadd.f32 %v26056_v46, %v8187_v57  ;;  %v10326_v46 = vrot.slane %v10318_v13, %v22893_v16 }
 0x490   :  { %20858 = vmatpush3.msra.mxu1 %v22848_v2  ;;  %20844 = vmatprep.subr.mxu0 %v22848_v2 }
 0x491   :  { %20859 = vmatprep.subr.mxu1 %v22848_v2  ;;  %20845 = vmatpush3.msra.mxu0 %v22848_v2  ;;  %v26234_v44 = vand.u32 4294901760, %v10326_v46 }
 0x492   :  { %20860 = vmatpush3.msra.mxu1 %v22848_v2  ;;  %20846 = vmatprep.subr.mxu0 %v22848_v2 }
 0x493   :  { %20861 = vmatprep.subr.mxu1 %v22848_v2  ;;  %20847 = vmatpush3.msra.mxu0 %v22848_v2  ;;  %v26250_v32 = vsub.f32 %v10326_v46, %v26234_v44 }
 0x494   :  { %20862 = vmatpush3.msra.mxu1 %v22848_v2  ;;  %20848 = vmatprep.subr.mxu0 %v22848_v2 }
 0x495   :  { %20863 = vmatprep.subr.mxu1 %v22848_v2  ;;  %20849 = vmatpush3.msra.mxu0 %v22848_v2  ;;  %v10408_v49 = vand.u32 4294901760, %v26250_v32 }
 0x496   :  { %9917 = vmatprep.mubr.f32.mxu0 %v9916_v61  ;;  %20864 = vmatpush3.msra.mxu1 %v22848_v2  ;;  %v26310_v61 = vld [vmem:[%s28960_s0 + $0x15] ss:$8 sm:$0x3] }
 0x497   :  { %9923 = vmatmul.mubr.f32.vlgmr.msra.gmra.mxu0 %v9922_v62  ;;  %20865 = vmatprep.subr.mxu1 %v22848_v2  ;;  %v10409_v42 = vsub.f32 %v26250_v32, %v10408_v49  ;;  %v26315_v62 = vld [vmem:[%s28960_s0 + $0x45] ss:$8 sm:$0x3] }
 0x498   :  { %20866 = vmatpush3.msra.mxu1 %v22848_v2  ;;  %10180 = vmatprep.subr.mxu0 %v22849_v3  ;;  %v20500_v63 = vpop.f32.mrf.mxu0 }
 0x499   :  { %20867 = vmatprep.subr.mxu1 %v22848_v2  ;;  %10181 = vmatpush1.msra.mxu0 %v22849_v3  ;;  %v10410_v47 = vand.u32 4294901760, %v10409_v42 }
 0x49a   :  { %20868 = vmatpush3.msra.mxu1 %v22848_v2  ;;  %10215 = vmatprep.mubr.f32.mxu0 %v26082_v59  ;;  %v20501_v0 = vpop.f32.mrf.mxu0 }
 0x49b   :  { %20888 = vmatprep.subr.mxu0 %v22848_v2  ;;  %20869 = vmatprep.subr.mxu1 %v22848_v2  ;;  %v20502_v1 = vadd.f32 %v20501_v0, %v20500_v63 }
 0x49c   :  { %10217 = vmatmul.mubr.f32.vlgmr.msra.gmra.mxu0 %v26086_v41  ;;  %20870 = vmatpush3.msra.mxu1 %v22848_v2  ;;  %v8524_v15 = vpop.f32.mrf.mxu0 }
 0x49d   :  { %20889 = vmatpush3.msra.mxu0 %v22848_v2  ;;  %20871 = vmatprep.subr.mxu1 %v22848_v2  ;;  %v8331_v19 = vadd.f32 %v20502_v1, %v8259_v24  ;;  %v10797_v1 = vsub.f32 %v26010_v9, %v26310_v61 }
 0x49e   :  { %20890 = vmatprep.subr.mxu0 %v22848_v2  ;;  %20872 = vmatpush3.msra.mxu1 %v22848_v2  ;;  %v8526_v14 = vpop.f32.mrf.mxu0 }
 0x49f   :  { %20891 = vmatpush3.msra.mxu0 %v22848_v2  ;;  %20873 = vmatprep.subr.mxu1 %v22848_v2  ;;  %22748 = vrsqrt.f32 %v8331_v19  ;;  %vm8336_vm0 = vcmp.eq.f32.partialorder %v8331_v19, inf  ;;  %v8339_v29 = vand.u32 2147483648, %v8331_v19  ;;  %vm8338_vm1 = vcmp.eq.f32.partialorder %v8331_v19, 0.0 }
 0x4a0   :  { %20892 = vmatprep.subr.mxu0 %v22848_v2  ;;  %20874 = vmatpush3.msra.mxu1 %v22848_v2  ;;  %v10799_v9 = vmul.f32 %v10797_v1, %v10797_v1 }
 0x4a1   :  { %20893 = vmatpush3.msra.mxu0 %v22848_v2  ;;  %20875 = vmatprep.subr.mxu1 %v22848_v2  ;;  %v8598_v38 = vpop.f32.mrf.mxu0 }
 0x4a2   :  { %20894 = vmatprep.subr.mxu0 %v22848_v2  ;;  %20876 = vmatpush3.msra.mxu1 %v22848_v2 }
 0x4a3   :  { %20895 = vmatpush3.msra.mxu0 %v22848_v2  ;;  %20877 = vmatprep.subr.mxu1 %v22848_v2  ;;  %v8600_v5 = vpop.f32.mrf.mxu0 }
 0x4a4   :  { %20896 = vmatprep.subr.mxu0 %v22848_v2  ;;  %20878 = vmatpush3.msra.mxu1 %v22848_v2 }
 0x4a5   :  { %20897 = vmatpush3.msra.mxu0 %v22848_v2  ;;  %20879 = vmatprep.subr.mxu1 %v22848_v2 }
 0x4a6   :  { %20898 = vmatprep.subr.mxu0 %v22848_v2  ;;  %20880 = vmatpush3.msra.mxu1 %v22848_v2 }
 0x4a7   :  { %20899 = vmatpush3.msra.mxu0 %v22848_v2  ;;  %20881 = vmatprep.subr.mxu1 %v22848_v2 }
 0x4a8   :  { %20900 = vmatprep.subr.mxu0 %v22848_v2  ;;  %20882 = vmatpush3.msra.mxu1 %v22848_v2 }
 0x4a9   :  { %20901 = vmatpush3.msra.mxu0 %v22848_v2  ;;  %20883 = vmatprep.subr.mxu1 %v22848_v2 }
 0x4aa   :  { %20902 = vmatprep.subr.mxu0 %v22848_v2  ;;  %20884 = vmatpush3.msra.mxu1 %v22848_v2 }
 0x4ab   :  { %20903 = vmatpush3.msra.mxu0 %v22848_v2  ;;  %10141 = vmatprep.mubr.f32.mxu1 %v9914_v55  ;;  %v20535_v54 = vpop.f32.mrf.mxu1 }
 0x4ac   :  { %v22749_v25 = vpop.eup %22748  ;;  %20904 = vmatprep.subr.mxu0 %v22848_v2  ;;  %10145 = vmatmul.mubr.f32.vlgmr.msra.gmra.mxu1 %v9920_v48 }
 0x4ad   :  { %v8335_v22 = vmul.f32 %v22749_v25, %v8331_v19  ;;  %20905 = vmatpush3.msra.mxu0 %v22848_v2  ;;  %20923 = vmatprep.subr.mxu1 %v22848_v2  ;;  %v20536_v10 = vpop.f32.mrf.mxu1 }
 0x4ae   :  { %20906 = vmatprep.subr.mxu0 %v22848_v2  ;;  %20924 = vmatpush3.msra.mxu1 %v22848_v2  ;;  %v20537_v20 = vadd.f32 %v20536_v10, %v20535_v54 }
 0x4af   :  { %v8337_v21 = vsel %vm8336_vm0, %v8331_v19, %v8335_v22  ;;  %20907 = vmatpush3.msra.mxu0 %v22848_v2  ;;  %20925 = vmatprep.subr.mxu1 %v22848_v2 }
 0x4b0   :  { %v8340_v56 = vsel %vm8338_vm1, %v8339_v29, %v8337_v21  ;;  %20908 = vmatprep.subr.mxu0 %v22848_v2  ;;  %20926 = vmatpush3.msra.mxu1 %v22848_v2  ;;  %v8525_v12 = vadd.f32 %v20537_v20, %v8524_v15  ;;  %v26200_v37 = vpop.f32.mrf.mxu1  ;;  %v10798_v15 = vsub.f32 %v26017_v17, %v26315_v62 }
 0x4b1   :  { %20909 = vmatpush3.msra.mxu0 %v22848_v2  ;;  %20927 = vmatprep.subr.mxu1 %v22848_v2  ;;  %v8341_v36 = vsub.f32 %v23789_v23, %v8340_v56 }
 0x4b2   :  { %20910 = vmatprep.subr.mxu0 %v22848_v2  ;;  %20928 = vmatpush3.msra.mxu1 %v22848_v2  ;;  %v8748_v39 = vpop.f32.mrf.mxu1  ;;  %v8599_v26 = vadd.f32 %v8598_v38, %v8525_v12  ;;  %v10800_v19 = vmul.f32 %v10798_v15, %v10798_v15 }
 0x4b3   :  { %20911 = vmatpush3.msra.mxu0 %v22848_v2  ;;  %20929 = vmatprep.subr.mxu1 %v22848_v2  ;;  %v8342_v28 = vadd.f32 0.5, %v8341_v36 }
 0x4b4   :  { %20912 = vmatprep.subr.mxu0 %v22848_v2  ;;  %20930 = vmatpush3.msra.mxu1 %v22848_v2  ;;  %v10803_v17 = vcombine.low %v10799_v9, %v10800_v19 }
 0x4b5   :  { %20913 = vmatpush3.msra.mxu0 %v22848_v2  ;;  %20931 = vmatprep.subr.mxu1 %v22848_v2  ;;  %v8343_v30 = vmax.f32 %v8342_v28, 0.0 }
 0x4b6   :  { %20914 = vmatprep.subr.mxu0 %v22848_v2  ;;  %20932 = vmatpush3.msra.mxu1 %v22848_v2  ;;  %v10810_v7 = vrot.slane %v10803_v17, %v22893_v16 }
 0x4b7   :  { %20915 = vmatpush3.msra.mxu0 %v22848_v2  ;;  %20933 = vmatprep.subr.mxu1 %v22848_v2  ;;  %v26219_v31 = vadd.f32 %v8343_v30, %v25901_v53  ;;  %v26230_v53 = vand.u32 4294901760, %v10333_v43 }
 0x4b8   :  { %20916 = vmatprep.subr.mxu0 %v22848_v2  ;;  %20934 = vmatpush3.msra.mxu1 %v22848_v2  ;;  %v10811_v29 = vcombine.high %v10810_v7, %v10810_v7  ;;  %v10818_v36 = vrot.slane %v10810_v7, %v22893_v16 }
 0x4b9   :  { %20917 = vmatpush3.msra.mxu0 %v22848_v2  ;;  %20935 = vmatprep.subr.mxu1 %v22848_v2  ;;  %v26243_v50 = vsub.f32 %v10333_v43, %v26230_v53 }
 0x4ba   :  { %20918 = vmatprep.subr.mxu0 %v22848_v2  ;;  %20936 = vmatpush3.msra.mxu1 %v22848_v2  ;;  %v10825_v12 = vrot.slane %v10811_v29, %v22893_v16  ;;  %v26391_v39 = vand.u32 4294901760, %v10818_v36 }
 0x4bb   :  { %20919 = vmatpush3.msra.mxu0 %v22848_v2  ;;  %10287 = vmatprep.mubr.f32.mxu0 %v26082_v59  ;;  %v10402_v33 = vand.u32 4294901760, %v26243_v50 }
 0x4bc   :  { %20937 = vmatprep.subr.mxu1 %v22848_v2  ;;  %10289 = vmatmul.mubr.f32.vlgmr.msra.gmra.mxu0 %v26086_v41  ;;  %v26407_v27 = vsub.f32 %v10818_v36, %v26391_v39 }
 0x4bd   :  { %20938 = vmatpush3.msra.mxu1 %v22848_v2  ;;  %10446 = vmatprep.subr.mxu0 %v22849_v3  ;;  %v10403_v41 = vsub.f32 %v26243_v50, %v10402_v33 }
 0x4be   :  { %20939 = vmatprep.subr.mxu1 %v22848_v2  ;;  %10447 = vmatpush1.msra.mxu0 %v22849_v3  ;;  %v10900_v46 = vand.u32 4294901760, %v26407_v27 }
 0x4bf   :  { %20940 = vmatpush3.msra.mxu1 %v22848_v2  ;;  %10481 = vmatprep.mubr.f32.mxu0 %v26230_v53  ;;  %v10404_v55 = vand.u32 4294901760, %v10403_v41 }
 0x4c0   :  { %20941 = vmatprep.subr.mxu1 %v22848_v2  ;;  %10483 = vmatmul.mubr.f32.vlgmr.msra.gmra.mxu0 %v26234_v44 }
 0x4c1   :  { %20942 = vmatpush3.msra.mxu1 %v22848_v2  ;;  %10518 = vmatprep.subr.mxu0 %v22849_v3 }
 0x4c2   :  { %20943 = vmatprep.subr.mxu1 %v22848_v2  ;;  %10519 = vmatpush1.msra.mxu0 %v22849_v3  ;;  %v20570_v34 = vpop.f32.mrf.mxu0 }
 0x4c3   :  { %20944 = vmatpush3.msra.mxu1 %v22848_v2  ;;  %10554 = vmatprep.mubr.f32.mxu0 %v26243_v50 }
 0x4c4   :  { %20945 = vmatprep.subr.mxu1 %v22848_v2  ;;  %20958 = vmatprep.subr.mxu0 %v22848_v2  ;;  %v20571_v52 = vpop.f32.mrf.mxu0 }
 0x4c5   :  { %20946 = vmatpush3.msra.mxu1 %v22848_v2  ;;  %10557 = vmatmul.mubr.f32.vlgmr.msra.gmra.mxu0 %v26250_v32  ;;  %v20572_v59 = vadd.f32 %v20571_v52, %v20570_v34  ;;  %v10901_v32 = vsub.f32 %v26407_v27, %v10900_v46 }
 0x4c6   :  { %20959 = vmatpush3.msra.mxu0 %v22848_v2  ;;  %20947 = vmatprep.subr.mxu1 %v22848_v2 }
 0x4c7   :  { %20960 = vmatprep.subr.mxu0 %v22848_v2  ;;  %20948 = vmatpush3.msra.mxu1 %v22848_v2  ;;  %v8675_v45 = vadd.f32 %v20572_v59, %v8599_v26 }
 0x4c8   :  { %20961 = vmatpush3.msra.mxu0 %v22848_v2  ;;  %20949 = vmatprep.subr.mxu1 %v22848_v2 }
 0x4c9   :  { %20962 = vmatprep.subr.mxu0 %v22848_v2  ;;  %20950 = vmatpush3.msra.mxu1 %v22848_v2  ;;  %v8747_v4 = vadd.f32 %v26200_v37, %v8675_v45 }
 0x4ca   :  { %20963 = vmatpush3.msra.mxu0 %v22848_v2  ;;  %20951 = vmatprep.subr.mxu1 %v22848_v2 }
 0x4cb   :  { %20964 = vmatprep.subr.mxu0 %v22848_v2  ;;  %20952 = vmatpush3.msra.mxu1 %v22848_v2 }
 0x4cc   :  { %20965 = vmatpush3.msra.mxu0 %v22848_v2  ;;  %20953 = vmatprep.subr.mxu1 %v22848_v2 }
 0x4cd   :  { %20966 = vmatprep.subr.mxu0 %v22848_v2  ;;  %20954 = vmatpush3.msra.mxu1 %v22848_v2 }
 0x4ce   :  { %10405 = vmatprep.mubr.f32.mxu1 %v10404_v55  ;;  %20967 = vmatpush3.msra.mxu0 %v22848_v2 }
 0x4cf   :  { %10411 = vmatmul.mubr.f32.vlgmr.msra.gmra.mxu1 %v10410_v47  ;;  %20968 = vmatprep.subr.mxu0 %v22848_v2 }
 0x4d0   :  { %10668 = vmatprep.subr.mxu1 %v22849_v3  ;;  %20969 = vmatpush3.msra.mxu0 %v22848_v2  ;;  %v20605_v48 = vpop.f32.mrf.mxu1 }
 0x4d1   :  { %10669 = vmatpush1.msra.mxu1 %v22849_v3  ;;  %20970 = vmatprep.subr.mxu0 %v22848_v2 }
 0x4d2   :  { %20971 = vmatpush3.msra.mxu0 %v22848_v2  ;;  %10703 = vmatprep.mubr.f32.mxu1 %v26230_v53  ;;  %v20606_v51 = vpop.f32.mrf.mxu1 }
 0x4d3   :  { %20993 = vmatprep.subr.mxu1 %v22848_v2  ;;  %20972 = vmatprep.subr.mxu0 %v22848_v2  ;;  %v20607_v57 = vadd.f32 %v20606_v51, %v20605_v48  ;;  %v26480_v48 = vld [vmem:[%s28960_s0 + $0x25] ss:$8 sm:$0x3] }
 0x4d4   :  { %10705 = vmatmul.mubr.f32.vlgmr.msra.gmra.mxu1 %v26234_v44  ;;  %20973 = vmatpush3.msra.mxu0 %v22848_v2  ;;  %v26297_v58 = vpop.f32.mrf.mxu1  ;;  %v11285_v51 = vsub.f32 %v26310_v61, %v26480_v48 }
 0x4d5   :  { %20994 = vmatpush3.msra.mxu1 %v22848_v2  ;;  %20974 = vmatprep.subr.mxu0 %v22848_v2  ;;  %v8819_v60 = vadd.f32 %v20607_v57, %v8747_v4  ;;  %v26487_v57 = vld [vmem:[%s28960_s0 + $0x55] ss:$8 sm:$0x3] }
 0x4d6   :  { %20995 = vmatprep.subr.mxu1 %v22848_v2  ;;  %20975 = vmatpush3.msra.mxu0 %v22848_v2  ;;  %v9018_v24 = vpop.f32.mrf.mxu1 }
 0x4d7   :  { %20996 = vmatpush3.msra.mxu1 %v22848_v2  ;;  %20976 = vmatprep.subr.mxu0 %v22848_v2  ;;  %22750 = vrsqrt.f32 %v8819_v60  ;;  %vm8824_vm2 = vcmp.eq.f32.partialorder %v8819_v60, inf  ;;  %v8827_v40 = vand.u32 2147483648, %v8819_v60  ;;  %vm8826_vm3 = vcmp.eq.f32.partialorder %v8819_v60, 0.0 }
 0x4d8   :  { %20997 = vmatprep.subr.mxu1 %v22848_v2  ;;  %20977 = vmatpush3.msra.mxu0 %v22848_v2 }
 0x4d9   :  { %20998 = vmatpush3.msra.mxu1 %v22848_v2  ;;  %20978 = vmatprep.subr.mxu0 %v22848_v2  ;;  %v9090_v63 = vpop.f32.mrf.mxu1 }
 0x4da   :  { %20999 = vmatprep.subr.mxu1 %v22848_v2  ;;  %20979 = vmatpush3.msra.mxu0 %v22848_v2 }
 0x4db   :  { %21000 = vmatpush3.msra.mxu1 %v22848_v2  ;;  %20980 = vmatprep.subr.mxu0 %v22848_v2  ;;  %v9092_v0 = vpop.f32.mrf.mxu1 }
 0x4dc   :  { %21001 = vmatprep.subr.mxu1 %v22848_v2  ;;  %20981 = vmatpush3.msra.mxu0 %v22848_v2 }
 0x4dd   :  { %21002 = vmatpush3.msra.mxu1 %v22848_v2  ;;  %20982 = vmatprep.subr.mxu0 %v22848_v2 }
 0x4de   :  { %21003 = vmatprep.subr.mxu1 %v22848_v2  ;;  %20983 = vmatpush3.msra.mxu0 %v22848_v2 }
 0x4df   :  { %21004 = vmatpush3.msra.mxu1 %v22848_v2  ;;  %20984 = vmatprep.subr.mxu0 %v22848_v2 }
 0x4e0   :  { %21005 = vmatprep.subr.mxu1 %v22848_v2  ;;  %20985 = vmatpush3.msra.mxu0 %v22848_v2 }
 0x4e1   :  { %21006 = vmatpush3.msra.mxu1 %v22848_v2  ;;  %20986 = vmatprep.subr.mxu0 %v22848_v2 }
 0x4e2   :  { %21007 = vmatprep.subr.mxu1 %v22848_v2  ;;  %20987 = vmatpush3.msra.mxu0 %v22848_v2 }
 0x4e3   :  { %21008 = vmatpush3.msra.mxu1 %v22848_v2  ;;  %20988 = vmatprep.subr.mxu0 %v22848_v2 }
 0x4e4   :  { %v22751_v14 = vpop.eup %22750  ;;  %21009 = vmatprep.subr.mxu1 %v22848_v2  ;;  %20989 = vmatpush3.msra.mxu0 %v22848_v2 }
 0x4e5   :  { %v8823_v38 = vmul.f32 %v22751_v14, %v8819_v60  ;;  %21010 = vmatpush3.msra.mxu1 %v22848_v2  ;;  %10629 = vmatprep.mubr.f32.mxu0 %v10402_v33  ;;  %v20640_v5 = vpop.f32.mrf.mxu0 }
 0x4e6   :  { %21011 = vmatprep.subr.mxu1 %v22848_v2  ;;  %10633 = vmatmul.mubr.f32.vlgmr.msra.gmra.mxu0 %v10408_v49  ;;  %v10902_v49 = vand.u32 4294901760, %v10901_v32 }
 0x4e7   :  { %v8825_v6 = vsel %vm8824_vm2, %v8819_v60, %v8823_v38  ;;  %21012 = vmatpush3.msra.mxu1 %v22848_v2  ;;  %21028 = vmatprep.subr.mxu0 %v22848_v2  ;;  %v20641_v18 = vpop.f32.mrf.mxu0  ;;  %v11287_v60 = vmul.f32 %v11285_v51, %v11285_v51 }
 0x4e8   :  { %v8828_v54 = vsel %vm8826_vm3, %v8827_v40, %v8825_v6  ;;  %21013 = vmatprep.subr.mxu1 %v22848_v2  ;;  %21029 = vmatpush3.msra.mxu0 %v22848_v2  ;;  %v20642_v8 = vadd.f32 %v20641_v18, %v20640_v5 }
 0x4e9   :  { %v8829_v25 = vsub.f32 %v23789_v23, %v8828_v54  ;;  %21014 = vmatpush3.msra.mxu1 %v22848_v2  ;;  %21030 = vmatprep.subr.mxu0 %v22848_v2 }
 0x4ea   :  { %21015 = vmatprep.subr.mxu1 %v22848_v2  ;;  %21031 = vmatpush3.msra.mxu0 %v22848_v2  ;;  %v9017_v22 = vadd.f32 %v20642_v8, %v26297_v58  ;;  %v26362_v10 = vpop.f32.mrf.mxu0  ;;  %v11286_v58 = vsub.f32 %v26315_v62, %v26487_v57 }
 0x4eb   :  { %21016 = vmatpush3.msra.mxu1 %v22848_v2  ;;  %21032 = vmatprep.subr.mxu0 %v22848_v2  ;;  %v8830_v20 = vadd.f32 0.2, %v8829_v25 }
 0x4ec   :  { %21017 = vmatprep.subr.mxu1 %v22848_v2  ;;  %21033 = vmatpush3.msra.mxu0 %v22848_v2  ;;  %v9240_v21 = vpop.f32.mrf.mxu0  ;;  %v9091_v13 = vadd.f32 %v9090_v63, %v9017_v22  ;;  %v11288_v24 = vmul.f32 %v11286_v58, %v11286_v58 }
 0x4ed   :  { %21018 = vmatpush3.msra.mxu1 %v22848_v2  ;;  %21034 = vmatprep.subr.mxu0 %v22848_v2  ;;  %v8831_v56 = vmax.f32 %v8830_v20, 0.0 }
 0x4ee   :  { %21019 = vmatprep.subr.mxu1 %v22848_v2  ;;  %21035 = vmatpush3.msra.mxu0 %v22848_v2  ;;  %v11291_v62 = vcombine.low %v11287_v60, %v11288_v24 }
 0x4ef   :  { %21020 = vmatpush3.msra.mxu1 %v22848_v2  ;;  %21036 = vmatprep.subr.mxu0 %v22848_v2  ;;  %v26376_v37 = vadd.f32 %v8831_v56, %v26071_v35  ;;  %v26387_v35 = vand.u32 4294901760, %v10825_v12 }
 0x4f0   :  { %21021 = vmatprep.subr.mxu1 %v22848_v2  ;;  %21037 = vmatpush3.msra.mxu0 %v22848_v2  ;;  %v11298_v17 = vrot.slane %v11291_v62, %v22893_v16 }
 0x4f1   :  { %21022 = vmatpush3.msra.mxu1 %v22848_v2  ;;  %21038 = vmatprep.subr.mxu0 %v22848_v2  ;;  %v26400_v26 = vsub.f32 %v10825_v12, %v26387_v35 }
 0x4f2   :  { %21023 = vmatprep.subr.mxu1 %v22848_v2  ;;  %21039 = vmatpush3.msra.mxu0 %v22848_v2  ;;  %v11299_v7 = vcombine.high %v11298_v17, %v11298_v17 }
 0x4f3   :  { %21024 = vmatpush3.msra.mxu1 %v22848_v2  ;;  %10775 = vmatprep.mubr.f32.mxu1 %v26230_v53  ;;  %v10894_v30 = vand.u32 4294901760, %v26400_v26 }
 0x4f4   :  { %21040 = vmatprep.subr.mxu0 %v22848_v2  ;;  %10777 = vmatmul.mubr.f32.vlgmr.msra.gmra.mxu1 %v26234_v44  ;;  %v11313_v25 = vrot.slane %v11299_v7, %v22893_v16 }
 0x4f5   :  { %21041 = vmatpush3.msra.mxu0 %v22848_v2  ;;  %10938 = vmatprep.subr.mxu1 %v22849_v3  ;;  %v10895_v50 = vsub.f32 %v26400_v26, %v10894_v30 }
 0x4f6   :  { %21042 = vmatprep.subr.mxu0 %v22848_v2  ;;  %10939 = vmatpush1.msra.mxu1 %v22849_v3 }
 0x4f7   :  { %21043 = vmatpush3.msra.mxu0 %v22848_v2  ;;  %10973 = vmatprep.mubr.f32.mxu1 %v26387_v35  ;;  %v10896_v34 = vand.u32 4294901760, %v10895_v50 }
 0x4f8   :  { %21044 = vmatprep.subr.mxu0 %v22848_v2  ;;  %10975 = vmatmul.mubr.f32.vlgmr.msra.gmra.mxu1 %v26391_v39 }
 0x4f9   :  { %21045 = vmatpush3.msra.mxu0 %v22848_v2  ;;  %11010 = vmatprep.subr.mxu1 %v22849_v3 }
 0x4fa   :  { %21046 = vmatprep.subr.mxu0 %v22848_v2  ;;  %11011 = vmatpush1.msra.mxu1 %v22849_v3  ;;  %v20675_v28 = vpop.f32.mrf.mxu1 }
 0x4fb   :  { %21047 = vmatpush3.msra.mxu0 %v22848_v2  ;;  %11046 = vmatprep.mubr.f32.mxu1 %v26400_v26 }
 0x4fc   :  { %21048 = vmatprep.subr.mxu0 %v22848_v2  ;;  %21063 = vmatprep.subr.mxu1 %v22848_v2  ;;  %v20676_v43 = vpop.f32.mrf.mxu1 }
 0x4fd   :  { %21049 = vmatpush3.msra.mxu0 %v22848_v2  ;;  %11049 = vmatmul.mubr.f32.vlgmr.msra.gmra.mxu1 %v26407_v27  ;;  %v20677_v53 = vadd.f32 %v20676_v43, %v20675_v28 }
 0x4fe   :  { %21064 = vmatpush3.msra.mxu1 %v22848_v2  ;;  %21050 = vmatprep.subr.mxu0 %v22848_v2 }
 0x4ff   :  { %21065 = vmatprep.subr.mxu1 %v22848_v2  ;;  %21051 = vmatpush3.msra.mxu0 %v22848_v2  ;;  %v9167_v44 = vadd.f32 %v20677_v53, %v9091_v13 }
 0x500   :  { %21066 = vmatpush3.msra.mxu1 %v22848_v2  ;;  %21052 = vmatprep.subr.mxu0 %v22848_v2 }
 0x501   :  { %21067 = vmatprep.subr.mxu1 %v22848_v2  ;;  %21053 = vmatpush3.msra.mxu0 %v22848_v2  ;;  %v9239_v33 = vadd.f32 %v26362_v10, %v9167_v44  ;;  %v11306_v10 = vrot.slane %v11298_v17, %v22893_v16 }
 0x502   :  { %21068 = vmatpush3.msra.mxu1 %v22848_v2  ;;  %21054 = vmatprep.subr.mxu0 %v22848_v2 }
 0x503   :  { %21069 = vmatprep.subr.mxu1 %v22848_v2  ;;  %21055 = vmatpush3.msra.mxu0 %v22848_v2  ;;  %v26560_v29 = vand.u32 4294901760, %v11306_v10 }
 0x504   :  { %21070 = vmatpush3.msra.mxu1 %v22848_v2  ;;  %21056 = vmatprep.subr.mxu0 %v22848_v2 }
 0x505   :  { %21071 = vmatprep.subr.mxu1 %v22848_v2  ;;  %21057 = vmatpush3.msra.mxu0 %v22848_v2  ;;  %v26576_v21 = vsub.f32 %v11306_v10, %v26560_v29 }
 0x506   :  { %21072 = vmatpush3.msra.mxu1 %v22848_v2  ;;  %21058 = vmatprep.subr.mxu0 %v22848_v2 }
 0x507   :  { %21073 = vmatprep.subr.mxu1 %v22848_v2  ;;  %21059 = vmatpush3.msra.mxu0 %v22848_v2  ;;  %v11388_v12 = vand.u32 4294901760, %v26576_v21 }
 0x508   :  { %10897 = vmatprep.mubr.f32.mxu0 %v10896_v34  ;;  %21074 = vmatpush3.msra.mxu1 %v22848_v2  ;;  %v26636_v34 = vld [vmem:[%s28960_s0 + $0x16] ss:$8 sm:$0x3] }
 0x509   :  { %10903 = vmatmul.mubr.f32.vlgmr.msra.gmra.mxu0 %v10902_v49  ;;  %21075 = vmatprep.subr.mxu1 %v22848_v2  ;;  %v11389_v26 = vsub.f32 %v26576_v21, %v11388_v12  ;;  %v26641_v49 = vld [vmem:[%s28960_s0 + $0x46] ss:$8 sm:$0x3] }
 0x50a   :  { %21076 = vmatpush3.msra.mxu1 %v22848_v2  ;;  %11160 = vmatprep.subr.mxu0 %v22849_v3  ;;  %v20710_v52 = vpop.f32.mrf.mxu0 }
 0x50b   :  { %21077 = vmatprep.subr.mxu1 %v22848_v2  ;;  %11161 = vmatpush1.msra.mxu0 %v22849_v3  ;;  %v11390_v43 = vand.u32 4294901760, %v11389_v26 }
 0x50c   :  { %21078 = vmatpush3.msra.mxu1 %v22848_v2  ;;  %11195 = vmatprep.mubr.f32.mxu0 %v26387_v35  ;;  %v20711_v59 = vpop.f32.mrf.mxu0 }
 0x50d   :  { %21098 = vmatprep.subr.mxu0 %v22848_v2  ;;  %21079 = vmatprep.subr.mxu1 %v22848_v2  ;;  %v20712_v41 = vadd.f32 %v20711_v59, %v20710_v52 }
 0x50e   :  { %11197 = vmatmul.mubr.f32.vlgmr.msra.gmra.mxu0 %v26391_v39  ;;  %21080 = vmatpush3.msra.mxu1 %v22848_v2  ;;  %v26458_v42 = vpop.f32.mrf.mxu0 }
 0x50f   :  { %21099 = vmatpush3.msra.mxu0 %v22848_v2  ;;  %21081 = vmatprep.subr.mxu1 %v22848_v2  ;;  %v26462_v45 = vadd.f32 %v20712_v41, %v9239_v33  ;;  %v26654_v41 = vld [vmem:[%s28960_s0] ss:$8 sm:$0x3] }
 0x510   :  { %21100 = vmatprep.subr.mxu0 %v22848_v2  ;;  %21082 = vmatpush3.msra.mxu1 %v22848_v2  ;;  %v9506_v4 = vpop.f32.mrf.mxu0 }
 0x511   :  { %21101 = vmatpush3.msra.mxu0 %v22848_v2  ;;  %21083 = vmatprep.subr.mxu1 %v22848_v2  ;;  %22752 = vrsqrt.f32 %v26462_v45  ;;  %vm9316_vm4 = vcmp.eq.f32.partialorder %v26462_v45, inf  ;;  %v9319_v15 = vand.u32 2147483648, %v26462_v45  ;;  %vm9318_vm5 = vcmp.eq.f32.partialorder %v26462_v45, 0.0 }
 0x512   :  { %21102 = vmatprep.subr.mxu0 %v22848_v2  ;;  %21084 = vmatpush3.msra.mxu1 %v22848_v2 }
 0x513   :  { %21103 = vmatpush3.msra.mxu0 %v22848_v2  ;;  %21085 = vmatprep.subr.mxu1 %v22848_v2  ;;  %v9578_v55 = vpop.f32.mrf.mxu0 }
 0x514   :  { %21104 = vmatprep.subr.mxu0 %v22848_v2  ;;  %21086 = vmatpush3.msra.mxu1 %v22848_v2 }
 0x515   :  { %21105 = vmatpush3.msra.mxu0 %v22848_v2  ;;  %21087 = vmatprep.subr.mxu1 %v22848_v2  ;;  %v9580_v47 = vpop.f32.mrf.mxu0 }
 0x516   :  { %21106 = vmatprep.subr.mxu0 %v22848_v2  ;;  %21088 = vmatpush3.msra.mxu1 %v22848_v2 }
 0x517   :  { %21107 = vmatpush3.msra.mxu0 %v22848_v2  ;;  %21089 = vmatprep.subr.mxu1 %v22848_v2 }
 0x518   :  { %21108 = vmatprep.subr.mxu0 %v22848_v2  ;;  %21090 = vmatpush3.msra.mxu1 %v22848_v2 }
 0x519   :  { %21109 = vmatpush3.msra.mxu0 %v22848_v2  ;;  %21091 = vmatprep.subr.mxu1 %v22848_v2 }
 0x51a   :  { %21110 = vmatprep.subr.mxu0 %v22848_v2  ;;  %21092 = vmatpush3.msra.mxu1 %v22848_v2 }
 0x51b   :  { %21111 = vmatpush3.msra.mxu0 %v22848_v2  ;;  %21093 = vmatprep.subr.mxu1 %v22848_v2 }
 0x51c   :  { %21112 = vmatprep.subr.mxu0 %v22848_v2  ;;  %21094 = vmatpush3.msra.mxu1 %v22848_v2 }
 0x51d   :  { %21113 = vmatpush3.msra.mxu0 %v22848_v2  ;;  %11121 = vmatprep.mubr.f32.mxu1 %v10894_v30  ;;  %v20745_v61 = vpop.f32.mrf.mxu1 }
 0x51e   :  { %v22753_v63 = vpop.eup %22752  ;;  %21114 = vmatprep.subr.mxu0 %v22848_v2  ;;  %11125 = vmatmul.mubr.f32.vlgmr.msra.gmra.mxu1 %v10900_v46 }
 0x51f   :  { %v9315_v0 = vmul.f32 %v22753_v63, %v26462_v45  ;;  %21115 = vmatpush3.msra.mxu0 %v22848_v2  ;;  %21133 = vmatprep.subr.mxu1 %v22848_v2  ;;  %v20746_v1 = vpop.f32.mrf.mxu1 }
 0x520   :  { %21116 = vmatprep.subr.mxu0 %v22848_v2  ;;  %21134 = vmatpush3.msra.mxu1 %v22848_v2  ;;  %v20747_v9 = vadd.f32 %v20746_v1, %v20745_v61 }
 0x521   :  { %v9317_v19 = vsel %vm9316_vm4, %v26462_v45, %v9315_v0  ;;  %21117 = vmatpush3.msra.mxu0 %v22848_v2  ;;  %21135 = vmatprep.subr.mxu1 %v22848_v2  ;;  %v26661_v45 = vld [vmem:[%s28960_s0 + $0x30] ss:$8 sm:$0x3] }
 0x522   :  { %21118 = vmatprep.subr.mxu0 %v22848_v2  ;;  %21136 = vmatpush3.msra.mxu1 %v22848_v2  ;;  %v9505_v14 = vadd.f32 %v20747_v9, %v26458_v42  ;;  %v26526_v38 = vpop.f32.mrf.mxu1  ;;  %v9320_v5 = vsel %vm9318_vm5, %v9319_v15, %v9317_v19  ;;  %v11777_v42 = vsub.f32 %v26654_v41, %v26636_v34 }
 0x523   :  { %21119 = vmatpush3.msra.mxu0 %v22848_v2  ;;  %21137 = vmatprep.subr.mxu1 %v22848_v2  ;;  %v9321_v40 = vsub.f32 %v23789_v23, %v9320_v5  ;;  %v11778_v4 = vsub.f32 %v26661_v45, %v26641_v49 }
 0x524   :  { %21120 = vmatprep.subr.mxu0 %v22848_v2  ;;  %21138 = vmatpush3.msra.mxu1 %v22848_v2  ;;  %v9728_v6 = vpop.f32.mrf.mxu1  ;;  %v9579_v18 = vadd.f32 %v9578_v55, %v9505_v14  ;;  %v11779_v55 = vmul.f32 %v11777_v42, %v11777_v42 }
 0x525   :  { %21121 = vmatpush3.msra.mxu0 %v22848_v2  ;;  %21139 = vmatprep.subr.mxu1 %v22848_v2  ;;  %v9322_v54 = vadd.f32 0.5, %v9321_v40  ;;  %v11780_v47 = vmul.f32 %v11778_v4, %v11778_v4 }
 0x526   :  { %21122 = vmatprep.subr.mxu0 %v22848_v2  ;;  %21140 = vmatpush3.msra.mxu1 %v22848_v2 }
 0x527   :  { %21123 = vmatpush3.msra.mxu0 %v22848_v2  ;;  %21141 = vmatprep.subr.mxu1 %v22848_v2  ;;  %v9323_v8 = vmax.f32 %v9322_v54, 0.0  ;;  %v11783_v51 = vcombine.low %v11779_v55, %v11780_v47 }
 0x528   :  { %21124 = vmatprep.subr.mxu0 %v22848_v2  ;;  %21142 = vmatpush3.msra.mxu1 %v22848_v2 }
 0x529   :  { %21125 = vmatpush3.msra.mxu0 %v22848_v2  ;;  %21143 = vmatprep.subr.mxu1 %v22848_v2  ;;  %v26545_v22 = vadd.f32 %v9323_v8, %v26219_v31  ;;  %v26556_v31 = vand.u32 4294901760, %v11313_v25  ;;  %v11790_v0 = vrot.slane %v11783_v51, %v22893_v16 }
 0x52a   :  { %21126 = vmatprep.subr.mxu0 %v22848_v2  ;;  %21144 = vmatpush3.msra.mxu1 %v22848_v2 }
 0x52b   :  { %21127 = vmatpush3.msra.mxu0 %v22848_v2  ;;  %21145 = vmatprep.subr.mxu1 %v22848_v2  ;;  %v26569_v20 = vsub.f32 %v11313_v25, %v26556_v31  ;;  %v11791_v14 = vcombine.high %v11790_v0, %v11790_v0  ;;  %v11798_v54 = vrot.slane %v11790_v0, %v22893_v16 }
 0x52c   :  { %21128 = vmatprep.subr.mxu0 %v22848_v2  ;;  %21146 = vmatpush3.msra.mxu1 %v22848_v2 }
 0x52d   :  { %21129 = vmatpush3.msra.mxu0 %v22848_v2  ;;  %11267 = vmatprep.mubr.f32.mxu0 %v26387_v35  ;;  %v11382_v13 = vand.u32 4294901760, %v26569_v20  ;;  %v26730_v8 = vand.u32 4294901760, %v11798_v54 }
 0x52e   :  { %21147 = vmatprep.subr.mxu1 %v22848_v2  ;;  %11269 = vmatmul.mubr.f32.vlgmr.msra.gmra.mxu0 %v26391_v39 }
 0x52f   :  { %21148 = vmatpush3.msra.mxu1 %v22848_v2  ;;  %11426 = vmatprep.subr.mxu0 %v22849_v3  ;;  %v11383_v39 = vsub.f32 %v26569_v20, %v11382_v13  ;;  %v26746_v10 = vsub.f32 %v11798_v54, %v26730_v8 }
 0x530   :  { %21149 = vmatprep.subr.mxu1 %v22848_v2  ;;  %11427 = vmatpush1.msra.mxu0 %v22849_v3 }
 0x531   :  { %21150 = vmatpush3.msra.mxu1 %v22848_v2  ;;  %11461 = vmatprep.mubr.f32.mxu0 %v26556_v31  ;;  %v11384_v30 = vand.u32 4294901760, %v11383_v39 }
 0x532   :  { %21151 = vmatprep.subr.mxu1 %v22848_v2  ;;  %11463 = vmatmul.mubr.f32.vlgmr.msra.gmra.mxu0 %v26560_v29 }
 0x533   :  { %21152 = vmatpush3.msra.mxu1 %v22848_v2  ;;  %11498 = vmatprep.subr.mxu0 %v22849_v3 }
 0x534   :  { %21153 = vmatprep.subr.mxu1 %v22848_v2  ;;  %11499 = vmatpush1.msra.mxu0 %v22849_v3  ;;  %v20780_v56 = vpop.f32.mrf.mxu0 }
 0x535   :  { %21154 = vmatpush3.msra.mxu1 %v22848_v2  ;;  %11534 = vmatprep.mubr.f32.mxu0 %v26569_v20 }
 0x536   :  { %21155 = vmatprep.subr.mxu1 %v22848_v2  ;;  %21168 = vmatprep.subr.mxu0 %v22848_v2  ;;  %v20781_v36 = vpop.f32.mrf.mxu0 }
 0x537   :  { %21156 = vmatpush3.msra.mxu1 %v22848_v2  ;;  %11537 = vmatmul.mubr.f32.vlgmr.msra.gmra.mxu0 %v26576_v21  ;;  %v20782_v35 = vadd.f32 %v20781_v36, %v20780_v56  ;;  %v11880_v21 = vand.u32 4294901760, %v26746_v10 }
 0x538   :  { %21169 = vmatpush3.msra.mxu0 %v22848_v2  ;;  %21157 = vmatprep.subr.mxu1 %v22848_v2 }
 0x539   :  { %21170 = vmatprep.subr.mxu0 %v22848_v2  ;;  %21158 = vmatpush3.msra.mxu1 %v22848_v2  ;;  %v9655_v27 = vadd.f32 %v20782_v35, %v9579_v18  ;;  %v11805_v18 = vrot.slane %v11791_v14, %v22893_v16  ;;  %v11881_v36 = vsub.f32 %v26746_v10, %v11880_v21 }
 0x53a   :  { %21171 = vmatpush3.msra.mxu0 %v22848_v2  ;;  %21159 = vmatprep.subr.mxu1 %v22848_v2 }
 0x53b   :  { %21172 = vmatprep.subr.mxu0 %v22848_v2  ;;  %21160 = vmatpush3.msra.mxu1 %v22848_v2  ;;  %v9727_v28 = vadd.f32 %v26526_v38, %v9655_v27  ;;  %v11882_v26 = vand.u32 4294901760, %v11881_v36 }
 0x53c   :  { %21173 = vmatpush3.msra.mxu0 %v22848_v2  ;;  %21161 = vmatprep.subr.mxu1 %v22848_v2 }
 0x53d   :  { %21174 = vmatprep.subr.mxu0 %v22848_v2  ;;  %21162 = vmatpush3.msra.mxu1 %v22848_v2 }
 0x53e   :  { %21175 = vmatpush3.msra.mxu0 %v22848_v2  ;;  %21163 = vmatprep.subr.mxu1 %v22848_v2 }
 0x53f   :  { %21176 = vmatprep.subr.mxu0 %v22848_v2  ;;  %21164 = vmatpush3.msra.mxu1 %v22848_v2 }
 0x540   :  { %11385 = vmatprep.mubr.f32.mxu1 %v11384_v30  ;;  %21177 = vmatpush3.msra.mxu0 %v22848_v2 }
 0x541   :  { %11391 = vmatmul.mubr.f32.vlgmr.msra.gmra.mxu1 %v11390_v43  ;;  %21178 = vmatprep.subr.mxu0 %v22848_v2 }
 0x542   :  { %11648 = vmatprep.subr.mxu1 %v22849_v3  ;;  %21179 = vmatpush3.msra.mxu0 %v22848_v2  ;;  %v20815_v46 = vpop.f32.mrf.mxu1 }
 0x543   :  { %11649 = vmatpush1.msra.mxu1 %v22849_v3  ;;  %21180 = vmatprep.subr.mxu0 %v22848_v2 }
 0x544   :  { %21181 = vmatpush3.msra.mxu0 %v22848_v2  ;;  %11683 = vmatprep.mubr.f32.mxu1 %v26556_v31  ;;  %v20816_v53 = vpop.f32.mrf.mxu1 }
 0x545   :  { %21203 = vmatprep.subr.mxu1 %v22848_v2  ;;  %21182 = vmatprep.subr.mxu0 %v22848_v2  ;;  %v20817_v44 = vadd.f32 %v20816_v53, %v20815_v46 }
 0x546   :  { %11685 = vmatmul.mubr.f32.vlgmr.msra.gmra.mxu1 %v26560_v29  ;;  %21183 = vmatpush3.msra.mxu0 %v22848_v2  ;;  %v26623_v50 = vpop.f32.mrf.mxu1 }
 0x547   :  { %21204 = vmatpush3.msra.mxu1 %v22848_v2  ;;  %21184 = vmatprep.subr.mxu0 %v22848_v2  ;;  %v9799_v32 = vadd.f32 %v20817_v44, %v9727_v28 }
 0x548   :  { %21205 = vmatprep.subr.mxu1 %v22848_v2  ;;  %21185 = vmatpush3.msra.mxu0 %v22848_v2  ;;  %v9998_v33 = vpop.f32.mrf.mxu1 }
 0x549   :  { %21206 = vmatpush3.msra.mxu1 %v22848_v2  ;;  %21186 = vmatprep.subr.mxu0 %v22848_v2  ;;  %22754 = vrsqrt.f32 %v9799_v32  ;;  %vm9804_vm6 = vcmp.eq.f32.partialorder %v9799_v32, inf  ;;  %v9807_v61 = vand.u32 2147483648, %v9799_v32  ;;  %vm9806_vm7 = vcmp.eq.f32.partialorder %v9799_v32, 0.0 }
 0x54a   :  { %21207 = vmatprep.subr.mxu1 %v22848_v2  ;;  %21187 = vmatpush3.msra.mxu0 %v22848_v2  ;;  %v12266_v33 = vsub.f32 %v26641_v49, %v26487_v57 }
 0x54b   :  { %21208 = vmatpush3.msra.mxu1 %v22848_v2  ;;  %21188 = vmatprep.subr.mxu0 %v22848_v2  ;;  %v26645_v52 = vpop.f32.mrf.mxu1 }
 0x54c   :  { %21209 = vmatprep.subr.mxu1 %v22848_v2  ;;  %21189 = vmatpush3.msra.mxu0 %v22848_v2 }
 0x54d   :  { %21210 = vmatpush3.msra.mxu1 %v22848_v2  ;;  %21190 = vmatprep.subr.mxu0 %v22848_v2  ;;  %v10072_v59 = vpop.f32.mrf.mxu1 }
 0x54e   :  { %21211 = vmatprep.subr.mxu1 %v22848_v2  ;;  %21191 = vmatpush3.msra.mxu0 %v22848_v2 }
 0x54f   :  { %21212 = vmatpush3.msra.mxu1 %v22848_v2  ;;  %21192 = vmatprep.subr.mxu0 %v22848_v2 }
 0x550   :  { %21213 = vmatprep.subr.mxu1 %v22848_v2  ;;  %21193 = vmatpush3.msra.mxu0 %v22848_v2 }
 0x551   :  { %21214 = vmatpush3.msra.mxu1 %v22848_v2  ;;  %21194 = vmatprep.subr.mxu0 %v22848_v2 }
 0x552   :  { %21215 = vmatprep.subr.mxu1 %v22848_v2  ;;  %21195 = vmatpush3.msra.mxu0 %v22848_v2 }
 0x553   :  { %21216 = vmatpush3.msra.mxu1 %v22848_v2  ;;  %21196 = vmatprep.subr.mxu0 %v22848_v2 }
 0x554   :  { %21217 = vmatprep.subr.mxu1 %v22848_v2  ;;  %21197 = vmatpush3.msra.mxu0 %v22848_v2 }
 0x555   :  { %21218 = vmatpush3.msra.mxu1 %v22848_v2  ;;  %21198 = vmatprep.subr.mxu0 %v22848_v2 }
 0x556   :  { %v22755_v58 = vpop.eup %22754  ;;  %21219 = vmatprep.subr.mxu1 %v22848_v2  ;;  %21199 = vmatpush3.msra.mxu0 %v22848_v2 }
 0x557   :  { %v9803_v60 = vmul.f32 %v22755_v58, %v9799_v32  ;;  %21220 = vmatpush3.msra.mxu1 %v22848_v2  ;;  %11609 = vmatprep.mubr.f32.mxu0 %v11382_v13  ;;  %v20850_v24 = vpop.f32.mrf.mxu0 }
 0x558   :  { %21221 = vmatprep.subr.mxu1 %v22848_v2  ;;  %11613 = vmatmul.mubr.f32.vlgmr.msra.gmra.mxu0 %v11388_v12 }
 0x559   :  { %v9805_v62 = vsel %vm9804_vm6, %v9799_v32, %v9803_v60  ;;  %21222 = vmatpush3.msra.mxu1 %v22848_v2  ;;  %21238 = vmatprep.subr.mxu0 %v22848_v2  ;;  %v20851_v63 = vpop.f32.mrf.mxu0  ;;  %v12265_v32 = vsub.f32 %v26636_v34, %v26480_v48  ;;  %v12268_v34 = vmul.f32 %v12266_v33, %v12266_v33 }
 0x55a   :  { %v9808_v1 = vsel %vm9806_vm7, %v9807_v61, %v9805_v62  ;;  %21223 = vmatprep.subr.mxu1 %v22848_v2  ;;  %21239 = vmatpush3.msra.mxu0 %v22848_v2  ;;  %v20852_v15 = vadd.f32 %v20851_v63, %v20850_v24 }
 0x55b   :  { %21224 = vmatpush3.msra.mxu1 %v22848_v2  ;;  %21240 = vmatprep.subr.mxu0 %v22848_v2  ;;  %v9809_v9 = vsub.f32 %v23789_v23, %v9808_v1  ;;  %v12267_v48 = vmul.f32 %v12265_v32, %v12265_v32 }
 0x55c   :  { %21225 = vmatprep.subr.mxu1 %v22848_v2  ;;  %21241 = vmatpush3.msra.mxu0 %v22848_v2  ;;  %v9997_v19 = vadd.f32 %v20852_v15, %v26623_v50  ;;  %v26700_v17 = vpop.f32.mrf.mxu0 }
 0x55d   :  { %21226 = vmatpush3.msra.mxu1 %v22848_v2  ;;  %21242 = vmatprep.subr.mxu0 %v22848_v2  ;;  %v9810_v38 = vadd.f32 0.2, %v9809_v9  ;;  %v12271_v49 = vcombine.low %v12267_v48, %v12268_v34 }
 0x55e   :  { %21227 = vmatprep.subr.mxu1 %v22848_v2  ;;  %21243 = vmatpush3.msra.mxu0 %v22848_v2  ;;  %v10220_v5 = vpop.f32.mrf.mxu0  ;;  %v10071_v40 = vadd.f32 %v26645_v52, %v9997_v19 }
 0x55f   :  { %21228 = vmatpush3.msra.mxu1 %v22848_v2  ;;  %21244 = vmatprep.subr.mxu0 %v22848_v2  ;;  %v9811_v6 = vmax.f32 %v9810_v38, 0.0  ;;  %v12278_v51 = vrot.slane %v12271_v49, %v22893_v16 }
 0x560   :  { %21229 = vmatprep.subr.mxu1 %v22848_v2  ;;  %21245 = vmatpush3.msra.mxu0 %v22848_v2 }
 0x561   :  { %21230 = vmatpush3.msra.mxu1 %v22848_v2  ;;  %21246 = vmatprep.subr.mxu0 %v22848_v2  ;;  %v26715_v7 = vadd.f32 %v9811_v6, %v26376_v37  ;;  %v26726_v37 = vand.u32 4294901760, %v11805_v18  ;;  %v12279_v0 = vcombine.high %v12278_v51, %v12278_v51 }
 0x562   :  { %21231 = vmatprep.subr.mxu1 %v22848_v2  ;;  %21247 = vmatpush3.msra.mxu0 %v22848_v2 }
 0x563   :  { %21232 = vmatpush3.msra.mxu1 %v22848_v2  ;;  %21248 = vmatprep.subr.mxu0 %v22848_v2  ;;  %v26739_v25 = vsub.f32 %v11805_v18, %v26726_v37  ;;  %v12293_v9 = vrot.slane %v12279_v0, %v22893_v16 }
 0x564   :  { %21233 = vmatprep.subr.mxu1 %v22848_v2  ;;  %21249 = vmatpush3.msra.mxu0 %v22848_v2 }
 0x565   :  { %21234 = vmatpush3.msra.mxu1 %v22848_v2  ;;  %11755 = vmatprep.mubr.f32.mxu1 %v26556_v31 }
 0x566   :  { %21250 = vmatprep.subr.mxu0 %v22848_v2  ;;  %11757 = vmatmul.mubr.f32.vlgmr.msra.gmra.mxu1 %v26560_v29  ;;  %v11874_v29 = vand.u32 4294901760, %v26739_v25 }
 0x567   :  { %21251 = vmatpush3.msra.mxu0 %v22848_v2  ;;  %11918 = vmatprep.subr.mxu1 %v22849_v3 }
 0x568   :  { %21252 = vmatprep.subr.mxu0 %v22848_v2  ;;  %11919 = vmatpush1.msra.mxu1 %v22849_v3  ;;  %v11875_v12 = vsub.f32 %v26739_v25, %v11874_v29 }
 0x569   :  { %21253 = vmatpush3.msra.mxu0 %v22848_v2  ;;  %11953 = vmatprep.mubr.f32.mxu1 %v26726_v37 }
 0x56a   :  { %21254 = vmatprep.subr.mxu0 %v22848_v2  ;;  %11955 = vmatmul.mubr.f32.vlgmr.msra.gmra.mxu1 %v26730_v8  ;;  %v11876_v39 = vand.u32 4294901760, %v11875_v12 }
 0x56b   :  { %21255 = vmatpush3.msra.mxu0 %v22848_v2  ;;  %11990 = vmatprep.subr.mxu1 %v22849_v3 }
 0x56c   :  { %21256 = vmatprep.subr.mxu0 %v22848_v2  ;;  %11991 = vmatpush1.msra.mxu1 %v22849_v3  ;;  %v20885_v31 = vpop.f32.mrf.mxu1 }
 0x56d   :  { %21257 = vmatpush3.msra.mxu0 %v22848_v2  ;;  %12026 = vmatprep.mubr.f32.mxu1 %v26739_v25 }
 0x56e   :  { %21258 = vmatprep.subr.mxu0 %v22848_v2  ;;  %21273 = vmatprep.subr.mxu1 %v22848_v2  ;;  %v20886_v20 = vpop.f32.mrf.mxu1 }
 0x56f   :  { %21259 = vmatpush3.msra.mxu0 %v22848_v2  ;;  %12029 = vmatmul.mubr.f32.vlgmr.msra.gmra.mxu1 %v26746_v10  ;;  %v20887_v13 = vadd.f32 %v20886_v20, %v20885_v31 }
 0x570   :  { %21274 = vmatpush3.msra.mxu1 %v22848_v2  ;;  %21260 = vmatprep.subr.mxu0 %v22848_v2 }
 0x571   :  { %21275 = vmatprep.subr.mxu1 %v22848_v2  ;;  %21261 = vmatpush3.msra.mxu0 %v22848_v2  ;;  %v10147_v56 = vadd.f32 %v20887_v13, %v10071_v40 }
 0x572   :  { %21276 = vmatpush3.msra.mxu1 %v22848_v2  ;;  %21262 = vmatprep.subr.mxu0 %v22848_v2 }
 0x573   :  { %21277 = vmatprep.subr.mxu1 %v22848_v2  ;;  %21263 = vmatpush3.msra.mxu0 %v22848_v2  ;;  %v10219_v35 = vadd.f32 %v26700_v17, %v10147_v56  ;;  %v12286_v17 = vrot.slane %v12278_v51, %v22893_v16 }
 0x574   :  { %21278 = vmatpush3.msra.mxu1 %v22848_v2  ;;  %21264 = vmatprep.subr.mxu0 %v22848_v2 }
 0x575   :  { %21279 = vmatprep.subr.mxu1 %v22848_v2  ;;  %21265 = vmatpush3.msra.mxu0 %v22848_v2  ;;  %v26878_v14 = vand.u32 4294901760, %v12286_v17 }
 0x576   :  { %21280 = vmatpush3.msra.mxu1 %v22848_v2  ;;  %21266 = vmatprep.subr.mxu0 %v22848_v2 }
 0x577   :  { %21281 = vmatprep.subr.mxu1 %v22848_v2  ;;  %21267 = vmatpush3.msra.mxu0 %v22848_v2  ;;  %v26894_v5 = vsub.f32 %v12286_v17, %v26878_v14 }
 0x578   :  { %21282 = vmatpush3.msra.mxu1 %v22848_v2  ;;  %21268 = vmatprep.subr.mxu0 %v22848_v2 }
 0x579   :  { %21283 = vmatprep.subr.mxu1 %v22848_v2  ;;  %21269 = vmatpush3.msra.mxu0 %v22848_v2  ;;  %v12368_v18 = vand.u32 4294901760, %v26894_v5 }
 0x57a   :  { %11877 = vmatprep.mubr.f32.mxu0 %v11876_v39  ;;  %21284 = vmatpush3.msra.mxu1 %v22848_v2  ;;  %v26954_v39 = vld [vmem:[%s28960_s0 + $0x17] ss:$8 sm:$0x3] }
 0x57b   :  { %11883 = vmatmul.mubr.f32.vlgmr.msra.gmra.mxu0 %v11882_v26  ;;  %21285 = vmatprep.subr.mxu1 %v22848_v2  ;;  %v12369_v25 = vsub.f32 %v26894_v5, %v12368_v18  ;;  %v26959_v26 = vld [vmem:[%s28960_s0 + $0x47] ss:$8 sm:$0x3] }
 0x57c   :  { %21286 = vmatpush3.msra.mxu1 %v22848_v2  ;;  %12140 = vmatprep.subr.mxu0 %v22849_v3  ;;  %v20920_v27 = vpop.f32.mrf.mxu0 }
 0x57d   :  { %21287 = vmatprep.subr.mxu1 %v22848_v2  ;;  %12141 = vmatpush1.msra.mxu0 %v22849_v3  ;;  %v12370_v20 = vand.u32 4294901760, %v12369_v25 }
 0x57e   :  { %21288 = vmatpush3.msra.mxu1 %v22848_v2  ;;  %12175 = vmatprep.mubr.f32.mxu0 %v26726_v37  ;;  %v20921_v28 = vpop.f32.mrf.mxu0 }
 0x57f   :  { %21308 = vmatprep.subr.mxu0 %v22848_v2  ;;  %21289 = vmatprep.subr.mxu1 %v22848_v2  ;;  %v20922_v30 = vadd.f32 %v20921_v28, %v20920_v27 }
 0x580   :  { %12177 = vmatmul.mubr.f32.vlgmr.msra.gmra.mxu0 %v26730_v8  ;;  %21290 = vmatpush3.msra.mxu1 %v22848_v2  ;;  %v10484_v43 = vpop.f32.mrf.mxu0 }
 0x581   :  { %21309 = vmatpush3.msra.mxu0 %v22848_v2  ;;  %21291 = vmatprep.subr.mxu1 %v22848_v2  ;;  %v10291_v46 = vadd.f32 %v20922_v30, %v10219_v35  ;;  %v12757_v30 = vsub.f32 %v26654_v41, %v26954_v39 }
 0x582   :  { %21310 = vmatprep.subr.mxu0 %v22848_v2  ;;  %21292 = vmatpush3.msra.mxu1 %v22848_v2  ;;  %v10486_v53 = vpop.f32.mrf.mxu0 }
 0x583   :  { %21311 = vmatpush3.msra.mxu0 %v22848_v2  ;;  %21293 = vmatprep.subr.mxu1 %v22848_v2  ;;  %22756 = vrsqrt.f32 %v10291_v46  ;;  %vm10296_vm8 = vcmp.eq.f32.partialorder %v10291_v46, inf  ;;  %v10299_v4 = vand.u32 2147483648, %v10291_v46  ;;  %vm10298_vm9 = vcmp.eq.f32.partialorder %v10291_v46, 0.0 }
 0x584   :  { %21312 = vmatprep.subr.mxu0 %v22848_v2  ;;  %21294 = vmatpush3.msra.mxu1 %v22848_v2  ;;  %v12759_v41 = vmul.f32 %v12757_v30, %v12757_v30 }
 0x585   :  { %21313 = vmatpush3.msra.mxu0 %v22848_v2  ;;  %21295 = vmatprep.subr.mxu1 %v22848_v2  ;;  %v10558_v44 = vpop.f32.mrf.mxu0 }
 0x586   :  { %21314 = vmatprep.subr.mxu0 %v22848_v2  ;;  %21296 = vmatpush3.msra.mxu1 %v22848_v2 }
 0x587   :  { %21315 = vmatpush3.msra.mxu0 %v22848_v2  ;;  %21297 = vmatprep.subr.mxu1 %v22848_v2  ;;  %v10560_v50 = vpop.f32.mrf.mxu0 }
 0x588   :  { %21316 = vmatprep.subr.mxu0 %v22848_v2  ;;  %21298 = vmatpush3.msra.mxu1 %v22848_v2 }
 0x589   :  { %21317 = vmatpush3.msra.mxu0 %v22848_v2  ;;  %21299 = vmatprep.subr.mxu1 %v22848_v2 }
 0x58a   :  { %21318 = vmatprep.subr.mxu0 %v22848_v2  ;;  %21300 = vmatpush3.msra.mxu1 %v22848_v2 }
 0x58b   :  { %21319 = vmatpush3.msra.mxu0 %v22848_v2  ;;  %21301 = vmatprep.subr.mxu1 %v22848_v2 }
 0x58c   :  { %21320 = vmatprep.subr.mxu0 %v22848_v2  ;;  %21302 = vmatpush3.msra.mxu1 %v22848_v2 }
 0x58d   :  { %21321 = vmatpush3.msra.mxu0 %v22848_v2  ;;  %21303 = vmatprep.subr.mxu1 %v22848_v2 }
 0x58e   :  { %21322 = vmatprep.subr.mxu0 %v22848_v2  ;;  %21304 = vmatpush3.msra.mxu1 %v22848_v2 }
 0x58f   :  { %21323 = vmatpush3.msra.mxu0 %v22848_v2  ;;  %12101 = vmatprep.mubr.f32.mxu1 %v11874_v29  ;;  %v20955_v57 = vpop.f32.mrf.mxu1 }
 0x590   :  { %v22757_v52 = vpop.eup %22756  ;;  %21324 = vmatprep.subr.mxu0 %v22848_v2  ;;  %12105 = vmatmul.mubr.f32.vlgmr.msra.gmra.mxu1 %v11880_v21 }
 0x591   :  { %v10295_v59 = vmul.f32 %v22757_v52, %v10291_v46  ;;  %21325 = vmatpush3.msra.mxu0 %v22848_v2  ;;  %21343 = vmatprep.subr.mxu1 %v22848_v2  ;;  %v20956_v42 = vpop.f32.mrf.mxu1 }
 0x592   :  { %21326 = vmatprep.subr.mxu0 %v22848_v2  ;;  %21344 = vmatpush3.msra.mxu1 %v22848_v2  ;;  %v20957_v55 = vadd.f32 %v20956_v42, %v20955_v57 }
 0x593   :  { %v10297_v47 = vsel %vm10296_vm8, %v10291_v46, %v10295_v59  ;;  %21327 = vmatpush3.msra.mxu0 %v22848_v2  ;;  %21345 = vmatprep.subr.mxu1 %v22848_v2 }
 0x594   :  { %21328 = vmatprep.subr.mxu0 %v22848_v2  ;;  %21346 = vmatpush3.msra.mxu1 %v22848_v2  ;;  %v10485_v58 = vadd.f32 %v20957_v55, %v10484_v43  ;;  %v26844_v60 = vpop.f32.mrf.mxu1  ;;  %v10300_v24 = vsel %vm10298_vm9, %v10299_v4, %v10297_v47  ;;  %v12758_v43 = vsub.f32 %v26661_v45, %v26959_v26 }
 0x595   :  { %21329 = vmatpush3.msra.mxu0 %v22848_v2  ;;  %21347 = vmatprep.subr.mxu1 %v22848_v2  ;;  %v10301_v61 = vsub.f32 %v23789_v23, %v10300_v24 }
 0x596   :  { %21330 = vmatprep.subr.mxu0 %v22848_v2  ;;  %21348 = vmatpush3.msra.mxu1 %v22848_v2  ;;  %v10708_v62 = vpop.f32.mrf.mxu1  ;;  %v10559_v63 = vadd.f32 %v10558_v44, %v10485_v58  ;;  %v12760_v46 = vmul.f32 %v12758_v43, %v12758_v43 }
 0x597   :  { %21331 = vmatpush3.msra.mxu0 %v22848_v2  ;;  %21349 = vmatprep.subr.mxu1 %v22848_v2  ;;  %v10302_v1 = vadd.f32 0.5, %v10301_v61 }
 0x598   :  { %21332 = vmatprep.subr.mxu0 %v22848_v2  ;;  %21350 = vmatpush3.msra.mxu1 %v22848_v2  ;;  %v12763_v45 = vcombine.low %v12759_v41, %v12760_v46 }
 0x599   :  { %21333 = vmatpush3.msra.mxu0 %v22848_v2  ;;  %21351 = vmatprep.subr.mxu1 %v22848_v2  ;;  %v10303_v15 = vmax.f32 %v10302_v1, 0.0 }
 0x59a   :  { %21334 = vmatprep.subr.mxu0 %v22848_v2  ;;  %21352 = vmatpush3.msra.mxu1 %v22848_v2  ;;  %v12770_v34 = vrot.slane %v12763_v45, %v22893_v16 }
 0x59b   :  { %21335 = vmatpush3.msra.mxu0 %v22848_v2  ;;  %21353 = vmatprep.subr.mxu1 %v22848_v2  ;;  %v26863_v19 = vadd.f32 %v10303_v15, %v26545_v22  ;;  %v26874_v22 = vand.u32 4294901760, %v12293_v9 }
 0x59c   :  { %21336 = vmatprep.subr.mxu0 %v22848_v2  ;;  %21354 = vmatpush3.msra.mxu1 %v22848_v2  ;;  %v12771_v4 = vcombine.high %v12770_v34, %v12770_v34  ;;  %v12778_v61 = vrot.slane %v12770_v34, %v22893_v16 }
 0x59d   :  { %21337 = vmatpush3.msra.mxu0 %v22848_v2  ;;  %21355 = vmatprep.subr.mxu1 %v22848_v2  ;;  %v26887_v38 = vsub.f32 %v12293_v9, %v26874_v22 }
 0x59e   :  { %21338 = vmatprep.subr.mxu0 %v22848_v2  ;;  %21356 = vmatpush3.msra.mxu1 %v22848_v2  ;;  %v27035_v62 = vand.u32 4294901760, %v12778_v61 }
 0x59f   :  { %21339 = vmatpush3.msra.mxu0 %v22848_v2  ;;  %12247 = vmatprep.mubr.f32.mxu0 %v26726_v37  ;;  %v12362_v40 = vand.u32 4294901760, %v26887_v38 }
 0x5a0   :  { %21357 = vmatprep.subr.mxu1 %v22848_v2  ;;  %12249 = vmatmul.mubr.f32.vlgmr.msra.gmra.mxu0 %v26730_v8  ;;  %v27051_v0 = vsub.f32 %v12778_v61, %v27035_v62 }
 0x5a1   :  { %21358 = vmatpush3.msra.mxu1 %v22848_v2  ;;  %12406 = vmatprep.subr.mxu0 %v22849_v3  ;;  %v12363_v8 = vsub.f32 %v26887_v38, %v12362_v40 }
 0x5a2   :  { %21359 = vmatprep.subr.mxu1 %v22848_v2  ;;  %12407 = vmatpush1.msra.mxu0 %v22849_v3  ;;  %v12860_v17 = vand.u32 4294901760, %v27051_v0 }
 0x5a3   :  { %21360 = vmatpush3.msra.mxu1 %v22848_v2  ;;  %12441 = vmatprep.mubr.f32.mxu0 %v26874_v22  ;;  %v12364_v29 = vand.u32 4294901760, %v12363_v8 }
 0x5a4   :  { %21361 = vmatprep.subr.mxu1 %v22848_v2  ;;  %12443 = vmatmul.mubr.f32.vlgmr.msra.gmra.mxu0 %v26878_v14 }
 0x5a5   :  { %21362 = vmatpush3.msra.mxu1 %v22848_v2  ;;  %12478 = vmatprep.subr.mxu0 %v22849_v3 }
 0x5a6   :  { %21363 = vmatprep.subr.mxu1 %v22848_v2  ;;  %12479 = vmatpush1.msra.mxu0 %v22849_v3  ;;  %v20990_v6 = vpop.f32.mrf.mxu0 }
 0x5a7   :  { %21364 = vmatpush3.msra.mxu1 %v22848_v2  ;;  %12514 = vmatprep.mubr.f32.mxu0 %v26887_v38 }
 0x5a8   :  { %21365 = vmatprep.subr.mxu1 %v22848_v2  ;;  %21378 = vmatprep.subr.mxu0 %v22848_v2  ;;  %v20991_v54 = vpop.f32.mrf.mxu0 }
 0x5a9   :  { %21366 = vmatpush3.msra.mxu1 %v22848_v2  ;;  %12517 = vmatmul.mubr.f32.vlgmr.msra.gmra.mxu0 %v26894_v5  ;;  %v20992_v37 = vadd.f32 %v20991_v54, %v20990_v6  ;;  %v12861_v5 = vsub.f32 %v27051_v0, %v12860_v17 }
 0x5aa   :  { %21379 = vmatpush3.msra.mxu0 %v22848_v2  ;;  %21367 = vmatprep.subr.mxu1 %v22848_v2 }
 0x5ab   :  { %21380 = vmatprep.subr.mxu0 %v22848_v2  ;;  %21368 = vmatpush3.msra.mxu1 %v22848_v2  ;;  %v10635_v10 = vadd.f32 %v20992_v37, %v10559_v63 }
 0x5ac   :  { %21381 = vmatpush3.msra.mxu0 %v22848_v2  ;;  %21369 = vmatprep.subr.mxu1 %v22848_v2 }
 0x5ad   :  { %21382 = vmatprep.subr.mxu0 %v22848_v2  ;;  %21370 = vmatpush3.msra.mxu1 %v22848_v2  ;;  %v10707_v31 = vadd.f32 %v26844_v60, %v10635_v10  ;;  %v12785_v60 = vrot.slane %v12771_v4, %v22893_v16 }
 0x5ae   :  { %21383 = vmatpush3.msra.mxu0 %v22848_v2  ;;  %21371 = vmatprep.subr.mxu1 %v22848_v2 }
 0x5af   :  { %21384 = vmatprep.subr.mxu0 %v22848_v2  ;;  %21372 = vmatpush3.msra.mxu1 %v22848_v2 }
 0x5b0   :  { %21385 = vmatpush3.msra.mxu0 %v22848_v2  ;;  %21373 = vmatprep.subr.mxu1 %v22848_v2 }
 0x5b1   :  { %21386 = vmatprep.subr.mxu0 %v22848_v2  ;;  %21374 = vmatpush3.msra.mxu1 %v22848_v2 }
 0x5b2   :  { %12365 = vmatprep.mubr.f32.mxu1 %v12364_v29  ;;  %21387 = vmatpush3.msra.mxu0 %v22848_v2 }
 0x5b3   :  { %12371 = vmatmul.mubr.f32.vlgmr.msra.gmra.mxu1 %v12370_v20  ;;  %21388 = vmatprep.subr.mxu0 %v22848_v2 }
 0x5b4   :  { %12628 = vmatprep.subr.mxu1 %v22849_v3  ;;  %21389 = vmatpush3.msra.mxu0 %v22848_v2  ;;  %v21025_v21 = vpop.f32.mrf.mxu1 }
 0x5b5   :  { %12629 = vmatpush1.msra.mxu1 %v22849_v3  ;;  %21390 = vmatprep.subr.mxu0 %v22848_v2 }
 0x5b6   :  { %21391 = vmatpush3.msra.mxu0 %v22848_v2  ;;  %12663 = vmatprep.mubr.f32.mxu1 %v26874_v22  ;;  %v21026_v13 = vpop.f32.mrf.mxu1 }
 0x5b7   :  { %21413 = vmatprep.subr.mxu1 %v22848_v2  ;;  %21392 = vmatprep.subr.mxu0 %v22848_v2  ;;  %v21027_v56 = vadd.f32 %v21026_v13, %v21025_v21  ;;  %v27124_v21 = vld [vmem:[%s28960_s0 + $0x25] ss:$8 sm:$0x3] }
 0x5b8   :  { %12665 = vmatmul.mubr.f32.vlgmr.msra.gmra.mxu1 %v26878_v14  ;;  %21393 = vmatpush3.msra.mxu0 %v22848_v2  ;;  %v26941_v12 = vpop.f32.mrf.mxu1  ;;  %v13245_v13 = vsub.f32 %v26954_v39, %v27124_v21 }
 0x5b9   :  { %21414 = vmatpush3.msra.mxu1 %v22848_v2  ;;  %21394 = vmatprep.subr.mxu0 %v22848_v2  ;;  %v10779_v36 = vadd.f32 %v21027_v56, %v10707_v31  ;;  %v27131_v56 = vld [vmem:[%s28960_s0 + $0x55] ss:$8 sm:$0x3] }
 0x5ba   :  { %21415 = vmatprep.subr.mxu1 %v22848_v2  ;;  %21395 = vmatpush3.msra.mxu0 %v22848_v2  ;;  %v10978_v35 = vpop.f32.mrf.mxu1 }
 0x5bb   :  { %21416 = vmatpush3.msra.mxu1 %v22848_v2  ;;  %21396 = vmatprep.subr.mxu0 %v22848_v2  ;;  %22758 = vrsqrt.f32 %v10779_v36  ;;  %vm10784_vm10 = vcmp.eq.f32.partialorder %v10779_v36, inf  ;;  %v10787_v32 = vand.u32 2147483648, %v10779_v36  ;;  %vm10786_vm11 = vcmp.eq.f32.partialorder %v10779_v36, 0.0 }
 0x5bc   :  { %21417 = vmatprep.subr.mxu1 %v22848_v2  ;;  %21397 = vmatpush3.msra.mxu0 %v22848_v2 }
 0x5bd   :  { %21418 = vmatpush3.msra.mxu1 %v22848_v2  ;;  %21398 = vmatprep.subr.mxu0 %v22848_v2  ;;  %v11050_v27 = vpop.f32.mrf.mxu1 }
 0x5be   :  { %21419 = vmatprep.subr.mxu1 %v22848_v2  ;;  %21399 = vmatpush3.msra.mxu0 %v22848_v2 }
 0x5bf   :  { %21420 = vmatpush3.msra.mxu1 %v22848_v2  ;;  %21400 = vmatprep.subr.mxu0 %v22848_v2  ;;  %v11052_v28 = vpop.f32.mrf.mxu1 }
 0x5c0   :  { %21421 = vmatprep.subr.mxu1 %v22848_v2  ;;  %21401 = vmatpush3.msra.mxu0 %v22848_v2 }
 0x5c1   :  { %21422 = vmatpush3.msra.mxu1 %v22848_v2  ;;  %21402 = vmatprep.subr.mxu0 %v22848_v2 }
 0x5c2   :  { %21423 = vmatprep.subr.mxu1 %v22848_v2  ;;  %21403 = vmatpush3.msra.mxu0 %v22848_v2 }
 0x5c3   :  { %21424 = vmatpush3.msra.mxu1 %v22848_v2  ;;  %21404 = vmatprep.subr.mxu0 %v22848_v2 }
 0x5c4   :  { %21425 = vmatprep.subr.mxu1 %v22848_v2  ;;  %21405 = vmatpush3.msra.mxu0 %v22848_v2 }
 0x5c5   :  { %21426 = vmatpush3.msra.mxu1 %v22848_v2  ;;  %21406 = vmatprep.subr.mxu0 %v22848_v2 }
 0x5c6   :  { %21427 = vmatprep.subr.mxu1 %v22848_v2  ;;  %21407 = vmatpush3.msra.mxu0 %v22848_v2 }
 0x5c7   :  { %21428 = vmatpush3.msra.mxu1 %v22848_v2  ;;  %21408 = vmatprep.subr.mxu0 %v22848_v2 }
 0x5c8   :  { %v22759_v53 = vpop.eup %22758  ;;  %21429 = vmatprep.subr.mxu1 %v22848_v2  ;;  %21409 = vmatpush3.msra.mxu0 %v22848_v2 }
 0x5c9   :  { %v10783_v44 = vmul.f32 %v22759_v53, %v10779_v36  ;;  %21430 = vmatpush3.msra.mxu1 %v22848_v2  ;;  %12589 = vmatprep.mubr.f32.mxu0 %v12362_v40  ;;  %v21060_v50 = vpop.f32.mrf.mxu0 }
 0x5ca   :  { %21431 = vmatprep.subr.mxu1 %v22848_v2  ;;  %12593 = vmatmul.mubr.f32.vlgmr.msra.gmra.mxu0 %v12368_v18  ;;  %v12862_v18 = vand.u32 4294901760, %v12861_v5 }
 0x5cb   :  { %v10785_v33 = vsel %vm10784_vm10, %v10779_v36, %v10783_v44  ;;  %21432 = vmatpush3.msra.mxu1 %v22848_v2  ;;  %21448 = vmatprep.subr.mxu0 %v22848_v2  ;;  %v21061_v48 = vpop.f32.mrf.mxu0  ;;  %v13247_v36 = vmul.f32 %v13245_v13, %v13245_v13 }
 0x5cc   :  { %21433 = vmatprep.subr.mxu1 %v22848_v2  ;;  %21449 = vmatpush3.msra.mxu0 %v22848_v2  ;;  %v21062_v57 = vadd.f32 %v21061_v48, %v21060_v50  ;;  %v10788_v49 = vsel %vm10786_vm11, %v10787_v32, %v10785_v33 }
 0x5cd   :  { %21434 = vmatpush3.msra.mxu1 %v22848_v2  ;;  %21450 = vmatprep.subr.mxu0 %v22848_v2  ;;  %v10789_v52 = vsub.f32 %v23789_v23, %v10788_v49 }
 0x5ce   :  { %21435 = vmatprep.subr.mxu1 %v22848_v2  ;;  %21451 = vmatpush3.msra.mxu0 %v22848_v2  ;;  %v10977_v59 = vadd.f32 %v21062_v57, %v26941_v12  ;;  %v27006_v42 = vpop.f32.mrf.mxu0  ;;  %v13246_v12 = vsub.f32 %v26959_v26, %v27131_v56 }
 0x5cf   :  { %21436 = vmatpush3.msra.mxu1 %v22848_v2  ;;  %21452 = vmatprep.subr.mxu0 %v22848_v2  ;;  %v10790_v55 = vadd.f32 0.2, %v10789_v52 }
 0x5d0   :  { %21437 = vmatprep.subr.mxu1 %v22848_v2  ;;  %21453 = vmatpush3.msra.mxu0 %v22848_v2  ;;  %v11200_v47 = vpop.f32.mrf.mxu0  ;;  %v11051_v51 = vadd.f32 %v11050_v27, %v10977_v59  ;;  %v13248_v35 = vmul.f32 %v13246_v12, %v13246_v12 }
 0x5d1   :  { %21438 = vmatpush3.msra.mxu1 %v22848_v2  ;;  %21454 = vmatprep.subr.mxu0 %v22848_v2  ;;  %v10791_v58 = vmax.f32 %v10790_v55, 0.0 }
 0x5d2   :  { %21439 = vmatprep.subr.mxu1 %v22848_v2  ;;  %21455 = vmatpush3.msra.mxu0 %v22848_v2  ;;  %v13251_v26 = vcombine.low %v13247_v36, %v13248_v35 }
 0x5d3   :  { %21440 = vmatpush3.msra.mxu1 %v22848_v2  ;;  %21456 = vmatprep.subr.mxu0 %v22848_v2  ;;  %v27020_v24 = vadd.f32 %v10791_v58, %v26715_v7  ;;  %v27031_v7 = vand.u32 4294901760, %v12785_v60 }
 0x5d4   :  { %21441 = vmatprep.subr.mxu1 %v22848_v2  ;;  %21457 = vmatpush3.msra.mxu0 %v22848_v2  ;;  %v13258_v45 = vrot.slane %v13251_v26, %v22893_v16 }
 0x5d5   :  { %21442 = vmatpush3.msra.mxu1 %v22848_v2  ;;  %21458 = vmatprep.subr.mxu0 %v22848_v2  ;;  %v27044_v63 = vsub.f32 %v12785_v60, %v27031_v7 }
 0x5d6   :  { %21443 = vmatprep.subr.mxu1 %v22848_v2  ;;  %21459 = vmatpush3.msra.mxu0 %v22848_v2  ;;  %v13259_v34 = vcombine.high %v13258_v45, %v13258_v45 }
 0x5d7   :  { %21444 = vmatpush3.msra.mxu1 %v22848_v2  ;;  %12735 = vmatprep.mubr.f32.mxu1 %v26874_v22  ;;  %v12854_v15 = vand.u32 4294901760, %v27044_v63 }
 0x5d8   :  { %21460 = vmatprep.subr.mxu0 %v22848_v2  ;;  %12737 = vmatmul.mubr.f32.vlgmr.msra.gmra.mxu1 %v26878_v14  ;;  %v13273_v52 = vrot.slane %v13259_v34, %v22893_v16 }
 0x5d9   :  { %21461 = vmatpush3.msra.mxu0 %v22848_v2  ;;  %12898 = vmatprep.subr.mxu1 %v22849_v3  ;;  %v12855_v38 = vsub.f32 %v27044_v63, %v12854_v15 }
 0x5da   :  { %21462 = vmatprep.subr.mxu0 %v22848_v2  ;;  %12899 = vmatpush1.msra.mxu1 %v22849_v3 }
 0x5db   :  { %21463 = vmatpush3.msra.mxu0 %v22848_v2  ;;  %12933 = vmatprep.mubr.f32.mxu1 %v27031_v7  ;;  %v12856_v6 = vand.u32 4294901760, %v12855_v38 }
 0x5dc   :  { %21464 = vmatprep.subr.mxu0 %v22848_v2  ;;  %12935 = vmatmul.mubr.f32.vlgmr.msra.gmra.mxu1 %v27035_v62 }
 0x5dd   :  { %21465 = vmatpush3.msra.mxu0 %v22848_v2  ;;  %12970 = vmatprep.subr.mxu1 %v22849_v3 }
 0x5de   :  { %21466 = vmatprep.subr.mxu0 %v22848_v2  ;;  %12971 = vmatpush1.msra.mxu1 %v22849_v3  ;;  %v21095_v1 = vpop.f32.mrf.mxu1 }
 0x5df   :  { %21467 = vmatpush3.msra.mxu0 %v22848_v2  ;;  %13006 = vmatprep.mubr.f32.mxu1 %v27044_v63 }
 0x5e0   :  { %21468 = vmatprep.subr.mxu0 %v22848_v2  ;;  %21483 = vmatprep.subr.mxu1 %v22848_v2  ;;  %v21096_v9 = vpop.f32.mrf.mxu1 }
 0x5e1   :  { %21469 = vmatpush3.msra.mxu0 %v22848_v2  ;;  %13009 = vmatmul.mubr.f32.vlgmr.msra.gmra.mxu1 %v27051_v0  ;;  %v21097_v22 = vadd.f32 %v21096_v9, %v21095_v1 }
 0x5e2   :  { %21484 = vmatpush3.msra.mxu1 %v22848_v2  ;;  %21470 = vmatprep.subr.mxu0 %v22848_v2 }
 0x5e3   :  { %21485 = vmatprep.subr.mxu1 %v22848_v2  ;;  %21471 = vmatpush3.msra.mxu0 %v22848_v2  ;;  %v11127_v14 = vadd.f32 %v21097_v22, %v11051_v51 }
 0x5e4   :  { %21486 = vmatpush3.msra.mxu1 %v22848_v2  ;;  %21472 = vmatprep.subr.mxu0 %v22848_v2 }
 0x5e5   :  { %21487 = vmatprep.subr.mxu1 %v22848_v2  ;;  %21473 = vmatpush3.msra.mxu0 %v22848_v2  ;;  %v11199_v40 = vadd.f32 %v27006_v42, %v11127_v14  ;;  %v13266_v42 = vrot.slane %v13258_v45, %v22893_v16 }
 0x5e6   :  { %21488 = vmatpush3.msra.mxu1 %v22848_v2  ;;  %21474 = vmatprep.subr.mxu0 %v22848_v2 }
 0x5e7   :  { %21489 = vmatprep.subr.mxu1 %v22848_v2  ;;  %21475 = vmatpush3.msra.mxu0 %v22848_v2  ;;  %v27204_v4 = vand.u32 4294901760, %v13266_v42 }
 0x5e8   :  { %21490 = vmatpush3.msra.mxu1 %v22848_v2  ;;  %21476 = vmatprep.subr.mxu0 %v22848_v2 }
 0x5e9   :  { %21491 = vmatprep.subr.mxu1 %v22848_v2  ;;  %21477 = vmatpush3.msra.mxu0 %v22848_v2  ;;  %v27220_v47 = vsub.f32 %v13266_v42, %v27204_v4 }
 0x5ea   :  { %21492 = vmatpush3.msra.mxu1 %v22848_v2  ;;  %21478 = vmatprep.subr.mxu0 %v22848_v2 }
 0x5eb   :  { %21493 = vmatprep.subr.mxu1 %v22848_v2  ;;  %21479 = vmatpush3.msra.mxu0 %v22848_v2  ;;  %v13348_v60 = vand.u32 4294901760, %v27220_v47 }
 0x5ec   :  { %12857 = vmatprep.mubr.f32.mxu0 %v12856_v6  ;;  %21494 = vmatpush3.msra.mxu1 %v22848_v2  ;;  %v27283_v6 = vld [vmem:[%s28960_s0 + $0x20] ss:$8 sm:$0x3] }
 0x5ed   :  { %12863 = vmatmul.mubr.f32.vlgmr.msra.gmra.mxu0 %v12862_v18  ;;  %21495 = vmatprep.subr.mxu1 %v22848_v2  ;;  %v13349_v63 = vsub.f32 %v27220_v47, %v13348_v60  ;;  %v27288_v18 = vld [vmem:[%s28960_s0 + $0x50] ss:$8 sm:$0x3] }
 0x5ee   :  { %21496 = vmatpush3.msra.mxu1 %v22848_v2  ;;  %13120 = vmatprep.subr.mxu0 %v22849_v3  ;;  %v21130_v54 = vpop.f32.mrf.mxu0 }
 0x5ef   :  { %21497 = vmatprep.subr.mxu1 %v22848_v2  ;;  %13121 = vmatpush1.msra.mxu0 %v22849_v3  ;;  %v13350_v9 = vand.u32 4294901760, %v13349_v63 }
 0x5f0   :  { %21498 = vmatpush3.msra.mxu1 %v22848_v2  ;;  %13155 = vmatprep.mubr.f32.mxu0 %v27031_v7  ;;  %v21131_v37 = vpop.f32.mrf.mxu0 }
 0x5f1   :  { %21518 = vmatprep.subr.mxu0 %v22848_v2  ;;  %21499 = vmatprep.subr.mxu1 %v22848_v2  ;;  %v21132_v8 = vadd.f32 %v21131_v37, %v21130_v54 }
 0x5f2   :  { %13157 = vmatmul.mubr.f32.vlgmr.msra.gmra.mxu0 %v27035_v62  ;;  %21500 = vmatpush3.msra.mxu1 %v22848_v2  ;;  %v27102_v25 = vpop.f32.mrf.mxu0 }
 0x5f3   :  { %21519 = vmatpush3.msra.mxu0 %v22848_v2  ;;  %21501 = vmatprep.subr.mxu1 %v22848_v2  ;;  %v27106_v10 = vadd.f32 %v21132_v8, %v11199_v40  ;;  %v27301_v8 = vld [vmem:[%s28960_s0] ss:$8 sm:$0x3] }
 0x5f4   :  { %21520 = vmatprep.subr.mxu0 %v22848_v2  ;;  %21502 = vmatpush3.msra.mxu1 %v22848_v2  ;;  %v11466_v31 = vpop.f32.mrf.mxu0 }
 0x5f5   :  { %21521 = vmatpush3.msra.mxu0 %v22848_v2  ;;  %21503 = vmatprep.subr.mxu1 %v22848_v2  ;;  %22760 = vrsqrt.f32 %v27106_v10  ;;  %vm11276_vm12 = vcmp.eq.f32.partialorder %v27106_v10, inf  ;;  %v11279_v43 = vand.u32 2147483648, %v27106_v10  ;;  %vm11278_vm13 = vcmp.eq.f32.partialorder %v27106_v10, 0.0 }
 0x5f6   :  { %21522 = vmatprep.subr.mxu0 %v22848_v2  ;;  %21504 = vmatpush3.msra.mxu1 %v22848_v2 }
 0x5f7   :  { %21523 = vmatpush3.msra.mxu0 %v22848_v2  ;;  %21505 = vmatprep.subr.mxu1 %v22848_v2  ;;  %v11538_v29 = vpop.f32.mrf.mxu0 }
 0x5f8   :  { %21524 = vmatprep.subr.mxu0 %v22848_v2  ;;  %21506 = vmatpush3.msra.mxu1 %v22848_v2 }
 0x5f9   :  { %21525 = vmatpush3.msra.mxu0 %v22848_v2  ;;  %21507 = vmatprep.subr.mxu1 %v22848_v2  ;;  %v11540_v20 = vpop.f32.mrf.mxu0 }
 0x5fa   :  { %21526 = vmatprep.subr.mxu0 %v22848_v2  ;;  %21508 = vmatpush3.msra.mxu1 %v22848_v2 }
 0x5fb   :  { %21527 = vmatpush3.msra.mxu0 %v22848_v2  ;;  %21509 = vmatprep.subr.mxu1 %v22848_v2 }
 0x5fc   :  { %21528 = vmatprep.subr.mxu0 %v22848_v2  ;;  %21510 = vmatpush3.msra.mxu1 %v22848_v2 }
 0x5fd   :  { %21529 = vmatpush3.msra.mxu0 %v22848_v2  ;;  %21511 = vmatprep.subr.mxu1 %v22848_v2 }
 0x5fe   :  { %21530 = vmatprep.subr.mxu0 %v22848_v2  ;;  %21512 = vmatpush3.msra.mxu1 %v22848_v2 }
 0x5ff   :  { %21531 = vmatpush3.msra.mxu0 %v22848_v2  ;;  %21513 = vmatprep.subr.mxu1 %v22848_v2 }
 0x600   :  { %21532 = vmatprep.subr.mxu0 %v22848_v2  ;;  %21514 = vmatpush3.msra.mxu1 %v22848_v2 }
 0x601   :  { %21533 = vmatpush3.msra.mxu0 %v22848_v2  ;;  %13081 = vmatprep.mubr.f32.mxu1 %v12854_v15  ;;  %v21165_v39 = vpop.f32.mrf.mxu1 }
 0x602   :  { %v22761_v27 = vpop.eup %22760  ;;  %21534 = vmatprep.subr.mxu0 %v22848_v2  ;;  %13085 = vmatmul.mubr.f32.vlgmr.msra.gmra.mxu1 %v12860_v17 }
 0x603   :  { %v11275_v28 = vmul.f32 %v22761_v27, %v27106_v10  ;;  %21535 = vmatpush3.msra.mxu0 %v22848_v2  ;;  %21553 = vmatprep.subr.mxu1 %v22848_v2  ;;  %v21166_v30 = vpop.f32.mrf.mxu1 }
 0x604   :  { %21536 = vmatprep.subr.mxu0 %v22848_v2  ;;  %21554 = vmatpush3.msra.mxu1 %v22848_v2  ;;  %v21167_v41 = vadd.f32 %v21166_v30, %v21165_v39 }
 0x605   :  { %v11277_v46 = vsel %vm11276_vm12, %v27106_v10, %v11275_v28  ;;  %21537 = vmatpush3.msra.mxu0 %v22848_v2  ;;  %21555 = vmatprep.subr.mxu1 %v22848_v2  ;;  %v27308_v10 = vld [vmem:[%s28960_s0 + $0x30] ss:$8 sm:$0x3] }
 0x606   :  { %21538 = vmatprep.subr.mxu0 %v22848_v2  ;;  %21556 = vmatpush3.msra.mxu1 %v22848_v2  ;;  %v11465_v53 = vadd.f32 %v21167_v41, %v27102_v25  ;;  %v27170_v44 = vpop.f32.mrf.mxu1  ;;  %v11280_v50 = vsel %vm11278_vm13, %v11279_v43, %v11277_v46  ;;  %v13737_v25 = vsub.f32 %v27301_v8, %v27283_v6 }
 0x607   :  { %21539 = vmatpush3.msra.mxu0 %v22848_v2  ;;  %21557 = vmatprep.subr.mxu1 %v22848_v2  ;;  %v11281_v32 = vsub.f32 %v23789_v23, %v11280_v50  ;;  %v13738_v31 = vsub.f32 %v27308_v10, %v27288_v18 }
 0x608   :  { %21540 = vmatprep.subr.mxu0 %v22848_v2  ;;  %21558 = vmatpush3.msra.mxu1 %v22848_v2  ;;  %v11688_v33 = vpop.f32.mrf.mxu1  ;;  %v11539_v48 = vadd.f32 %v11538_v29, %v11465_v53  ;;  %v13739_v29 = vmul.f32 %v13737_v25, %v13737_v25 }
 0x609   :  { %21541 = vmatpush3.msra.mxu0 %v22848_v2  ;;  %21559 = vmatprep.subr.mxu1 %v22848_v2  ;;  %v11282_v57 = vadd.f32 0.5, %v11281_v32  ;;  %v13740_v20 = vmul.f32 %v13738_v31, %v13738_v31 }
 0x60a   :  { %21542 = vmatprep.subr.mxu0 %v22848_v2  ;;  %21560 = vmatpush3.msra.mxu1 %v22848_v2 }
 0x60b   :  { %21543 = vmatpush3.msra.mxu0 %v22848_v2  ;;  %21561 = vmatprep.subr.mxu1 %v22848_v2  ;;  %v11283_v49 = vmax.f32 %v11282_v57, 0.0  ;;  %v13743_v13 = vcombine.low %v13739_v29, %v13740_v20 }
 0x60c   :  { %21544 = vmatprep.subr.mxu0 %v22848_v2  ;;  %21562 = vmatpush3.msra.mxu1 %v22848_v2 }
 0x60d   :  { %21545 = vmatpush3.msra.mxu0 %v22848_v2  ;;  %21563 = vmatprep.subr.mxu1 %v22848_v2  ;;  %v27189_v59 = vadd.f32 %v11283_v49, %v26863_v19  ;;  %v27200_v19 = vand.u32 4294901760, %v13273_v52  ;;  %v13750_v28 = vrot.slane %v13743_v13, %v22893_v16 }
 0x60e   :  { %21546 = vmatprep.subr.mxu0 %v22848_v2  ;;  %21564 = vmatpush3.msra.mxu1 %v22848_v2 }
 0x60f   :  { %21547 = vmatpush3.msra.mxu0 %v22848_v2  ;;  %21565 = vmatprep.subr.mxu1 %v22848_v2  ;;  %v27213_v55 = vsub.f32 %v13273_v52, %v27200_v19  ;;  %v13751_v53 = vcombine.high %v13750_v28, %v13750_v28  ;;  %v13758_v57 = vrot.slane %v13750_v28, %v22893_v16 }
 0x610   :  { %21548 = vmatprep.subr.mxu0 %v22848_v2  ;;  %21566 = vmatpush3.msra.mxu1 %v22848_v2 }
 0x611   :  { %21549 = vmatpush3.msra.mxu0 %v22848_v2  ;;  %13227 = vmatprep.mubr.f32.mxu0 %v27031_v7  ;;  %v13342_v51 = vand.u32 4294901760, %v27213_v55  ;;  %v27382_v49 = vand.u32 4294901760, %v13758_v57 }
 0x612   :  { %21567 = vmatprep.subr.mxu1 %v22848_v2  ;;  %13229 = vmatmul.mubr.f32.vlgmr.msra.gmra.mxu0 %v27035_v62 }
 0x613   :  { %21568 = vmatpush3.msra.mxu1 %v22848_v2  ;;  %13386 = vmatprep.subr.mxu0 %v22849_v3  ;;  %v13343_v62 = vsub.f32 %v27213_v55, %v13342_v51  ;;  %v27398_v42 = vsub.f32 %v13758_v57, %v27382_v49 }
 0x614   :  { %21569 = vmatprep.subr.mxu1 %v22848_v2  ;;  %13387 = vmatpush1.msra.mxu0 %v22849_v3 }
 0x615   :  { %21570 = vmatpush3.msra.mxu1 %v22848_v2  ;;  %13421 = vmatprep.mubr.f32.mxu0 %v27200_v19  ;;  %v13344_v15 = vand.u32 4294901760, %v13343_v62 }
 0x616   :  { %21571 = vmatprep.subr.mxu1 %v22848_v2  ;;  %13423 = vmatmul.mubr.f32.vlgmr.msra.gmra.mxu0 %v27204_v4 }
 0x617   :  { %21572 = vmatpush3.msra.mxu1 %v22848_v2  ;;  %13458 = vmatprep.subr.mxu0 %v22849_v3 }
 0x618   :  { %21573 = vmatprep.subr.mxu1 %v22848_v2  ;;  %13459 = vmatpush1.msra.mxu0 %v22849_v3  ;;  %v21200_v58 = vpop.f32.mrf.mxu0 }
 0x619   :  { %21574 = vmatpush3.msra.mxu1 %v22848_v2  ;;  %13494 = vmatprep.mubr.f32.mxu0 %v27213_v55 }
 0x61a   :  { %21575 = vmatprep.subr.mxu1 %v22848_v2  ;;  %21588 = vmatprep.subr.mxu0 %v22848_v2  ;;  %v21201_v61 = vpop.f32.mrf.mxu0 }
 0x61b   :  { %21576 = vmatpush3.msra.mxu1 %v22848_v2  ;;  %13497 = vmatmul.mubr.f32.vlgmr.msra.gmra.mxu0 %v27220_v47  ;;  %v21202_v7 = vadd.f32 %v21201_v61, %v21200_v58  ;;  %v13840_v47 = vand.u32 4294901760, %v27398_v42 }
 0x61c   :  { %21589 = vmatpush3.msra.mxu0 %v22848_v2  ;;  %21577 = vmatprep.subr.mxu1 %v22848_v2 }
 0x61d   :  { %21590 = vmatprep.subr.mxu0 %v22848_v2  ;;  %21578 = vmatpush3.msra.mxu1 %v22848_v2  ;;  %v11615_v0 = vadd.f32 %v21202_v7, %v11539_v48  ;;  %v13765_v48 = vrot.slane %v13751_v53, %v22893_v16  ;;  %v13841_v61 = vsub.f32 %v27398_v42, %v13840_v47 }
 0x61e   :  { %21591 = vmatpush3.msra.mxu0 %v22848_v2  ;;  %21579 = vmatprep.subr.mxu1 %v22848_v2 }
 0x61f   :  { %21592 = vmatprep.subr.mxu0 %v22848_v2  ;;  %21580 = vmatpush3.msra.mxu1 %v22848_v2  ;;  %v11687_v1 = vadd.f32 %v27170_v44, %v11615_v0  ;;  %v13842_v63 = vand.u32 4294901760, %v13841_v61 }
 0x620   :  { %21593 = vmatpush3.msra.mxu0 %v22848_v2  ;;  %21581 = vmatprep.subr.mxu1 %v22848_v2 }
 0x621   :  { %21594 = vmatprep.subr.mxu0 %v22848_v2  ;;  %21582 = vmatpush3.msra.mxu1 %v22848_v2 }
 0x622   :  { %21595 = vmatpush3.msra.mxu0 %v22848_v2  ;;  %21583 = vmatprep.subr.mxu1 %v22848_v2 }
 0x623   :  { %21596 = vmatprep.subr.mxu0 %v22848_v2  ;;  %21584 = vmatpush3.msra.mxu1 %v22848_v2 }
 0x624   :  { %13345 = vmatprep.mubr.f32.mxu1 %v13344_v15  ;;  %21597 = vmatpush3.msra.mxu0 %v22848_v2 }
 0x625   :  { %13351 = vmatmul.mubr.f32.vlgmr.msra.gmra.mxu1 %v13350_v9  ;;  %21598 = vmatprep.subr.mxu0 %v22848_v2 }
 0x626   :  { %13608 = vmatprep.subr.mxu1 %v22849_v3  ;;  %21599 = vmatpush3.msra.mxu0 %v22848_v2  ;;  %v21235_v17 = vpop.f32.mrf.mxu1 }
 0x627   :  { %13609 = vmatpush1.msra.mxu1 %v22849_v3  ;;  %21600 = vmatprep.subr.mxu0 %v22848_v2 }
 0x628   :  { %21601 = vmatpush3.msra.mxu0 %v22848_v2  ;;  %13643 = vmatprep.mubr.f32.mxu1 %v27200_v19  ;;  %v21236_v22 = vpop.f32.mrf.mxu1 }
 0x629   :  { %21623 = vmatprep.subr.mxu1 %v22848_v2  ;;  %21602 = vmatprep.subr.mxu0 %v22848_v2  ;;  %v21237_v14 = vadd.f32 %v21236_v22, %v21235_v17 }
 0x62a   :  { %13645 = vmatmul.mubr.f32.vlgmr.msra.gmra.mxu1 %v27204_v4  ;;  %21603 = vmatpush3.msra.mxu0 %v22848_v2  ;;  %v27267_v38 = vpop.f32.mrf.mxu1 }
 0x62b   :  { %21624 = vmatpush3.msra.mxu1 %v22848_v2  ;;  %21604 = vmatprep.subr.mxu0 %v22848_v2  ;;  %v27271_v5 = vadd.f32 %v21237_v14, %v11687_v1 }
 0x62c   :  { %21625 = vmatprep.subr.mxu1 %v22848_v2  ;;  %21605 = vmatpush3.msra.mxu0 %v22848_v2  ;;  %v11958_v40 = vpop.f32.mrf.mxu1 }
 0x62d   :  { %21626 = vmatpush3.msra.mxu1 %v22848_v2  ;;  %21606 = vmatprep.subr.mxu0 %v22848_v2  ;;  %22762 = vrsqrt.f32 %v27271_v5  ;;  %vm11764_vm14 = vcmp.eq.f32.partialorder %v27271_v5, inf  ;;  %v11767_v39 = vand.u32 2147483648, %v27271_v5  ;;  %vm11766_vm15 = vcmp.eq.f32.partialorder %v27271_v5, 0.0 }
 0x62e   :  { %21627 = vmatprep.subr.mxu1 %v22848_v2  ;;  %21607 = vmatpush3.msra.mxu0 %v22848_v2  ;;  %v14226_v40 = vsub.f32 %v27288_v18, %v27131_v56 }
 0x62f   :  { %21628 = vmatpush3.msra.mxu1 %v22848_v2  ;;  %21608 = vmatprep.subr.mxu0 %v22848_v2  ;;  %v27292_v54 = vpop.f32.mrf.mxu1 }
 0x630   :  { %21629 = vmatprep.subr.mxu1 %v22848_v2  ;;  %21609 = vmatpush3.msra.mxu0 %v22848_v2 }
 0x631   :  { %21630 = vmatpush3.msra.mxu1 %v22848_v2  ;;  %21610 = vmatprep.subr.mxu0 %v22848_v2  ;;  %v12032_v37 = vpop.f32.mrf.mxu1 }
 0x632   :  { %21631 = vmatprep.subr.mxu1 %v22848_v2  ;;  %21611 = vmatpush3.msra.mxu0 %v22848_v2 }
 0x633   :  { %21632 = vmatpush3.msra.mxu1 %v22848_v2  ;;  %21612 = vmatprep.subr.mxu0 %v22848_v2 }
 0x634   :  { %21633 = vmatprep.subr.mxu1 %v22848_v2  ;;  %21613 = vmatpush3.msra.mxu0 %v22848_v2 }
 0x635   :  { %21634 = vmatpush3.msra.mxu1 %v22848_v2  ;;  %21614 = vmatprep.subr.mxu0 %v22848_v2 }
 0x636   :  { %21635 = vmatprep.subr.mxu1 %v22848_v2  ;;  %21615 = vmatpush3.msra.mxu0 %v22848_v2 }
 0x637   :  { %21636 = vmatpush3.msra.mxu1 %v22848_v2  ;;  %21616 = vmatprep.subr.mxu0 %v22848_v2 }
 0x638   :  { %21637 = vmatprep.subr.mxu1 %v22848_v2  ;;  %21617 = vmatpush3.msra.mxu0 %v22848_v2 }
 0x639   :  { %21638 = vmatpush3.msra.mxu1 %v22848_v2  ;;  %21618 = vmatprep.subr.mxu0 %v22848_v2 }
 0x63a   :  { %v22763_v12 = vpop.eup %22762  ;;  %21639 = vmatprep.subr.mxu1 %v22848_v2  ;;  %21619 = vmatpush3.msra.mxu0 %v22848_v2 }
 0x63b   :  { %v11763_v36 = vmul.f32 %v22763_v12, %v27271_v5  ;;  %21640 = vmatpush3.msra.mxu1 %v22848_v2  ;;  %13569 = vmatprep.mubr.f32.mxu0 %v13342_v51  ;;  %v21270_v35 = vpop.f32.mrf.mxu0 }
 0x63c   :  { %21641 = vmatprep.subr.mxu1 %v22848_v2  ;;  %13573 = vmatmul.mubr.f32.vlgmr.msra.gmra.mxu0 %v13348_v60 }
 0x63d   :  { %v11765_v26 = vsel %vm11764_vm14, %v27271_v5, %v11763_v36  ;;  %21642 = vmatpush3.msra.mxu1 %v22848_v2  ;;  %21658 = vmatprep.subr.mxu0 %v22848_v2  ;;  %v21271_v27 = vpop.f32.mrf.mxu0  ;;  %v14225_v5 = vsub.f32 %v27283_v6, %v27124_v21  ;;  %v14228_v6 = vmul.f32 %v14226_v40, %v14226_v40 }
 0x63e   :  { %21643 = vmatprep.subr.mxu1 %v22848_v2  ;;  %21659 = vmatpush3.msra.mxu0 %v22848_v2  ;;  %v21272_v30 = vadd.f32 %v21271_v27, %v21270_v35  ;;  %v11768_v43 = vsel %vm11766_vm15, %v11767_v39, %v11765_v26 }
 0x63f   :  { %21644 = vmatpush3.msra.mxu1 %v22848_v2  ;;  %21660 = vmatprep.subr.mxu0 %v22848_v2  ;;  %v11769_v41 = vsub.f32 %v23789_v23, %v11768_v43  ;;  %v14227_v21 = vmul.f32 %v14225_v5, %v14225_v5 }
 0x640   :  { %21645 = vmatprep.subr.mxu1 %v22848_v2  ;;  %21661 = vmatpush3.msra.mxu0 %v22848_v2  ;;  %v11957_v46 = vadd.f32 %v21272_v30, %v27267_v38  ;;  %v27352_v45 = vpop.f32.mrf.mxu0 }
 0x641   :  { %21646 = vmatpush3.msra.mxu1 %v22848_v2  ;;  %21662 = vmatprep.subr.mxu0 %v22848_v2  ;;  %v11770_v44 = vadd.f32 0.2, %v11769_v41  ;;  %v14231_v18 = vcombine.low %v14227_v21, %v14228_v6 }
 0x642   :  { %21647 = vmatprep.subr.mxu1 %v22848_v2  ;;  %21663 = vmatpush3.msra.mxu0 %v22848_v2  ;;  %v12180_v50 = vpop.f32.mrf.mxu0  ;;  %v12031_v32 = vadd.f32 %v27292_v54, %v11957_v46 }
 0x643   :  { %21648 = vmatpush3.msra.mxu1 %v22848_v2  ;;  %21664 = vmatprep.subr.mxu0 %v22848_v2  ;;  %v11771_v33 = vmax.f32 %v11770_v44, 0.0  ;;  %v14238_v20 = vrot.slane %v14231_v18, %v22893_v16 }
 0x644   :  { %21649 = vmatprep.subr.mxu1 %v22848_v2  ;;  %21665 = vmatpush3.msra.mxu0 %v22848_v2 }
 0x645   :  { %21650 = vmatpush3.msra.mxu1 %v22848_v2  ;;  %21666 = vmatprep.subr.mxu0 %v22848_v2  ;;  %v27367_v34 = vadd.f32 %v11771_v33, %v27020_v24  ;;  %v27378_v24 = vand.u32 4294901760, %v13765_v48  ;;  %v14239_v28 = vcombine.high %v14238_v20, %v14238_v20 }
 0x646   :  { %21651 = vmatprep.subr.mxu1 %v22848_v2  ;;  %21667 = vmatpush3.msra.mxu0 %v22848_v2 }
 0x647   :  { %21652 = vmatpush3.msra.mxu1 %v22848_v2  ;;  %21668 = vmatprep.subr.mxu0 %v22848_v2  ;;  %v27391_v52 = vsub.f32 %v13765_v48, %v27378_v24  ;;  %v14253_v41 = vrot.slane %v14239_v28, %v22893_v16 }
 0x648   :  { %21653 = vmatprep.subr.mxu1 %v22848_v2  ;;  %21669 = vmatpush3.msra.mxu0 %v22848_v2 }
 0x649   :  { %21654 = vmatpush3.msra.mxu1 %v22848_v2  ;;  %13715 = vmatprep.mubr.f32.mxu1 %v27200_v19 }
 0x64a   :  { %21670 = vmatprep.subr.mxu0 %v22848_v2  ;;  %13717 = vmatmul.mubr.f32.vlgmr.msra.gmra.mxu1 %v27204_v4  ;;  %v13834_v4 = vand.u32 4294901760, %v27391_v52 }
 0x64b   :  { %21671 = vmatpush3.msra.mxu0 %v22848_v2  ;;  %13878 = vmatprep.subr.mxu1 %v22849_v3 }
 0x64c   :  { %21672 = vmatprep.subr.mxu0 %v22848_v2  ;;  %13879 = vmatpush1.msra.mxu1 %v22849_v3  ;;  %v13835_v60 = vsub.f32 %v27391_v52, %v13834_v4 }
 0x64d   :  { %21673 = vmatpush3.msra.mxu0 %v22848_v2  ;;  %13913 = vmatprep.mubr.f32.mxu1 %v27378_v24 }
 0x64e   :  { %21674 = vmatprep.subr.mxu0 %v22848_v2  ;;  %13915 = vmatmul.mubr.f32.vlgmr.msra.gmra.mxu1 %v27382_v49  ;;  %v13836_v62 = vand.u32 4294901760, %v13835_v60 }
 0x64f   :  { %21675 = vmatpush3.msra.mxu0 %v22848_v2  ;;  %13950 = vmatprep.subr.mxu1 %v22849_v3 }
 0x650   :  { %21676 = vmatprep.subr.mxu0 %v22848_v2  ;;  %13951 = vmatpush1.msra.mxu1 %v22849_v3  ;;  %v21305_v19 = vpop.f32.mrf.mxu1 }
 0x651   :  { %21677 = vmatpush3.msra.mxu0 %v22848_v2  ;;  %13986 = vmatprep.mubr.f32.mxu1 %v27391_v52 }
 0x652   :  { %21678 = vmatprep.subr.mxu0 %v22848_v2  ;;  %21693 = vmatprep.subr.mxu1 %v22848_v2  ;;  %v21306_v55 = vpop.f32.mrf.mxu1 }
 0x653   :  { %21679 = vmatpush3.msra.mxu0 %v22848_v2  ;;  %13989 = vmatmul.mubr.f32.vlgmr.msra.gmra.mxu1 %v27398_v42  ;;  %v21307_v51 = vadd.f32 %v21306_v55, %v21305_v19 }
 0x654   :  { %21694 = vmatpush3.msra.mxu1 %v22848_v2  ;;  %21680 = vmatprep.subr.mxu0 %v22848_v2 }
 0x655   :  { %21695 = vmatprep.subr.mxu1 %v22848_v2  ;;  %21681 = vmatpush3.msra.mxu0 %v22848_v2  ;;  %v12107_v58 = vadd.f32 %v21307_v51, %v12031_v32 }
 0x656   :  { %21696 = vmatpush3.msra.mxu1 %v22848_v2  ;;  %21682 = vmatprep.subr.mxu0 %v22848_v2 }
 0x657   :  { %21697 = vmatprep.subr.mxu1 %v22848_v2  ;;  %21683 = vmatpush3.msra.mxu0 %v22848_v2  ;;  %v12179_v7 = vadd.f32 %v27352_v45, %v12107_v58  ;;  %v14246_v45 = vrot.slane %v14238_v20, %v22893_v16 }
 0x658   :  { %21698 = vmatpush3.msra.mxu1 %v22848_v2  ;;  %21684 = vmatprep.subr.mxu0 %v22848_v2 }
 0x659   :  { %21699 = vmatprep.subr.mxu1 %v22848_v2  ;;  %21685 = vmatpush3.msra.mxu0 %v22848_v2  ;;  %v27530_v53 = vand.u32 4294901760, %v14246_v45 }
 0x65a   :  { %21700 = vmatpush3.msra.mxu1 %v22848_v2  ;;  %21686 = vmatprep.subr.mxu0 %v22848_v2 }
 0x65b   :  { %21701 = vmatprep.subr.mxu1 %v22848_v2  ;;  %21687 = vmatpush3.msra.mxu0 %v22848_v2  ;;  %v27546_v50 = vsub.f32 %v14246_v45, %v27530_v53 }
 0x65c   :  { %21702 = vmatpush3.msra.mxu1 %v22848_v2  ;;  %21688 = vmatprep.subr.mxu0 %v22848_v2 }
 0x65d   :  { %21703 = vmatprep.subr.mxu1 %v22848_v2  ;;  %21689 = vmatpush3.msra.mxu0 %v22848_v2  ;;  %v14328_v48 = vand.u32 4294901760, %v27546_v50 }
 0x65e   :  { %13837 = vmatprep.mubr.f32.mxu0 %v13836_v62  ;;  %21704 = vmatpush3.msra.mxu1 %v22848_v2  ;;  %v27606_v62 = vld [vmem:[%s28960_s0 + $0x21] ss:$8 sm:$0x3] }
 0x65f   :  { %13843 = vmatmul.mubr.f32.vlgmr.msra.gmra.mxu0 %v13842_v63  ;;  %21705 = vmatprep.subr.mxu1 %v22848_v2  ;;  %v14329_v52 = vsub.f32 %v27546_v50, %v14328_v48  ;;  %v27611_v63 = vld [vmem:[%s28960_s0 + $0x51] ss:$8 sm:$0x3] }
 0x660   :  { %21706 = vmatpush3.msra.mxu1 %v22848_v2  ;;  %14100 = vmatprep.subr.mxu0 %v22849_v3  ;;  %v21340_v0 = vpop.f32.mrf.mxu0 }
 0x661   :  { %21707 = vmatprep.subr.mxu1 %v22848_v2  ;;  %14101 = vmatpush1.msra.mxu0 %v22849_v3  ;;  %v14330_v55 = vand.u32 4294901760, %v14329_v52 }
 0x662   :  { %21708 = vmatpush3.msra.mxu1 %v22848_v2  ;;  %14135 = vmatprep.mubr.f32.mxu0 %v27378_v24  ;;  %v21341_v1 = vpop.f32.mrf.mxu0 }
 0x663   :  { %21728 = vmatprep.subr.mxu0 %v22848_v2  ;;  %21709 = vmatprep.subr.mxu1 %v22848_v2  ;;  %v21342_v15 = vadd.f32 %v21341_v1, %v21340_v0 }
 0x664   :  { %14137 = vmatmul.mubr.f32.vlgmr.msra.gmra.mxu0 %v27382_v49  ;;  %21710 = vmatpush3.msra.mxu1 %v22848_v2  ;;  %v12444_v9 = vpop.f32.mrf.mxu0 }
 0x665   :  { %21729 = vmatpush3.msra.mxu0 %v22848_v2  ;;  %21711 = vmatprep.subr.mxu1 %v22848_v2  ;;  %v12251_v17 = vadd.f32 %v21342_v15, %v12179_v7  ;;  %v14717_v15 = vsub.f32 %v27301_v8, %v27606_v62 }
 0x666   :  { %21730 = vmatprep.subr.mxu0 %v22848_v2  ;;  %21712 = vmatpush3.msra.mxu1 %v22848_v2  ;;  %v12446_v22 = vpop.f32.mrf.mxu0 }
 0x667   :  { %21731 = vmatpush3.msra.mxu0 %v22848_v2  ;;  %21713 = vmatprep.subr.mxu1 %v22848_v2  ;;  %22764 = vrsqrt.f32 %v12251_v17  ;;  %vm12256_vm0 = vcmp.eq.f32.partialorder %v12251_v17, inf  ;;  %v12259_v31 = vand.u32 2147483648, %v12251_v17  ;;  %vm12258_vm1 = vcmp.eq.f32.partialorder %v12251_v17, 0.0 }
 0x668   :  { %21732 = vmatprep.subr.mxu0 %v22848_v2  ;;  %21714 = vmatpush3.msra.mxu1 %v22848_v2  ;;  %v14719_v8 = vmul.f32 %v14717_v15, %v14717_v15 }
 0x669   :  { %21733 = vmatpush3.msra.mxu0 %v22848_v2  ;;  %21715 = vmatprep.subr.mxu1 %v22848_v2  ;;  %v12518_v14 = vpop.f32.mrf.mxu0 }
 0x66a   :  { %21734 = vmatprep.subr.mxu0 %v22848_v2  ;;  %21716 = vmatpush3.msra.mxu1 %v22848_v2 }
 0x66b   :  { %21735 = vmatpush3.msra.mxu0 %v22848_v2  ;;  %21717 = vmatprep.subr.mxu1 %v22848_v2  ;;  %v12520_v38 = vpop.f32.mrf.mxu0 }
 0x66c   :  { %21736 = vmatprep.subr.mxu0 %v22848_v2  ;;  %21718 = vmatpush3.msra.mxu1 %v22848_v2 }
 0x66d   :  { %21737 = vmatpush3.msra.mxu0 %v22848_v2  ;;  %21719 = vmatprep.subr.mxu1 %v22848_v2 }
 0x66e   :  { %21738 = vmatprep.subr.mxu0 %v22848_v2  ;;  %21720 = vmatpush3.msra.mxu1 %v22848_v2 }
 0x66f   :  { %21739 = vmatpush3.msra.mxu0 %v22848_v2  ;;  %21721 = vmatprep.subr.mxu1 %v22848_v2 }
 0x670   :  { %21740 = vmatprep.subr.mxu0 %v22848_v2  ;;  %21722 = vmatpush3.msra.mxu1 %v22848_v2 }
 0x671   :  { %21741 = vmatpush3.msra.mxu0 %v22848_v2  ;;  %21723 = vmatprep.subr.mxu1 %v22848_v2 }
 0x672   :  { %21742 = vmatprep.subr.mxu0 %v22848_v2  ;;  %21724 = vmatpush3.msra.mxu1 %v22848_v2 }
 0x673   :  { %21743 = vmatpush3.msra.mxu0 %v22848_v2  ;;  %14061 = vmatprep.mubr.f32.mxu1 %v13834_v4  ;;  %v21375_v56 = vpop.f32.mrf.mxu1 }
 0x674   :  { %v22765_v54 = vpop.eup %22764  ;;  %21744 = vmatprep.subr.mxu0 %v22848_v2  ;;  %14065 = vmatmul.mubr.f32.vlgmr.msra.gmra.mxu1 %v13840_v47 }
 0x675   :  { %v12255_v37 = vmul.f32 %v22765_v54, %v12251_v17  ;;  %21745 = vmatpush3.msra.mxu0 %v22848_v2  ;;  %21763 = vmatprep.subr.mxu1 %v22848_v2  ;;  %v21376_v25 = vpop.f32.mrf.mxu1 }
 0x676   :  { %21746 = vmatprep.subr.mxu0 %v22848_v2  ;;  %21764 = vmatpush3.msra.mxu1 %v22848_v2  ;;  %v21377_v29 = vadd.f32 %v21376_v25, %v21375_v56 }
 0x677   :  { %21747 = vmatpush3.msra.mxu0 %v22848_v2  ;;  %21765 = vmatprep.subr.mxu1 %v22848_v2  ;;  %v12257_v13 = vsel %vm12256_vm0, %v12251_v17, %v12255_v37 }
 0x678   :  { %21748 = vmatprep.subr.mxu0 %v22848_v2  ;;  %21766 = vmatpush3.msra.mxu1 %v22848_v2  ;;  %v12445_v12 = vadd.f32 %v21377_v29, %v12444_v9  ;;  %v27496_v36 = vpop.f32.mrf.mxu1  ;;  %v12260_v35 = vsel %vm12258_vm1, %v12259_v31, %v12257_v13  ;;  %v14718_v9 = vsub.f32 %v27308_v10, %v27611_v63 }
 0x679   :  { %21749 = vmatpush3.msra.mxu0 %v22848_v2  ;;  %21767 = vmatprep.subr.mxu1 %v22848_v2  ;;  %v12261_v39 = vsub.f32 %v23789_v23, %v12260_v35 }
 0x67a   :  { %21750 = vmatprep.subr.mxu0 %v22848_v2  ;;  %21768 = vmatpush3.msra.mxu1 %v22848_v2  ;;  %v12668_v26 = vpop.f32.mrf.mxu1  ;;  %v12519_v27 = vadd.f32 %v12518_v14, %v12445_v12  ;;  %v14720_v17 = vmul.f32 %v14718_v9, %v14718_v9 }
 0x67b   :  { %21751 = vmatpush3.msra.mxu0 %v22848_v2  ;;  %21769 = vmatprep.subr.mxu1 %v22848_v2  ;;  %v12262_v30 = vadd.f32 0.5, %v12261_v39 }
 0x67c   :  { %21752 = vmatprep.subr.mxu0 %v22848_v2  ;;  %21770 = vmatpush3.msra.mxu1 %v22848_v2  ;;  %v14723_v10 = vcombine.low %v14719_v8, %v14720_v17 }
 0x67d   :  { %21753 = vmatpush3.msra.mxu0 %v22848_v2  ;;  %21771 = vmatprep.subr.mxu1 %v22848_v2  ;;  %v12263_v43 = vmax.f32 %v12262_v30, 0.0 }
 0x67e   :  { %21754 = vmatprep.subr.mxu0 %v22848_v2  ;;  %21772 = vmatpush3.msra.mxu1 %v22848_v2  ;;  %v14730_v6 = vrot.slane %v14723_v10, %v22893_v16 }
 0x67f   :  { %21755 = vmatpush3.msra.mxu0 %v22848_v2  ;;  %21773 = vmatprep.subr.mxu1 %v22848_v2  ;;  %v27515_v46 = vadd.f32 %v12263_v43, %v27189_v59  ;;  %v27526_v59 = vand.u32 4294901760, %v14253_v41 }
 0x680   :  { %21756 = vmatprep.subr.mxu0 %v22848_v2  ;;  %21774 = vmatpush3.msra.mxu1 %v22848_v2  ;;  %v14731_v31 = vcombine.high %v14730_v6, %v14730_v6  ;;  %v14738_v39 = vrot.slane %v14730_v6, %v22893_v16 }
 0x681   :  { %21757 = vmatpush3.msra.mxu0 %v22848_v2  ;;  %21775 = vmatprep.subr.mxu1 %v22848_v2  ;;  %v27539_v44 = vsub.f32 %v14253_v41, %v27526_v59 }
 0x682   :  { %21758 = vmatprep.subr.mxu0 %v22848_v2  ;;  %21776 = vmatpush3.msra.mxu1 %v22848_v2  ;;  %v27687_v26 = vand.u32 4294901760, %v14738_v39 }
 0x683   :  { %21759 = vmatpush3.msra.mxu0 %v22848_v2  ;;  %14207 = vmatprep.mubr.f32.mxu0 %v27378_v24  ;;  %v14322_v32 = vand.u32 4294901760, %v27539_v44 }
 0x684   :  { %21777 = vmatprep.subr.mxu1 %v22848_v2  ;;  %14209 = vmatmul.mubr.f32.vlgmr.msra.gmra.mxu0 %v27382_v49  ;;  %v27703_v28 = vsub.f32 %v14738_v39, %v27687_v26 }
 0x685   :  { %21778 = vmatpush3.msra.mxu1 %v22848_v2  ;;  %14366 = vmatprep.subr.mxu0 %v22849_v3  ;;  %v14323_v49 = vsub.f32 %v27539_v44, %v14322_v32 }
 0x686   :  { %21779 = vmatprep.subr.mxu1 %v22848_v2  ;;  %14367 = vmatpush1.msra.mxu0 %v22849_v3  ;;  %v14820_v45 = vand.u32 4294901760, %v27703_v28 }
 0x687   :  { %21780 = vmatpush3.msra.mxu1 %v22848_v2  ;;  %14401 = vmatprep.mubr.f32.mxu0 %v27526_v59  ;;  %v14324_v4 = vand.u32 4294901760, %v14323_v49 }
 0x688   :  { %21781 = vmatprep.subr.mxu1 %v22848_v2  ;;  %14403 = vmatmul.mubr.f32.vlgmr.msra.gmra.mxu0 %v27530_v53 }
 0x689   :  { %21782 = vmatpush3.msra.mxu1 %v22848_v2  ;;  %14438 = vmatprep.subr.mxu0 %v22849_v3 }
 0x68a   :  { %21783 = vmatprep.subr.mxu1 %v22848_v2  ;;  %14439 = vmatpush1.msra.mxu0 %v22849_v3  ;;  %v21410_v33 = vpop.f32.mrf.mxu0 }
 0x68b   :  { %21784 = vmatpush3.msra.mxu1 %v22848_v2  ;;  %14474 = vmatprep.mubr.f32.mxu0 %v27539_v44 }
 0x68c   :  { %21785 = vmatprep.subr.mxu1 %v22848_v2  ;;  %21798 = vmatprep.subr.mxu0 %v22848_v2  ;;  %v21411_v57 = vpop.f32.mrf.mxu0 }
 0x68d   :  { %21786 = vmatpush3.msra.mxu1 %v22848_v2  ;;  %14477 = vmatmul.mubr.f32.vlgmr.msra.gmra.mxu0 %v27546_v50  ;;  %v21412_v24 = vadd.f32 %v21411_v57, %v21410_v33  ;;  %v14821_v50 = vsub.f32 %v27703_v28, %v14820_v45 }
 0x68e   :  { %21799 = vmatpush3.msra.mxu0 %v22848_v2  ;;  %21787 = vmatprep.subr.mxu1 %v22848_v2 }
 0x68f   :  { %21800 = vmatprep.subr.mxu0 %v22848_v2  ;;  %21788 = vmatpush3.msra.mxu1 %v22848_v2  ;;  %v12595_v42 = vadd.f32 %v21412_v24, %v12519_v27 }
 0x690   :  { %21801 = vmatpush3.msra.mxu0 %v22848_v2  ;;  %21789 = vmatprep.subr.mxu1 %v22848_v2 }
 0x691   :  { %21802 = vmatprep.subr.mxu0 %v22848_v2  ;;  %21790 = vmatpush3.msra.mxu1 %v22848_v2  ;;  %v12667_v19 = vadd.f32 %v27496_v36, %v12595_v42  ;;  %v14745_v36 = vrot.slane %v14731_v31, %v22893_v16 }
 0x692   :  { %21803 = vmatpush3.msra.mxu0 %v22848_v2  ;;  %21791 = vmatprep.subr.mxu1 %v22848_v2 }
 0x693   :  { %21804 = vmatprep.subr.mxu0 %v22848_v2  ;;  %21792 = vmatpush3.msra.mxu1 %v22848_v2 }
 0x694   :  { %21805 = vmatpush3.msra.mxu0 %v22848_v2  ;;  %21793 = vmatprep.subr.mxu1 %v22848_v2 }
 0x695   :  { %21806 = vmatprep.subr.mxu0 %v22848_v2  ;;  %21794 = vmatpush3.msra.mxu1 %v22848_v2 }
 0x696   :  { %14325 = vmatprep.mubr.f32.mxu1 %v14324_v4  ;;  %21807 = vmatpush3.msra.mxu0 %v22848_v2 }
 0x697   :  { %14331 = vmatmul.mubr.f32.vlgmr.msra.gmra.mxu1 %v14330_v55  ;;  %21808 = vmatprep.subr.mxu0 %v22848_v2 }
 0x698   :  { %14588 = vmatprep.subr.mxu1 %v22849_v3  ;;  %21809 = vmatpush3.msra.mxu0 %v22848_v2  ;;  %v21445_v47 = vpop.f32.mrf.mxu1 }
 0x699   :  { %14589 = vmatpush1.msra.mxu1 %v22849_v3  ;;  %21810 = vmatprep.subr.mxu0 %v22848_v2 }
 0x69a   :  { %21811 = vmatpush3.msra.mxu0 %v22848_v2  ;;  %14623 = vmatprep.mubr.f32.mxu1 %v27526_v59  ;;  %v21446_v51 = vpop.f32.mrf.mxu1 }
 0x69b   :  { %21833 = vmatprep.subr.mxu1 %v22848_v2  ;;  %21812 = vmatprep.subr.mxu0 %v22848_v2  ;;  %v21447_v58 = vadd.f32 %v21446_v51, %v21445_v47  ;;  %v27776_v47 = vld [vmem:[%s28960_s0 + $0x25] ss:$8 sm:$0x3] }
 0x69c   :  { %14625 = vmatmul.mubr.f32.vlgmr.msra.gmra.mxu1 %v27530_v53  ;;  %21813 = vmatpush3.msra.mxu0 %v22848_v2  ;;  %v27593_v60 = vpop.f32.mrf.mxu1  ;;  %v15205_v51 = vsub.f32 %v27606_v62, %v27776_v47 }
 0x69d   :  { %21834 = vmatpush3.msra.mxu1 %v22848_v2  ;;  %21814 = vmatprep.subr.mxu0 %v22848_v2  ;;  %v12739_v61 = vadd.f32 %v21447_v58, %v12667_v19  ;;  %v27783_v58 = vld [vmem:[%s28960_s0 + $0x55] ss:$8 sm:$0x3] }
 0x69e   :  { %21835 = vmatprep.subr.mxu1 %v22848_v2  ;;  %21815 = vmatpush3.msra.mxu0 %v22848_v2  ;;  %v12938_v7 = vpop.f32.mrf.mxu1 }
 0x69f   :  { %21836 = vmatpush3.msra.mxu1 %v22848_v2  ;;  %21816 = vmatprep.subr.mxu0 %v22848_v2  ;;  %22766 = vrsqrt.f32 %v12739_v61  ;;  %vm12744_vm2 = vcmp.eq.f32.partialorder %v12739_v61, inf  ;;  %v12747_v5 = vand.u32 2147483648, %v12739_v61  ;;  %vm12746_vm3 = vcmp.eq.f32.partialorder %v12739_v61, 0.0 }
 0x6a0   :  { %21837 = vmatprep.subr.mxu1 %v22848_v2  ;;  %21817 = vmatpush3.msra.mxu0 %v22848_v2 }
 0x6a1   :  { %21838 = vmatpush3.msra.mxu1 %v22848_v2  ;;  %21818 = vmatprep.subr.mxu0 %v22848_v2  ;;  %v13010_v0 = vpop.f32.mrf.mxu1 }
 0x6a2   :  { %21839 = vmatprep.subr.mxu1 %v22848_v2  ;;  %21819 = vmatpush3.msra.mxu0 %v22848_v2 }
 0x6a3   :  { %21840 = vmatpush3.msra.mxu1 %v22848_v2  ;;  %21820 = vmatprep.subr.mxu0 %v22848_v2  ;;  %v13012_v1 = vpop.f32.mrf.mxu1 }
 0x6a4   :  { %21841 = vmatprep.subr.mxu1 %v22848_v2  ;;  %21821 = vmatpush3.msra.mxu0 %v22848_v2 }
 0x6a5   :  { %21842 = vmatpush3.msra.mxu1 %v22848_v2  ;;  %21822 = vmatprep.subr.mxu0 %v22848_v2 }
 0x6a6   :  { %21843 = vmatprep.subr.mxu1 %v22848_v2  ;;  %21823 = vmatpush3.msra.mxu0 %v22848_v2 }
 0x6a7   :  { %21844 = vmatpush3.msra.mxu1 %v22848_v2  ;;  %21824 = vmatprep.subr.mxu0 %v22848_v2 }
 0x6a8   :  { %21845 = vmatprep.subr.mxu1 %v22848_v2  ;;  %21825 = vmatpush3.msra.mxu0 %v22848_v2 }
 0x6a9   :  { %21846 = vmatpush3.msra.mxu1 %v22848_v2  ;;  %21826 = vmatprep.subr.mxu0 %v22848_v2 }
 0x6aa   :  { %21847 = vmatprep.subr.mxu1 %v22848_v2  ;;  %21827 = vmatpush3.msra.mxu0 %v22848_v2 }
 0x6ab   :  { %21848 = vmatpush3.msra.mxu1 %v22848_v2  ;;  %21828 = vmatprep.subr.mxu0 %v22848_v2 }
 0x6ac   :  { %v22767_v22 = vpop.eup %22766  ;;  %21849 = vmatprep.subr.mxu1 %v22848_v2  ;;  %21829 = vmatpush3.msra.mxu0 %v22848_v2 }
 0x6ad   :  { %v12743_v14 = vmul.f32 %v22767_v22, %v12739_v61  ;;  %21850 = vmatpush3.msra.mxu1 %v22848_v2  ;;  %14549 = vmatprep.mubr.f32.mxu0 %v14322_v32  ;;  %v21480_v38 = vpop.f32.mrf.mxu0 }
 0x6ae   :  { %21851 = vmatprep.subr.mxu1 %v22848_v2  ;;  %14553 = vmatmul.mubr.f32.vlgmr.msra.gmra.mxu0 %v14328_v48  ;;  %v14822_v48 = vand.u32 4294901760, %v14821_v50 }
 0x6af   :  { %v12745_v40 = vsel %vm12744_vm2, %v12739_v61, %v12743_v14  ;;  %21852 = vmatpush3.msra.mxu1 %v22848_v2  ;;  %21868 = vmatprep.subr.mxu0 %v22848_v2  ;;  %v21481_v21 = vpop.f32.mrf.mxu0  ;;  %v15207_v61 = vmul.f32 %v15205_v51, %v15205_v51 }
 0x6b0   :  { %21853 = vmatprep.subr.mxu1 %v22848_v2  ;;  %21869 = vmatpush3.msra.mxu0 %v22848_v2  ;;  %v21482_v56 = vadd.f32 %v21481_v21, %v21480_v38  ;;  %v12748_v18 = vsel %vm12746_vm3, %v12747_v5, %v12745_v40 }
 0x6b1   :  { %21854 = vmatpush3.msra.mxu1 %v22848_v2  ;;  %21870 = vmatprep.subr.mxu0 %v22848_v2  ;;  %v12749_v54 = vsub.f32 %v23789_v23, %v12748_v18 }
 0x6b2   :  { %21855 = vmatprep.subr.mxu1 %v22848_v2  ;;  %21871 = vmatpush3.msra.mxu0 %v22848_v2  ;;  %v12937_v37 = vadd.f32 %v21482_v56, %v27593_v60  ;;  %v27658_v25 = vpop.f32.mrf.mxu0  ;;  %v15206_v60 = vsub.f32 %v27611_v63, %v27783_v58 }
 0x6b3   :  { %21856 = vmatpush3.msra.mxu1 %v22848_v2  ;;  %21872 = vmatprep.subr.mxu0 %v22848_v2  ;;  %v12750_v29 = vadd.f32 0.2, %v12749_v54 }
 0x6b4   :  { %21857 = vmatprep.subr.mxu1 %v22848_v2  ;;  %21873 = vmatpush3.msra.mxu0 %v22848_v2  ;;  %v13160_v20 = vpop.f32.mrf.mxu0  ;;  %v13011_v13 = vadd.f32 %v13010_v0, %v12937_v37  ;;  %v15208_v7 = vmul.f32 %v15206_v60, %v15206_v60 }
 0x6b5   :  { %21858 = vmatpush3.msra.mxu1 %v22848_v2  ;;  %21874 = vmatprep.subr.mxu0 %v22848_v2  ;;  %v12751_v12 = vmax.f32 %v12750_v29, 0.0 }
 0x6b6   :  { %21859 = vmatprep.subr.mxu1 %v22848_v2  ;;  %21875 = vmatpush3.msra.mxu0 %v22848_v2  ;;  %v15211_v63 = vcombine.low %v15207_v61, %v15208_v7 }
 0x6b7   :  { %21860 = vmatpush3.msra.mxu1 %v22848_v2  ;;  %21876 = vmatprep.subr.mxu0 %v22848_v2  ;;  %v27672_v35 = vadd.f32 %v12751_v12, %v27367_v34  ;;  %v27683_v34 = vand.u32 4294901760, %v14745_v36 }
 0x6b8   :  { %21861 = vmatprep.subr.mxu1 %v22848_v2  ;;  %21877 = vmatpush3.msra.mxu0 %v22848_v2  ;;  %v15218_v17 = vrot.slane %v15211_v63, %v22893_v16 }
 0x6b9   :  { %21862 = vmatpush3.msra.mxu1 %v22848_v2  ;;  %21878 = vmatprep.subr.mxu0 %v22848_v2  ;;  %v27696_v27 = vsub.f32 %v14745_v36, %v27683_v34 }
 0x6ba   :  { %21863 = vmatprep.subr.mxu1 %v22848_v2  ;;  %21879 = vmatpush3.msra.mxu0 %v22848_v2  ;;  %v15219_v6 = vcombine.high %v15218_v17, %v15218_v17 }
 0x6bb   :  { %21864 = vmatpush3.msra.mxu1 %v22848_v2  ;;  %14695 = vmatprep.mubr.f32.mxu1 %v27526_v59  ;;  %v14814_v43 = vand.u32 4294901760, %v27696_v27 }
 0x6bc   :  { %21880 = vmatprep.subr.mxu0 %v22848_v2  ;;  %14697 = vmatmul.mubr.f32.vlgmr.msra.gmra.mxu1 %v27530_v53  ;;  %v15233_v54 = vrot.slane %v15219_v6, %v22893_v16 }
 0x6bd   :  { %21881 = vmatpush3.msra.mxu0 %v22848_v2  ;;  %14858 = vmatprep.subr.mxu1 %v22849_v3  ;;  %v14815_v44 = vsub.f32 %v27696_v27, %v14814_v43 }
 0x6be   :  { %21882 = vmatprep.subr.mxu0 %v22848_v2  ;;  %14859 = vmatpush1.msra.mxu1 %v22849_v3 }
 0x6bf   :  { %21883 = vmatpush3.msra.mxu0 %v22848_v2  ;;  %14893 = vmatprep.mubr.f32.mxu1 %v27683_v34  ;;  %v14816_v33 = vand.u32 4294901760, %v14815_v44 }
 0x6c0   :  { %21884 = vmatprep.subr.mxu0 %v22848_v2  ;;  %14895 = vmatmul.mubr.f32.vlgmr.msra.gmra.mxu1 %v27687_v26 }
 0x6c1   :  { %21885 = vmatpush3.msra.mxu0 %v22848_v2  ;;  %14930 = vmatprep.subr.mxu1 %v22849_v3 }
 0x6c2   :  { %21886 = vmatprep.subr.mxu0 %v22848_v2  ;;  %14931 = vmatpush1.msra.mxu1 %v22849_v3  ;;  %v21515_v30 = vpop.f32.mrf.mxu1 }
 0x6c3   :  { %21887 = vmatpush3.msra.mxu0 %v22848_v2  ;;  %14966 = vmatprep.mubr.f32.mxu1 %v27696_v27 }
 0x6c4   :  { %21888 = vmatprep.subr.mxu0 %v22848_v2  ;;  %21903 = vmatprep.subr.mxu1 %v22848_v2  ;;  %v21516_v41 = vpop.f32.mrf.mxu1 }
 0x6c5   :  { %21889 = vmatpush3.msra.mxu0 %v22848_v2  ;;  %14969 = vmatmul.mubr.f32.vlgmr.msra.gmra.mxu1 %v27703_v28  ;;  %v21517_v59 = vadd.f32 %v21516_v41, %v21515_v30 }
 0x6c6   :  { %21904 = vmatpush3.msra.mxu1 %v22848_v2  ;;  %21890 = vmatprep.subr.mxu0 %v22848_v2 }
 0x6c7   :  { %21905 = vmatprep.subr.mxu1 %v22848_v2  ;;  %21891 = vmatpush3.msra.mxu0 %v22848_v2  ;;  %v13087_v53 = vadd.f32 %v21517_v59, %v13011_v13 }
 0x6c8   :  { %21906 = vmatpush3.msra.mxu1 %v22848_v2  ;;  %21892 = vmatprep.subr.mxu0 %v22848_v2 }
 0x6c9   :  { %21907 = vmatprep.subr.mxu1 %v22848_v2  ;;  %21893 = vmatpush3.msra.mxu0 %v22848_v2  ;;  %v13159_v32 = vadd.f32 %v27658_v25, %v13087_v53  ;;  %v15226_v25 = vrot.slane %v15218_v17, %v22893_v16 }
 0x6ca   :  { %21908 = vmatpush3.msra.mxu1 %v22848_v2  ;;  %21894 = vmatprep.subr.mxu0 %v22848_v2 }
 0x6cb   :  { %21909 = vmatprep.subr.mxu1 %v22848_v2  ;;  %21895 = vmatpush3.msra.mxu0 %v22848_v2  ;;  %v27856_v31 = vand.u32 4294901760, %v15226_v25 }
 0x6cc   :  { %21910 = vmatpush3.msra.mxu1 %v22848_v2  ;;  %21896 = vmatprep.subr.mxu0 %v22848_v2 }
 0x6cd   :  { %21911 = vmatprep.subr.mxu1 %v22848_v2  ;;  %21897 = vmatpush3.msra.mxu0 %v22848_v2  ;;  %v27872_v20 = vsub.f32 %v15226_v25, %v27856_v31 }
 0x6ce   :  { %21912 = vmatpush3.msra.mxu1 %v22848_v2  ;;  %21898 = vmatprep.subr.mxu0 %v22848_v2 }
 0x6cf   :  { %21913 = vmatprep.subr.mxu1 %v22848_v2  ;;  %21899 = vmatpush3.msra.mxu0 %v22848_v2  ;;  %v15308_v36 = vand.u32 4294901760, %v27872_v20 }
 0x6d0   :  { %14817 = vmatprep.mubr.f32.mxu0 %v14816_v33  ;;  %21914 = vmatpush3.msra.mxu1 %v22848_v2  ;;  %v27935_v33 = vld [vmem:[%s28960_s0 + $0x22] ss:$8 sm:$0x3] }
 0x6d1   :  { %14823 = vmatmul.mubr.f32.vlgmr.msra.gmra.mxu0 %v14822_v48  ;;  %21915 = vmatprep.subr.mxu1 %v22848_v2  ;;  %v15309_v27 = vsub.f32 %v27872_v20, %v15308_v36  ;;  %v27940_v48 = vld [vmem:[%s28960_s0 + $0x52] ss:$8 sm:$0x3] }
 0x6d2   :  { %21916 = vmatpush3.msra.mxu1 %v22848_v2  ;;  %15080 = vmatprep.subr.mxu0 %v22849_v3  ;;  %v21550_v57 = vpop.f32.mrf.mxu0 }
 0x6d3   :  { %21917 = vmatprep.subr.mxu1 %v22848_v2  ;;  %15081 = vmatpush1.msra.mxu0 %v22849_v3  ;;  %v15310_v41 = vand.u32 4294901760, %v15309_v27 }
 0x6d4   :  { %21918 = vmatpush3.msra.mxu1 %v22848_v2  ;;  %15115 = vmatprep.mubr.f32.mxu0 %v27683_v34  ;;  %v21551_v24 = vpop.f32.mrf.mxu0 }
 0x6d5   :  { %21938 = vmatprep.subr.mxu0 %v22848_v2  ;;  %21919 = vmatprep.subr.mxu1 %v22848_v2  ;;  %v21552_v49 = vadd.f32 %v21551_v24, %v21550_v57 }
 0x6d6   :  { %15117 = vmatmul.mubr.f32.vlgmr.msra.gmra.mxu0 %v27687_v26  ;;  %21920 = vmatpush3.msra.mxu1 %v22848_v2  ;;  %v27754_v52 = vpop.f32.mrf.mxu0 }
 0x6d7   :  { %21939 = vmatpush3.msra.mxu0 %v22848_v2  ;;  %21921 = vmatprep.subr.mxu1 %v22848_v2  ;;  %v27758_v42 = vadd.f32 %v21552_v49, %v13159_v32  ;;  %v27953_v49 = vld [vmem:[%s28960_s0] ss:$8 sm:$0x3] }
 0x6d8   :  { %21940 = vmatprep.subr.mxu0 %v22848_v2  ;;  %21922 = vmatpush3.msra.mxu1 %v22848_v2  ;;  %v13426_v19 = vpop.f32.mrf.mxu0 }
 0x6d9   :  { %21941 = vmatpush3.msra.mxu0 %v22848_v2  ;;  %21923 = vmatprep.subr.mxu1 %v22848_v2  ;;  %22768 = vrsqrt.f32 %v27758_v42  ;;  %vm13236_vm4 = vcmp.eq.f32.partialorder %v27758_v42, inf  ;;  %v13239_v8 = vand.u32 2147483648, %v27758_v42  ;;  %vm13238_vm5 = vcmp.eq.f32.partialorder %v27758_v42, 0.0 }
 0x6da   :  { %21942 = vmatprep.subr.mxu0 %v22848_v2  ;;  %21924 = vmatpush3.msra.mxu1 %v22848_v2 }
 0x6db   :  { %21943 = vmatpush3.msra.mxu0 %v22848_v2  ;;  %21925 = vmatprep.subr.mxu1 %v22848_v2  ;;  %v13498_v4 = vpop.f32.mrf.mxu0 }
 0x6dc   :  { %21944 = vmatprep.subr.mxu0 %v22848_v2  ;;  %21926 = vmatpush3.msra.mxu1 %v22848_v2 }
 0x6dd   :  { %21945 = vmatpush3.msra.mxu0 %v22848_v2  ;;  %21927 = vmatprep.subr.mxu1 %v22848_v2  ;;  %v13500_v55 = vpop.f32.mrf.mxu0 }
 0x6de   :  { %21946 = vmatprep.subr.mxu0 %v22848_v2  ;;  %21928 = vmatpush3.msra.mxu1 %v22848_v2 }
 0x6df   :  { %21947 = vmatpush3.msra.mxu0 %v22848_v2  ;;  %21929 = vmatprep.subr.mxu1 %v22848_v2 }
 0x6e0   :  { %21948 = vmatprep.subr.mxu0 %v22848_v2  ;;  %21930 = vmatpush3.msra.mxu1 %v22848_v2 }
 0x6e1   :  { %21949 = vmatpush3.msra.mxu0 %v22848_v2  ;;  %21931 = vmatprep.subr.mxu1 %v22848_v2 }
 0x6e2   :  { %21950 = vmatprep.subr.mxu0 %v22848_v2  ;;  %21932 = vmatpush3.msra.mxu1 %v22848_v2 }
 0x6e3   :  { %21951 = vmatpush3.msra.mxu0 %v22848_v2  ;;  %21933 = vmatprep.subr.mxu1 %v22848_v2 }
 0x6e4   :  { %21952 = vmatprep.subr.mxu0 %v22848_v2  ;;  %21934 = vmatpush3.msra.mxu1 %v22848_v2 }
 0x6e5   :  { %21953 = vmatpush3.msra.mxu0 %v22848_v2  ;;  %15041 = vmatprep.mubr.f32.mxu1 %v14814_v43  ;;  %v21585_v62 = vpop.f32.mrf.mxu1 }
 0x6e6   :  { %v22769_v0 = vpop.eup %22768  ;;  %21954 = vmatprep.subr.mxu0 %v22848_v2  ;;  %15045 = vmatmul.mubr.f32.vlgmr.msra.gmra.mxu1 %v14820_v45 }
 0x6e7   :  { %v13235_v1 = vmul.f32 %v22769_v0, %v27758_v42  ;;  %21955 = vmatpush3.msra.mxu0 %v22848_v2  ;;  %21973 = vmatprep.subr.mxu1 %v22848_v2  ;;  %v21586_v15 = vpop.f32.mrf.mxu1 }
 0x6e8   :  { %21956 = vmatprep.subr.mxu0 %v22848_v2  ;;  %21974 = vmatpush3.msra.mxu1 %v22848_v2  ;;  %v21587_v9 = vadd.f32 %v21586_v15, %v21585_v62 }
 0x6e9   :  { %21957 = vmatpush3.msra.mxu0 %v22848_v2  ;;  %21975 = vmatprep.subr.mxu1 %v22848_v2  ;;  %v13237_v10 = vsel %vm13236_vm4, %v27758_v42, %v13235_v1  ;;  %v27960_v42 = vld [vmem:[%s28960_s0 + $0x30] ss:$8 sm:$0x3] }
 0x6ea   :  { %21958 = vmatprep.subr.mxu0 %v22848_v2  ;;  %21976 = vmatpush3.msra.mxu1 %v22848_v2  ;;  %v13425_v22 = vadd.f32 %v21587_v9, %v27754_v52  ;;  %v27822_v14 = vpop.f32.mrf.mxu1  ;;  %v13240_v38 = vsel %vm13238_vm5, %v13239_v8, %v13237_v10  ;;  %v15697_v52 = vsub.f32 %v27953_v49, %v27935_v33 }
 0x6eb   :  { %21959 = vmatpush3.msra.mxu0 %v22848_v2  ;;  %21977 = vmatprep.subr.mxu1 %v22848_v2  ;;  %v13241_v5 = vsub.f32 %v23789_v23, %v13240_v38  ;;  %v15698_v19 = vsub.f32 %v27960_v42, %v27940_v48 }
 0x6ec   :  { %21960 = vmatprep.subr.mxu0 %v22848_v2  ;;  %21978 = vmatpush3.msra.mxu1 %v22848_v2  ;;  %v13648_v40 = vpop.f32.mrf.mxu1  ;;  %v13499_v21 = vadd.f32 %v13498_v4, %v13425_v22  ;;  %v15699_v4 = vmul.f32 %v15697_v52, %v15697_v52 }
 0x6ed   :  { %21961 = vmatpush3.msra.mxu0 %v22848_v2  ;;  %21979 = vmatprep.subr.mxu1 %v22848_v2  ;;  %v13242_v56 = vadd.f32 0.5, %v13241_v5  ;;  %v15700_v55 = vmul.f32 %v15698_v19, %v15698_v19 }
 0x6ee   :  { %21962 = vmatprep.subr.mxu0 %v22848_v2  ;;  %21980 = vmatpush3.msra.mxu1 %v22848_v2 }
 0x6ef   :  { %21963 = vmatpush3.msra.mxu0 %v22848_v2  ;;  %21981 = vmatprep.subr.mxu1 %v22848_v2  ;;  %v13243_v18 = vmax.f32 %v13242_v56, 0.0  ;;  %v15703_v51 = vcombine.low %v15699_v4, %v15700_v55 }
 0x6f0   :  { %21964 = vmatprep.subr.mxu0 %v22848_v2  ;;  %21982 = vmatpush3.msra.mxu1 %v22848_v2 }
 0x6f1   :  { %21965 = vmatpush3.msra.mxu0 %v22848_v2  ;;  %21983 = vmatprep.subr.mxu1 %v22848_v2  ;;  %v27841_v37 = vadd.f32 %v13243_v18, %v27515_v46  ;;  %v27852_v46 = vand.u32 4294901760, %v15233_v54  ;;  %v15710_v0 = vrot.slane %v15703_v51, %v22893_v16 }
 0x6f2   :  { %21966 = vmatprep.subr.mxu0 %v22848_v2  ;;  %21984 = vmatpush3.msra.mxu1 %v22848_v2 }
 0x6f3   :  { %21967 = vmatpush3.msra.mxu0 %v22848_v2  ;;  %21985 = vmatprep.subr.mxu1 %v22848_v2  ;;  %v27865_v29 = vsub.f32 %v15233_v54, %v27852_v46  ;;  %v15711_v22 = vcombine.high %v15710_v0, %v15710_v0  ;;  %v15718_v56 = vrot.slane %v15710_v0, %v22893_v16 }
 0x6f4   :  { %21968 = vmatprep.subr.mxu0 %v22848_v2  ;;  %21986 = vmatpush3.msra.mxu1 %v22848_v2 }
 0x6f5   :  { %21969 = vmatpush3.msra.mxu0 %v22848_v2  ;;  %15187 = vmatprep.mubr.f32.mxu0 %v27683_v34  ;;  %v15302_v13 = vand.u32 4294901760, %v27865_v29  ;;  %v28034_v18 = vand.u32 4294901760, %v15718_v56 }
 0x6f6   :  { %21987 = vmatprep.subr.mxu1 %v22848_v2  ;;  %15189 = vmatmul.mubr.f32.vlgmr.msra.gmra.mxu0 %v27687_v26 }
 0x6f7   :  { %21988 = vmatpush3.msra.mxu1 %v22848_v2  ;;  %15346 = vmatprep.subr.mxu0 %v22849_v3  ;;  %v15303_v26 = vsub.f32 %v27865_v29, %v15302_v13  ;;  %v28050_v25 = vsub.f32 %v15718_v56, %v28034_v18 }
 0x6f8   :  { %21989 = vmatprep.subr.mxu1 %v22848_v2  ;;  %15347 = vmatpush1.msra.mxu0 %v22849_v3 }
 0x6f9   :  { %21990 = vmatpush3.msra.mxu1 %v22848_v2  ;;  %15381 = vmatprep.mubr.f32.mxu0 %v27852_v46  ;;  %v15304_v43 = vand.u32 4294901760, %v15303_v26 }
 0x6fa   :  { %21991 = vmatprep.subr.mxu1 %v22848_v2  ;;  %15383 = vmatmul.mubr.f32.vlgmr.msra.gmra.mxu0 %v27856_v31 }
 0x6fb   :  { %21992 = vmatpush3.msra.mxu1 %v22848_v2  ;;  %15418 = vmatprep.subr.mxu0 %v22849_v3 }
 0x6fc   :  { %21993 = vmatprep.subr.mxu1 %v22848_v2  ;;  %15419 = vmatpush1.msra.mxu0 %v22849_v3  ;;  %v21620_v12 = vpop.f32.mrf.mxu0 }
 0x6fd   :  { %21994 = vmatpush3.msra.mxu1 %v22848_v2  ;;  %15454 = vmatprep.mubr.f32.mxu0 %v27865_v29 }
 0x6fe   :  { %21995 = vmatprep.subr.mxu1 %v22848_v2  ;;  %22008 = vmatprep.subr.mxu0 %v22848_v2  ;;  %v21621_v39 = vpop.f32.mrf.mxu0 }
 0x6ff   :  { %21996 = vmatpush3.msra.mxu1 %v22848_v2  ;;  %15457 = vmatmul.mubr.f32.vlgmr.msra.gmra.mxu0 %v27872_v20  ;;  %v21622_v34 = vadd.f32 %v21621_v39, %v21620_v12  ;;  %v15800_v20 = vand.u32 4294901760, %v28050_v25 }
 0x700   :  { %22009 = vmatpush3.msra.mxu0 %v22848_v2  ;;  %21997 = vmatprep.subr.mxu1 %v22848_v2 }
 0x701   :  { %22010 = vmatprep.subr.mxu0 %v22848_v2  ;;  %21998 = vmatpush3.msra.mxu1 %v22848_v2  ;;  %v13575_v28 = vadd.f32 %v21622_v34, %v13499_v21  ;;  %v15725_v21 = vrot.slane %v15711_v22, %v22893_v16  ;;  %v15801_v39 = vsub.f32 %v28050_v25, %v15800_v20 }
 0x702   :  { %22011 = vmatpush3.msra.mxu0 %v22848_v2  ;;  %21999 = vmatprep.subr.mxu1 %v22848_v2 }
 0x703   :  { %22012 = vmatprep.subr.mxu0 %v22848_v2  ;;  %22000 = vmatpush3.msra.mxu1 %v22848_v2  ;;  %v13647_v30 = vadd.f32 %v27822_v14, %v13575_v28  ;;  %v15802_v27 = vand.u32 4294901760, %v15801_v39 }
 0x704   :  { %22013 = vmatpush3.msra.mxu0 %v22848_v2  ;;  %22001 = vmatprep.subr.mxu1 %v22848_v2 }
 0x705   :  { %22014 = vmatprep.subr.mxu0 %v22848_v2  ;;  %22002 = vmatpush3.msra.mxu1 %v22848_v2 }
 0x706   :  { %22015 = vmatpush3.msra.mxu0 %v22848_v2  ;;  %22003 = vmatprep.subr.mxu1 %v22848_v2 }
 0x707   :  { %22016 = vmatprep.subr.mxu0 %v22848_v2  ;;  %22004 = vmatpush3.msra.mxu1 %v22848_v2 }
 0x708   :  { %15305 = vmatprep.mubr.f32.mxu1 %v15304_v43  ;;  %22017 = vmatpush3.msra.mxu0 %v22848_v2 }
 0x709   :  { %15311 = vmatmul.mubr.f32.vlgmr.msra.gmra.mxu1 %v15310_v41  ;;  %22018 = vmatprep.subr.mxu0 %v22848_v2 }
 0x70a   :  { %15568 = vmatprep.subr.mxu1 %v22849_v3  ;;  %22019 = vmatpush3.msra.mxu0 %v22848_v2  ;;  %v21655_v45 = vpop.f32.mrf.mxu1 }
 0x70b   :  { %15569 = vmatpush1.msra.mxu1 %v22849_v3  ;;  %22020 = vmatprep.subr.mxu0 %v22848_v2 }
 0x70c   :  { %22021 = vmatpush3.msra.mxu0 %v22848_v2  ;;  %15603 = vmatprep.mubr.f32.mxu1 %v27852_v46  ;;  %v21656_v59 = vpop.f32.mrf.mxu1 }
 0x70d   :  { %22043 = vmatprep.subr.mxu1 %v22848_v2  ;;  %22022 = vmatprep.subr.mxu0 %v22848_v2  ;;  %v21657_v53 = vadd.f32 %v21656_v59, %v21655_v45 }
 0x70e   :  { %15605 = vmatmul.mubr.f32.vlgmr.msra.gmra.mxu1 %v27856_v31  ;;  %22023 = vmatpush3.msra.mxu0 %v22848_v2  ;;  %v27919_v44 = vpop.f32.mrf.mxu1 }
 0x70f   :  { %22044 = vmatpush3.msra.mxu1 %v22848_v2  ;;  %22024 = vmatprep.subr.mxu0 %v22848_v2  ;;  %v27923_v50 = vadd.f32 %v21657_v53, %v13647_v30 }
 0x710   :  { %22045 = vmatprep.subr.mxu1 %v22848_v2  ;;  %22025 = vmatpush3.msra.mxu0 %v22848_v2  ;;  %v13918_v32 = vpop.f32.mrf.mxu1 }
 0x711   :  { %22046 = vmatpush3.msra.mxu1 %v22848_v2  ;;  %22026 = vmatprep.subr.mxu0 %v22848_v2  ;;  %22770 = vrsqrt.f32 %v27923_v50  ;;  %vm13724_vm6 = vcmp.eq.f32.partialorder %v27923_v50, inf  ;;  %v13727_v62 = vand.u32 2147483648, %v27923_v50  ;;  %vm13726_vm7 = vcmp.eq.f32.partialorder %v27923_v50, 0.0 }
 0x712   :  { %22047 = vmatprep.subr.mxu1 %v22848_v2  ;;  %22027 = vmatpush3.msra.mxu0 %v22848_v2  ;;  %v16186_v32 = vsub.f32 %v27940_v48, %v27783_v58 }
 0x713   :  { %22048 = vmatpush3.msra.mxu1 %v22848_v2  ;;  %22028 = vmatprep.subr.mxu0 %v22848_v2  ;;  %v27944_v57 = vpop.f32.mrf.mxu1 }
 0x714   :  { %22049 = vmatprep.subr.mxu1 %v22848_v2  ;;  %22029 = vmatpush3.msra.mxu0 %v22848_v2 }
 0x715   :  { %22050 = vmatpush3.msra.mxu1 %v22848_v2  ;;  %22030 = vmatprep.subr.mxu0 %v22848_v2  ;;  %v13992_v24 = vpop.f32.mrf.mxu1 }
 0x716   :  { %22051 = vmatprep.subr.mxu1 %v22848_v2  ;;  %22031 = vmatpush3.msra.mxu0 %v22848_v2 }
 0x717   :  { %22052 = vmatpush3.msra.mxu1 %v22848_v2  ;;  %22032 = vmatprep.subr.mxu0 %v22848_v2 }
 0x718   :  { %22053 = vmatprep.subr.mxu1 %v22848_v2  ;;  %22033 = vmatpush3.msra.mxu0 %v22848_v2 }
 0x719   :  { %22054 = vmatpush3.msra.mxu1 %v22848_v2  ;;  %22034 = vmatprep.subr.mxu0 %v22848_v2 }
 0x71a   :  { %22055 = vmatprep.subr.mxu1 %v22848_v2  ;;  %22035 = vmatpush3.msra.mxu0 %v22848_v2 }
 0x71b   :  { %22056 = vmatpush3.msra.mxu1 %v22848_v2  ;;  %22036 = vmatprep.subr.mxu0 %v22848_v2 }
 0x71c   :  { %22057 = vmatprep.subr.mxu1 %v22848_v2  ;;  %22037 = vmatpush3.msra.mxu0 %v22848_v2 }
 0x71d   :  { %22058 = vmatpush3.msra.mxu1 %v22848_v2  ;;  %22038 = vmatprep.subr.mxu0 %v22848_v2 }
 0x71e   :  { %v22771_v60 = vpop.eup %22770  ;;  %22059 = vmatprep.subr.mxu1 %v22848_v2  ;;  %22039 = vmatpush3.msra.mxu0 %v22848_v2 }
 0x71f   :  { %v13723_v61 = vmul.f32 %v22771_v60, %v27923_v50  ;;  %22060 = vmatpush3.msra.mxu1 %v22848_v2  ;;  %15529 = vmatprep.mubr.f32.mxu0 %v15302_v13  ;;  %v21690_v7 = vpop.f32.mrf.mxu0 }
 0x720   :  { %22061 = vmatprep.subr.mxu1 %v22848_v2  ;;  %15533 = vmatmul.mubr.f32.vlgmr.msra.gmra.mxu0 %v15308_v36 }
 0x721   :  { %22062 = vmatpush3.msra.mxu1 %v22848_v2  ;;  %22078 = vmatprep.subr.mxu0 %v22848_v2  ;;  %v21691_v63 = vpop.f32.mrf.mxu0  ;;  %v13725_v1 = vsel %vm13724_vm6, %v27923_v50, %v13723_v61  ;;  %v16185_v50 = vsub.f32 %v27935_v33, %v27776_v47  ;;  %v16188_v33 = vmul.f32 %v16186_v32, %v16186_v32 }
 0x722   :  { %22063 = vmatprep.subr.mxu1 %v22848_v2  ;;  %22079 = vmatpush3.msra.mxu0 %v22848_v2  ;;  %v21692_v15 = vadd.f32 %v21691_v63, %v21690_v7  ;;  %v13728_v9 = vsel %vm13726_vm7, %v13727_v62, %v13725_v1 }
 0x723   :  { %22064 = vmatpush3.msra.mxu1 %v22848_v2  ;;  %22080 = vmatprep.subr.mxu0 %v22848_v2  ;;  %v13729_v8 = vsub.f32 %v23789_v23, %v13728_v9  ;;  %v16187_v47 = vmul.f32 %v16185_v50, %v16185_v50 }
 0x724   :  { %22065 = vmatprep.subr.mxu1 %v22848_v2  ;;  %22081 = vmatpush3.msra.mxu0 %v22848_v2  ;;  %v13917_v17 = vadd.f32 %v21692_v15, %v27919_v44  ;;  %v28004_v10 = vpop.f32.mrf.mxu0 }
 0x725   :  { %22066 = vmatpush3.msra.mxu1 %v22848_v2  ;;  %22082 = vmatprep.subr.mxu0 %v22848_v2  ;;  %v13730_v14 = vadd.f32 0.2, %v13729_v8  ;;  %v16191_v48 = vcombine.low %v16187_v47, %v16188_v33 }
 0x726   :  { %22067 = vmatprep.subr.mxu1 %v22848_v2  ;;  %22083 = vmatpush3.msra.mxu0 %v22848_v2  ;;  %v14140_v38 = vpop.f32.mrf.mxu0  ;;  %v13991_v5 = vadd.f32 %v27944_v57, %v13917_v17 }
 0x727   :  { %22068 = vmatpush3.msra.mxu1 %v22848_v2  ;;  %22084 = vmatprep.subr.mxu0 %v22848_v2  ;;  %v13731_v40 = vmax.f32 %v13730_v14, 0.0  ;;  %v16198_v55 = vrot.slane %v16191_v48, %v22893_v16 }
 0x728   :  { %22069 = vmatprep.subr.mxu1 %v22848_v2  ;;  %22085 = vmatpush3.msra.mxu0 %v22848_v2 }
 0x729   :  { %22070 = vmatpush3.msra.mxu1 %v22848_v2  ;;  %22086 = vmatprep.subr.mxu0 %v22848_v2  ;;  %v28019_v6 = vadd.f32 %v13731_v40, %v27672_v35  ;;  %v28030_v35 = vand.u32 4294901760, %v15725_v21  ;;  %v16199_v1 = vcombine.high %v16198_v55, %v16198_v55 }
 0x72a   :  { %22071 = vmatprep.subr.mxu1 %v22848_v2  ;;  %22087 = vmatpush3.msra.mxu0 %v22848_v2 }
 0x72b   :  { %22072 = vmatpush3.msra.mxu1 %v22848_v2  ;;  %22088 = vmatprep.subr.mxu0 %v22848_v2  ;;  %v28043_v54 = vsub.f32 %v15725_v21, %v28030_v35  ;;  %v16213_v8 = vrot.slane %v16199_v1, %v22893_v16 }
 0x72c   :  { %22073 = vmatprep.subr.mxu1 %v22848_v2  ;;  %22089 = vmatpush3.msra.mxu0 %v22848_v2 }
 0x72d   :  { %22074 = vmatpush3.msra.mxu1 %v22848_v2  ;;  %15675 = vmatprep.mubr.f32.mxu1 %v27852_v46 }
 0x72e   :  { %22090 = vmatprep.subr.mxu0 %v22848_v2  ;;  %15677 = vmatmul.mubr.f32.vlgmr.msra.gmra.mxu1 %v27856_v31  ;;  %v15794_v31 = vand.u32 4294901760, %v28043_v54 }
 0x72f   :  { %22091 = vmatpush3.msra.mxu0 %v22848_v2  ;;  %15838 = vmatprep.subr.mxu1 %v22849_v3 }
 0x730   :  { %22092 = vmatprep.subr.mxu0 %v22848_v2  ;;  %15839 = vmatpush1.msra.mxu1 %v22849_v3  ;;  %v15795_v36 = vsub.f32 %v28043_v54, %v15794_v31 }
 0x731   :  { %22093 = vmatpush3.msra.mxu0 %v22848_v2  ;;  %15873 = vmatprep.mubr.f32.mxu1 %v28030_v35 }
 0x732   :  { %22094 = vmatprep.subr.mxu0 %v22848_v2  ;;  %15875 = vmatmul.mubr.f32.vlgmr.msra.gmra.mxu1 %v28034_v18  ;;  %v15796_v26 = vand.u32 4294901760, %v15795_v36 }
 0x733   :  { %22095 = vmatpush3.msra.mxu0 %v22848_v2  ;;  %15910 = vmatprep.subr.mxu1 %v22849_v3 }
 0x734   :  { %22096 = vmatprep.subr.mxu0 %v22848_v2  ;;  %15911 = vmatpush1.msra.mxu1 %v22849_v3  ;;  %v21725_v46 = vpop.f32.mrf.mxu1 }
 0x735   :  { %22097 = vmatpush3.msra.mxu0 %v22848_v2  ;;  %15946 = vmatprep.mubr.f32.mxu1 %v28043_v54 }
 0x736   :  { %22098 = vmatprep.subr.mxu0 %v22848_v2  ;;  %22113 = vmatprep.subr.mxu1 %v22848_v2  ;;  %v21726_v29 = vpop.f32.mrf.mxu1 }
 0x737   :  { %22099 = vmatpush3.msra.mxu0 %v22848_v2  ;;  %15949 = vmatmul.mubr.f32.vlgmr.msra.gmra.mxu1 %v28050_v25  ;;  %v21727_v13 = vadd.f32 %v21726_v29, %v21725_v46 }
 0x738   :  { %22114 = vmatpush3.msra.mxu1 %v22848_v2  ;;  %22100 = vmatprep.subr.mxu0 %v22848_v2 }
 0x739   :  { %22115 = vmatprep.subr.mxu1 %v22848_v2  ;;  %22101 = vmatpush3.msra.mxu0 %v22848_v2  ;;  %v14067_v12 = vadd.f32 %v21727_v13, %v13991_v5 }
 0x73a   :  { %22116 = vmatpush3.msra.mxu1 %v22848_v2  ;;  %22102 = vmatprep.subr.mxu0 %v22848_v2 }
 0x73b   :  { %22117 = vmatprep.subr.mxu1 %v22848_v2  ;;  %22103 = vmatpush3.msra.mxu0 %v22848_v2  ;;  %v14139_v34 = vadd.f32 %v28004_v10, %v14067_v12  ;;  %v16206_v10 = vrot.slane %v16198_v55, %v22893_v16 }
 0x73c   :  { %22118 = vmatpush3.msra.mxu1 %v22848_v2  ;;  %22104 = vmatprep.subr.mxu0 %v22848_v2 }
 0x73d   :  { %22119 = vmatprep.subr.mxu1 %v22848_v2  ;;  %22105 = vmatpush3.msra.mxu0 %v22848_v2  ;;  %v28182_v22 = vand.u32 4294901760, %v16206_v10 }
 0x73e   :  { %22120 = vmatpush3.msra.mxu1 %v22848_v2  ;;  %22106 = vmatprep.subr.mxu0 %v22848_v2 }
 0x73f   :  { %22121 = vmatprep.subr.mxu1 %v22848_v2  ;;  %22107 = vmatpush3.msra.mxu0 %v22848_v2  ;;  %v28198_v38 = vsub.f32 %v16206_v10, %v28182_v22 }
 0x740   :  { %22122 = vmatpush3.msra.mxu1 %v22848_v2  ;;  %22108 = vmatprep.subr.mxu0 %v22848_v2 }
 0x741   :  { %22123 = vmatprep.subr.mxu1 %v22848_v2  ;;  %22109 = vmatpush3.msra.mxu0 %v22848_v2  ;;  %v16288_v21 = vand.u32 4294901760, %v28198_v38 }
 0x742   :  { %15797 = vmatprep.mubr.f32.mxu0 %v15796_v26  ;;  %22124 = vmatpush3.msra.mxu1 %v22848_v2  ;;  %v28258_v26 = vld [vmem:[%s28960_s0 + $0x23] ss:$8 sm:$0x3] }
 0x743   :  { %15803 = vmatmul.mubr.f32.vlgmr.msra.gmra.mxu0 %v15802_v27  ;;  %22125 = vmatprep.subr.mxu1 %v22848_v2  ;;  %v16289_v54 = vsub.f32 %v28198_v38, %v16288_v21  ;;  %v28263_v27 = vld [vmem:[%s28960_s0 + $0x53] ss:$8 sm:$0x3] }
 0x744   :  { %22126 = vmatpush3.msra.mxu1 %v22848_v2  ;;  %16060 = vmatprep.subr.mxu0 %v22849_v3  ;;  %v21760_v28 = vpop.f32.mrf.mxu0 }
 0x745   :  { %22127 = vmatprep.subr.mxu1 %v22848_v2  ;;  %16061 = vmatpush1.msra.mxu0 %v22849_v3  ;;  %v16290_v29 = vand.u32 4294901760, %v16289_v54 }
 0x746   :  { %22128 = vmatpush3.msra.mxu1 %v22848_v2  ;;  %16095 = vmatprep.mubr.f32.mxu0 %v28030_v35  ;;  %v21761_v30 = vpop.f32.mrf.mxu0 }
 0x747   :  { %22148 = vmatprep.subr.mxu0 %v22848_v2  ;;  %22129 = vmatprep.subr.mxu1 %v22848_v2  ;;  %v21762_v43 = vadd.f32 %v21761_v30, %v21760_v28 }
 0x748   :  { %16097 = vmatmul.mubr.f32.vlgmr.msra.gmra.mxu0 %v28034_v18  ;;  %22130 = vmatpush3.msra.mxu1 %v22848_v2  ;;  %v14404_v41 = vpop.f32.mrf.mxu0 }
 0x749   :  { %22149 = vmatpush3.msra.mxu0 %v22848_v2  ;;  %22131 = vmatprep.subr.mxu1 %v22848_v2  ;;  %v14211_v45 = vadd.f32 %v21762_v43, %v14139_v34  ;;  %v16677_v43 = vsub.f32 %v27953_v49, %v28258_v26 }
 0x74a   :  { %22150 = vmatprep.subr.mxu0 %v22848_v2  ;;  %22132 = vmatpush3.msra.mxu1 %v22848_v2  ;;  %v14406_v59 = vpop.f32.mrf.mxu0 }
 0x74b   :  { %22151 = vmatpush3.msra.mxu0 %v22848_v2  ;;  %22133 = vmatprep.subr.mxu1 %v22848_v2  ;;  %22772 = vrsqrt.f32 %v14211_v45  ;;  %vm14216_vm8 = vcmp.eq.f32.partialorder %v14211_v45, inf  ;;  %v14219_v4 = vand.u32 2147483648, %v14211_v45  ;;  %vm14218_vm9 = vcmp.eq.f32.partialorder %v14211_v45, 0.0 }
 0x74c   :  { %22152 = vmatprep.subr.mxu0 %v22848_v2  ;;  %22134 = vmatpush3.msra.mxu1 %v22848_v2  ;;  %v16679_v49 = vmul.f32 %v16677_v43, %v16677_v43 }
 0x74d   :  { %22153 = vmatpush3.msra.mxu0 %v22848_v2  ;;  %22135 = vmatprep.subr.mxu1 %v22848_v2  ;;  %v14478_v53 = vpop.f32.mrf.mxu0 }
 0x74e   :  { %22154 = vmatprep.subr.mxu0 %v22848_v2  ;;  %22136 = vmatpush3.msra.mxu1 %v22848_v2 }
 0x74f   :  { %22155 = vmatpush3.msra.mxu0 %v22848_v2  ;;  %22137 = vmatprep.subr.mxu1 %v22848_v2  ;;  %v14480_v44 = vpop.f32.mrf.mxu0 }
 0x750   :  { %22156 = vmatprep.subr.mxu0 %v22848_v2  ;;  %22138 = vmatpush3.msra.mxu1 %v22848_v2 }
 0x751   :  { %22157 = vmatpush3.msra.mxu0 %v22848_v2  ;;  %22139 = vmatprep.subr.mxu1 %v22848_v2 }
 0x752   :  { %22158 = vmatprep.subr.mxu0 %v22848_v2  ;;  %22140 = vmatpush3.msra.mxu1 %v22848_v2 }
 0x753   :  { %22159 = vmatpush3.msra.mxu0 %v22848_v2  ;;  %22141 = vmatprep.subr.mxu1 %v22848_v2 }
 0x754   :  { %22160 = vmatprep.subr.mxu0 %v22848_v2  ;;  %22142 = vmatpush3.msra.mxu1 %v22848_v2 }
 0x755   :  { %22161 = vmatpush3.msra.mxu0 %v22848_v2  ;;  %22143 = vmatprep.subr.mxu1 %v22848_v2 }
 0x756   :  { %22162 = vmatprep.subr.mxu0 %v22848_v2  ;;  %22144 = vmatpush3.msra.mxu1 %v22848_v2 }
 0x757   :  { %22163 = vmatpush3.msra.mxu0 %v22848_v2  ;;  %16021 = vmatprep.mubr.f32.mxu1 %v15794_v31  ;;  %v21795_v58 = vpop.f32.mrf.mxu1 }
 0x758   :  { %v22773_v57 = vpop.eup %22772  ;;  %22164 = vmatprep.subr.mxu0 %v22848_v2  ;;  %16025 = vmatmul.mubr.f32.vlgmr.msra.gmra.mxu1 %v15800_v20 }
 0x759   :  { %22165 = vmatpush3.msra.mxu0 %v22848_v2  ;;  %22183 = vmatprep.subr.mxu1 %v22848_v2  ;;  %v21796_v24 = vpop.f32.mrf.mxu1  ;;  %v14215_v52 = vmul.f32 %v22773_v57, %v14211_v45 }
 0x75a   :  { %22166 = vmatprep.subr.mxu0 %v22848_v2  ;;  %22184 = vmatpush3.msra.mxu1 %v22848_v2  ;;  %v21797_v19 = vadd.f32 %v21796_v24, %v21795_v58 }
 0x75b   :  { %22167 = vmatpush3.msra.mxu0 %v22848_v2  ;;  %22185 = vmatprep.subr.mxu1 %v22848_v2  ;;  %v14217_v51 = vsel %vm14216_vm8, %v14211_v45, %v14215_v52 }
 0x75c   :  { %22168 = vmatprep.subr.mxu0 %v22848_v2  ;;  %22186 = vmatpush3.msra.mxu1 %v22848_v2  ;;  %v14405_v60 = vadd.f32 %v21797_v19, %v14404_v41  ;;  %v28148_v61 = vpop.f32.mrf.mxu1  ;;  %v14220_v7 = vsel %vm14218_vm9, %v14219_v4, %v14217_v51  ;;  %v16678_v41 = vsub.f32 %v27960_v42, %v28263_v27 }
 0x75d   :  { %22169 = vmatpush3.msra.mxu0 %v22848_v2  ;;  %22187 = vmatprep.subr.mxu1 %v22848_v2  ;;  %v14221_v62 = vsub.f32 %v23789_v23, %v14220_v7 }
 0x75e   :  { %22170 = vmatprep.subr.mxu0 %v22848_v2  ;;  %22188 = vmatpush3.msra.mxu1 %v22848_v2  ;;  %v14628_v63 = vpop.f32.mrf.mxu1  ;;  %v14479_v0 = vadd.f32 %v14478_v53, %v14405_v60  ;;  %v16680_v45 = vmul.f32 %v16678_v41, %v16678_v41 }
 0x75f   :  { %22171 = vmatpush3.msra.mxu0 %v22848_v2  ;;  %22189 = vmatprep.subr.mxu1 %v22848_v2  ;;  %v14222_v15 = vadd.f32 0.5, %v14221_v62 }
 0x760   :  { %22172 = vmatprep.subr.mxu0 %v22848_v2  ;;  %22190 = vmatpush3.msra.mxu1 %v22848_v2  ;;  %v16683_v42 = vcombine.low %v16679_v49, %v16680_v45 }
 0x761   :  { %22173 = vmatpush3.msra.mxu0 %v22848_v2  ;;  %22191 = vmatprep.subr.mxu1 %v22848_v2  ;;  %v14223_v9 = vmax.f32 %v14222_v15, 0.0 }
 0x762   :  { %22174 = vmatprep.subr.mxu0 %v22848_v2  ;;  %22192 = vmatpush3.msra.mxu1 %v22848_v2  ;;  %v16690_v47 = vrot.slane %v16683_v42, %v22893_v16 }
 0x763   :  { %22175 = vmatpush3.msra.mxu0 %v22848_v2  ;;  %22193 = vmatprep.subr.mxu1 %v22848_v2  ;;  %v28167_v17 = vadd.f32 %v14223_v9, %v27841_v37  ;;  %v28178_v37 = vand.u32 4294901760, %v16213_v8 }
 0x764   :  { %22176 = vmatprep.subr.mxu0 %v22848_v2  ;;  %22194 = vmatpush3.msra.mxu1 %v22848_v2  ;;  %v16691_v19 = vcombine.high %v16690_v47, %v16690_v47  ;;  %v16698_v62 = vrot.slane %v16690_v47, %v22893_v16 }
 0x765   :  { %22177 = vmatpush3.msra.mxu0 %v22848_v2  ;;  %22195 = vmatprep.subr.mxu1 %v22848_v2  ;;  %v28191_v14 = vsub.f32 %v16213_v8, %v28178_v37 }
 0x766   :  { %22178 = vmatprep.subr.mxu0 %v22848_v2  ;;  %22196 = vmatpush3.msra.mxu1 %v22848_v2  ;;  %v28339_v63 = vand.u32 4294901760, %v16698_v62 }
 0x767   :  { %22179 = vmatpush3.msra.mxu0 %v22848_v2  ;;  %16167 = vmatprep.mubr.f32.mxu0 %v28030_v35  ;;  %v16282_v5 = vand.u32 4294901760, %v28191_v14 }
 0x768   :  { %22197 = vmatprep.subr.mxu1 %v22848_v2  ;;  %16169 = vmatmul.mubr.f32.vlgmr.msra.gmra.mxu0 %v28034_v18  ;;  %v28355_v1 = vsub.f32 %v16698_v62, %v28339_v63 }
 0x769   :  { %22198 = vmatpush3.msra.mxu1 %v22848_v2  ;;  %16326 = vmatprep.subr.mxu0 %v22849_v3  ;;  %v16283_v18 = vsub.f32 %v28191_v14, %v16282_v5 }
 0x76a   :  { %22199 = vmatprep.subr.mxu1 %v22848_v2  ;;  %16327 = vmatpush1.msra.mxu0 %v22849_v3  ;;  %v16780_v10 = vand.u32 4294901760, %v28355_v1 }
 0x76b   :  { %22200 = vmatpush3.msra.mxu1 %v22848_v2  ;;  %16361 = vmatprep.mubr.f32.mxu0 %v28178_v37  ;;  %v16284_v31 = vand.u32 4294901760, %v16283_v18 }
 0x76c   :  { %22201 = vmatprep.subr.mxu1 %v22848_v2  ;;  %16363 = vmatmul.mubr.f32.vlgmr.msra.gmra.mxu0 %v28182_v22 }
 0x76d   :  { %22202 = vmatpush3.msra.mxu1 %v22848_v2  ;;  %16398 = vmatprep.subr.mxu0 %v22849_v3 }
 0x76e   :  { %22203 = vmatprep.subr.mxu1 %v22848_v2  ;;  %16399 = vmatpush1.msra.mxu0 %v22849_v3  ;;  %v21830_v40 = vpop.f32.mrf.mxu0 }
 0x76f   :  { %22204 = vmatpush3.msra.mxu1 %v22848_v2  ;;  %16434 = vmatprep.mubr.f32.mxu0 %v28191_v14 }
 0x770   :  { %22205 = vmatprep.subr.mxu1 %v22848_v2  ;;  %22218 = vmatprep.subr.mxu0 %v22848_v2  ;;  %v21831_v56 = vpop.f32.mrf.mxu0 }
 0x771   :  { %22206 = vmatpush3.msra.mxu1 %v22848_v2  ;;  %16437 = vmatmul.mubr.f32.vlgmr.msra.gmra.mxu0 %v28198_v38  ;;  %v21832_v35 = vadd.f32 %v21831_v56, %v21830_v40  ;;  %v16781_v38 = vsub.f32 %v28355_v1, %v16780_v10 }
 0x772   :  { %22219 = vmatpush3.msra.mxu0 %v22848_v2  ;;  %22207 = vmatprep.subr.mxu1 %v22848_v2 }
 0x773   :  { %22220 = vmatprep.subr.mxu0 %v22848_v2  ;;  %22208 = vmatpush3.msra.mxu1 %v22848_v2  ;;  %v14555_v25 = vadd.f32 %v21832_v35, %v14479_v0 }
 0x774   :  { %22221 = vmatpush3.msra.mxu0 %v22848_v2  ;;  %22209 = vmatprep.subr.mxu1 %v22848_v2 }
 0x775   :  { %22222 = vmatprep.subr.mxu0 %v22848_v2  ;;  %22210 = vmatpush3.msra.mxu1 %v22848_v2  ;;  %v14627_v46 = vadd.f32 %v28148_v61, %v14555_v25  ;;  %v16705_v61 = vrot.slane %v16691_v19, %v22893_v16 }
 0x776   :  { %22223 = vmatpush3.msra.mxu0 %v22848_v2  ;;  %22211 = vmatprep.subr.mxu1 %v22848_v2 }
 0x777   :  { %22224 = vmatprep.subr.mxu0 %v22848_v2  ;;  %22212 = vmatpush3.msra.mxu1 %v22848_v2 }
 0x778   :  { %22225 = vmatpush3.msra.mxu0 %v22848_v2  ;;  %22213 = vmatprep.subr.mxu1 %v22848_v2 }
 0x779   :  { %22226 = vmatprep.subr.mxu0 %v22848_v2  ;;  %22214 = vmatpush3.msra.mxu1 %v22848_v2 }
 0x77a   :  { %16285 = vmatprep.mubr.f32.mxu1 %v16284_v31  ;;  %22227 = vmatpush3.msra.mxu0 %v22848_v2 }
 0x77b   :  { %16291 = vmatmul.mubr.f32.vlgmr.msra.gmra.mxu1 %v16290_v29  ;;  %22228 = vmatprep.subr.mxu0 %v22848_v2 }
 0x77c   :  { %16548 = vmatprep.subr.mxu1 %v22849_v3  ;;  %22229 = vmatpush3.msra.mxu0 %v22848_v2  ;;  %v21865_v20 = vpop.f32.mrf.mxu1 }
 0x77d   :  { %16549 = vmatpush1.msra.mxu1 %v22849_v3  ;;  %22230 = vmatprep.subr.mxu0 %v22848_v2 }
 0x77e   :  { %22231 = vmatpush3.msra.mxu0 %v22848_v2  ;;  %16583 = vmatprep.mubr.f32.mxu1 %v28178_v37  ;;  %v21866_v13 = vpop.f32.mrf.mxu1 }
 0x77f   :  { %22253 = vmatprep.subr.mxu1 %v22848_v2  ;;  %22232 = vmatprep.subr.mxu0 %v22848_v2  ;;  %v21867_v12 = vadd.f32 %v21866_v13, %v21865_v20  ;;  %v28428_v20 = vld [vmem:[%s28960_s0 + $0x25] ss:$8 sm:$0x3] }
 0x780   :  { %16585 = vmatmul.mubr.f32.vlgmr.msra.gmra.mxu1 %v28182_v22  ;;  %22233 = vmatpush3.msra.mxu0 %v22848_v2  ;;  %v28245_v36 = vpop.f32.mrf.mxu1  ;;  %v17165_v13 = vsub.f32 %v28258_v26, %v28428_v20 }
 0x781   :  { %22254 = vmatpush3.msra.mxu1 %v22848_v2  ;;  %22234 = vmatprep.subr.mxu0 %v22848_v2  ;;  %v14699_v39 = vadd.f32 %v21867_v12, %v14627_v46  ;;  %v28435_v12 = vld [vmem:[%s28960_s0 + $0x55] ss:$8 sm:$0x3] }
 0x782   :  { %22255 = vmatprep.subr.mxu1 %v22848_v2  ;;  %22235 = vmatpush3.msra.mxu0 %v22848_v2  ;;  %v14898_v34 = vpop.f32.mrf.mxu1 }
 0x783   :  { %22256 = vmatpush3.msra.mxu1 %v22848_v2  ;;  %22236 = vmatprep.subr.mxu0 %v22848_v2  ;;  %22774 = vrsqrt.f32 %v14699_v39  ;;  %vm14704_vm10 = vcmp.eq.f32.partialorder %v14699_v39, inf  ;;  %v14707_v50 = vand.u32 2147483648, %v14699_v39  ;;  %vm14706_vm11 = vcmp.eq.f32.partialorder %v14699_v39, 0.0 }
 0x784   :  { %22257 = vmatprep.subr.mxu1 %v22848_v2  ;;  %22237 = vmatpush3.msra.mxu0 %v22848_v2 }
 0x785   :  { %22258 = vmatpush3.msra.mxu1 %v22848_v2  ;;  %22238 = vmatprep.subr.mxu0 %v22848_v2  ;;  %v14970_v28 = vpop.f32.mrf.mxu1 }
 0x786   :  { %22259 = vmatprep.subr.mxu1 %v22848_v2  ;;  %22239 = vmatpush3.msra.mxu0 %v22848_v2 }
 0x787   :  { %22260 = vmatpush3.msra.mxu1 %v22848_v2  ;;  %22240 = vmatprep.subr.mxu0 %v22848_v2  ;;  %v14972_v30 = vpop.f32.mrf.mxu1 }
 0x788   :  { %22261 = vmatprep.subr.mxu1 %v22848_v2  ;;  %22241 = vmatpush3.msra.mxu0 %v22848_v2 }
 0x789   :  { %22262 = vmatpush3.msra.mxu1 %v22848_v2  ;;  %22242 = vmatprep.subr.mxu0 %v22848_v2 }
 0x78a   :  { %22263 = vmatprep.subr.mxu1 %v22848_v2  ;;  %22243 = vmatpush3.msra.mxu0 %v22848_v2 }
 0x78b   :  { %22264 = vmatpush3.msra.mxu1 %v22848_v2  ;;  %22244 = vmatprep.subr.mxu0 %v22848_v2 }
 0x78c   :  { %22265 = vmatprep.subr.mxu1 %v22848_v2  ;;  %22245 = vmatpush3.msra.mxu0 %v22848_v2 }
 0x78d   :  { %22266 = vmatpush3.msra.mxu1 %v22848_v2  ;;  %22246 = vmatprep.subr.mxu0 %v22848_v2 }
 0x78e   :  { %22267 = vmatprep.subr.mxu1 %v22848_v2  ;;  %22247 = vmatpush3.msra.mxu0 %v22848_v2 }
 0x78f   :  { %22268 = vmatpush3.msra.mxu1 %v22848_v2  ;;  %22248 = vmatprep.subr.mxu0 %v22848_v2 }
 0x790   :  { %v22775_v59 = vpop.eup %22774  ;;  %22269 = vmatprep.subr.mxu1 %v22848_v2  ;;  %22249 = vmatpush3.msra.mxu0 %v22848_v2 }
 0x791   :  { %v14703_v53 = vmul.f32 %v22775_v59, %v14699_v39  ;;  %22270 = vmatpush3.msra.mxu1 %v22848_v2  ;;  %16509 = vmatprep.mubr.f32.mxu0 %v16282_v5  ;;  %v21900_v44 = vpop.f32.mrf.mxu0 }
 0x792   :  { %22271 = vmatprep.subr.mxu1 %v22848_v2  ;;  %16513 = vmatmul.mubr.f32.vlgmr.msra.gmra.mxu0 %v16288_v21  ;;  %v16782_v21 = vand.u32 4294901760, %v16781_v38 }
 0x793   :  { %22272 = vmatpush3.msra.mxu1 %v22848_v2  ;;  %22288 = vmatprep.subr.mxu0 %v22848_v2  ;;  %v21901_v32 = vpop.f32.mrf.mxu0  ;;  %v14705_v33 = vsel %vm14704_vm10, %v14699_v39, %v14703_v53  ;;  %v17167_v39 = vmul.f32 %v17165_v13, %v17165_v13  ;;  %vm18636_vm10 = vcmask 1024  }
 0x794   :  { %22273 = vmatprep.subr.mxu1 %v22848_v2  ;;  %22289 = vmatpush3.msra.mxu0 %v22848_v2  ;;  %v21902_v58 = vadd.f32 %v21901_v32, %v21900_v44  ;;  %v14708_v48 = vsel %vm14706_vm11, %v14707_v50, %v14705_v33 }
 0x795   :  { %22274 = vmatpush3.msra.mxu1 %v22848_v2  ;;  %22290 = vmatprep.subr.mxu0 %v22848_v2  ;;  %v14709_v57 = vsub.f32 %v23789_v23, %v14708_v48 }
 0x796   :  { %22275 = vmatprep.subr.mxu1 %v22848_v2  ;;  %22291 = vmatpush3.msra.mxu0 %v22848_v2  ;;  %v14897_v24 = vadd.f32 %v21902_v58, %v28245_v36  ;;  %v28310_v52 = vpop.f32.mrf.mxu0  ;;  %v17166_v36 = vsub.f32 %v28263_v27, %v28435_v12 }
 0x797   :  { %22276 = vmatpush3.msra.mxu1 %v22848_v2  ;;  %22292 = vmatprep.subr.mxu0 %v22848_v2  ;;  %v14710_v4 = vadd.f32 0.2, %v14709_v57 }
 0x798   :  { %22277 = vmatprep.subr.mxu1 %v22848_v2  ;;  %22293 = vmatpush3.msra.mxu0 %v22848_v2  ;;  %v15120_v55 = vpop.f32.mrf.mxu0  ;;  %v14971_v51 = vadd.f32 %v14970_v28, %v14897_v24  ;;  %v17168_v34 = vmul.f32 %v17166_v36, %v17166_v36 }
 0x799   :  { %22278 = vmatpush3.msra.mxu1 %v22848_v2  ;;  %22294 = vmatprep.subr.mxu0 %v22848_v2  ;;  %v14711_v60 = vmax.f32 %v14710_v4, 0.0 }
 0x79a   :  { %22279 = vmatprep.subr.mxu1 %v22848_v2  ;;  %22295 = vmatpush3.msra.mxu0 %v22848_v2  ;;  %v17171_v27 = vcombine.low %v17167_v39, %v17168_v34 }
 0x79b   :  { %22280 = vmatpush3.msra.mxu1 %v22848_v2  ;;  %22296 = vmatprep.subr.mxu0 %v22848_v2  ;;  %v28324_v7 = vadd.f32 %v14711_v60, %v28019_v6  ;;  %v28335_v6 = vand.u32 4294901760, %v16705_v61 }
 0x79c   :  { %22281 = vmatprep.subr.mxu1 %v22848_v2  ;;  %22297 = vmatpush3.msra.mxu0 %v22848_v2  ;;  %v17178_v45 = vrot.slane %v17171_v27, %v22893_v16 }
 0x79d   :  { %22282 = vmatpush3.msra.mxu1 %v22848_v2  ;;  %22298 = vmatprep.subr.mxu0 %v22848_v2  ;;  %v28348_v0 = vsub.f32 %v16705_v61, %v28335_v6 }
 0x79e   :  { %22283 = vmatprep.subr.mxu1 %v22848_v2  ;;  %22299 = vmatpush3.msra.mxu0 %v22848_v2  ;;  %v17179_v33 = vcombine.high %v17178_v45, %v17178_v45 }
 0x79f   :  { %22284 = vmatpush3.msra.mxu1 %v22848_v2  ;;  %16655 = vmatprep.mubr.f32.mxu1 %v28178_v37  ;;  %v16774_v9 = vand.u32 4294901760, %v28348_v0 }
 0x7a0   :  { %22300 = vmatprep.subr.mxu0 %v22848_v2  ;;  %16657 = vmatmul.mubr.f32.vlgmr.msra.gmra.mxu1 %v28182_v22  ;;  %v17193_v57 = vrot.slane %v17179_v33, %v22893_v16 }
 0x7a1   :  { %22301 = vmatpush3.msra.mxu0 %v22848_v2  ;;  %16818 = vmatprep.subr.mxu1 %v22849_v3  ;;  %v16775_v14 = vsub.f32 %v28348_v0, %v16774_v9 }
 0x7a2   :  { %22302 = vmatprep.subr.mxu0 %v22848_v2  ;;  %16819 = vmatpush1.msra.mxu1 %v22849_v3 }
 0x7a3   :  { %22303 = vmatpush3.msra.mxu0 %v22848_v2  ;;  %16853 = vmatprep.mubr.f32.mxu1 %v28335_v6  ;;  %v16776_v40 = vand.u32 4294901760, %v16775_v14 }
 0x7a4   :  { %22304 = vmatprep.subr.mxu0 %v22848_v2  ;;  %16855 = vmatmul.mubr.f32.vlgmr.msra.gmra.mxu1 %v28339_v63 }
 0x7a5   :  { %22305 = vmatpush3.msra.mxu0 %v22848_v2  ;;  %16890 = vmatprep.subr.mxu1 %v22849_v3 }
 0x7a6   :  { %22306 = vmatprep.subr.mxu0 %v22848_v2  ;;  %16891 = vmatpush1.msra.mxu1 %v22849_v3  ;;  %v21935_v15 = vpop.f32.mrf.mxu1 }
 0x7a7   :  { %22307 = vmatpush3.msra.mxu0 %v22848_v2  ;;  %16926 = vmatprep.mubr.f32.mxu1 %v28348_v0 }
 0x7a8   :  { %22308 = vmatprep.subr.mxu0 %v22848_v2  ;;  %22323 = vmatprep.subr.mxu1 %v22848_v2  ;;  %v21936_v8 = vpop.f32.mrf.mxu1 }
 0x7a9   :  { %22309 = vmatpush3.msra.mxu0 %v22848_v2  ;;  %16929 = vmatmul.mubr.f32.vlgmr.msra.gmra.mxu1 %v28355_v1  ;;  %v21937_v37 = vadd.f32 %v21936_v8, %v21935_v15 }
 0x7aa   :  { %22324 = vmatpush3.msra.mxu1 %v22848_v2  ;;  %22310 = vmatprep.subr.mxu0 %v22848_v2 }
 0x7ab   :  { %22325 = vmatprep.subr.mxu1 %v22848_v2  ;;  %22311 = vmatpush3.msra.mxu0 %v22848_v2  ;;  %v15047_v22 = vadd.f32 %v21937_v37, %v14971_v51 }
 0x7ac   :  { %22326 = vmatpush3.msra.mxu1 %v22848_v2  ;;  %22312 = vmatprep.subr.mxu0 %v22848_v2 }
 0x7ad   :  { %22327 = vmatprep.subr.mxu1 %v22848_v2  ;;  %22313 = vmatpush3.msra.mxu0 %v22848_v2  ;;  %v15119_v5 = vadd.f32 %v28310_v52, %v15047_v22  ;;  %v17186_v52 = vrot.slane %v17178_v45, %v22893_v16 }
 0x7ae   :  { %22328 = vmatpush3.msra.mxu1 %v22848_v2  ;;  %22314 = vmatprep.subr.mxu0 %v22848_v2 }
 0x7af   :  { %22329 = vmatprep.subr.mxu1 %v22848_v2  ;;  %22315 = vmatpush3.msra.mxu0 %v22848_v2  ;;  %v28508_v19 = vand.u32 4294901760, %v17186_v52 }
 0x7b0   :  { %22330 = vmatpush3.msra.mxu1 %v22848_v2  ;;  %22316 = vmatprep.subr.mxu0 %v22848_v2 }
 0x7b1   :  { %22331 = vmatprep.subr.mxu1 %v22848_v2  ;;  %22317 = vmatpush3.msra.mxu0 %v22848_v2  ;;  %v28524_v55 = vsub.f32 %v17186_v52, %v28508_v19 }
 0x7b2   :  { %22332 = vmatpush3.msra.mxu1 %v22848_v2  ;;  %22318 = vmatprep.subr.mxu0 %v22848_v2 }
 0x7b3   :  { %22333 = vmatprep.subr.mxu1 %v22848_v2  ;;  %22319 = vmatpush3.msra.mxu0 %v22848_v2  ;;  %v17268_v61 = vand.u32 4294901760, %v28524_v55 }
 0x7b4   :  { %16777 = vmatprep.mubr.f32.mxu0 %v16776_v40  ;;  %22334 = vmatpush3.msra.mxu1 %v22848_v2  ;;  %v28587_v40 = vld [vmem:[%s28960_s0 + $0x24] ss:$8 sm:$0x3] }
 0x7b5   :  { %16783 = vmatmul.mubr.f32.vlgmr.msra.gmra.mxu0 %v16782_v21  ;;  %22335 = vmatprep.subr.mxu1 %v22848_v2  ;;  %v17269_v0 = vsub.f32 %v28524_v55, %v17268_v61  ;;  %v28592_v21 = vld [vmem:[%s28960_s0 + $0x54] ss:$8 sm:$0x3] }
 0x7b6   :  { %22336 = vmatpush3.msra.mxu1 %v22848_v2  ;;  %17040 = vmatprep.subr.mxu0 %v22849_v3  ;;  %v21970_v56 = vpop.f32.mrf.mxu0 }
 0x7b7   :  { %22337 = vmatprep.subr.mxu1 %v22848_v2  ;;  %17041 = vmatpush1.msra.mxu0 %v22849_v3  ;;  %v17270_v8 = vand.u32 4294901760, %v17269_v0 }
 0x7b8   :  { %22338 = vmatpush3.msra.mxu1 %v22848_v2  ;;  %17075 = vmatprep.mubr.f32.mxu0 %v28335_v6  ;;  %v21971_v35 = vpop.f32.mrf.mxu0 }
 0x7b9   :  { %22358 = vmatprep.subr.mxu0 %v22848_v2  ;;  %22339 = vmatprep.subr.mxu1 %v22848_v2  ;;  %v21972_v18 = vadd.f32 %v21971_v35, %v21970_v56 }
 0x7ba   :  { %17077 = vmatmul.mubr.f32.vlgmr.msra.gmra.mxu0 %v28339_v63  ;;  %22340 = vmatpush3.msra.mxu1 %v22848_v2  ;;  %v28406_v54 = vpop.f32.mrf.mxu0 }
 0x7bb   :  { %22359 = vmatpush3.msra.mxu0 %v22848_v2  ;;  %22341 = vmatprep.subr.mxu1 %v22848_v2  ;;  %v28410_v25 = vadd.f32 %v21972_v18, %v15119_v5  ;;  %v22824_v18 = vld [vmem:[%s28960_s0] ss:$8 sm:$0x3] }
 0x7bc   :  { %22360 = vmatprep.subr.mxu0 %v22848_v2  ;;  %22342 = vmatpush3.msra.mxu1 %v22848_v2  ;;  %v15386_v46 = vpop.f32.mrf.mxu0 }
 0x7bd   :  { %22361 = vmatpush3.msra.mxu0 %v22848_v2  ;;  %22343 = vmatprep.subr.mxu1 %v22848_v2  ;;  %22776 = vrsqrt.f32 %v28410_v25  ;;  %vm15196_vm12 = vcmp.eq.f32.partialorder %v28410_v25, inf  ;;  %v15199_v49 = vand.u32 2147483648, %v28410_v25  ;;  %vm15198_vm13 = vcmp.eq.f32.partialorder %v28410_v25, 0.0 }
 0x7be   :  { %22362 = vmatprep.subr.mxu0 %v22848_v2  ;;  %22344 = vmatpush3.msra.mxu1 %v22848_v2 }
 0x7bf   :  { %22363 = vmatpush3.msra.mxu0 %v22848_v2  ;;  %22345 = vmatprep.subr.mxu1 %v22848_v2  ;;  %v15458_v31 = vpop.f32.mrf.mxu0 }
 0x7c0   :  { %22364 = vmatprep.subr.mxu0 %v22848_v2  ;;  %22346 = vmatpush3.msra.mxu1 %v22848_v2 }
 0x7c1   :  { %22365 = vmatpush3.msra.mxu0 %v22848_v2  ;;  %22347 = vmatprep.subr.mxu1 %v22848_v2  ;;  %v15460_v29 = vpop.f32.mrf.mxu0 }
 0x7c2   :  { %22366 = vmatprep.subr.mxu0 %v22848_v2  ;;  %22348 = vmatpush3.msra.mxu1 %v22848_v2 }
 0x7c3   :  { %22367 = vmatpush3.msra.mxu0 %v22848_v2  ;;  %22349 = vmatprep.subr.mxu1 %v22848_v2 }
 0x7c4   :  { %22368 = vmatprep.subr.mxu0 %v22848_v2  ;;  %22350 = vmatpush3.msra.mxu1 %v22848_v2 }
 0x7c5   :  { %22369 = vmatpush3.msra.mxu0 %v22848_v2  ;;  %22351 = vmatprep.subr.mxu1 %v22848_v2 }
 0x7c6   :  { %22370 = vmatprep.subr.mxu0 %v22848_v2  ;;  %22352 = vmatpush3.msra.mxu1 %v22848_v2 }
 0x7c7   :  { %22371 = vmatpush3.msra.mxu0 %v22848_v2  ;;  %22353 = vmatprep.subr.mxu1 %v22848_v2 }
 0x7c8   :  { %22372 = vmatprep.subr.mxu0 %v22848_v2  ;;  %22354 = vmatpush3.msra.mxu1 %v22848_v2 }
 0x7c9   :  { %22373 = vmatpush3.msra.mxu0 %v22848_v2  ;;  %17001 = vmatprep.mubr.f32.mxu1 %v16774_v9  ;;  %v22005_v26 = vpop.f32.mrf.mxu1 }
 0x7ca   :  { %v22777_v28 = vpop.eup %22776  ;;  %22374 = vmatprep.subr.mxu0 %v22848_v2  ;;  %17005 = vmatmul.mubr.f32.vlgmr.msra.gmra.mxu1 %v16780_v10 }
 0x7cb   :  { %22375 = vmatpush3.msra.mxu0 %v22848_v2  ;;  %22393 = vmatprep.subr.mxu1 %v22848_v2  ;;  %v22006_v30 = vpop.f32.mrf.mxu1  ;;  %v15195_v43 = vmul.f32 %v22777_v28, %v28410_v25 }
 0x7cc   :  { %22376 = vmatprep.subr.mxu0 %v22848_v2  ;;  %22394 = vmatpush3.msra.mxu1 %v22848_v2  ;;  %v22007_v41 = vadd.f32 %v22006_v30, %v22005_v26 }
 0x7cd   :  { %22377 = vmatpush3.msra.mxu0 %v22848_v2  ;;  %22395 = vmatprep.subr.mxu1 %v22848_v2  ;;  %v15197_v42 = vsel %vm15196_vm12, %v28410_v25, %v15195_v43  ;;  %v22825_v25 = vld [vmem:[%s28960_s0 + $0x30] ss:$8 sm:$0x3] }
 0x7ce   :  { %22378 = vmatprep.subr.mxu0 %v22848_v2  ;;  %22396 = vmatpush3.msra.mxu1 %v22848_v2  ;;  %v15385_v59 = vadd.f32 %v22007_v41, %v28406_v54  ;;  %v28474_v53 = vpop.f32.mrf.mxu1  ;;  %v15200_v44 = vsel %vm15198_vm13, %v15199_v49, %v15197_v42  ;;  %v17657_v54 = vsub.f32 %v22824_v18, %v28587_v40  ;;  %vm18635_vm13 = vcmp.eq.s32.totalorder %v22885_v11, 0 }
 0x7cf   :  { %22379 = vmatpush3.msra.mxu0 %v22848_v2  ;;  %22397 = vmatprep.subr.mxu1 %v22848_v2  ;;  %v15201_v50 = vsub.f32 %v23789_v23, %v15200_v44  ;;  %v17658_v46 = vsub.f32 %v22825_v25, %v28592_v21 }
 0x7d0   :  { %22380 = vmatprep.subr.mxu0 %v22848_v2  ;;  %22398 = vmatpush3.msra.mxu1 %v22848_v2  ;;  %v15608_v32 = vpop.f32.mrf.mxu1  ;;  %v15459_v47 = vadd.f32 %v15458_v31, %v15385_v59  ;;  %v17659_v31 = vmul.f32 %v17657_v54, %v17657_v54 }
 0x7d1   :  { %22381 = vmatpush3.msra.mxu0 %v22848_v2  ;;  %22399 = vmatprep.subr.mxu1 %v22848_v2  ;;  %v15202_v58 = vadd.f32 0.5, %v15201_v50  ;;  %v17660_v29 = vmul.f32 %v17658_v46, %v17658_v46 }
 0x7d2   :  { %22382 = vmatprep.subr.mxu0 %v22848_v2  ;;  %22400 = vmatpush3.msra.mxu1 %v22848_v2 }
 0x7d3   :  { %22383 = vmatpush3.msra.mxu0 %v22848_v2  ;;  %22401 = vmatprep.subr.mxu1 %v22848_v2  ;;  %v15203_v48 = vmax.f32 %v15202_v58, 0.0  ;;  %v17663_v13 = vcombine.low %v17659_v31, %v17660_v29 }
 0x7d4   :  { %22384 = vmatprep.subr.mxu0 %v22848_v2  ;;  %22402 = vmatpush3.msra.mxu1 %v22848_v2 }
 0x7d5   :  { %22385 = vmatpush3.msra.mxu0 %v22848_v2  ;;  %22403 = vmatprep.subr.mxu1 %v22848_v2  ;;  %v28493_v24 = vadd.f32 %v15203_v48, %v28167_v17  ;;  %v28504_v17 = vand.u32 4294901760, %v17193_v57  ;;  %v17670_v28 = vrot.slane %v17663_v13, %v22893_v16 }
 0x7d6   :  { %22386 = vmatprep.subr.mxu0 %v22848_v2  ;;  %22404 = vmatpush3.msra.mxu1 %v22848_v2 }
 0x7d7   :  { %22387 = vmatpush3.msra.mxu0 %v22848_v2  ;;  %22405 = vmatprep.subr.mxu1 %v22848_v2  ;;  %v28517_v4 = vsub.f32 %v17193_v57, %v28504_v17  ;;  %v17671_v59 = vcombine.high %v17670_v28, %v17670_v28  ;;  %v17678_v58 = vrot.slane %v17670_v28, %v22893_v16 }
 0x7d8   :  { %22388 = vmatprep.subr.mxu0 %v22848_v2  ;;  %22406 = vmatpush3.msra.mxu1 %v22848_v2 }
 0x7d9   :  { %22389 = vmatpush3.msra.mxu0 %v22848_v2  ;;  %17147 = vmatprep.mubr.f32.mxu0 %v28335_v6  ;;  %v17262_v51 = vand.u32 4294901760, %v28517_v4  ;;  %v28680_v48 = vand.u32 4294901760, %v17678_v58 }
 0x7da   :  { %22407 = vmatprep.subr.mxu1 %v22848_v2  ;;  %17149 = vmatmul.mubr.f32.vlgmr.msra.gmra.mxu0 %v28339_v63 }
 0x7db   :  { %22408 = vmatpush3.msra.mxu1 %v22848_v2  ;;  %17306 = vmatprep.subr.mxu0 %v22849_v3  ;;  %v17263_v63 = vsub.f32 %v28517_v4, %v17262_v51  ;;  %v28696_v52 = vsub.f32 %v17678_v58, %v28680_v48 }
 0x7dc   :  { %22409 = vmatprep.subr.mxu1 %v22848_v2  ;;  %17307 = vmatpush1.msra.mxu0 %v22849_v3 }
 0x7dd   :  { %22410 = vmatpush3.msra.mxu1 %v22848_v2  ;;  %17341 = vmatprep.mubr.f32.mxu0 %v28504_v17  ;;  %v17264_v9 = vand.u32 4294901760, %v17263_v63 }
 0x7de   :  { %22411 = vmatprep.subr.mxu1 %v22848_v2  ;;  %17343 = vmatmul.mubr.f32.vlgmr.msra.gmra.mxu0 %v28508_v19 }
 0x7df   :  { %22412 = vmatpush3.msra.mxu1 %v22848_v2  ;;  %17378 = vmatprep.subr.mxu0 %v22849_v3 }
 0x7e0   :  { %22413 = vmatprep.subr.mxu1 %v22848_v2  ;;  %17379 = vmatpush1.msra.mxu0 %v22849_v3  ;;  %v22040_v60 = vpop.f32.mrf.mxu0 }
 0x7e1   :  { %22414 = vmatpush3.msra.mxu1 %v22848_v2  ;;  %17414 = vmatprep.mubr.f32.mxu0 %v28517_v4 }
 0x7e2   :  { %22415 = vmatprep.subr.mxu1 %v22848_v2  ;;  %22428 = vmatprep.subr.mxu0 %v22848_v2  ;;  %v22041_v62 = vpop.f32.mrf.mxu0 }
 0x7e3   :  { %22416 = vmatpush3.msra.mxu1 %v22848_v2  ;;  %17417 = vmatmul.mubr.f32.vlgmr.msra.gmra.mxu0 %v28524_v55  ;;  %v22042_v6 = vadd.f32 %v22041_v62, %v22040_v60  ;;  %v17760_v55 = vand.u32 4294901760, %v28696_v52 }
 0x7e4   :  { %22429 = vmatpush3.msra.mxu0 %v22848_v2  ;;  %22417 = vmatprep.subr.mxu1 %v22848_v2 }
 0x7e5   :  { %22430 = vmatprep.subr.mxu0 %v22848_v2  ;;  %22418 = vmatpush3.msra.mxu1 %v22848_v2  ;;  %v15535_v1 = vadd.f32 %v22042_v6, %v15459_v47  ;;  %v17685_v47 = vrot.slane %v17671_v59, %v22893_v16  ;;  %v17761_v62 = vsub.f32 %v28696_v52, %v17760_v55 }
 0x7e6   :  { %22431 = vmatpush3.msra.mxu0 %v22848_v2  ;;  %22419 = vmatprep.subr.mxu1 %v22848_v2 }
 0x7e7   :  { %22432 = vmatprep.subr.mxu0 %v22848_v2  ;;  %22420 = vmatpush3.msra.mxu1 %v22848_v2  ;;  %v15607_v15 = vadd.f32 %v28474_v53, %v15535_v1  ;;  %v17762_v0 = vand.u32 4294901760, %v17761_v62 }
 0x7e8   :  { %22433 = vmatpush3.msra.mxu0 %v22848_v2  ;;  %22421 = vmatprep.subr.mxu1 %v22848_v2 }
 0x7e9   :  { %22434 = vmatprep.subr.mxu0 %v22848_v2  ;;  %22422 = vmatpush3.msra.mxu1 %v22848_v2 }
 0x7ea   :  { %22435 = vmatpush3.msra.mxu0 %v22848_v2  ;;  %22423 = vmatprep.subr.mxu1 %v22848_v2 }
 0x7eb   :  { %22436 = vmatprep.subr.mxu0 %v22848_v2  ;;  %22424 = vmatpush3.msra.mxu1 %v22848_v2 }
 0x7ec   :  { %17265 = vmatprep.mubr.f32.mxu1 %v17264_v9  ;;  %22437 = vmatpush3.msra.mxu0 %v22848_v2 }
 0x7ed   :  { %17271 = vmatmul.mubr.f32.vlgmr.msra.gmra.mxu1 %v17270_v8  ;;  %22438 = vmatprep.subr.mxu0 %v22848_v2 }
 0x7ee   :  { %17528 = vmatprep.subr.mxu1 %v22849_v3  ;;  %22439 = vmatpush3.msra.mxu0 %v22848_v2  ;;  %v22075_v10 = vpop.f32.mrf.mxu1 }
 0x7ef   :  { %17529 = vmatpush1.msra.mxu1 %v22849_v3  ;;  %22440 = vmatprep.subr.mxu0 %v22848_v2 }
 0x7f0   :  { %22441 = vmatpush3.msra.mxu0 %v22848_v2  ;;  %17563 = vmatprep.mubr.f32.mxu1 %v28504_v17  ;;  %v22076_v37 = vpop.f32.mrf.mxu1 }
 0x7f1   :  { %22463 = vmatprep.subr.mxu1 %v22848_v2  ;;  %22442 = vmatprep.subr.mxu0 %v22848_v2  ;;  %v22077_v22 = vadd.f32 %v22076_v37, %v22075_v10 }
 0x7f2   :  { %17565 = vmatmul.mubr.f32.vlgmr.msra.gmra.mxu1 %v28508_v19  ;;  %22443 = vmatpush3.msra.mxu0 %v22848_v2  ;;  %v28571_v14 = vpop.f32.mrf.mxu1 }
 0x7f3   :  { %22464 = vmatpush3.msra.mxu1 %v22848_v2  ;;  %22444 = vmatprep.subr.mxu0 %v22848_v2  ;;  %v28575_v38 = vadd.f32 %v22077_v22, %v15607_v15 }
 0x7f4   :  { %22465 = vmatprep.subr.mxu1 %v22848_v2  ;;  %22445 = vmatpush3.msra.mxu0 %v22848_v2  ;;  %v15878_v5 = vpop.f32.mrf.mxu1 }
 0x7f5   :  { %22466 = vmatpush3.msra.mxu1 %v22848_v2  ;;  %22446 = vmatprep.subr.mxu0 %v22848_v2  ;;  %22778 = vrsqrt.f32 %v28575_v38  ;;  %vm15684_vm14 = vcmp.eq.f32.partialorder %v28575_v38, inf  ;;  %v15687_v26 = vand.u32 2147483648, %v28575_v38  ;;  %vm15686_vm15 = vcmp.eq.f32.partialorder %v28575_v38, 0.0 }
 0x7f6   :  { %22467 = vmatprep.subr.mxu1 %v22848_v2  ;;  %22447 = vmatpush3.msra.mxu0 %v22848_v2  ;;  %v18146_v5 = vsub.f32 %v28592_v21, %v28435_v12 }
 0x7f7   :  { %22468 = vmatpush3.msra.mxu1 %v22848_v2  ;;  %22448 = vmatprep.subr.mxu0 %v22848_v2  ;;  %v28596_v56 = vpop.f32.mrf.mxu1 }
 0x7f8   :  { %22469 = vmatprep.subr.mxu1 %v22848_v2  ;;  %22449 = vmatpush3.msra.mxu0 %v22848_v2 }
 0x7f9   :  { %22470 = vmatpush3.msra.mxu1 %v22848_v2  ;;  %22450 = vmatprep.subr.mxu0 %v22848_v2  ;;  %v15952_v35 = vpop.f32.mrf.mxu1 }
 0x7fa   :  { %22471 = vmatprep.subr.mxu1 %v22848_v2  ;;  %22451 = vmatpush3.msra.mxu0 %v22848_v2 }
 0x7fb   :  { %22472 = vmatpush3.msra.mxu1 %v22848_v2  ;;  %22452 = vmatprep.subr.mxu0 %v22848_v2 }
 0x7fc   :  { %22473 = vmatprep.subr.mxu1 %v22848_v2  ;;  %22453 = vmatpush3.msra.mxu0 %v22848_v2 }
 0x7fd   :  { %22474 = vmatpush3.msra.mxu1 %v22848_v2  ;;  %22454 = vmatprep.subr.mxu0 %v22848_v2 }
 0x7fe   :  { %22475 = vmatprep.subr.mxu1 %v22848_v2  ;;  %22455 = vmatpush3.msra.mxu0 %v22848_v2 }
 0x7ff   :  { %22476 = vmatpush3.msra.mxu1 %v22848_v2  ;;  %22456 = vmatprep.subr.mxu0 %v22848_v2 }
 0x800   :  { %22477 = vmatprep.subr.mxu1 %v22848_v2  ;;  %22457 = vmatpush3.msra.mxu0 %v22848_v2 }
 0x801   :  { %22478 = vmatpush3.msra.mxu1 %v22848_v2  ;;  %22458 = vmatprep.subr.mxu0 %v22848_v2 }
 0x802   :  { %v22779_v36 = vpop.eup %22778  ;;  %22479 = vmatprep.subr.mxu1 %v22848_v2  ;;  %22459 = vmatpush3.msra.mxu0 %v22848_v2 }
 0x803   :  { %22480 = vmatpush3.msra.mxu1 %v22848_v2  ;;  %17489 = vmatprep.mubr.f32.mxu0 %v17262_v51  ;;  %v22110_v39 = vpop.f32.mrf.mxu0  ;;  %v15683_v34 = vmul.f32 %v22779_v36, %v28575_v38 }
 0x804   :  { %22481 = vmatprep.subr.mxu1 %v22848_v2  ;;  %17493 = vmatmul.mubr.f32.vlgmr.msra.gmra.mxu0 %v17268_v61 }
 0x805   :  { %22482 = vmatpush3.msra.mxu1 %v22848_v2  ;;  %22498 = vmatprep.subr.mxu0 %v22848_v2  ;;  %v22111_v27 = vpop.f32.mrf.mxu0  ;;  %v15685_v30 = vsel %vm15684_vm14, %v28575_v38, %v15683_v34  ;;  %v18145_v38 = vsub.f32 %v28587_v40, %v28428_v20  ;;  %v18148_v40 = vmul.f32 %v18146_v5, %v18146_v5 }
 0x806   :  { %22483 = vmatprep.subr.mxu1 %v22848_v2  ;;  %22499 = vmatpush3.msra.mxu0 %v22848_v2  ;;  %v22112_v43 = vadd.f32 %v22111_v27, %v22110_v39  ;;  %v15688_v41 = vsel %vm15686_vm15, %v15687_v26, %v15685_v30 }
 0x807   :  { %22484 = vmatpush3.msra.mxu1 %v22848_v2  ;;  %22500 = vmatprep.subr.mxu0 %v22848_v2  ;;  %v15689_v49 = vsub.f32 %v23789_v23, %v15688_v41  ;;  %v18147_v20 = vmul.f32 %v18145_v38, %v18145_v38 }
 0x808   :  { %22485 = vmatprep.subr.mxu1 %v22848_v2  ;;  %22501 = vmatpush3.msra.mxu0 %v22848_v2  ;;  %v15877_v45 = vadd.f32 %v22112_v43, %v28571_v14  ;;  %v28650_v42 = vpop.f32.mrf.mxu0 }
 0x809   :  { %22486 = vmatpush3.msra.mxu1 %v22848_v2  ;;  %22502 = vmatprep.subr.mxu0 %v22848_v2  ;;  %v15690_v53 = vadd.f32 0.2, %v15689_v49  ;;  %v18151_v21 = vcombine.low %v18147_v20, %v18148_v40 }
 0x80a   :  { %22487 = vmatprep.subr.mxu1 %v22848_v2  ;;  %22503 = vmatpush3.msra.mxu0 %v22848_v2  ;;  %v16100_v44 = vpop.f32.mrf.mxu0  ;;  %v15951_v50 = vadd.f32 %v28596_v56, %v15877_v45 }
 0x80b   :  { %22488 = vmatpush3.msra.mxu1 %v22848_v2  ;;  %22504 = vmatprep.subr.mxu0 %v22848_v2  ;;  %v15691_v32 = vmax.f32 %v15690_v53, 0.0  ;;  %v18158_v46 = vrot.slane %v18151_v21, %v22893_v16 }
 0x80c   :  { %22489 = vmatprep.subr.mxu1 %v22848_v2  ;;  %22505 = vmatpush3.msra.mxu0 %v22848_v2 }
 0x80d   :  { %22490 = vmatpush3.msra.mxu1 %v22848_v2  ;;  %22506 = vmatprep.subr.mxu0 %v22848_v2  ;;  %v28665_v33 = vadd.f32 %v15691_v32, %v28324_v7  ;;  %v28676_v7 = vand.u32 4294901760, %v17685_v47  ;;  %v18159_v27 = vcombine.high %v18158_v46, %v18158_v46  ;;  %v18166_v49 = vrot.slane %v18158_v46, %v22893_v16 }
 0x80e   :  { %22491 = vmatprep.subr.mxu1 %v22848_v2  ;;  %22507 = vmatpush3.msra.mxu0 %v22848_v2 }
 0x80f   :  { %22492 = vmatpush3.msra.mxu1 %v22848_v2  ;;  %22508 = vmatprep.subr.mxu0 %v22848_v2  ;;  %v28689_v57 = vsub.f32 %v17685_v47, %v28676_v7  ;;  %v18173_v43 = vrot.slane %v18159_v27, %v22893_v16  ;;  %v28828_v45 = vand.u32 4294901760, %v18166_v49 }
 0x810   :  { %22493 = vmatprep.subr.mxu1 %v22848_v2  ;;  %22509 = vmatpush3.msra.mxu0 %v22848_v2 }
 0x811   :  { %22494 = vmatpush3.msra.mxu1 %v22848_v2  ;;  %17635 = vmatprep.mubr.f32.mxu1 %v28504_v17 }
 0x812   :  { %22510 = vmatprep.subr.mxu0 %v22848_v2  ;;  %17637 = vmatmul.mubr.f32.vlgmr.msra.gmra.mxu1 %v28508_v19  ;;  %v17754_v19 = vand.u32 4294901760, %v28689_v57 }
 0x813   :  { %22511 = vmatpush3.msra.mxu0 %v22848_v2  ;;  %17798 = vmatprep.subr.mxu1 %v22849_v3 }
 0x814   :  { %22512 = vmatprep.subr.mxu0 %v22848_v2  ;;  %17799 = vmatpush1.msra.mxu1 %v22849_v3  ;;  %v17755_v61 = vsub.f32 %v28689_v57, %v17754_v19 }
 0x815   :  { %22513 = vmatpush3.msra.mxu0 %v22848_v2  ;;  %17833 = vmatprep.mubr.f32.mxu1 %v28676_v7 }
 0x816   :  { %22514 = vmatprep.subr.mxu0 %v22848_v2  ;;  %17835 = vmatmul.mubr.f32.vlgmr.msra.gmra.mxu1 %v28680_v48  ;;  %v17756_v63 = vand.u32 4294901760, %v17755_v61 }
 0x817   :  { %22515 = vmatpush3.msra.mxu0 %v22848_v2  ;;  %17870 = vmatprep.subr.mxu1 %v22849_v3 }
 0x818   :  { %22516 = vmatprep.subr.mxu0 %v22848_v2  ;;  %17871 = vmatpush1.msra.mxu1 %v22849_v3  ;;  %v22145_v17 = vpop.f32.mrf.mxu1 }
 0x819   :  { %22517 = vmatpush3.msra.mxu0 %v22848_v2  ;;  %17906 = vmatprep.mubr.f32.mxu1 %v28689_v57 }
 0x81a   :  { %22518 = vmatprep.subr.mxu0 %v22848_v2  ;;  %22533 = vmatprep.subr.mxu1 %v22848_v2  ;;  %v22146_v4 = vpop.f32.mrf.mxu1 }
 0x81b   :  { %22519 = vmatpush3.msra.mxu0 %v22848_v2  ;;  %17909 = vmatmul.mubr.f32.vlgmr.msra.gmra.mxu1 %v28696_v52  ;;  %v22147_v51 = vadd.f32 %v22146_v4, %v22145_v17 }
 0x81c   :  { %22534 = vmatpush3.msra.mxu1 %v22848_v2  ;;  %22520 = vmatprep.subr.mxu0 %v22848_v2 }
 0x81d   :  { %22535 = vmatprep.subr.mxu1 %v22848_v2  ;;  %22521 = vmatpush3.msra.mxu0 %v22848_v2  ;;  %v16027_v60 = vadd.f32 %v22147_v51, %v15951_v50 }
 0x81e   :  { %22536 = vmatpush3.msra.mxu1 %v22848_v2  ;;  %22522 = vmatprep.subr.mxu0 %v22848_v2 }
 0x81f   :  { %22537 = vmatprep.subr.mxu1 %v22848_v2  ;;  %22523 = vmatpush3.msra.mxu0 %v22848_v2  ;;  %v16099_v6 = vadd.f32 %v28650_v42, %v16027_v60  ;;  %v28844_v42 = vsub.f32 %v18166_v49, %v28828_v45 }
 0x820   :  { %22538 = vmatpush3.msra.mxu1 %v22848_v2  ;;  %22524 = vmatprep.subr.mxu0 %v22848_v2 }
 0x821   :  { %22539 = vmatprep.subr.mxu1 %v22848_v2  ;;  %22525 = vmatpush3.msra.mxu0 %v22848_v2  ;;  %v18248_v44 = vand.u32 4294901760, %v28844_v42 }
 0x822   :  { %22540 = vmatpush3.msra.mxu1 %v22848_v2  ;;  %22526 = vmatprep.subr.mxu0 %v22848_v2 }
 0x823   :  { %22541 = vmatprep.subr.mxu1 %v22848_v2  ;;  %22527 = vmatpush3.msra.mxu0 %v22848_v2  ;;  %v18249_v58 = vsub.f32 %v28844_v42, %v18248_v44 }
 0x824   :  { %22542 = vmatpush3.msra.mxu1 %v22848_v2  ;;  %22528 = vmatprep.subr.mxu0 %v22848_v2 }
 0x825   :  { %22543 = vmatprep.subr.mxu1 %v22848_v2  ;;  %22529 = vmatpush3.msra.mxu0 %v22848_v2  ;;  %v18250_v52 = vand.u32 4294901760, %v18249_v58 }
 0x826   :  { %17757 = vmatprep.mubr.f32.mxu0 %v17756_v63  ;;  %22544 = vmatpush3.msra.mxu1 %v22848_v2 }
 0x827   :  { %17763 = vmatmul.mubr.f32.vlgmr.msra.gmra.mxu0 %v17762_v0  ;;  %22545 = vmatprep.subr.mxu1 %v22848_v2 }
 0x828   :  { %22546 = vmatpush3.msra.mxu1 %v22848_v2  ;;  %18020 = vmatprep.subr.mxu0 %v22849_v3  ;;  %v22180_v1 = vpop.f32.mrf.mxu0 }
 0x829   :  { %22547 = vmatprep.subr.mxu1 %v22848_v2  ;;  %18021 = vmatpush1.msra.mxu0 %v22849_v3 }
 0x82a   :  { %22548 = vmatpush3.msra.mxu1 %v22848_v2  ;;  %18055 = vmatprep.mubr.f32.mxu0 %v28676_v7  ;;  %v22181_v15 = vpop.f32.mrf.mxu0 }
 0x82b   :  { %22568 = vmatprep.subr.mxu0 %v22848_v2  ;;  %22549 = vmatprep.subr.mxu1 %v22848_v2  ;;  %v22182_v9 = vadd.f32 %v22181_v15, %v22180_v1 }
 0x82c   :  { %18057 = vmatmul.mubr.f32.vlgmr.msra.gmra.mxu0 %v28680_v48  ;;  %22550 = vmatpush3.msra.mxu1 %v22848_v2  ;;  %v16364_v8 = vpop.f32.mrf.mxu0 }
 0x82d   :  { %22569 = vmatpush3.msra.mxu0 %v22848_v2  ;;  %22551 = vmatprep.subr.mxu1 %v22848_v2  ;;  %v16171_v10 = vadd.f32 %v22182_v9, %v16099_v6 }
 0x82e   :  { %22570 = vmatprep.subr.mxu0 %v22848_v2  ;;  %22552 = vmatpush3.msra.mxu1 %v22848_v2  ;;  %v16366_v37 = vpop.f32.mrf.mxu0 }
 0x82f   :  { %22571 = vmatpush3.msra.mxu0 %v22848_v2  ;;  %22553 = vmatprep.subr.mxu1 %v22848_v2  ;;  %22780 = vrsqrt.f32 %v16171_v10  ;;  %vm16176_vm0 = vcmp.eq.f32.partialorder %v16171_v10, inf  ;;  %v16179_v25 = vand.u32 2147483648, %v16171_v10  ;;  %vm16178_vm1 = vcmp.eq.f32.partialorder %v16171_v10, 0.0 }
 0x830   :  { %22572 = vmatprep.subr.mxu0 %v22848_v2  ;;  %22554 = vmatpush3.msra.mxu1 %v22848_v2 }
 0x831   :  { %22573 = vmatpush3.msra.mxu0 %v22848_v2  ;;  %22555 = vmatprep.subr.mxu1 %v22848_v2  ;;  %v16438_v22 = vpop.f32.mrf.mxu0 }
 0x832   :  { %22574 = vmatprep.subr.mxu0 %v22848_v2  ;;  %22556 = vmatpush3.msra.mxu1 %v22848_v2 }
 0x833   :  { %22575 = vmatpush3.msra.mxu0 %v22848_v2  ;;  %22557 = vmatprep.subr.mxu1 %v22848_v2  ;;  %v16440_v14 = vpop.f32.mrf.mxu0 }
 0x834   :  { %22576 = vmatprep.subr.mxu0 %v22848_v2  ;;  %22558 = vmatpush3.msra.mxu1 %v22848_v2 }
 0x835   :  { %22577 = vmatpush3.msra.mxu0 %v22848_v2  ;;  %22559 = vmatprep.subr.mxu1 %v22848_v2 }
 0x836   :  { %22578 = vmatprep.subr.mxu0 %v22848_v2  ;;  %22560 = vmatpush3.msra.mxu1 %v22848_v2 }
 0x837   :  { %22579 = vmatpush3.msra.mxu0 %v22848_v2  ;;  %22561 = vmatprep.subr.mxu1 %v22848_v2 }
 0x838   :  { %22580 = vmatprep.subr.mxu0 %v22848_v2  ;;  %22562 = vmatpush3.msra.mxu1 %v22848_v2 }
 0x839   :  { %22581 = vmatpush3.msra.mxu0 %v22848_v2  ;;  %22563 = vmatprep.subr.mxu1 %v22848_v2 }
 0x83a   :  { %22582 = vmatprep.subr.mxu0 %v22848_v2  ;;  %22564 = vmatpush3.msra.mxu1 %v22848_v2 }
 0x83b   :  { %22583 = vmatpush3.msra.mxu0 %v22848_v2  ;;  %17981 = vmatprep.mubr.f32.mxu1 %v17754_v19  ;;  %v22215_v12 = vpop.f32.mrf.mxu1 }
 0x83c   :  { %v22781_v56 = vpop.eup %22780  ;;  %22584 = vmatprep.subr.mxu0 %v22848_v2  ;;  %17985 = vmatmul.mubr.f32.vlgmr.msra.gmra.mxu1 %v17760_v55 }
 0x83d   :  { %22585 = vmatpush3.msra.mxu0 %v22848_v2  ;;  %22603 = vmatprep.subr.mxu1 %v22848_v2  ;;  %v22216_v35 = vpop.f32.mrf.mxu1  ;;  %v16175_v18 = vmul.f32 %v22781_v56, %v16171_v10 }
 0x83e   :  { %22586 = vmatprep.subr.mxu0 %v22848_v2  ;;  %22604 = vmatpush3.msra.mxu1 %v22848_v2  ;;  %v22217_v54 = vadd.f32 %v22216_v35, %v22215_v12 }
 0x83f   :  { %22587 = vmatpush3.msra.mxu0 %v22848_v2  ;;  %22605 = vmatprep.subr.mxu1 %v22848_v2  ;;  %v16177_v31 = vsel %vm16176_vm0, %v16171_v10, %v16175_v18 }
 0x840   :  { %22588 = vmatprep.subr.mxu0 %v22848_v2  ;;  %22606 = vmatpush3.msra.mxu1 %v22848_v2  ;;  %v16365_v29 = vadd.f32 %v22217_v54, %v16364_v8  ;;  %v28794_v13 = vpop.f32.mrf.mxu1  ;;  %v16180_v36 = vsel %vm16178_vm1, %v16179_v25, %v16177_v31 }
 0x841   :  { %22589 = vmatpush3.msra.mxu0 %v22848_v2  ;;  %22607 = vmatprep.subr.mxu1 %v22848_v2  ;;  %v16181_v39 = vsub.f32 %v23789_v23, %v16180_v36 }
 0x842   :  { %22590 = vmatprep.subr.mxu0 %v22848_v2  ;;  %22608 = vmatpush3.msra.mxu1 %v22848_v2  ;;  %v16588_v34 = vpop.f32.mrf.mxu1  ;;  %v16439_v26 = vadd.f32 %v16438_v22, %v16365_v29 }
 0x843   :  { %22591 = vmatpush3.msra.mxu0 %v22848_v2  ;;  %22609 = vmatprep.subr.mxu1 %v22848_v2  ;;  %v16182_v28 = vadd.f32 0.5, %v16181_v39 }
 0x844   :  { %22592 = vmatprep.subr.mxu0 %v22848_v2  ;;  %22610 = vmatpush3.msra.mxu1 %v22848_v2 }
 0x845   :  { %22593 = vmatpush3.msra.mxu0 %v22848_v2  ;;  %22611 = vmatprep.subr.mxu1 %v22848_v2  ;;  %v16183_v30 = vmax.f32 %v16182_v28, 0.0 }
 0x846   :  { %22594 = vmatprep.subr.mxu0 %v22848_v2  ;;  %22612 = vmatpush3.msra.mxu1 %v22848_v2 }
 0x847   :  { %22595 = vmatpush3.msra.mxu0 %v22848_v2  ;;  %22613 = vmatprep.subr.mxu1 %v22848_v2  ;;  %v28813_v41 = vadd.f32 %v16183_v30, %v28493_v24  ;;  %v28824_v24 = vand.u32 4294901760, %v18173_v43 }
 0x848   :  { %22596 = vmatprep.subr.mxu0 %v22848_v2  ;;  %22614 = vmatpush3.msra.mxu1 %v22848_v2 }
 0x849   :  { %22597 = vmatpush3.msra.mxu0 %v22848_v2  ;;  %22615 = vmatprep.subr.mxu1 %v22848_v2  ;;  %v28837_v16 = vsub.f32 %v18173_v43, %v28824_v24 }
 0x84a   :  { %22598 = vmatprep.subr.mxu0 %v22848_v2  ;;  %22616 = vmatpush3.msra.mxu1 %v22848_v2 }
 0x84b   :  { %22599 = vmatpush3.msra.mxu0 %v22848_v2  ;;  %18127 = vmatprep.mubr.f32.mxu0 %v28676_v7  ;;  %v18242_v59 = vand.u32 4294901760, %v28837_v16 }
 0x84c   :  { %22617 = vmatprep.subr.mxu1 %v22848_v2  ;;  %18129 = vmatmul.mubr.f32.vlgmr.msra.gmra.mxu0 %v28680_v48 }
 0x84d   :  { %22618 = vmatpush3.msra.mxu1 %v22848_v2  ;;  %18286 = vmatprep.subr.mxu0 %v22849_v3  ;;  %v18243_v47 = vsub.f32 %v28837_v16, %v18242_v59 }
 0x84e   :  { %22619 = vmatprep.subr.mxu1 %v22848_v2  ;;  %18287 = vmatpush1.msra.mxu0 %v22849_v3 }
 0x84f   :  { %22620 = vmatpush3.msra.mxu1 %v22848_v2  ;;  %18321 = vmatprep.mubr.f32.mxu0 %v28824_v24  ;;  %v18244_v57 = vand.u32 4294901760, %v18243_v47 }
 0x850   :  { %22621 = vmatprep.subr.mxu1 %v22848_v2  ;;  %18323 = vmatmul.mubr.f32.vlgmr.msra.gmra.mxu0 %v28828_v45 }
 0x851   :  { %22622 = vmatpush3.msra.mxu1 %v22848_v2  ;;  %18358 = vmatprep.subr.mxu0 %v22849_v3 }
 0x852   :  { %22623 = vmatprep.subr.mxu1 %v22848_v2  ;;  %18359 = vmatpush1.msra.mxu0 %v22849_v3  ;;  %v22250_v53 = vpop.f32.mrf.mxu0 }
 0x853   :  { %22624 = vmatpush3.msra.mxu1 %v22848_v2  ;;  %18394 = vmatprep.mubr.f32.mxu0 %v28837_v16 }
 0x854   :  { %22625 = vmatprep.subr.mxu1 %v22848_v2  ;;  %22638 = vmatprep.subr.mxu0 %v22848_v2  ;;  %v22251_v50 = vpop.f32.mrf.mxu0 }
 0x855   :  { %22626 = vmatpush3.msra.mxu1 %v22848_v2  ;;  %18397 = vmatmul.mubr.f32.vlgmr.msra.gmra.mxu0 %v28844_v42  ;;  %v22252_v32 = vadd.f32 %v22251_v50, %v22250_v53 }
 0x856   :  { %22639 = vmatpush3.msra.mxu0 %v22848_v2  ;;  %22627 = vmatprep.subr.mxu1 %v22848_v2 }
 0x857   :  { %22640 = vmatprep.subr.mxu0 %v22848_v2  ;;  %22628 = vmatpush3.msra.mxu1 %v22848_v2  ;;  %v16515_v7 = vadd.f32 %v22252_v32, %v16439_v26 }
 0x858   :  { %22641 = vmatpush3.msra.mxu0 %v22848_v2  ;;  %22629 = vmatprep.subr.mxu1 %v22848_v2 }
 0x859   :  { %22642 = vmatprep.subr.mxu0 %v22848_v2  ;;  %22630 = vmatpush3.msra.mxu1 %v22848_v2  ;;  %v16587_v48 = vadd.f32 %v28794_v13, %v16515_v7 }
 0x85a   :  { %22643 = vmatpush3.msra.mxu0 %v22848_v2  ;;  %22631 = vmatprep.subr.mxu1 %v22848_v2 }
 0x85b   :  { %22644 = vmatprep.subr.mxu0 %v22848_v2  ;;  %22632 = vmatpush3.msra.mxu1 %v22848_v2 }
 0x85c   :  { %22645 = vmatpush3.msra.mxu0 %v22848_v2  ;;  %22633 = vmatprep.subr.mxu1 %v22848_v2 }
 0x85d   :  { %22646 = vmatprep.subr.mxu0 %v22848_v2  ;;  %22634 = vmatpush3.msra.mxu1 %v22848_v2 }
 0x85e   :  { %18245 = vmatprep.mubr.f32.mxu1 %v18244_v57  ;;  %22647 = vmatpush3.msra.mxu0 %v22848_v2 }
 0x85f   :  { %18251 = vmatmul.mubr.f32.vlgmr.msra.gmra.mxu1 %v18250_v52  ;;  %22648 = vmatprep.subr.mxu0 %v22848_v2 }
 0x860   :  { %18508 = vmatprep.subr.mxu1 %v22849_v3  ;;  %22649 = vmatpush3.msra.mxu0 %v22848_v2  ;;  %v22285_v17 = vpop.f32.mrf.mxu1 }
 0x861   :  { %18509 = vmatpush1.msra.mxu1 %v22849_v3  ;;  %22650 = vmatprep.subr.mxu0 %v22848_v2 }
 0x862   :  { %22651 = vmatpush3.msra.mxu0 %v22848_v2  ;;  %18543 = vmatprep.mubr.f32.mxu1 %v28824_v24  ;;  %v22286_v19 = vpop.f32.mrf.mxu1 }
 0x863   :  { %22673 = vmatprep.subr.mxu1 %v22848_v2  ;;  %22652 = vmatprep.subr.mxu0 %v22848_v2  ;;  %v22287_v4 = vadd.f32 %v22286_v19, %v22285_v17 }
 0x864   :  { %18545 = vmatmul.mubr.f32.vlgmr.msra.gmra.mxu1 %v28828_v45  ;;  %22653 = vmatpush3.msra.mxu0 %v22848_v2  ;;  %v16856_v55 = vpop.f32.mrf.mxu1 }
 0x865   :  { %22674 = vmatpush3.msra.mxu1 %v22848_v2  ;;  %22654 = vmatprep.subr.mxu0 %v22848_v2  ;;  %v16659_v3 = vadd.f32 %v22287_v4, %v16587_v48 }
 0x866   :  { %22675 = vmatprep.subr.mxu1 %v22848_v2  ;;  %22655 = vmatpush3.msra.mxu0 %v22848_v2  ;;  %v16858_v51 = vpop.f32.mrf.mxu1 }
 0x867   :  { %22676 = vmatpush3.msra.mxu1 %v22848_v2  ;;  %22656 = vmatprep.subr.mxu0 %v22848_v2  ;;  %22782 = vrsqrt.f32 %v16659_v3  ;;  %vm16664_vm2 = vcmp.eq.f32.partialorder %v16659_v3, inf  ;;  %v16667_v0 = vand.u32 2147483648, %v16659_v3  ;;  %vm16666_vm3 = vcmp.eq.f32.partialorder %v16659_v3, 0.0 }
 0x868   :  { %22677 = vmatprep.subr.mxu1 %v22848_v2  ;;  %22657 = vmatpush3.msra.mxu0 %v22848_v2 }
 0x869   :  { %22678 = vmatpush3.msra.mxu1 %v22848_v2  ;;  %22658 = vmatprep.subr.mxu0 %v22848_v2  ;;  %v16930_v60 = vpop.f32.mrf.mxu1 }
 0x86a   :  { %22679 = vmatprep.subr.mxu1 %v22848_v2  ;;  %22659 = vmatpush3.msra.mxu0 %v22848_v2 }
 0x86b   :  { %22680 = vmatpush3.msra.mxu1 %v22848_v2  ;;  %22660 = vmatprep.subr.mxu0 %v22848_v2  ;;  %v16932_v61 = vpop.f32.mrf.mxu1 }
 0x86c   :  { %22681 = vmatprep.subr.mxu1 %v22848_v2  ;;  %22661 = vmatpush3.msra.mxu0 %v22848_v2 }
 0x86d   :  { %22682 = vmatpush3.msra.mxu1 %v22848_v2  ;;  %22662 = vmatprep.subr.mxu0 %v22848_v2 }
 0x86e   :  { %22683 = vmatprep.subr.mxu1 %v22848_v2  ;;  %22663 = vmatpush3.msra.mxu0 %v22848_v2 }
 0x86f   :  { %22684 = vmatpush3.msra.mxu1 %v22848_v2  ;;  %22664 = vmatprep.subr.mxu0 %v22848_v2 }
 0x870   :  { %22685 = vmatprep.subr.mxu1 %v22848_v2  ;;  %22665 = vmatpush3.msra.mxu0 %v22848_v2 }
 0x871   :  { %22686 = vmatpush3.msra.mxu1 %v22848_v2  ;;  %22666 = vmatprep.subr.mxu0 %v22848_v2 }
 0x872   :  { %22687 = vmatprep.subr.mxu1 %v22848_v2  ;;  %22667 = vmatpush3.msra.mxu0 %v22848_v2 }
 0x873   :  { %22688 = vmatpush3.msra.mxu1 %v22848_v2  ;;  %22668 = vmatprep.subr.mxu0 %v22848_v2 }
 0x874   :  { %v22783_v62 = vpop.eup %22782  ;;  %22689 = vmatprep.subr.mxu1 %v22848_v2  ;;  %22669 = vmatpush3.msra.mxu0 %v22848_v2 }
 0x875   :  { %22690 = vmatpush3.msra.mxu1 %v22848_v2  ;;  %18469 = vmatprep.mubr.f32.mxu0 %v18242_v59  ;;  %v22320_v6 = vpop.f32.mrf.mxu0  ;;  %v16663_v63 = vmul.f32 %v22783_v62, %v16659_v3 }
 0x876   :  { %22691 = vmatprep.subr.mxu1 %v22848_v2  ;;  %18473 = vmatmul.mubr.f32.vlgmr.msra.gmra.mxu0 %v18248_v44 }
 0x877   :  { %22692 = vmatpush3.msra.mxu1 %v22848_v2  ;;  %18615 = vmatprep.mubr.f32.mxu1 %v28824_v24  ;;  %v22321_v1 = vpop.f32.mrf.mxu0  ;;  %v16665_v15 = vsel %vm16664_vm2, %v16659_v3, %v16663_v63 }
 0x878   :  { %22693 = vmatprep.subr.mxu1 %v22848_v2  ;;  %v22322_v9 = vadd.f32 %v22321_v1, %v22320_v6  ;;  %v16668_v8 = vsel %vm16666_vm3, %v16667_v0, %v16665_v15 }
 0x879   :  { %22694 = vmatpush3.msra.mxu1 %v22848_v2  ;;  %v16669_v10 = vsub.f32 %v23789_v23, %v16668_v8 }
 0x87a   :  { %22695 = vmatprep.subr.mxu1 %v22848_v2  ;;  %v16857_v37 = vadd.f32 %v22322_v9, %v16856_v55  ;;  %v17078_v22 = vpop.f32.mrf.mxu0 }
 0x87b   :  { %22696 = vmatpush3.msra.mxu1 %v22848_v2  ;;  %v16670_v14 = vadd.f32 0.2, %v16669_v10 }
 0x87c   :  { %22697 = vmatprep.subr.mxu1 %v22848_v2  ;;  %v17080_v38 = vpop.f32.mrf.mxu0  ;;  %v16931_v5 = vadd.f32 %v16930_v60, %v16857_v37 }
 0x87d   :  { %22698 = vmatpush3.msra.mxu1 %v22848_v2  ;;  %v16671_v20 = vmax.f32 %v16670_v14, 0.0 }
 0x87e   :  { %22699 = vmatprep.subr.mxu1 %v22848_v2 }
 0x87f   :  { %22700 = vmatpush3.msra.mxu1 %v22848_v2  ;;  %v28941_v40 = vadd.f32 %v16671_v20, %v28665_v33 }
 0x880   :  { %22701 = vmatprep.subr.mxu1 %v22848_v2 }
 0x881   :  { %22702 = vmatpush3.msra.mxu1 %v22848_v2 }
 0x882   :  { %22703 = vmatprep.subr.mxu1 %v22848_v2 }
 0x883   :  { %22704 = vmatpush3.msra.mxu1 %v22848_v2 }
 0x884   :  { %18617 = vmatmul.mubr.f32.vlgmr.msra.gmra.mxu1 %v28828_v45 }
 0x88a   :  { %v22355_v12 = vpop.f32.mrf.mxu1 }
 0x88c   :  { %v22356_v21 = vpop.f32.mrf.mxu1 }
 0x88d   :  { %v22357_v56 = vadd.f32 %v22356_v21, %v22355_v12 }
 0x88f   :  { %v17007_v35 = vadd.f32 %v22357_v56, %v16931_v5 }
 0x891   :  { %v17079_v18 = vadd.f32 %v17078_v22, %v17007_v35 }
 0x89a   :  { %v22390_v54 = vpop.f32.mrf.mxu0 }
 0x89c   :  { %v22391_v25 = vpop.f32.mrf.mxu0 }
 0x89d   :  { %v22392_v46 = vadd.f32 %v22391_v25, %v22390_v54 }
 0x89e   :  { %v17344_v33 = vpop.f32.mrf.mxu0 }
 0x89f   :  { %v17151_v31 = vadd.f32 %v22392_v46, %v17079_v18 }
 0x8a0   :  { %v17346_v29 = vpop.f32.mrf.mxu0 }
 0x8a1   :  { %22784 = vrsqrt.f32 %v17151_v31  ;;  %vm17156_vm4 = vcmp.eq.f32.partialorder %v17151_v31, inf  ;;  %v17159_v28 = vand.u32 2147483648, %v17151_v31  ;;  %vm17158_vm5 = vcmp.eq.f32.partialorder %v17151_v31, 0.0 }
 0x8a3   :  { %v17418_v13 = vpop.f32.mrf.mxu0 }
 0x8a5   :  { %v17420_v36 = vpop.f32.mrf.mxu0 }
 0x8ad   :  { %v22425_v39 = vpop.f32.mrf.mxu1 }
 0x8ae   :  { %v22785_v34 = vpop.eup %22784 }
 0x8af   :  { %v22426_v26 = vpop.f32.mrf.mxu1  ;;  %v17155_v2 = vmul.f32 %v22785_v34, %v17151_v31 }
 0x8b0   :  { %v22427_v27 = vadd.f32 %v22426_v26, %v22425_v39 }
 0x8b1   :  { %v17157_v30 = vsel %vm17156_vm4, %v17151_v31, %v17155_v2 }
 0x8b2   :  { %v17345_v43 = vadd.f32 %v22427_v27, %v17344_v33  ;;  %v17566_v49 = vpop.f32.mrf.mxu1  ;;  %v17160_v24 = vsel %vm17158_vm5, %v17159_v28, %v17157_v30 }
 0x8b3   :  { %v17161_v45 = vsub.f32 %v23789_v23, %v17160_v24 }
 0x8b4   :  { %v17568_v16 = vpop.f32.mrf.mxu1  ;;  %v17419_v42 = vadd.f32 %v17418_v13, %v17345_v43 }
 0x8b5   :  { %v17162_v59 = vadd.f32 0.5, %v17161_v45 }
 0x8b7   :  { %v17163_v53 = vmax.f32 %v17162_v59, 0.0 }
 0x8b9   :  { %v17164_v44 = vadd.f32 %v17163_v53, %v28813_v41 }
 0x8c4   :  { %v22460_v50 = vpop.f32.mrf.mxu0 }
 0x8c6   :  { %v22461_v32 = vpop.f32.mrf.mxu0 }
 0x8c7   :  { %v22462_v47 = vadd.f32 %v22461_v32, %v22460_v50 }
 0x8c9   :  { %v17495_v58 = vadd.f32 %v22462_v47, %v17419_v42 }
 0x8cb   :  { %v17567_v7 = vadd.f32 %v17566_v49, %v17495_v58 }
 0x8d2   :  { %v22495_v48 = vpop.f32.mrf.mxu1 }
 0x8d4   :  { %v22496_v57 = vpop.f32.mrf.mxu1 }
 0x8d5   :  { %v22497_v52 = vadd.f32 %v22496_v57, %v22495_v48 }
 0x8d6   :  { %v17836_v17 = vpop.f32.mrf.mxu1 }
 0x8d7   :  { %v17639_v19 = vadd.f32 %v22497_v52, %v17567_v7 }
 0x8d8   :  { %v17838_v4 = vpop.f32.mrf.mxu1 }
 0x8d9   :  { %22786 = vrsqrt.f32 %v17639_v19  ;;  %vm17644_vm6 = vcmp.eq.f32.partialorder %v17639_v19, inf  ;;  %v17647_v62 = vand.u32 2147483648, %v17639_v19  ;;  %vm17646_vm7 = vcmp.eq.f32.partialorder %v17639_v19, 0.0 }
 0x8db   :  { %v17910_v55 = vpop.f32.mrf.mxu1 }
 0x8dd   :  { %v17912_v3 = vpop.f32.mrf.mxu1 }
 0x8e6   :  { %v22787_v51 = vpop.eup %22786 }
 0x8e7   :  { %v22530_v60 = vpop.f32.mrf.mxu0  ;;  %v17643_v61 = vmul.f32 %v22787_v51, %v17639_v19 }
 0x8e9   :  { %v17645_v41 = vsel %vm17644_vm6, %v17639_v19, %v17643_v61  ;;  %v22531_v6 = vpop.f32.mrf.mxu0 }
 0x8ea   :  { %v17648_v63 = vsel %vm17646_vm7, %v17647_v62, %v17645_v41  ;;  %v22532_v22 = vadd.f32 %v22531_v6, %v22530_v60 }
 0x8eb   :  { %v17649_v0 = vsub.f32 %v23789_v23, %v17648_v63 }
 0x8ec   :  { %v18058_v1 = vpop.f32.mrf.mxu0  ;;  %v17837_v38 = vadd.f32 %v22532_v22, %v17836_v17 }
 0x8ed   :  { %v17650_v15 = vadd.f32 0.2, %v17649_v0 }
 0x8ee   :  { %v18060_v9 = vpop.f32.mrf.mxu0  ;;  %v17911_v20 = vadd.f32 %v17910_v55, %v17837_v38 }
 0x8ef   :  { %v17651_v8 = vmax.f32 %v17650_v15, 0.0 }
 0x8f1   :  { %v17652_v10 = vadd.f32 %v17651_v8, %v28941_v40 }
 0x8fc   :  { %v22565_v37 = vpop.f32.mrf.mxu1 }
 0x8fe   :  { %v22566_v14 = vpop.f32.mrf.mxu1 }
 0x8ff   :  { %v22567_v5 = vadd.f32 %v22566_v14, %v22565_v37 }
 0x901   :  { %v17987_v12 = vadd.f32 %v22567_v5, %v17911_v20 }
 0x903   :  { %v18059_v35 = vadd.f32 %v18058_v1, %v17987_v12 }
 0x90c   :  { %v22600_v21 = vpop.f32.mrf.mxu0 }
 0x90e   :  { %v22601_v56 = vpop.f32.mrf.mxu0 }
 0x90f   :  { %v22602_v18 = vadd.f32 %v22601_v56, %v22600_v21 }
 0x910   :  { %v18324_v54 = vpop.f32.mrf.mxu0 }
 0x911   :  { %v18131_v25 = vadd.f32 %v22602_v18, %v18059_v35 }
 0x912   :  { %v18326_v46 = vpop.f32.mrf.mxu0 }
 0x913   :  { %22788 = vrsqrt.f32 %v18131_v25  ;;  %vm18136_vm8 = vcmp.eq.f32.partialorder %v18131_v25, inf  ;;  %v18139_v39 = vand.u32 2147483648, %v18131_v25  ;;  %vm18138_vm9 = vcmp.eq.f32.partialorder %v18131_v25, 0.0 }
 0x915   :  { %v18398_v33 = vpop.f32.mrf.mxu0 }
 0x917   :  { %v18400_v31 = vpop.f32.mrf.mxu0 }
 0x91f   :  { %v22635_v29 = vpop.f32.mrf.mxu1 }
 0x920   :  { %v22789_v13 = vpop.eup %22788 }
 0x921   :  { %v22636_v40 = vpop.f32.mrf.mxu1  ;;  %v18135_v36 = vmul.f32 %v22789_v13, %v18131_v25 }
 0x922   :  { %v22637_v16 = vadd.f32 %v22636_v40, %v22635_v29 }
 0x923   :  { %v18137_v34 = vsel %vm18136_vm8, %v18131_v25, %v18135_v36 }
 0x924   :  { %v18546_v26 = vpop.f32.mrf.mxu1  ;;  %v18140_v2 = vsel %vm18138_vm9, %v18139_v39, %v18137_v34  ;;  %v18325_v59 = vadd.f32 %v22637_v16, %v18324_v54 }
 0x925   :  { %v18141_v27 = vsub.f32 %v23789_v23, %v18140_v2 }
 0x926   :  { %v18548_v28 = vpop.f32.mrf.mxu1  ;;  %v18399_v50 = vadd.f32 %v18398_v33, %v18325_v59 }
 0x927   :  { %v18142_v30 = vadd.f32 0.5, %v18141_v27 }
 0x929   :  { %v18143_v43 = vmax.f32 %v18142_v30, 0.0 }
 0x92b   :  { %v18144_v49 = vadd.f32 %v18143_v43, %v17164_v44 }
 0x92d   :  { %v18637_v24 = vsel %vm18636_vm10, %v18144_v49, 0.0 }
 0x92e   :  { %18638 = vadd.xlane.f32.xlu0 %v18637_v24 }
 0x936   :  { %v22670_v45 = vpop.f32.mrf.mxu0 }
 0x938   :  { %v22671_v42 = vpop.f32.mrf.mxu0 }
 0x939   :  { %v22672_v53 = vadd.f32 %v22671_v42, %v22670_v45 }
 0x93b   :  { %v18475_v32 = vadd.f32 %v22672_v53, %v18399_v50 }
 0x93d   :  { %v18547_v7 = vadd.f32 %v18546_v26, %v18475_v32 }
 0x944   :  { %v22705_v47 = vpop.f32.mrf.mxu1 }
 0x946   :  { %v22706_v58 = vpop.f32.mrf.mxu1 }
 0x947   :  { %v22707_v48 = vadd.f32 %v22706_v58, %v22705_v47 }
 0x949   :  { %v18619_v57 = vadd.f32 %v22707_v48, %v18547_v7 }
 0x94b   :  { %22790 = vrsqrt.f32 %v18619_v57  ;;  %vm18624_vm11 = vcmp.eq.f32.partialorder %v18619_v57, inf  ;;  %v18627_v44 = vand.u32 2147483648, %v18619_v57  ;;  %vm18626_vm12 = vcmp.eq.f32.partialorder %v18619_v57, 0.0 }
 0x958   :  { %v22791_v52 = vpop.eup %22790 }
 0x959   :  { %v18623_v17 = vmul.f32 %v22791_v52, %v18619_v57 }
 0x95b   :  { %v18625_v19 = vsel %vm18624_vm11, %v18619_v57, %v18623_v17 }
 0x95c   :  { %v18628_v4 = vsel %vm18626_vm12, %v18627_v44, %v18625_v19 }
 0x95d   :  { %v18629_v55 = vsub.f32 %v23789_v23, %v18628_v4 }
 0x95f   :  { %v18630_v3 = vadd.f32 0.2, %v18629_v55 }
 0x961   :  { %v18631_v51 = vmax.f32 %v18630_v3, 0.0 }
 0x963   :  { %v18632_v60 = vadd.f32 %v18631_v51, %v17652_v10 }
 0x965   :  { %v18647_v61 = vsel %vm18636_vm10, %v18632_v60, 0.0 }
 0x966   :  { %18648 = vadd.xlane.f32.xlu0 %v18647_v61 }
 0x9b7   :  { %v18639_v62 = vpop.xlane.xlu0 %18638 }
 0x9b8   :  { %v18640_v41 = vrot.slane %v18639_v62, 4 }
 0x9ba   :  { %v18641_v6 = vadd.f32 %v18640_v41, %v18639_v62 }
 0x9bc   :  { %v18642_v63 = vrot.slane %v18641_v6, 2 }
 0x9be   :  { %v18643_v0 = vadd.f32 %v18642_v63, %v18641_v6 }
 0x9c0   :  { %v18644_v1 = vrot.slane %v18643_v0, 1 }
 0x9c2   :  { %v18645_v15 = vadd.f32 %v18644_v1, %v18643_v0 }
 0x9c4   :  { %22708 = vpush %v18645_v15 }
 0x9ef   :  { %v18649_v9 = vpop.xlane.xlu0 %18648 }
 0x9f0   :  { %v18650_v8 = vrot.slane %v18649_v9, 4 }
 0x9f2   :  { %v18651_v37 = vadd.f32 %v18650_v8, %v18649_v9 }
 0x9f4   :  { %v18652_v22 = vrot.slane %v18651_v37, 2 }
 0x9f5   :  { %s22709_s0 = spop %22708 }
 0x9f6   :  { %v18653_v14 = vadd.f32 %v18652_v22, %v18651_v37  ;;  %v18657_v10 = vstv %s22709_s0 }
 0x9f8   :  { %v18654_v23 = vrot.slane %v18653_v14, 1 }
 0x9fa   :  { %v18655_v38 = vadd.f32 %v18654_v23, %v18653_v14 }
 0x9fc   :  { %22710 = vpush %v18655_v38 }
 0xa2d   :  { %s22711_s19 = spop %22710 }
 0xa2e   :  { %v18658_v5 = vstv %s22711_s19 }
 0xa2f   :  { %v18659_v20 = vsel %vm18635_vm13, %v18657_v10, %v18658_v5 }
 0xa30   :  { %18660 = vst [vmem:[#allocation2] sm:$0xff] %v18659_v20 }
 0xa31   :  { %22837 = shalt.err (!%p22834_p4)
}
 0xa32   :  { %18670 = dma.vmem_to_hbm [thread:$0]  %s18668_s18, 128, %s28961_s1, [#allocation3]  }
 0xa33   :  { %22846 = dma.done.wait [#allocation3], 128  }
 0xa34   :  { %22847 = vsyncadd [#allocation3], 4294967168 }
 0xa35   :  { %18674 = vsyncpa [#allocation3], 1 }

</bundles_post_ra>
